<compile_context>
chip_gen: v7x
topology: tpu7x:2x2x1
jax: 0.10.0
libtpu: 0.0.40
codegen_flags: <defaults>
</compile_context>

<pallas_src>
import functools

import jax
import jax.numpy as jnp
from jax.experimental import pallas as pl
from jax.experimental.pallas import tpu as pltpu


# ---------------------------------------------------------------------------
# Pallas kernels
# ---------------------------------------------------------------------------
def _matmul_bias_act_kernel(x_ref, w_ref, b_ref, o_ref, *, relu):
    acc = jnp.dot(x_ref[...], w_ref[...], preferred_element_type=jnp.float32)
    acc = acc + b_ref[...]                      # (1, N) broadcasts over rows
    if relu:
        acc = jnp.maximum(acc, 0.0)
    o_ref[...] = acc.astype(o_ref.dtype)


def _fc_fused_kernel(x_ref, w1_ref, b1_ref, w2_ref, b2_ref, o_ref):
    # fc1 (matmul+bias+relu) and fc2 (matmul+bias) in one kernel; the hidden
    # activation stays in VMEM/vregs, never round-trips to HBM.
    h = jnp.dot(x_ref[...], w1_ref[...], preferred_element_type=jnp.float32)
    h = jnp.maximum(h + b1_ref[...], 0.0)
    o = jnp.dot(h, w2_ref[...], preferred_element_type=jnp.float32) + b2_ref[...]
    o_ref[...] = o.astype(o_ref.dtype)


# ---------------------------------------------------------------------------
# pallas_call wrappers
# ---------------------------------------------------------------------------
_TILE_M_CAP = 512  # rows per grid step; double-buffered footprint stays far
                   # below the scoped-VMEM defaults on v5e (16 MiB) / v7x (32 MiB)


def _tile_m(M):
    # Full-dim block when small (always layout-legal even for odd M);
    # otherwise an 8-aligned tile; partial trailing blocks are handled by Pallas.
    return M if M <= _TILE_M_CAP else _TILE_M_CAP


def matmul_bias_relu(x, w, b2d, *, relu):
    """relu?(x @ w + b).  x:(M,K), w:(K,N), b2d:(1,N), all f32, no HBM padding."""
    M, K = x.shape
    K2, N = w.shape
    assert K == K2 and b2d.shape == (1, N)
    tm = _tile_m(M)
    return pl.pallas_call(
        functools.partial(_matmul_bias_act_kernel, relu=relu),
        out_shape=jax.ShapeDtypeStruct((M, N), jnp.float32),
        grid=(pl.cdiv(M, tm),),
        in_specs=[
            pl.BlockSpec((tm, K), lambda i: (i, 0)),   # full-K block (no zero pad)
            pl.BlockSpec((K, N), lambda i: (0, 0)),    # weight resident across grid
            pl.BlockSpec((1, N), lambda i: (0, 0)),
        ],
        out_specs=pl.BlockSpec((tm, N), lambda i: (i, 0)),
        compiler_params=pltpu.CompilerParams(dimension_semantics=("parallel",)),
    )(x, w, b2d)


def fc_head(feat, w1, b1, w2, b2):
    """Fused fc1(relu) -> fc2 head: one pallas_call, hidden kept on-chip."""
    M, K = feat.shape
    H = w1.shape[1]
    N = w2.shape[1]
    tm = _tile_m(M)
    return pl.pallas_call(
        _fc_fused_kernel,
        out_shape=jax.ShapeDtypeStruct((M, N), jnp.float32),
        grid=(pl.cdiv(M, tm),),
        in_specs=[
            pl.BlockSpec((tm, K), lambda i: (i, 0)),
            pl.BlockSpec((K, H), lambda i: (0, 0)),
            pl.BlockSpec((1, H), lambda i: (0, 0)),
            pl.BlockSpec((H, N), lambda i: (0, 0)),
            pl.BlockSpec((1, N), lambda i: (0, 0)),
        ],
        out_specs=pl.BlockSpec((tm, N), lambda i: (i, 0)),
        compiler_params=pltpu.CompilerParams(dimension_semantics=("parallel",)),
    )(feat, w1, b1, w2, b2)


# ---------------------------------------------------------------------------
# Conv2d (valid padding) = im2col (plain-JAX glue, fused under jit) + Pallas matmul
# ---------------------------------------------------------------------------
def conv2d_relu(x_nhwc, w2d, b2d, kh, kw, stride):
    N, H, W, C = x_nhwc.shape
    K, O = w2d.shape
    assert K == kh * kw * C
    oh = (H - kh) // stride + 1
    ow = (W - kw) // stride + 1
    # TODO(synk): strided window gathers are not expressible in a BlockSpec
    # index_map; the im2col stays as plain-JAX glue (fused by XLA under jit),
    # only the matmul+bias+relu hot path runs in Pallas.
    cols = [
        x_nhwc[:, i : i + stride * oh : stride, j : j + stride * ow : stride, :]
        for i in range(kh) for j in range(kw)
    ]
    patches = jnp.stack(cols, axis=3).reshape(N * oh * ow, kh * kw * C)
    y = matmul_bias_relu(patches, w2d, b2d, relu=True)
    return y.reshape(N, oh, ow, O)


# ---------------------------------------------------------------------------
# Parameter init (PyTorch layout) + one-time layout preparation
# ---------------------------------------------------------------------------
def _kaiming_uniform(key, shape, fan_in):
    bound = (6.0 / fan_in) ** 0.5
    return jax.random.uniform(key, shape, jnp.float32, -bound, bound)


def _conv_out(n, k, s):
    return (n - k) // s + 1


def init_convnet_params(key, input_shape, action_n):
    c_in, H, W = input_shape
    h3 = _conv_out(_conv_out(_conv_out(H, 8, 4), 4, 2), 3, 1)
    w3 = _conv_out(_conv_out(_conv_out(W, 8, 4), 4, 2), 3, 1)
    flatten_size = 64 * h3 * w3

    ks = jax.random.split(key, 5)
    return {
        "c1_w": _kaiming_uniform(ks[0], (32, c_in, 8, 8), c_in * 8 * 8),
        "c1_b": jnp.zeros((32,), jnp.float32),
        "c2_w": _kaiming_uniform(ks[1], (64, 32, 4, 4), 32 * 4 * 4),
        "c2_b": jnp.zeros((64,), jnp.float32),
        "c3_w": _kaiming_uniform(ks[2], (64, 64, 3, 3), 64 * 3 * 3),
        "c3_b": jnp.zeros((64,), jnp.float32),
        "fc1_w": _kaiming_uniform(ks[3], (512, flatten_size), flatten_size),  # (out, in)
        "fc1_b": jnp.zeros((512,), jnp.float32),
        "fc2_w": _kaiming_uniform(ks[4], (action_n, 512), 512),
        "fc2_b": jnp.zeros((action_n,), jnp.float32),
    }


def prepare_params(params, input_shape):
    """One-time weight layout transforms, hoisted out of the forward pass."""
    c_in, H, W = input_shape
    h3 = _conv_out(_conv_out(_conv_out(H, 8, 4), 4, 2), 3, 1)
    w3 = _conv_out(_conv_out(_conv_out(W, 8, 4), 4, 2), 3, 1)

    def conv_w(w_oihw):
        O, C, kh, kw = w_oihw.shape
        # (O,C,kh,kw) -> (kh,kw,C,O) -> (kh*kw*C, O), matching the patch ordering.
        return jnp.transpose(w_oihw, (2, 3, 1, 0)).reshape(kh * kw * C, O)

    # Fold the PyTorch NCHW-flatten permutation into fc1's weight so the forward
    # can flatten the NHWC feature map directly (no per-step feature transpose).
    fc1 = params["fc1_w"].reshape(512, 64, h3, w3)
    fc1 = jnp.transpose(fc1, (2, 3, 1, 0)).reshape(h3 * w3 * 64, 512)

    return {
        "c1_w": conv_w(params["c1_w"]), "c1_b": params["c1_b"].reshape(1, -1),
        "c2_w": conv_w(params["c2_w"]), "c2_b": params["c2_b"].reshape(1, -1),
        "c3_w": conv_w(params["c3_w"]), "c3_b": params["c3_b"].reshape(1, -1),
        "fc1_w": fc1,                   "fc1_b": params["fc1_b"].reshape(1, -1),
        "fc2_w": jnp.transpose(params["fc2_w"]),
        "fc2_b": params["fc2_b"].reshape(1, -1),
    }


# ---------------------------------------------------------------------------
# Forward pass (matches ConvNet.forward; input is NCHW like PyTorch)
# ---------------------------------------------------------------------------
@jax.jit
def convnet_forward(prep, x_nchw):
    x = jnp.transpose(x_nchw, (0, 2, 3, 1)).astype(jnp.float32)   # NCHW -> NHWC
    x = conv2d_relu(x, prep["c1_w"], prep["c1_b"], 8, 8, 4)
    x = conv2d_relu(x, prep["c2_w"], prep["c2_b"], 4, 4, 2)
    x = conv2d_relu(x, prep["c3_w"], prep["c3_b"], 3, 3, 1)
    feat = x.reshape(x.shape[0], -1)   # NHWC flatten; fc1_w pre-permuted to match
    return fc_head(feat, prep["fc1_w"], prep["fc1_b"], prep["fc2_w"], prep["fc2_b"])


# ---------------------------------------------------------------------------
# Pure-JAX reference (uses the original PyTorch-layout params)
# ---------------------------------------------------------------------------
def convnet_reference(params, x_nchw):
    def conv(x, w, b, s):
        y = jax.lax.conv_general_dilated(
            x, jnp.transpose(w, (2, 3, 1, 0)), (s, s), "VALID",
            dimension_numbers=("NHWC", "HWIO", "NHWC"))
        return jnp.maximum(y + b[None, None, None, :], 0.0)

    x = jnp.transpose(x_nchw, (0, 2, 3, 1))
    x = conv(x, params["c1_w"], params["c1_b"], 4)
    x = conv(x, params["c2_w"], params["c2_b"], 2)
    x = conv(x, params["c3_w"], params["c3_b"], 1)
    feat = jnp.transpose(x, (0, 3, 1, 2)).reshape(x.shape[0], -1)   # NCHW flatten
    h = jnp.maximum(feat @ params["fc1_w"].T + params["fc1_b"], 0.0)
    return h @ params["fc2_w"].T + params["fc2_b"]


if __name__ == "__main__":
    key = jax.random.PRNGKey(0)
    kp, kx = jax.random.split(key)

    batch = 2
    input_shape = (1, 80, 80)   # CHW, as in the module docstring
    action_n = 6

    params = init_convnet_params(kp, input_shape, action_n)
    prep = jax.tree_util.tree_map(jax.block_until_ready, prepare_params(params, input_shape))
    x = jax.random.uniform(kx, (batch,) + input_shape, jnp.float32)

    logits = jax.block_until_ready(convnet_forward(prep, x))
    assert logits.shape == (batch, action_n), logits.shape

    ref = jax.block_until_ready(convnet_reference(params, x))
    assert jnp.allclose(logits, ref, atol=1e-3, rtol=1e-3), (
        float(jnp.max(jnp.abs(logits - ref))))

    print("KERNEL_OK")
</pallas_src>

<mosaic_0001>
module attributes {stable_mosaic.version = 11 : i64} {
  func.func @_matmul_bias_act_kernel(%arg0: i32, %arg1: memref<512x64xf32, #tpu.memory_space<vmem>>, %arg2: memref<64x32xf32, #tpu.memory_space<vmem>>, %arg3: memref<1x32xf32, #tpu.memory_space<vmem>>, %arg4: memref<512x32xf32, #tpu.memory_space<vmem>>) attributes {dimension_semantics = [#tpu.dimension_semantics<parallel>], iteration_bounds = array<i64: 2>, scalar_prefetch = 0 : i64, scratch_operands = 0 : i64, tpu.core_type = #tpu.core_type<tc>, window_params = [{transform_indices = @transform_0, window_bounds = array<i64: 512, 64>}, {pipeline_mode = #tpu.pipeline_mode<synchronous>, transform_indices = @transform_1, window_bounds = array<i64: 64, 32>}, {pipeline_mode = #tpu.pipeline_mode<synchronous>, transform_indices = @transform_2, window_bounds = array<i64: 1, 32>}, {transform_indices = @transform_3, window_bounds = array<i64: 512, 32>}]} {
    %c0 = arith.constant 0 : index
    %c0_0 = arith.constant 0 : index
    %0 = vector.load %arg1[%c0, %c0_0] : memref<512x64xf32, #tpu.memory_space<vmem>>, vector<512x64xf32>
    %c0_1 = arith.constant 0 : index
    %c0_2 = arith.constant 0 : index
    %1 = vector.load %arg2[%c0_1, %c0_2] : memref<64x32xf32, #tpu.memory_space<vmem>>, vector<64x32xf32>
    %cst = arith.constant dense<0.000000e+00> : vector<512x32xf32>
    %2 = tpu.matmul %0, %1, %cst {dimension_numbers = #tpu.dot_dimension_numbers<[1], [0], [0], [1], [0, 0, 1, 1], [], []>} : vector<512x64xf32>, vector<64x32xf32>, vector<512x32xf32> -> vector<512x32xf32>
    %c0_3 = arith.constant 0 : index
    %c0_4 = arith.constant 0 : index
    %3 = vector.load %arg3[%c0_3, %c0_4] : memref<1x32xf32, #tpu.memory_space<vmem>>, vector<1x32xf32>
    %4 = vector.broadcast %3 : vector<1x32xf32> to vector<512x32xf32>
    %5 = arith.addf %2, %4 : vector<512x32xf32>
    %cst_5 = arith.constant 0.000000e+00 : f32
    %6 = vector.broadcast %cst_5 : f32 to vector<512x32xf32>
    %7 = arith.maximumf %5, %6 : vector<512x32xf32>
    %c0_6 = arith.constant 0 : index
    %c0_7 = arith.constant 0 : index
    %8 = vector.load %arg4[%c0_6, %c0_7] : memref<512x32xf32, #tpu.memory_space<vmem>>, vector<512x32xf32>
    tpu.vector_store %arg4[%c0_6, %c0_7], %7 {strides = array<i32>} : memref<512x32xf32, #tpu.memory_space<vmem>>, vector<512x32xf32>,
    return
  }
  func.func @transform_0(%arg0: i32) -> (i32, i32) {
    %c0_i32 = arith.constant 0 : i32
    %c0_i32_0 = arith.constant 0 : i32
    return %arg0, %c0_i32 : i32, i32
  }
  func.func @transform_1(%arg0: i32) -> (i32, i32) {
    %c0_i32 = arith.constant 0 : i32
    %c0_i32_0 = arith.constant 0 : i32
    %c0_i32_1 = arith.constant 0 : i32
    return %c0_i32, %c0_i32_0 : i32, i32
  }
  func.func @transform_2(%arg0: i32) -> (i32, i32) {
    %c0_i32 = arith.constant 0 : i32
    %c0_i32_0 = arith.constant 0 : i32
    %c0_i32_1 = arith.constant 0 : i32
    return %c0_i32, %c0_i32_0 : i32, i32
  }
  func.func @transform_3(%arg0: i32) -> (i32, i32) {
    %c0_i32 = arith.constant 0 : i32
    %c0_i32_0 = arith.constant 0 : i32
    return %arg0, %c0_i32 : i32, i32
  }
}

module attributes {stable_mosaic.version = 11 : i64} {
  func.func @_matmul_bias_act_kernel(%arg0: i32, %arg1: memref<128x512xf32, #tpu.memory_space<vmem>>, %arg2: memref<512x64xf32, #tpu.memory_space<vmem>>, %arg3: memref<1x64xf32, #tpu.memory_space<vmem>>, %arg4: memref<128x64xf32, #tpu.memory_space<vmem>>) attributes {dimension_semantics = [#tpu.dimension_semantics<parallel>], iteration_bounds = array<i64: 1>, scalar_prefetch = 0 : i64, scratch_operands = 0 : i64, tpu.core_type = #tpu.core_type<tc>, window_params = [{transform_indices = @transform_0, window_bounds = array<i64: 128, 512>}, {pipeline_mode = #tpu.pipeline_mode<synchronous>, transform_indices = @transform_1, window_bounds = array<i64: 512, 64>}, {pipeline_mode = #tpu.pipeline_mode<synchronous>, transform_indices = @transform_2, window_bounds = array<i64: 1, 64>}, {transform_indices = @transform_3, window_bounds = array<i64: 128, 64>}]} {
    %c0 = arith.constant 0 : index
    %c0_0 = arith.constant 0 : index
    %0 = vector.load %arg1[%c0, %c0_0] : memref<128x512xf32, #tpu.memory_space<vmem>>, vector<128x512xf32>
    %c0_1 = arith.constant 0 : index
    %c0_2 = arith.constant 0 : index
    %1 = vector.load %arg2[%c0_1, %c0_2] : memref<512x64xf32, #tpu.memory_space<vmem>>, vector<512x64xf32>
    %cst = arith.constant dense<0.000000e+00> : vector<128x64xf32>
    %2 = tpu.matmul %0, %1, %cst {dimension_numbers = #tpu.dot_dimension_numbers<[1], [0], [0], [1], [0, 0, 1, 1], [], []>} : vector<128x512xf32>, vector<512x64xf32>, vector<128x64xf32> -> vector<128x64xf32>
    %c0_3 = arith.constant 0 : index
    %c0_4 = arith.constant 0 : index
    %3 = vector.load %arg3[%c0_3, %c0_4] : memref<1x64xf32, #tpu.memory_space<vmem>>, vector<1x64xf32>
    %4 = vector.broadcast %3 : vector<1x64xf32> to vector<128x64xf32>
    %5 = arith.addf %2, %4 : vector<128x64xf32>
    %cst_5 = arith.constant 0.000000e+00 : f32
    %6 = vector.broadcast %cst_5 : f32 to vector<128x64xf32>
    %7 = arith.maximumf %5, %6 : vector<128x64xf32>
    %c0_6 = arith.constant 0 : index
    %c0_7 = arith.constant 0 : index
    %8 = vector.load %arg4[%c0_6, %c0_7] : memref<128x64xf32, #tpu.memory_space<vmem>>, vector<128x64xf32>
    tpu.vector_store %arg4[%c0_6, %c0_7], %7 {strides = array<i32>} : memref<128x64xf32, #tpu.memory_space<vmem>>, vector<128x64xf32>,
    return
  }
  func.func @transform_0(%arg0: i32) -> (i32, i32) {
    %c0_i32 = arith.constant 0 : i32
    %c0_i32_0 = arith.constant 0 : i32
    return %arg0, %c0_i32 : i32, i32
  }
  func.func @transform_1(%arg0: i32) -> (i32, i32) {
    %c0_i32 = arith.constant 0 : i32
    %c0_i32_0 = arith.constant 0 : i32
    %c0_i32_1 = arith.constant 0 : i32
    return %c0_i32, %c0_i32_0 : i32, i32
  }
  func.func @transform_2(%arg0: i32) -> (i32, i32) {
    %c0_i32 = arith.constant 0 : i32
    %c0_i32_0 = arith.constant 0 : i32
    %c0_i32_1 = arith.constant 0 : i32
    return %c0_i32, %c0_i32_0 : i32, i32
  }
  func.func @transform_3(%arg0: i32) -> (i32, i32) {
    %c0_i32 = arith.constant 0 : i32
    %c0_i32_0 = arith.constant 0 : i32
    return %arg0, %c0_i32 : i32, i32
  }
}

module attributes {stable_mosaic.version = 11 : i64} {
  func.func @_matmul_bias_act_kernel(%arg0: i32, %arg1: memref<72x576xf32, #tpu.memory_space<vmem>>, %arg2: memref<576x64xf32, #tpu.memory_space<vmem>>, %arg3: memref<1x64xf32, #tpu.memory_space<vmem>>, %arg4: memref<72x64xf32, #tpu.memory_space<vmem>>) attributes {dimension_semantics = [#tpu.dimension_semantics<parallel>], iteration_bounds = array<i64: 1>, scalar_prefetch = 0 : i64, scratch_operands = 0 : i64, tpu.core_type = #tpu.core_type<tc>, window_params = [{transform_indices = @transform_0, window_bounds = array<i64: 72, 576>}, {pipeline_mode = #tpu.pipeline_mode<synchronous>, transform_indices = @transform_1, window_bounds = array<i64: 576, 64>}, {pipeline_mode = #tpu.pipeline_mode<synchronous>, transform_indices = @transform_2, window_bounds = array<i64: 1, 64>}, {transform_indices = @transform_3, window_bounds = array<i64: 72, 64>}]} {
    %c0 = arith.constant 0 : index
    %c0_0 = arith.constant 0 : index
    %0 = vector.load %arg1[%c0, %c0_0] : memref<72x576xf32, #tpu.memory_space<vmem>>, vector<72x576xf32>
    %c0_1 = arith.constant 0 : index
    %c0_2 = arith.constant 0 : index
    %1 = vector.load %arg2[%c0_1, %c0_2] : memref<576x64xf32, #tpu.memory_space<vmem>>, vector<576x64xf32>
    %cst = arith.constant dense<0.000000e+00> : vector<72x64xf32>
    %2 = tpu.matmul %0, %1, %cst {dimension_numbers = #tpu.dot_dimension_numbers<[1], [0], [0], [1], [0, 0, 1, 1], [], []>} : vector<72x576xf32>, vector<576x64xf32>, vector<72x64xf32> -> vector<72x64xf32>
    %c0_3 = arith.constant 0 : index
    %c0_4 = arith.constant 0 : index
    %3 = vector.load %arg3[%c0_3, %c0_4] : memref<1x64xf32, #tpu.memory_space<vmem>>, vector<1x64xf32>
    %4 = vector.broadcast %3 : vector<1x64xf32> to vector<72x64xf32>
    %5 = arith.addf %2, %4 : vector<72x64xf32>
    %cst_5 = arith.constant 0.000000e+00 : f32
    %6 = vector.broadcast %cst_5 : f32 to vector<72x64xf32>
    %7 = arith.maximumf %5, %6 : vector<72x64xf32>
    %c0_6 = arith.constant 0 : index
    %c0_7 = arith.constant 0 : index
    %8 = vector.load %arg4[%c0_6, %c0_7] : memref<72x64xf32, #tpu.memory_space<vmem>>, vector<72x64xf32>
    tpu.vector_store %arg4[%c0_6, %c0_7], %7 {strides = array<i32>} : memref<72x64xf32, #tpu.memory_space<vmem>>, vector<72x64xf32>,
    return
  }
  func.func @transform_0(%arg0: i32) -> (i32, i32) {
    %c0_i32 = arith.constant 0 : i32
    %c0_i32_0 = arith.constant 0 : i32
    return %arg0, %c0_i32 : i32, i32
  }
  func.func @transform_1(%arg0: i32) -> (i32, i32) {
    %c0_i32 = arith.constant 0 : i32
    %c0_i32_0 = arith.constant 0 : i32
    %c0_i32_1 = arith.constant 0 : i32
    return %c0_i32, %c0_i32_0 : i32, i32
  }
  func.func @transform_2(%arg0: i32) -> (i32, i32) {
    %c0_i32 = arith.constant 0 : i32
    %c0_i32_0 = arith.constant 0 : i32
    %c0_i32_1 = arith.constant 0 : i32
    return %c0_i32, %c0_i32_0 : i32, i32
  }
  func.func @transform_3(%arg0: i32) -> (i32, i32) {
    %c0_i32 = arith.constant 0 : i32
    %c0_i32_0 = arith.constant 0 : i32
    return %arg0, %c0_i32 : i32, i32
  }
}

module attributes {stable_mosaic.version = 11 : i64} {
  func.func @_fc_fused_kernel(%arg0: i32, %arg1: memref<2x2304xf32, #tpu.memory_space<vmem>>, %arg2: memref<2304x512xf32, #tpu.memory_space<vmem>>, %arg3: memref<1x512xf32, #tpu.memory_space<vmem>>, %arg4: memref<512x6xf32, #tpu.memory_space<vmem>>, %arg5: memref<1x6xf32, #tpu.memory_space<vmem>>, %arg6: memref<2x6xf32, #tpu.memory_space<vmem>>) attributes {dimension_semantics = [#tpu.dimension_semantics<parallel>], iteration_bounds = array<i64: 1>, scalar_prefetch = 0 : i64, scratch_operands = 0 : i64, tpu.core_type = #tpu.core_type<tc>, window_params = [{transform_indices = @transform_0, window_bounds = array<i64: 2, 2304>}, {pipeline_mode = #tpu.pipeline_mode<synchronous>, transform_indices = @transform_1, window_bounds = array<i64: 2304, 512>}, {pipeline_mode = #tpu.pipeline_mode<synchronous>, transform_indices = @transform_2, window_bounds = array<i64: 1, 512>}, {pipeline_mode = #tpu.pipeline_mode<synchronous>, transform_indices = @transform_3, window_bounds = array<i64: 512, 6>}, {pipeline_mode = #tpu.pipeline_mode<synchronous>, transform_indices = @transform_4, window_bounds = array<i64: 1, 6>}, {transform_indices = @transform_5, window_bounds = array<i64: 2, 6>}]} {
    %c0 = arith.constant 0 : index
    %c0_0 = arith.constant 0 : index
    %0 = vector.load %arg1[%c0, %c0_0] : memref<2x2304xf32, #tpu.memory_space<vmem>>, vector<2x2304xf32>
    %c0_1 = arith.constant 0 : index
    %c0_2 = arith.constant 0 : index
    %1 = vector.load %arg2[%c0_1, %c0_2] : memref<2304x512xf32, #tpu.memory_space<vmem>>, vector<2304x512xf32>
    %cst = arith.constant dense<0.000000e+00> : vector<2x512xf32>
    %2 = tpu.matmul %0, %1, %cst {dimension_numbers = #tpu.dot_dimension_numbers<[1], [0], [0], [1], [0, 0, 1, 1], [], []>} : vector<2x2304xf32>, vector<2304x512xf32>, vector<2x512xf32> -> vector<2x512xf32>
    %c0_3 = arith.constant 0 : index
    %c0_4 = arith.constant 0 : index
    %3 = vector.load %arg3[%c0_3, %c0_4] : memref<1x512xf32, #tpu.memory_space<vmem>>, vector<1x512xf32>
    %4 = vector.broadcast %3 : vector<1x512xf32> to vector<2x512xf32>
    %5 = arith.addf %2, %4 : vector<2x512xf32>
    %cst_5 = arith.constant 0.000000e+00 : f32
    %6 = vector.broadcast %cst_5 : f32 to vector<2x512xf32>
    %7 = arith.maximumf %5, %6 : vector<2x512xf32>
    %c0_6 = arith.constant 0 : index
    %c0_7 = arith.constant 0 : index
    %8 = vector.load %arg4[%c0_6, %c0_7] : memref<512x6xf32, #tpu.memory_space<vmem>>, vector<512x6xf32>
    %cst_8 = arith.constant dense<0.000000e+00> : vector<2x6xf32>
    %9 = tpu.matmul %7, %8, %cst_8 {dimension_numbers = #tpu.dot_dimension_numbers<[1], [0], [0], [1], [0, 0, 1, 1], [], []>} : vector<2x512xf32>, vector<512x6xf32>, vector<2x6xf32> -> vector<2x6xf32>
    %c0_9 = arith.constant 0 : index
    %c0_10 = arith.constant 0 : index
    %10 = vector.load %arg5[%c0_9, %c0_10] : memref<1x6xf32, #tpu.memory_space<vmem>>, vector<1x6xf32>
    %11 = vector.broadcast %10 : vector<1x6xf32> to vector<2x6xf32>
    %12 = arith.addf %9, %11 : vector<2x6xf32>
    %c0_11 = arith.constant 0 : index
    %c0_12 = arith.constant 0 : index
    %13 = vector.load %arg6[%c0_11, %c0_12] : memref<2x6xf32, #tpu.memory_space<vmem>>, vector<2x6xf32>
    tpu.vector_store %arg6[%c0_11, %c0_12], %12 {strides = array<i32>} : memref<2x6xf32, #tpu.memory_space<vmem>>, vector<2x6xf32>,
    return
  }
  func.func @transform_0(%arg0: i32) -> (i32, i32) {
    %c0_i32 = arith.constant 0 : i32
    %c0_i32_0 = arith.constant 0 : i32
    return %arg0, %c0_i32 : i32, i32
  }
  func.func @transform_1(%arg0: i32) -> (i32, i32) {
    %c0_i32 = arith.constant 0 : i32
    %c0_i32_0 = arith.constant 0 : i32
    %c0_i32_1 = arith.constant 0 : i32
    return %c0_i32, %c0_i32_0 : i32, i32
  }
  func.func @transform_2(%arg0: i32) -> (i32, i32) {
    %c0_i32 = arith.constant 0 : i32
    %c0_i32_0 = arith.constant 0 : i32
    %c0_i32_1 = arith.constant 0 : i32
    return %c0_i32, %c0_i32_0 : i32, i32
  }
  func.func @transform_3(%arg0: i32) -> (i32, i32) {
    %c0_i32 = arith.constant 0 : i32
    %c0_i32_0 = arith.constant 0 : i32
    %c0_i32_1 = arith.constant 0 : i32
    return %c0_i32, %c0_i32_0 : i32, i32
  }
  func.func @transform_4(%arg0: i32) -> (i32, i32) {
    %c0_i32 = arith.constant 0 : i32
    %c0_i32_0 = arith.constant 0 : i32
    %c0_i32_1 = arith.constant 0 : i32
    return %c0_i32, %c0_i32_0 : i32, i32
  }
  func.func @transform_5(%arg0: i32) -> (i32, i32) {
    %c0_i32 = arith.constant 0 : i32
    %c0_i32_0 = arith.constant 0 : i32
    return %arg0, %c0_i32 : i32, i32
  }
}

</mosaic_0001>

<bundles_post_ra>
// kernel: convnet_forward.4
= control target key start
LH: loop header
LB: loop body
LE: loop exit
PB: predicated region body
PF: predicated region fallthrough
CT: control target
= control target key end

     0   :  { %s1941_s12 = smov 0   ;;  %s1943_s13 = smov 0   ;;  %s2538_s0 = inlined_call_operand.vmem [shape: f32[722,64], index: 0, kind: input, shape index: {}]   ;;  %s2539_s1 = inlined_call_operand.vmem [shape: f32[64,32], index: 1, kind: input, shape index: {}]   ;;  %s2540_s2 = inlined_call_operand.vmem [shape: f32[1,32], index: 2, kind: input, shape index: {}]   ;;  %s2541_s3 = inlined_call_operand.vmem [shape: f32[722,32], index: 3, kind: output, shape index: {}]  }
   0x1   :  { %s1945_s14 = smov 0  }
   0x2 LB: > { %s1954_s15 = sadd.s32 4294967295, %s1887_s14   ;;  %s1956_s16 = sadd.s32 1, %s1887_s14   ;;  %s1887_s14 = sphi %s1945_s14, %s2550_s14   ;;  %s1883_s13 = sphi %s1943_s13, %s2549_s13   ;;  %s1879_s12 = sphi %s1941_s12, %s2548_s12  }
   0x3   : > { %s85_s17 = ssub.s32 %s1887_s14, %s1956_s16  ;;  %s88_s18 = sadd.s32 1, %s1883_s13 }
   0x4   : > { %p86_p0 = scmp.eq.s32.totalorder %s85_s17, 0  ;;  %p98_p1 = scmp.ne.s32.totalorder %s1883_s13, %s1879_s12 }
   0x5   : > { %p99_p2 = scmp.eq.s32.totalorder %s1954_s15, 1  ;;  %p1448_p3 = scmp.ge.s32.totalorder %s1887_s14, 1 }
   0x6   : > { %s1964_s19 = scalar_select %p86_p0, %s1883_s13, %s88_s18  }
   0x7   : > { %p1966_p4 = por %p99_p2, %p98_p1  ;;  %p146_p5 = scmp.lt.s32.totalorder %s1887_s14, 3 }
   0x9   : > { %p147_p6 = pnand %p1448_p3, %p146_p5 }
   0xa   : > { %v256_v0 = vld [vmem:[%s2539_s1] sm:$0xff] (!%p147_p6)  ;;  %v257_v1 = vld [vmem:[%s2539_s1 + $0x8] sm:$0xff] (!%p147_p6)  ;;  %v258_v2 = vld [vmem:[%s2539_s1 + $0x10] sm:$0xff] (!%p147_p6)  ;;  %s1980_s27 = sshll.u32 (!%p147_p6), %s1954_s15, 6  ;;  %vm271_vm0 = vcmask (!%p147_p6), 523264   ;;  %s170_s22 = sand.u32 (!%p147_p6), 1, %s1879_s12  }
   0xb   : > { %150 = sbr.rel (%p147_p6) target bundleno = 379 (0x17b), region = 32  ;;  %v1721_v3 = vpack.c.bf16 (!%p147_p6), %v257_v1, %v256_v0  ;;  %v259_v4 = vld [vmem:[%s2539_s1 + $0x18] sm:$0xff] (!%p147_p6)  ;;  %p178_p7 = scmp.lt.s32.totalorder (!%p147_p6), %s1980_s27, 90  ;;  %v260_v6 = vld [vmem:[%s2539_s1 + $0x20] sm:$0xff] (!%p147_p6)  ;;  %v261_v7 = vld [vmem:[%s2539_s1 + $0x28] sm:$0xff] (!%p147_p6)  ;;  %vm913_vm1 = vcmask (!%p147_p6), 261120  }
   0xc   : > { %v1725_v5 = vpack.c.bf16 (!%p147_p6), %v259_v4, %v258_v2  ;;  %v1729_v8 = vpack.c.bf16 (!%p147_p6), %v261_v7, %v260_v6  ;;  %v262_v9 = vld [vmem:[%s2539_s1 + $0x30] sm:$0xff] (!%p147_p6)  ;;  %v263_v10 = vld [vmem:[%s2539_s1 + $0x38] sm:$0xff] (!%p147_p6)  ;;  %s1449_s25 = sshll.u32 (!%p147_p6), %s170_s22, 9 }
   0xd   : > { %1722 = vmatprep.subr.bf16.mxu0 (!%p147_p6), %v1721_v3  ;;  %1737 = vmatprep.subr.bf16.mxu1 (!%p147_p6), %v1721_v3  ;;  %v1733_v13 = vpack.c.bf16 (!%p147_p6), %v263_v10, %v262_v9  ;;  %s2142_s12 = scalar_lea.vmem (!%p147_p6), [#allocation2], %s1449_s25  }
   0xe   : > { %1724 = vmatpush3.bf16.msra.mxu0 (!%p147_p6), %v1721_v3  ;;  %1741 = vmatpush3.bf16.msra.mxu1 (!%p147_p6), %v1721_v3 }
   0xf   : > { %1726 = vmatprep.subr.bf16.mxu0 (!%p147_p6), %v1725_v5  ;;  %1738 = vmatprep.subr.bf16.mxu1 (!%p147_p6), %v1725_v5 }
  0x12   : > { %s179_s7 = scalar_select %p178_p7, %s1980_s27, 90  ;;  %1728 = vmatpush3.bf16.msra.mxu0 %v1725_v5  ;;  %1742 = vmatpush3.bf16.msra.mxu1 %v1725_v5 }
  0x13   : > { %1730 = vmatprep.subr.bf16.mxu0 %v1729_v8  ;;  %1739 = vmatprep.subr.bf16.mxu1 %v1729_v8  ;;  %s986_s26 = ssub.s32 (%p1966_p4), 91, %s1980_s27  ;;  %s1534_s28 = sshll.u32 (%p1966_p4), %s1954_s15, 9 }
  0x14   : > { %s1451_s8 = sshll.u32 %s179_s7, 3  ;;  %p987_p8 = scmp.lt.s32.totalorder (%p1966_p4), %s986_s26, 64 }
  0x15   : > { %s2002_s21 = scalar_lea.vmem %s2538_s0, %s1451_s8  ;;  %s2339_s4 = scalar_lea.vmem (%p1966_p4), %s2541_s3, %s1534_s28  }
  0x16   : > { %v192_v11 = vld [vmem:[%s2002_s21] sm:$0xff]  ;;  %1732 = vmatpush3.bf16.msra.mxu0 %v1729_v8  ;;  %1743 = vmatpush3.bf16.msra.mxu1 %v1729_v8  ;;  %v193_v14 = vld [vmem:[%s2002_s21 + $0x8] sm:$0xff]  ;;  %v194_v16 = vld [vmem:[%s2002_s21 + $0x10] sm:$0xff] }
  0x17   : > { %v224_v12 = vld [vmem:[%s2002_s21 + $0x100] sm:$0xff]  ;;  %1625 = vmatprep.mubr.msk.f32.mxu0 %vm271_vm0, %v192_v11  ;;  %1734 = vmatprep.subr.bf16.mxu0 %v1733_v13  ;;  %v225_v15 = vld [vmem:[%s2002_s21 + $0x108] sm:$0xff]  ;;  %v226_v17 = vld [vmem:[%s2002_s21 + $0x110] sm:$0xff] }
  0x18   : > { %1673 = vmatprep.mubr.msk.f32.mxu1 %vm271_vm0, %v224_v12  ;;  %1740 = vmatprep.subr.bf16.mxu1 %v1733_v13  ;;  %v195_v18 = vld [vmem:[%s2002_s21 + $0x18] sm:$0xff]  ;;  %v196_v20 = vld [vmem:[%s2002_s21 + $0x20] sm:$0xff]  ;;  %v197_v22 = vld [vmem:[%s2002_s21 + $0x28] sm:$0xff] }
  0x19   : > { %v227_v19 = vld [vmem:[%s2002_s21 + $0x118] sm:$0xff]  ;;  %v228_v21 = vld [vmem:[%s2002_s21 + $0x120] sm:$0xff]  ;;  %v229_v23 = vld [vmem:[%s2002_s21 + $0x128] sm:$0xff] }
  0x1a   : > { %1736 = vmatpush3.bf16.msra.mxu0 %v1733_v13  ;;  %1744 = vmatpush3.bf16.msra.mxu1 %v1733_v13  ;;  %v198_v24 = vld [vmem:[%s2002_s21 + $0x30] sm:$0xff]  ;;  %v199_v26 = vld [vmem:[%s2002_s21 + $0x38] sm:$0xff]  ;;  %v200_v28 = vld [vmem:[%s2002_s21 + $0x40] sm:$0xff] }
  0x1b   : > { %v230_v25 = vld [vmem:[%s2002_s21 + $0x130] sm:$0xff]  ;;  %v231_v27 = vld [vmem:[%s2002_s21 + $0x138] sm:$0xff]  ;;  %v232_v29 = vld [vmem:[%s2002_s21 + $0x140] sm:$0xff] }
  0x1c   : > { %v201_v30 = vld [vmem:[%s2002_s21 + $0x48] sm:$0xff]  ;;  %v202_v32 = vld [vmem:[%s2002_s21 + $0x50] sm:$0xff]  ;;  %v203_v34 = vld [vmem:[%s2002_s21 + $0x58] sm:$0xff] }
  0x1d   : > { %1626 = vmatmul.mubr.msk.f32.vlgmr.msra.gmra.mrb[0].mxu0 %vm271_vm0, %v193_v14  ;;  %1674 = vmatmul.mubr.msk.f32.vlgmr.msra.gmra.mrb[0].mxu1 %vm271_vm0, %v225_v15  ;;  %v233_v31 = vld [vmem:[%s2002_s21 + $0x148] sm:$0xff]  ;;  %v234_v33 = vld [vmem:[%s2002_s21 + $0x150] sm:$0xff]  ;;  %v235_v35 = vld [vmem:[%s2002_s21 + $0x158] sm:$0xff] }
  0x1e   : > { %1628 = vmatprep.mubr.msk.f32.mxu0 %vm271_vm0, %v194_v16  ;;  %1676 = vmatprep.mubr.msk.f32.mxu1 %vm271_vm0, %v226_v17  ;;  %v204_v36 = vld [vmem:[%s2002_s21 + $0x60] sm:$0xff]  ;;  %v205_v38 = vld [vmem:[%s2002_s21 + $0x68] sm:$0xff]  ;;  %v206_v40 = vld [vmem:[%s2002_s21 + $0x70] sm:$0xff] }
  0x1f   : > { %v236_v37 = vld [vmem:[%s2002_s21 + $0x160] sm:$0xff]  ;;  %v237_v39 = vld [vmem:[%s2002_s21 + $0x168] sm:$0xff]  ;;  %v238_v41 = vld [vmem:[%s2002_s21 + $0x170] sm:$0xff] }
  0x20   : > { %v207_v42 = vld [vmem:[%s2002_s21 + $0x78] sm:$0xff]  ;;  %v208_v44 = vld [vmem:[%s2002_s21 + $0x80] sm:$0xff]  ;;  %v209_v46 = vld [vmem:[%s2002_s21 + $0x88] sm:$0xff] }
  0x21   : > { %1629 = vmatmul.mubr.msk.f32.gmra.mrb[2].mxu0 %vm271_vm0, %v195_v18  ;;  %1677 = vmatmul.mubr.msk.f32.gmra.mrb[2].mxu1 %vm271_vm0, %v227_v19  ;;  %v239_v43 = vld [vmem:[%s2002_s21 + $0x178] sm:$0xff]  ;;  %v240_v45 = vld [vmem:[%s2002_s21 + $0x180] sm:$0xff]  ;;  %v241_v47 = vld [vmem:[%s2002_s21 + $0x188] sm:$0xff] }
  0x22   : > { %1631 = vmatprep.mubr.msk.f32.mxu0 %vm271_vm0, %v196_v20  ;;  %1679 = vmatprep.mubr.msk.f32.mxu1 %vm271_vm0, %v228_v21  ;;  %v210_v48 = vld [vmem:[%s2002_s21 + $0x90] sm:$0xff]  ;;  %v211_v50 = vld [vmem:[%s2002_s21 + $0x98] sm:$0xff]  ;;  %v212_v52 = vld [vmem:[%s2002_s21 + $0xa0] sm:$0xff] }
  0x23   : > { %v242_v49 = vld [vmem:[%s2002_s21 + $0x190] sm:$0xff]  ;;  %v243_v51 = vld [vmem:[%s2002_s21 + $0x198] sm:$0xff]  ;;  %v244_v53 = vld [vmem:[%s2002_s21 + $0x1a0] sm:$0xff] }
  0x24   : > { %v213_v54 = vld [vmem:[%s2002_s21 + $0xa8] sm:$0xff]  ;;  %v214_v56 = vld [vmem:[%s2002_s21 + $0xb0] sm:$0xff]  ;;  %v215_v58 = vld [vmem:[%s2002_s21 + $0xb8] sm:$0xff] }
  0x25   : > { %1632 = vmatmul.mubr.msk.f32.gmra.mrb[4].mxu0 %vm271_vm0, %v197_v22  ;;  %1680 = vmatmul.mubr.msk.f32.gmra.mrb[4].mxu1 %vm271_vm0, %v229_v23  ;;  %v245_v55 = vld [vmem:[%s2002_s21 + $0x1a8] sm:$0xff]  ;;  %v246_v57 = vld [vmem:[%s2002_s21 + $0x1b0] sm:$0xff]  ;;  %v247_v59 = vld [vmem:[%s2002_s21 + $0x1b8] sm:$0xff] }
  0x26   : > { %1634 = vmatprep.mubr.msk.f32.mxu0 %vm271_vm0, %v198_v24  ;;  %1682 = vmatprep.mubr.msk.f32.mxu1 %vm271_vm0, %v230_v25  ;;  %v216_v60 = vld [vmem:[%s2002_s21 + $0xc0] sm:$0xff]  ;;  %v217_v62 = vld [vmem:[%s2002_s21 + $0xc8] sm:$0xff]  ;;  %v218_v0 = vld [vmem:[%s2002_s21 + $0xd0] sm:$0xff] }
  0x27   : > { %v248_v61 = vld [vmem:[%s2002_s21 + $0x1c0] sm:$0xff]  ;;  %v249_v63 = vld [vmem:[%s2002_s21 + $0x1c8] sm:$0xff]  ;;  %v250_v1 = vld [vmem:[%s2002_s21 + $0x1d0] sm:$0xff] }
  0x28   : > { %v219_v2 = vld [vmem:[%s2002_s21 + $0xd8] sm:$0xff]  ;;  %v220_v4 = vld [vmem:[%s2002_s21 + $0xe0] sm:$0xff]  ;;  %v221_v6 = vld [vmem:[%s2002_s21 + $0xe8] sm:$0xff] }
  0x29   : > { %1635 = vmatmul.mubr.msk.f32.gmra.mrb[6].mxu0 %vm271_vm0, %v199_v26  ;;  %1683 = vmatmul.mubr.msk.f32.gmra.mrb[6].mxu1 %vm271_vm0, %v231_v27  ;;  %v251_v3 = vld [vmem:[%s2002_s21 + $0x1d8] sm:$0xff]  ;;  %v252_v5 = vld [vmem:[%s2002_s21 + $0x1e0] sm:$0xff]  ;;  %v253_v7 = vld [vmem:[%s2002_s21 + $0x1e8] sm:$0xff] }
  0x2a   : > { %1637 = vmatprep.mubr.msk.f32.mxu0 %vm271_vm0, %v200_v28  ;;  %1685 = vmatprep.mubr.msk.f32.mxu1 %vm271_vm0, %v232_v29  ;;  %v222_v8 = vld [vmem:[%s2002_s21 + $0xf0] sm:$0xff]  ;;  %v223_v10 = vld [vmem:[%s2002_s21 + $0xf8] sm:$0xff]  ;;  %v2136_v12 = vld [vmem:[%s2540_s2] ss:$0 sm:$0xff] }
  0x2b   : > { %v254_v9 = vld [vmem:[%s2002_s21 + $0x1f0] sm:$0xff]  ;;  %v255_v11 = vld [vmem:[%s2002_s21 + $0x1f8] sm:$0xff] }
  0x2d   : > { %1638 = vmatmul.mubr.msk.f32.gmra.mrb[8].mxu0 %vm271_vm0, %v201_v30  ;;  %1686 = vmatmul.mubr.msk.f32.gmra.mrb[8].mxu1 %vm271_vm0, %v233_v31 }
  0x2e   : > { %1640 = vmatprep.mubr.msk.f32.mxu0 %vm271_vm0, %v202_v32  ;;  %1688 = vmatprep.mubr.msk.f32.mxu1 %vm271_vm0, %v234_v33 }
  0x31   : > { %1641 = vmatmul.mubr.msk.f32.gmra.mrb[10].mxu0 %vm271_vm0, %v203_v34  ;;  %1689 = vmatmul.mubr.msk.f32.gmra.mrb[10].mxu1 %vm271_vm0, %v235_v35 }
  0x32   : > { %1643 = vmatprep.mubr.msk.f32.mxu0 %vm271_vm0, %v204_v36  ;;  %1691 = vmatprep.mubr.msk.f32.mxu1 %vm271_vm0, %v236_v37 }
  0x35   : > { %1644 = vmatmul.mubr.msk.f32.gmra.mrb[12].mxu0 %vm271_vm0, %v205_v38  ;;  %1692 = vmatmul.mubr.msk.f32.gmra.mrb[12].mxu1 %vm271_vm0, %v237_v39 }
  0x36   : > { %1646 = vmatprep.mubr.msk.f32.mxu0 %vm271_vm0, %v206_v40  ;;  %1694 = vmatprep.mubr.msk.f32.mxu1 %vm271_vm0, %v238_v41 }
  0x39   : > { %1647 = vmatmul.mubr.msk.f32.gmra.mrb[14].mxu0 %vm271_vm0, %v207_v42  ;;  %1695 = vmatmul.mubr.msk.f32.gmra.mrb[14].mxu1 %vm271_vm0, %v239_v43 }
  0x3a   : > { %1649 = vmatprep.mubr.msk.f32.mxu0 %vm271_vm0, %v208_v44  ;;  %1697 = vmatprep.mubr.msk.f32.mxu1 %vm271_vm0, %v240_v45 }
  0x3d   : > { %1650 = vmatmul.mubr.msk.f32.gmra.mrb[16].mxu0 %vm271_vm0, %v209_v46  ;;  %1698 = vmatmul.mubr.msk.f32.gmra.mrb[16].mxu1 %vm271_vm0, %v241_v47 }
  0x3e   : > { %1652 = vmatprep.mubr.msk.f32.mxu0 %vm271_vm0, %v210_v48  ;;  %1700 = vmatprep.mubr.msk.f32.mxu1 %vm271_vm0, %v242_v49 }
  0x41   : > { %1653 = vmatmul.mubr.msk.f32.gmra.mrb[18].mxu0 %vm271_vm0, %v211_v50  ;;  %1701 = vmatmul.mubr.msk.f32.gmra.mrb[18].mxu1 %vm271_vm0, %v243_v51 }
  0x42   : > { %1655 = vmatprep.mubr.msk.f32.mxu0 %vm271_vm0, %v212_v52  ;;  %1703 = vmatprep.mubr.msk.f32.mxu1 %vm271_vm0, %v244_v53 }
  0x45   : > { %1656 = vmatmul.mubr.msk.f32.gmra.mrb[20].mxu0 %vm271_vm0, %v213_v54  ;;  %1704 = vmatmul.mubr.msk.f32.gmra.mrb[20].mxu1 %vm271_vm0, %v245_v55 }
  0x46   : > { %1658 = vmatprep.mubr.msk.f32.mxu0 %vm271_vm0, %v214_v56  ;;  %1706 = vmatprep.mubr.msk.f32.mxu1 %vm271_vm0, %v246_v57 }
  0x49   : > { %1659 = vmatmul.mubr.msk.f32.gmra.mrb[22].mxu0 %vm271_vm0, %v215_v58  ;;  %1707 = vmatmul.mubr.msk.f32.gmra.mrb[22].mxu1 %vm271_vm0, %v247_v59 }
  0x4a   : > { %1661 = vmatprep.mubr.msk.f32.mxu0 %vm271_vm0, %v216_v60  ;;  %1709 = vmatprep.mubr.msk.f32.mxu1 %vm271_vm0, %v248_v61 }
  0x4d   : > { %1662 = vmatmul.mubr.msk.f32.gmra.mrb[24].mxu0 %vm271_vm0, %v217_v62  ;;  %1710 = vmatmul.mubr.msk.f32.gmra.mrb[24].mxu1 %vm271_vm0, %v249_v63 }
  0x4e   : > { %1664 = vmatprep.mubr.msk.f32.mxu0 %vm271_vm0, %v218_v0  ;;  %1712 = vmatprep.mubr.msk.f32.mxu1 %vm271_vm0, %v250_v1 }
  0x51   : > { %1665 = vmatmul.mubr.msk.f32.gmra.mrb[26].mxu0 %vm271_vm0, %v219_v2  ;;  %1713 = vmatmul.mubr.msk.f32.gmra.mrb[26].mxu1 %vm271_vm0, %v251_v3 }
  0x52   : > { %1667 = vmatprep.mubr.msk.f32.mxu0 %vm271_vm0, %v220_v4  ;;  %1715 = vmatprep.mubr.msk.f32.mxu1 %vm271_vm0, %v252_v5 }
  0x55   : > { %1668 = vmatmul.mubr.msk.f32.gmra.mrb[28].mxu0 %vm271_vm0, %v221_v6  ;;  %1716 = vmatmul.mubr.msk.f32.gmra.mrb[28].mxu1 %vm271_vm0, %v253_v7 }
  0x56   : > { %1670 = vmatprep.mubr.msk.f32.mxu0 %vm271_vm0, %v222_v8  ;;  %1718 = vmatprep.mubr.msk.f32.mxu1 %vm271_vm0, %v254_v9 }
  0x59   : > { %1671 = vmatmul.mubr.msk.f32.gmra.mrb[30].mxu0 %vm271_vm0, %v223_v10  ;;  %1719 = vmatmul.mubr.msk.f32.gmra.mrb[30].mxu1 %vm271_vm0, %v255_v11 }
  0xf0   : > { %v1627_v13 = vpop.f32.mrb[0].mxu0  ;;  %v1675_v14 = vpop.f32.mrb[0].mxu1 }
  0xf1   : > { %v536_v15 = vadd.f32 %v1627_v13, %v2136_v12  ;;  %v696_v16 = vadd.f32 %v1675_v14, %v2136_v12  ;;  %v530_v17 = vpop.f32.mrb[1].mxu0  ;;  %v690_v18 = vpop.f32.mrb[1].mxu1 }
  0xf2   : > { %v531_v19 = vadd.f32 %v2136_v12, %v530_v17  ;;  %v691_v20 = vadd.f32 %v2136_v12, %v690_v18 }
  0xf3   : > { %v850_v21 = vmax.f32 %v536_v15, 0.0  ;;  %v882_v22 = vmax.f32 %v696_v16, 0.0 }
  0xf4   : > { %v849_v23 = vmax.f32 %v531_v19, 0.0  ;;  %v881_v24 = vmax.f32 %v691_v20, 0.0  ;;  %v1630_v25 = vpop.f32.mrb[2].mxu0  ;;  %v1678_v26 = vpop.f32.mrb[2].mxu1 }
  0xf5   : > { %915 = vst.msk [vmem:[%s2142_s12 + $0x8] sm:$0xff] %vm913_vm1, %v850_v21  ;;  %947 = vst.msk [vmem:[%s2142_s12 + $0x108] sm:$0xff] %vm913_vm1, %v882_v22  ;;  %v546_v27 = vadd.f32 %v1630_v25, %v2136_v12  ;;  %v706_v28 = vadd.f32 %v1678_v26, %v2136_v12  ;;  %v540_v29 = vpop.f32.mrb[3].mxu0  ;;  %v700_v30 = vpop.f32.mrb[3].mxu1 }
  0xf6   : > { %914 = vst.msk [vmem:[%s2142_s12] sm:$0xff] %vm913_vm1, %v849_v23  ;;  %946 = vst.msk [vmem:[%s2142_s12 + $0x100] sm:$0xff] %vm913_vm1, %v881_v24  ;;  %v541_v31 = vadd.f32 %v2136_v12, %v540_v29  ;;  %v701_v32 = vadd.f32 %v2136_v12, %v700_v30 }
  0xf7   : > { %v852_v33 = vmax.f32 %v546_v27, 0.0  ;;  %v884_v34 = vmax.f32 %v706_v28, 0.0 }
  0xf8   : > { %v851_v35 = vmax.f32 %v541_v31, 0.0  ;;  %v883_v36 = vmax.f32 %v701_v32, 0.0  ;;  %v1633_v37 = vpop.f32.mrb[4].mxu0  ;;  %v1681_v38 = vpop.f32.mrb[4].mxu1 }
  0xf9   : > { %917 = vst.msk [vmem:[%s2142_s12 + $0x18] sm:$0xff] %vm913_vm1, %v852_v33  ;;  %949 = vst.msk [vmem:[%s2142_s12 + $0x118] sm:$0xff] %vm913_vm1, %v884_v34  ;;  %v556_v39 = vadd.f32 %v1633_v37, %v2136_v12  ;;  %v716_v40 = vadd.f32 %v1681_v38, %v2136_v12  ;;  %v550_v41 = vpop.f32.mrb[5].mxu0  ;;  %v710_v42 = vpop.f32.mrb[5].mxu1 }
  0xfa   : > { %916 = vst.msk [vmem:[%s2142_s12 + $0x10] sm:$0xff] %vm913_vm1, %v851_v35  ;;  %948 = vst.msk [vmem:[%s2142_s12 + $0x110] sm:$0xff] %vm913_vm1, %v883_v36  ;;  %v551_v43 = vadd.f32 %v2136_v12, %v550_v41  ;;  %v711_v44 = vadd.f32 %v2136_v12, %v710_v42 }
  0xfb   : > { %v854_v45 = vmax.f32 %v556_v39, 0.0  ;;  %v886_v46 = vmax.f32 %v716_v40, 0.0 }
  0xfc   : > { %v853_v47 = vmax.f32 %v551_v43, 0.0  ;;  %v885_v48 = vmax.f32 %v711_v44, 0.0  ;;  %v1636_v49 = vpop.f32.mrb[6].mxu0  ;;  %v1684_v50 = vpop.f32.mrb[6].mxu1 }
  0xfd   : > { %919 = vst.msk [vmem:[%s2142_s12 + $0x28] sm:$0xff] %vm913_vm1, %v854_v45  ;;  %951 = vst.msk [vmem:[%s2142_s12 + $0x128] sm:$0xff] %vm913_vm1, %v886_v46  ;;  %v566_v51 = vadd.f32 %v1636_v49, %v2136_v12  ;;  %v726_v52 = vadd.f32 %v1684_v50, %v2136_v12  ;;  %v560_v53 = vpop.f32.mrb[7].mxu0  ;;  %v720_v54 = vpop.f32.mrb[7].mxu1 }
  0xfe   : > { %918 = vst.msk [vmem:[%s2142_s12 + $0x20] sm:$0xff] %vm913_vm1, %v853_v47  ;;  %950 = vst.msk [vmem:[%s2142_s12 + $0x120] sm:$0xff] %vm913_vm1, %v885_v48  ;;  %v561_v55 = vadd.f32 %v2136_v12, %v560_v53  ;;  %v721_v56 = vadd.f32 %v2136_v12, %v720_v54 }
  0xff   : > { %v856_v57 = vmax.f32 %v566_v51, 0.0  ;;  %v888_v58 = vmax.f32 %v726_v52, 0.0 }
 0x100   : > { %v855_v59 = vmax.f32 %v561_v55, 0.0  ;;  %v887_v60 = vmax.f32 %v721_v56, 0.0  ;;  %v1639_v61 = vpop.f32.mrb[8].mxu0  ;;  %v1687_v62 = vpop.f32.mrb[8].mxu1 }
 0x101   : > { %921 = vst.msk [vmem:[%s2142_s12 + $0x38] sm:$0xff] %vm913_vm1, %v856_v57  ;;  %953 = vst.msk [vmem:[%s2142_s12 + $0x138] sm:$0xff] %vm913_vm1, %v888_v58  ;;  %v576_v63 = vadd.f32 %v1639_v61, %v2136_v12  ;;  %v736_v0 = vadd.f32 %v1687_v62, %v2136_v12  ;;  %v570_v1 = vpop.f32.mrb[9].mxu0  ;;  %v730_v2 = vpop.f32.mrb[9].mxu1 }
 0x102   : > { %920 = vst.msk [vmem:[%s2142_s12 + $0x30] sm:$0xff] %vm913_vm1, %v855_v59  ;;  %952 = vst.msk [vmem:[%s2142_s12 + $0x130] sm:$0xff] %vm913_vm1, %v887_v60  ;;  %v571_v3 = vadd.f32 %v2136_v12, %v570_v1  ;;  %v731_v4 = vadd.f32 %v2136_v12, %v730_v2 }
 0x103   : > { %v858_v5 = vmax.f32 %v576_v63, 0.0  ;;  %v890_v6 = vmax.f32 %v736_v0, 0.0 }
 0x104   : > { %v857_v7 = vmax.f32 %v571_v3, 0.0  ;;  %v889_v8 = vmax.f32 %v731_v4, 0.0  ;;  %v1642_v9 = vpop.f32.mrb[10].mxu0  ;;  %v1690_v10 = vpop.f32.mrb[10].mxu1 }
 0x105   : > { %923 = vst.msk [vmem:[%s2142_s12 + $0x48] sm:$0xff] %vm913_vm1, %v858_v5  ;;  %955 = vst.msk [vmem:[%s2142_s12 + $0x148] sm:$0xff] %vm913_vm1, %v890_v6  ;;  %v586_v11 = vadd.f32 %v1642_v9, %v2136_v12  ;;  %v746_v13 = vadd.f32 %v1690_v10, %v2136_v12  ;;  %v580_v14 = vpop.f32.mrb[11].mxu0  ;;  %v740_v15 = vpop.f32.mrb[11].mxu1 }
 0x106   : > { %922 = vst.msk [vmem:[%s2142_s12 + $0x40] sm:$0xff] %vm913_vm1, %v857_v7  ;;  %954 = vst.msk [vmem:[%s2142_s12 + $0x140] sm:$0xff] %vm913_vm1, %v889_v8  ;;  %v581_v16 = vadd.f32 %v2136_v12, %v580_v14  ;;  %v741_v17 = vadd.f32 %v2136_v12, %v740_v15 }
 0x107   : > { %v860_v18 = vmax.f32 %v586_v11, 0.0  ;;  %v892_v19 = vmax.f32 %v746_v13, 0.0 }
 0x108   : > { %v859_v20 = vmax.f32 %v581_v16, 0.0  ;;  %v891_v21 = vmax.f32 %v741_v17, 0.0  ;;  %v1645_v22 = vpop.f32.mrb[12].mxu0  ;;  %v1693_v23 = vpop.f32.mrb[12].mxu1 }
 0x109   : > { %925 = vst.msk [vmem:[%s2142_s12 + $0x58] sm:$0xff] %vm913_vm1, %v860_v18  ;;  %957 = vst.msk [vmem:[%s2142_s12 + $0x158] sm:$0xff] %vm913_vm1, %v892_v19  ;;  %v596_v24 = vadd.f32 %v1645_v22, %v2136_v12  ;;  %v756_v25 = vadd.f32 %v1693_v23, %v2136_v12  ;;  %v590_v26 = vpop.f32.mrb[13].mxu0  ;;  %v750_v27 = vpop.f32.mrb[13].mxu1 }
 0x10a   : > { %924 = vst.msk [vmem:[%s2142_s12 + $0x50] sm:$0xff] %vm913_vm1, %v859_v20  ;;  %956 = vst.msk [vmem:[%s2142_s12 + $0x150] sm:$0xff] %vm913_vm1, %v891_v21  ;;  %v591_v28 = vadd.f32 %v2136_v12, %v590_v26  ;;  %v751_v29 = vadd.f32 %v2136_v12, %v750_v27 }
 0x10b   : > { %v862_v30 = vmax.f32 %v596_v24, 0.0  ;;  %v894_v31 = vmax.f32 %v756_v25, 0.0 }
 0x10c   : > { %v861_v32 = vmax.f32 %v591_v28, 0.0  ;;  %v893_v33 = vmax.f32 %v751_v29, 0.0  ;;  %v1648_v34 = vpop.f32.mrb[14].mxu0  ;;  %v1696_v35 = vpop.f32.mrb[14].mxu1 }
 0x10d   : > { %927 = vst.msk [vmem:[%s2142_s12 + $0x68] sm:$0xff] %vm913_vm1, %v862_v30  ;;  %959 = vst.msk [vmem:[%s2142_s12 + $0x168] sm:$0xff] %vm913_vm1, %v894_v31  ;;  %v606_v36 = vadd.f32 %v1648_v34, %v2136_v12  ;;  %v766_v37 = vadd.f32 %v1696_v35, %v2136_v12  ;;  %v600_v38 = vpop.f32.mrb[15].mxu0  ;;  %v760_v39 = vpop.f32.mrb[15].mxu1 }
 0x10e   : > { %926 = vst.msk [vmem:[%s2142_s12 + $0x60] sm:$0xff] %vm913_vm1, %v861_v32  ;;  %958 = vst.msk [vmem:[%s2142_s12 + $0x160] sm:$0xff] %vm913_vm1, %v893_v33  ;;  %v601_v40 = vadd.f32 %v2136_v12, %v600_v38  ;;  %v761_v41 = vadd.f32 %v2136_v12, %v760_v39 }
 0x10f   : > { %v864_v42 = vmax.f32 %v606_v36, 0.0  ;;  %v896_v43 = vmax.f32 %v766_v37, 0.0 }
 0x110   : > { %v863_v44 = vmax.f32 %v601_v40, 0.0  ;;  %v895_v45 = vmax.f32 %v761_v41, 0.0  ;;  %v1651_v46 = vpop.f32.mrb[16].mxu0  ;;  %v1699_v47 = vpop.f32.mrb[16].mxu1 }
 0x111   : > { %929 = vst.msk [vmem:[%s2142_s12 + $0x78] sm:$0xff] %vm913_vm1, %v864_v42  ;;  %961 = vst.msk [vmem:[%s2142_s12 + $0x178] sm:$0xff] %vm913_vm1, %v896_v43  ;;  %v616_v48 = vadd.f32 %v1651_v46, %v2136_v12  ;;  %v776_v49 = vadd.f32 %v1699_v47, %v2136_v12  ;;  %v610_v50 = vpop.f32.mrb[17].mxu0  ;;  %v770_v51 = vpop.f32.mrb[17].mxu1 }
 0x112   : > { %928 = vst.msk [vmem:[%s2142_s12 + $0x70] sm:$0xff] %vm913_vm1, %v863_v44  ;;  %960 = vst.msk [vmem:[%s2142_s12 + $0x170] sm:$0xff] %vm913_vm1, %v895_v45  ;;  %v611_v52 = vadd.f32 %v2136_v12, %v610_v50  ;;  %v771_v53 = vadd.f32 %v2136_v12, %v770_v51 }
 0x113   : > { %v866_v54 = vmax.f32 %v616_v48, 0.0  ;;  %v898_v55 = vmax.f32 %v776_v49, 0.0 }
 0x114   : > { %v865_v56 = vmax.f32 %v611_v52, 0.0  ;;  %v897_v57 = vmax.f32 %v771_v53, 0.0  ;;  %v1654_v58 = vpop.f32.mrb[18].mxu0  ;;  %v1702_v59 = vpop.f32.mrb[18].mxu1 }
 0x115   : > { %931 = vst.msk [vmem:[%s2142_s12 + $0x88] sm:$0xff] %vm913_vm1, %v866_v54  ;;  %963 = vst.msk [vmem:[%s2142_s12 + $0x188] sm:$0xff] %vm913_vm1, %v898_v55  ;;  %v626_v60 = vadd.f32 %v1654_v58, %v2136_v12  ;;  %v786_v61 = vadd.f32 %v1702_v59, %v2136_v12  ;;  %v620_v62 = vpop.f32.mrb[19].mxu0  ;;  %v780_v63 = vpop.f32.mrb[19].mxu1 }
 0x116   : > { %930 = vst.msk [vmem:[%s2142_s12 + $0x80] sm:$0xff] %vm913_vm1, %v865_v56  ;;  %962 = vst.msk [vmem:[%s2142_s12 + $0x180] sm:$0xff] %vm913_vm1, %v897_v57  ;;  %v621_v0 = vadd.f32 %v2136_v12, %v620_v62  ;;  %v781_v1 = vadd.f32 %v2136_v12, %v780_v63 }
 0x117   : > { %v868_v2 = vmax.f32 %v626_v60, 0.0  ;;  %v900_v3 = vmax.f32 %v786_v61, 0.0 }
 0x118   : > { %v867_v4 = vmax.f32 %v621_v0, 0.0  ;;  %v899_v5 = vmax.f32 %v781_v1, 0.0  ;;  %v1657_v6 = vpop.f32.mrb[20].mxu0  ;;  %v1705_v7 = vpop.f32.mrb[20].mxu1 }
 0x119   : > { %933 = vst.msk [vmem:[%s2142_s12 + $0x98] sm:$0xff] %vm913_vm1, %v868_v2  ;;  %965 = vst.msk [vmem:[%s2142_s12 + $0x198] sm:$0xff] %vm913_vm1, %v900_v3  ;;  %v636_v8 = vadd.f32 %v1657_v6, %v2136_v12  ;;  %v796_v9 = vadd.f32 %v1705_v7, %v2136_v12  ;;  %v630_v10 = vpop.f32.mrb[21].mxu0  ;;  %v790_v11 = vpop.f32.mrb[21].mxu1 }
 0x11a   : > { %932 = vst.msk [vmem:[%s2142_s12 + $0x90] sm:$0xff] %vm913_vm1, %v867_v4  ;;  %964 = vst.msk [vmem:[%s2142_s12 + $0x190] sm:$0xff] %vm913_vm1, %v899_v5  ;;  %v631_v13 = vadd.f32 %v2136_v12, %v630_v10  ;;  %v791_v14 = vadd.f32 %v2136_v12, %v790_v11 }
 0x11b   : > { %v870_v15 = vmax.f32 %v636_v8, 0.0  ;;  %v902_v16 = vmax.f32 %v796_v9, 0.0 }
 0x11c   : > { %v869_v17 = vmax.f32 %v631_v13, 0.0  ;;  %v901_v18 = vmax.f32 %v791_v14, 0.0  ;;  %v1660_v19 = vpop.f32.mrb[22].mxu0  ;;  %v1708_v20 = vpop.f32.mrb[22].mxu1 }
 0x11d   : > { %935 = vst.msk [vmem:[%s2142_s12 + $0xa8] sm:$0xff] %vm913_vm1, %v870_v15  ;;  %967 = vst.msk [vmem:[%s2142_s12 + $0x1a8] sm:$0xff] %vm913_vm1, %v902_v16  ;;  %v646_v21 = vadd.f32 %v1660_v19, %v2136_v12  ;;  %v806_v22 = vadd.f32 %v1708_v20, %v2136_v12  ;;  %v640_v23 = vpop.f32.mrb[23].mxu0  ;;  %v800_v24 = vpop.f32.mrb[23].mxu1 }
 0x11e   : > { %934 = vst.msk [vmem:[%s2142_s12 + $0xa0] sm:$0xff] %vm913_vm1, %v869_v17  ;;  %966 = vst.msk [vmem:[%s2142_s12 + $0x1a0] sm:$0xff] %vm913_vm1, %v901_v18  ;;  %v641_v25 = vadd.f32 %v2136_v12, %v640_v23  ;;  %v801_v26 = vadd.f32 %v2136_v12, %v800_v24 }
 0x11f   : > { %v872_v27 = vmax.f32 %v646_v21, 0.0  ;;  %v904_v28 = vmax.f32 %v806_v22, 0.0 }
 0x120   : > { %v871_v29 = vmax.f32 %v641_v25, 0.0  ;;  %v903_v30 = vmax.f32 %v801_v26, 0.0  ;;  %v1663_v31 = vpop.f32.mrb[24].mxu0  ;;  %v1711_v32 = vpop.f32.mrb[24].mxu1 }
 0x121   : > { %937 = vst.msk [vmem:[%s2142_s12 + $0xb8] sm:$0xff] %vm913_vm1, %v872_v27  ;;  %969 = vst.msk [vmem:[%s2142_s12 + $0x1b8] sm:$0xff] %vm913_vm1, %v904_v28  ;;  %v656_v33 = vadd.f32 %v1663_v31, %v2136_v12  ;;  %v816_v34 = vadd.f32 %v1711_v32, %v2136_v12  ;;  %v650_v35 = vpop.f32.mrb[25].mxu0  ;;  %v810_v36 = vpop.f32.mrb[25].mxu1 }
 0x122   : > { %936 = vst.msk [vmem:[%s2142_s12 + $0xb0] sm:$0xff] %vm913_vm1, %v871_v29  ;;  %968 = vst.msk [vmem:[%s2142_s12 + $0x1b0] sm:$0xff] %vm913_vm1, %v903_v30  ;;  %v651_v37 = vadd.f32 %v2136_v12, %v650_v35  ;;  %v811_v38 = vadd.f32 %v2136_v12, %v810_v36 }
 0x123   : > { %v874_v39 = vmax.f32 %v656_v33, 0.0  ;;  %v906_v40 = vmax.f32 %v816_v34, 0.0 }
 0x124   : > { %v873_v41 = vmax.f32 %v651_v37, 0.0  ;;  %v905_v42 = vmax.f32 %v811_v38, 0.0  ;;  %v1666_v43 = vpop.f32.mrb[26].mxu0  ;;  %v1714_v44 = vpop.f32.mrb[26].mxu1 }
 0x125   : > { %939 = vst.msk [vmem:[%s2142_s12 + $0xc8] sm:$0xff] %vm913_vm1, %v874_v39  ;;  %971 = vst.msk [vmem:[%s2142_s12 + $0x1c8] sm:$0xff] %vm913_vm1, %v906_v40  ;;  %v666_v45 = vadd.f32 %v1666_v43, %v2136_v12  ;;  %v826_v46 = vadd.f32 %v1714_v44, %v2136_v12  ;;  %v660_v47 = vpop.f32.mrb[27].mxu0  ;;  %v820_v48 = vpop.f32.mrb[27].mxu1 }
 0x126   : > { %938 = vst.msk [vmem:[%s2142_s12 + $0xc0] sm:$0xff] %vm913_vm1, %v873_v41  ;;  %970 = vst.msk [vmem:[%s2142_s12 + $0x1c0] sm:$0xff] %vm913_vm1, %v905_v42  ;;  %v661_v49 = vadd.f32 %v2136_v12, %v660_v47  ;;  %v821_v50 = vadd.f32 %v2136_v12, %v820_v48 }
 0x127   : > { %v876_v51 = vmax.f32 %v666_v45, 0.0  ;;  %v908_v52 = vmax.f32 %v826_v46, 0.0 }
 0x128   : > { %v875_v53 = vmax.f32 %v661_v49, 0.0  ;;  %v907_v54 = vmax.f32 %v821_v50, 0.0  ;;  %v1669_v55 = vpop.f32.mrb[28].mxu0  ;;  %v1717_v56 = vpop.f32.mrb[28].mxu1 }
 0x129   : > { %941 = vst.msk [vmem:[%s2142_s12 + $0xd8] sm:$0xff] %vm913_vm1, %v876_v51  ;;  %973 = vst.msk [vmem:[%s2142_s12 + $0x1d8] sm:$0xff] %vm913_vm1, %v908_v52  ;;  %v676_v57 = vadd.f32 %v1669_v55, %v2136_v12  ;;  %v836_v58 = vadd.f32 %v1717_v56, %v2136_v12  ;;  %v670_v59 = vpop.f32.mrb[29].mxu0  ;;  %v830_v60 = vpop.f32.mrb[29].mxu1 }
 0x12a   : > { %940 = vst.msk [vmem:[%s2142_s12 + $0xd0] sm:$0xff] %vm913_vm1, %v875_v53  ;;  %972 = vst.msk [vmem:[%s2142_s12 + $0x1d0] sm:$0xff] %vm913_vm1, %v907_v54  ;;  %v671_v61 = vadd.f32 %v2136_v12, %v670_v59  ;;  %v831_v62 = vadd.f32 %v2136_v12, %v830_v60 }
 0x12b   : > { %v878_v63 = vmax.f32 %v676_v57, 0.0  ;;  %v910_v0 = vmax.f32 %v836_v58, 0.0 }
 0x12c   : > { %v877_v1 = vmax.f32 %v671_v61, 0.0  ;;  %v909_v2 = vmax.f32 %v831_v62, 0.0  ;;  %v1672_v3 = vpop.f32.mrb[30].mxu0  ;;  %v1720_v4 = vpop.f32.mrb[30].mxu1  ;;  %984 = sbr.rel (!%p1966_p4) target bundleno = 379 (0x17b), region = 36 }
 0x12d   : > { %943 = vst.msk [vmem:[%s2142_s12 + $0xe8] sm:$0xff] %vm913_vm1, %v878_v63  ;;  %975 = vst.msk [vmem:[%s2142_s12 + $0x1e8] sm:$0xff] %vm913_vm1, %v910_v0  ;;  %v686_v5 = vadd.f32 %v1672_v3, %v2136_v12  ;;  %v846_v6 = vadd.f32 %v1720_v4, %v2136_v12  ;;  %v680_v7 = vpop.f32.mrb[31].mxu0  ;;  %v840_v8 = vpop.f32.mrb[31].mxu1 }
 0x12e   : > { %942 = vst.msk [vmem:[%s2142_s12 + $0xe0] sm:$0xff] %vm913_vm1, %v877_v1  ;;  %974 = vst.msk [vmem:[%s2142_s12 + $0x1e0] sm:$0xff] %vm913_vm1, %v909_v2  ;;  %v681_v9 = vadd.f32 %v2136_v12, %v680_v7  ;;  %v841_v10 = vadd.f32 %v2136_v12, %v840_v8 }
 0x12f   : > { %v880_v11 = vmax.f32 %v686_v5, 0.0  ;;  %v912_v13 = vmax.f32 %v846_v6, 0.0 }
 0x130   : > { %v879_v14 = vmax.f32 %v681_v9, 0.0  ;;  %v911_v15 = vmax.f32 %v841_v10, 0.0 }
 0x131   : > { %945 = vst.msk [vmem:[%s2142_s12 + $0xf8] sm:$0xff] %vm913_vm1, %v880_v11  ;;  %977 = vst.msk [vmem:[%s2142_s12 + $0x1f8] sm:$0xff] %vm913_vm1, %v912_v13 }
 0x132   : > { %944 = vst.msk [vmem:[%s2142_s12 + $0xf0] sm:$0xff] %vm913_vm1, %v879_v14  ;;  %976 = vst.msk [vmem:[%s2142_s12 + $0x1f0] sm:$0xff] %vm913_vm1, %v911_v15 }
 0x133   : > { %s2552_s26 = smov (!%p987_p8, %s986_s26), 64 }
 0x134   : > { %s1519_s5 = sshll.u32 %s2552_s26, 7 }
 0x135   : > { %p1522_p9 = scmp.eq.s32.totalorder %s1519_s5, 0 }
 0x136   : > { %s2345_s6 = sshrl.u32 (!%p1522_p9), %s2552_s26, 6 }
 0x137   : > { %995 = sbr.rel (%p1522_p9) target bundleno = 379 (0x17b), region = 40  ;;  %p1523_p10 = scmp.le.s32.totalorder (!%p1522_p9), %s2345_s6, 0 }
 0x13e   : > { %1401 = sbr.rel (%p1523_p10) target bundleno = 358 (0x166), region = 116  ;;  %s2543_s15 = smov (!%p1523_p10), %s2339_s4 }
 0x13f   : > { %s2544_s20 = smov (!%p1523_p10), %s2142_s12  ;;  %s2354_s27 = smov (!%p1523_p10), 0  }
 0x140   : > { %s2356_s7 = smov (!%p1523_p10), 0  }
 0x145 LB: >> { %v1183_v12 = vld [vmem:[%s1895_s20] sm:$0xff]  ;;  %v1185_v16 = vld [vmem:[%s1895_s20 + $0x8] sm:$0xff]  ;;  %v1187_v17 = vld [vmem:[%s1895_s20 + $0x10] sm:$0xff]  ;;  %s1311_s8 = sadd.s32 1, %s1899_s27  ;;  %s1177_s7 = sadd.s32 1, %s1903_s7   ;;  %s1903_s7 = sphi %s2356_s7, %s1177_s7   ;;  %s1899_s27 = sphi %s2354_s27, %s2547_s27   ;;  %s1895_s20 = sphi %s2544_s20, %s2546_s20   ;;  %s1891_s15 = sphi %s2543_s15, %s2545_s15  }
 0x146   : >> { %1184 = vst [vmem:[%s1891_s15] sm:$0xff] %v1183_v12  ;;  %1186 = vst [vmem:[%s1891_s15 + $0x8] sm:$0xff] %v1185_v16  ;;  %v1189_v18 = vld [vmem:[%s1895_s20 + $0x18] sm:$0xff]  ;;  %v1191_v19 = vld [vmem:[%s1895_s20 + $0x20] sm:$0xff]  ;;  %p1312_p11 = scmp.ge.s32.totalorder %s1311_s8, %s2345_s6  ;;  %p1176_p12 = scmp.ge.s32.totalorder %s1177_s7, %s2345_s6 }
 0x147   : >> { %1188 = vst [vmem:[%s1891_s15 + $0x10] sm:$0xff] %v1187_v17  ;;  %v1193_v20 = vld [vmem:[%s1895_s20 + $0x28] sm:$0xff]  ;;  %1190 = vst [vmem:[%s1891_s15 + $0x18] sm:$0xff] %v1189_v18  ;;  %v1195_v21 = vld [vmem:[%s1895_s20 + $0x30] sm:$0xff] }
 0x148   : >> { %1192 = vst [vmem:[%s1891_s15 + $0x20] sm:$0xff] %v1191_v19  ;;  %1194 = vst [vmem:[%s1891_s15 + $0x28] sm:$0xff] %v1193_v20  ;;  %v1197_v22 = vld [vmem:[%s1895_s20 + $0x38] sm:$0xff]  ;;  %v1199_v23 = vld [vmem:[%s1895_s20 + $0x40] sm:$0xff]  ;;  %s2554_s8 = smov (%p1312_p11, %s1311_s8), 0 }
 0x149   : >> { %1196 = vst [vmem:[%s1891_s15 + $0x30] sm:$0xff] %v1195_v21  ;;  %1198 = vst [vmem:[%s1891_s15 + $0x38] sm:$0xff] %v1197_v22  ;;  %v1201_v24 = vld [vmem:[%s1895_s20 + $0x48] sm:$0xff]  ;;  %v1203_v25 = vld [vmem:[%s1895_s20 + $0x50] sm:$0xff]  ;;  %s1524_s9 = sshll.u32 %s2554_s8, 9  ;;  %s2547_s27 = smov %s2554_s8 }
 0x14a   : >> { %1200 = vst [vmem:[%s1891_s15 + $0x40] sm:$0xff] %v1199_v23  ;;  %v1205_v26 = vld [vmem:[%s1895_s20 + $0x58] sm:$0xff]  ;;  %1202 = vst [vmem:[%s1891_s15 + $0x48] sm:$0xff] %v1201_v24  ;;  %v1207_v27 = vld [vmem:[%s1895_s20 + $0x60] sm:$0xff]  ;;  %s2412_s10 = scalar_lea.vmem %s2142_s12, %s1524_s9 [#allocation2]   ;;  %s2415_s11 = scalar_lea.vmem %s2339_s4, %s1524_s9  }
 0x14b   : >> { %1204 = vst [vmem:[%s1891_s15 + $0x50] sm:$0xff] %v1203_v25  ;;  %1206 = vst [vmem:[%s1891_s15 + $0x58] sm:$0xff] %v1205_v26  ;;  %v1209_v28 = vld [vmem:[%s1895_s20 + $0x68] sm:$0xff]  ;;  %v1211_v29 = vld [vmem:[%s1895_s20 + $0x70] sm:$0xff] }
 0x14c   : >> { %1208 = vst [vmem:[%s1891_s15 + $0x60] sm:$0xff] %v1207_v27  ;;  %1210 = vst [vmem:[%s1891_s15 + $0x68] sm:$0xff] %v1209_v28  ;;  %v1213_v30 = vld [vmem:[%s1895_s20 + $0x78] sm:$0xff]  ;;  %v1215_v31 = vld [vmem:[%s1895_s20 + $0x80] sm:$0xff] }
 0x14d   : >> { %1212 = vst [vmem:[%s1891_s15 + $0x70] sm:$0xff] %v1211_v29  ;;  %v1217_v32 = vld [vmem:[%s1895_s20 + $0x88] sm:$0xff]  ;;  %1214 = vst [vmem:[%s1891_s15 + $0x78] sm:$0xff] %v1213_v30  ;;  %v1219_v33 = vld [vmem:[%s1895_s20 + $0x90] sm:$0xff] }
 0x14e   : >> { %1216 = vst [vmem:[%s1891_s15 + $0x80] sm:$0xff] %v1215_v31  ;;  %1218 = vst [vmem:[%s1891_s15 + $0x88] sm:$0xff] %v1217_v32  ;;  %v1221_v34 = vld [vmem:[%s1895_s20 + $0x98] sm:$0xff]  ;;  %v1223_v35 = vld [vmem:[%s1895_s20 + $0xa0] sm:$0xff] }
 0x14f   : >> { %1220 = vst [vmem:[%s1891_s15 + $0x90] sm:$0xff] %v1219_v33  ;;  %1222 = vst [vmem:[%s1891_s15 + $0x98] sm:$0xff] %v1221_v34  ;;  %v1225_v36 = vld [vmem:[%s1895_s20 + $0xa8] sm:$0xff]  ;;  %v1227_v37 = vld [vmem:[%s1895_s20 + $0xb0] sm:$0xff] }
 0x150   : >> { %1224 = vst [vmem:[%s1891_s15 + $0xa0] sm:$0xff] %v1223_v35  ;;  %v1229_v38 = vld [vmem:[%s1895_s20 + $0xb8] sm:$0xff]  ;;  %1226 = vst [vmem:[%s1891_s15 + $0xa8] sm:$0xff] %v1225_v36  ;;  %v1231_v39 = vld [vmem:[%s1895_s20 + $0xc0] sm:$0xff] }
 0x151   : >> { %1228 = vst [vmem:[%s1891_s15 + $0xb0] sm:$0xff] %v1227_v37  ;;  %1230 = vst [vmem:[%s1891_s15 + $0xb8] sm:$0xff] %v1229_v38  ;;  %v1233_v40 = vld [vmem:[%s1895_s20 + $0xc8] sm:$0xff]  ;;  %v1235_v41 = vld [vmem:[%s1895_s20 + $0xd0] sm:$0xff] }
 0x152   : >> { %1232 = vst [vmem:[%s1891_s15 + $0xc0] sm:$0xff] %v1231_v39  ;;  %1234 = vst [vmem:[%s1891_s15 + $0xc8] sm:$0xff] %v1233_v40  ;;  %v1237_v42 = vld [vmem:[%s1895_s20 + $0xd8] sm:$0xff]  ;;  %v1239_v43 = vld [vmem:[%s1895_s20 + $0xe0] sm:$0xff] }
 0x153   : >> { %1236 = vst [vmem:[%s1891_s15 + $0xd0] sm:$0xff] %v1235_v41  ;;  %v1241_v44 = vld [vmem:[%s1895_s20 + $0xe8] sm:$0xff]  ;;  %1238 = vst [vmem:[%s1891_s15 + $0xd8] sm:$0xff] %v1237_v42  ;;  %v1243_v45 = vld [vmem:[%s1895_s20 + $0xf0] sm:$0xff] }
 0x154   : >> { %1240 = vst [vmem:[%s1891_s15 + $0xe0] sm:$0xff] %v1239_v43  ;;  %1242 = vst [vmem:[%s1891_s15 + $0xe8] sm:$0xff] %v1241_v44  ;;  %v1245_v46 = vld [vmem:[%s1895_s20 + $0xf8] sm:$0xff]  ;;  %v1247_v47 = vld [vmem:[%s1895_s20 + $0x100] sm:$0xff] }
 0x155   : >> { %1244 = vst [vmem:[%s1891_s15 + $0xf0] sm:$0xff] %v1243_v45  ;;  %1246 = vst [vmem:[%s1891_s15 + $0xf8] sm:$0xff] %v1245_v46  ;;  %v1249_v48 = vld [vmem:[%s1895_s20 + $0x108] sm:$0xff]  ;;  %v1251_v49 = vld [vmem:[%s1895_s20 + $0x110] sm:$0xff] }
 0x156   : >> { %1248 = vst [vmem:[%s1891_s15 + $0x100] sm:$0xff] %v1247_v47  ;;  %v1253_v50 = vld [vmem:[%s1895_s20 + $0x118] sm:$0xff]  ;;  %1250 = vst [vmem:[%s1891_s15 + $0x108] sm:$0xff] %v1249_v48  ;;  %v1255_v51 = vld [vmem:[%s1895_s20 + $0x120] sm:$0xff] }
 0x157   : >> { %1252 = vst [vmem:[%s1891_s15 + $0x110] sm:$0xff] %v1251_v49  ;;  %1254 = vst [vmem:[%s1891_s15 + $0x118] sm:$0xff] %v1253_v50  ;;  %v1257_v52 = vld [vmem:[%s1895_s20 + $0x128] sm:$0xff]  ;;  %v1259_v53 = vld [vmem:[%s1895_s20 + $0x130] sm:$0xff] }
 0x158   : >> { %1256 = vst [vmem:[%s1891_s15 + $0x120] sm:$0xff] %v1255_v51  ;;  %1258 = vst [vmem:[%s1891_s15 + $0x128] sm:$0xff] %v1257_v52  ;;  %v1261_v54 = vld [vmem:[%s1895_s20 + $0x138] sm:$0xff]  ;;  %v1263_v55 = vld [vmem:[%s1895_s20 + $0x140] sm:$0xff] }
 0x159   : >> { %1260 = vst [vmem:[%s1891_s15 + $0x130] sm:$0xff] %v1259_v53  ;;  %v1265_v56 = vld [vmem:[%s1895_s20 + $0x148] sm:$0xff]  ;;  %1262 = vst [vmem:[%s1891_s15 + $0x138] sm:$0xff] %v1261_v54  ;;  %v1267_v57 = vld [vmem:[%s1895_s20 + $0x150] sm:$0xff] }
 0x15a   : >> { %1264 = vst [vmem:[%s1891_s15 + $0x140] sm:$0xff] %v1263_v55  ;;  %1266 = vst [vmem:[%s1891_s15 + $0x148] sm:$0xff] %v1265_v56  ;;  %v1269_v58 = vld [vmem:[%s1895_s20 + $0x158] sm:$0xff]  ;;  %v1271_v59 = vld [vmem:[%s1895_s20 + $0x160] sm:$0xff] }
 0x15b   : >> { %1268 = vst [vmem:[%s1891_s15 + $0x150] sm:$0xff] %v1267_v57  ;;  %1270 = vst [vmem:[%s1891_s15 + $0x158] sm:$0xff] %v1269_v58  ;;  %v1273_v60 = vld [vmem:[%s1895_s20 + $0x168] sm:$0xff]  ;;  %v1275_v61 = vld [vmem:[%s1895_s20 + $0x170] sm:$0xff] }
 0x15c   : >> { %1272 = vst [vmem:[%s1891_s15 + $0x160] sm:$0xff] %v1271_v59  ;;  %v1277_v62 = vld [vmem:[%s1895_s20 + $0x178] sm:$0xff]  ;;  %1274 = vst [vmem:[%s1891_s15 + $0x168] sm:$0xff] %v1273_v60  ;;  %v1279_v63 = vld [vmem:[%s1895_s20 + $0x180] sm:$0xff] }
 0x15d   : >> { %1276 = vst [vmem:[%s1891_s15 + $0x170] sm:$0xff] %v1275_v61  ;;  %1278 = vst [vmem:[%s1891_s15 + $0x178] sm:$0xff] %v1277_v62  ;;  %v1281_v0 = vld [vmem:[%s1895_s20 + $0x188] sm:$0xff]  ;;  %v1283_v1 = vld [vmem:[%s1895_s20 + $0x190] sm:$0xff] }
 0x15e   : >> { %1280 = vst [vmem:[%s1891_s15 + $0x180] sm:$0xff] %v1279_v63  ;;  %1282 = vst [vmem:[%s1891_s15 + $0x188] sm:$0xff] %v1281_v0  ;;  %v1285_v2 = vld [vmem:[%s1895_s20 + $0x198] sm:$0xff]  ;;  %v1287_v3 = vld [vmem:[%s1895_s20 + $0x1a0] sm:$0xff] }
 0x15f   : >> { %1284 = vst [vmem:[%s1891_s15 + $0x190] sm:$0xff] %v1283_v1  ;;  %v1289_v4 = vld [vmem:[%s1895_s20 + $0x1a8] sm:$0xff]  ;;  %1286 = vst [vmem:[%s1891_s15 + $0x198] sm:$0xff] %v1285_v2  ;;  %v1291_v5 = vld [vmem:[%s1895_s20 + $0x1b0] sm:$0xff]  ;;  %1179 = sbr.rel (!%p1176_p12) target bundleno = 325 (0x145), region = 122 }
 0x160   : >> { %1288 = vst [vmem:[%s1891_s15 + $0x1a0] sm:$0xff] %v1287_v3  ;;  %1290 = vst [vmem:[%s1891_s15 + $0x1a8] sm:$0xff] %v1289_v4  ;;  %v1293_v6 = vld [vmem:[%s1895_s20 + $0x1b8] sm:$0xff]  ;;  %v1295_v7 = vld [vmem:[%s1895_s20 + $0x1c0] sm:$0xff] }
 0x161   : >> { %1292 = vst [vmem:[%s1891_s15 + $0x1b0] sm:$0xff] %v1291_v5  ;;  %1294 = vst [vmem:[%s1891_s15 + $0x1b8] sm:$0xff] %v1293_v6  ;;  %v1297_v8 = vld [vmem:[%s1895_s20 + $0x1c8] sm:$0xff]  ;;  %v1299_v9 = vld [vmem:[%s1895_s20 + $0x1d0] sm:$0xff] }
 0x162   : >> { %1296 = vst [vmem:[%s1891_s15 + $0x1c0] sm:$0xff] %v1295_v7  ;;  %v1301_v10 = vld [vmem:[%s1895_s20 + $0x1d8] sm:$0xff]  ;;  %1298 = vst [vmem:[%s1891_s15 + $0x1c8] sm:$0xff] %v1297_v8  ;;  %v1303_v11 = vld [vmem:[%s1895_s20 + $0x1e0] sm:$0xff] }
 0x163   : >> { %1300 = vst [vmem:[%s1891_s15 + $0x1d0] sm:$0xff] %v1299_v9  ;;  %1302 = vst [vmem:[%s1891_s15 + $0x1d8] sm:$0xff] %v1301_v10  ;;  %v1305_v13 = vld [vmem:[%s1895_s20 + $0x1e8] sm:$0xff]  ;;  %v1307_v14 = vld [vmem:[%s1895_s20 + $0x1f0] sm:$0xff] }
 0x164   : >> { %1304 = vst [vmem:[%s1891_s15 + $0x1e0] sm:$0xff] %v1303_v11  ;;  %1306 = vst [vmem:[%s1891_s15 + $0x1e8] sm:$0xff] %v1305_v13  ;;  %v1309_v15 = vld [vmem:[%s1895_s20 + $0x1f8] sm:$0xff]  ;;  %s2546_s20 = smov %s2412_s10 }
 0x165   : >> { %1308 = vst [vmem:[%s1891_s15 + $0x1f0] sm:$0xff] %v1307_v14  ;;  %1310 = vst [vmem:[%s1891_s15 + $0x1f8] sm:$0xff] %v1309_v15  ;;  %s2545_s15 = smov %s2415_s11 }
 0x166 PF: > { %s2520_s14 = sand.u32 63, %s2552_s26   ;;  %s1535_s17 = sshll.u32 %s2345_s6, 9 }
 0x167   : > { %s1322_s18 = scalar_lea.vmem %s2142_s12, %s1535_s17 [#allocation2]   ;;  %s1324_s21 = scalar_lea.vmem %s2339_s4, %s1535_s17  }
 0x168   : > { %p1529_p13 = scmp.le.s32.totalorder %s2520_s14, 0 }
 0x169   : > { %s1905_s22 = smov (!%p1529_p13), %s1324_s21   ;;  %s1909_s23 = smov (!%p1529_p13), %s1322_s18  }
 0x16a   : > { %1415 = sbr.rel (%p1529_p13) target bundleno = 379 (0x17b), region = 127  ;;  %s1913_s24 = smov (!%p1529_p13), 0  }
 0x16b   : > { %s1917_s25 = smov (!%p1529_p13), 0  }
 0x171 LB: >> { %v1334_v12 = vld [vmem:[%s1911_s23] sm:$0xff]  ;;  %s1336_s26 = sadd.s32 1, %s1915_s24  ;;  %s1328_s25 = sadd.s32 1, %s1919_s25   ;;  %s1919_s25 = sphi %s1917_s25, %s1328_s25   ;;  %s1915_s24 = sphi %s1913_s24, %s1914_s24   ;;  %s1911_s23 = sphi %s1909_s23, %s1341_s23   ;;  %s1907_s22 = sphi %s1905_s22, %s1342_s22  }
 0x172   : >> { %1335 = vst [vmem:[%s1907_s22] sm:$0xff] %v1334_v12  ;;  %p1337_p0 = scmp.ge.s32.totalorder %s1336_s26, %s2520_s14  ;;  %p1327_p1 = scmp.ge.s32.totalorder %s1328_s25, %s2520_s14 }
 0x174   : >> { %s2556_s26 = smov (%p1337_p0, %s1336_s26), 0  ;;  %1330 = sbr.rel (!%p1327_p1) target bundleno = 369 (0x171), region = 133 }
 0x175   : >> { %s1530_s12 = sshll.u32 %s2556_s26, 3  ;;  %s1914_s24 = smov %s2556_s26  }
 0x176   : >> { %s1341_s23 = scalar_lea.vmem %s1322_s18, %s1530_s12 [#allocation2]   ;;  %s1342_s22 = scalar_lea.vmem %s1324_s21, %s1530_s12  }
 0x17b PF: > { %p10_p2 = scmp.ge.s32.totalorder %s1956_s16, 4   ;;  %s2548_s12 = smov %s1883_s13 }
 0x17c   : > { %s2549_s13 = smov %s1964_s19  ;;  %s2550_s14 = smov %s1956_s16 }
 0x17d   :  { %12 = sbr.rel (!%p10_p2) target bundleno = 2 (0x2), region = 144 }

// kernel: convnet_forward.5
= control target key start
LH: loop header
LB: loop body
LE: loop exit
PB: predicated region body
PF: predicated region fallthrough
CT: control target
= control target key end

     0   :  { %vm455_vm0 = vcmask 523264   ;;  %s1190_s1 = inlined_call_operand.vmem [shape: f32[512,64], index: 1, kind: input, shape index: {}]   ;;  %s1191_s0 = inlined_call_operand.vmem [shape: f32[128,512], index: 0, kind: input, shape index: {}]   ;;  %s1192_s2 = inlined_call_operand.vmem [shape: f32[1,64], index: 2, kind: input, shape index: {}]   ;;  %s1193_s3 = inlined_call_operand.vmem [shape: f32[128,64], index: 3, kind: output, shape index: {}]  }
   0x1   :  { %v94_v0 = vld [vmem:[%s1190_s1 + $0x80] sm:$0xff]  ;;  %v95_v1 = vld [vmem:[%s1190_s1 + $0x88] sm:$0xff]  ;;  %v96_v11 = vld [vmem:[%s1190_s1 + $0x90] sm:$0xff] }
   0x2   :  { %v78_v2 = vld [vmem:[%s1190_s1] sm:$0xff]  ;;  %v637_v3 = vpack.c.bf16 %v95_v1, %v94_v0  ;;  %v79_v4 = vld [vmem:[%s1190_s1 + $0x8] sm:$0xff]  ;;  %v97_v13 = vld [vmem:[%s1190_s1 + $0x98] sm:$0xff] }
   0x3   :  { %v126_v5 = vld [vmem:[%s1190_s1 + $0x180] sm:$0xff]  ;;  %v127_v6 = vld [vmem:[%s1190_s1 + $0x188] sm:$0xff]  ;;  %v639_v7 = vpack.c.bf16 %v79_v4, %v78_v2  ;;  %v80_v14 = vld [vmem:[%s1190_s1 + $0x10] sm:$0xff]  ;;  %v641_v16 = vpack.c.bf16 %v97_v13, %v96_v11 }
   0x4   :  { %v669_v8 = vpack.c.bf16 %v127_v6, %v126_v5  ;;  %v110_v9 = vld [vmem:[%s1190_s1 + $0x100] sm:$0xff]  ;;  %v111_v10 = vld [vmem:[%s1190_s1 + $0x108] sm:$0xff]  ;;  %638 = vmatprep.subr.bf16.mxu0 %v637_v3  ;;  %v81_v15 = vld [vmem:[%s1190_s1 + $0x18] sm:$0xff] }
   0x5   :  { %v671_v12 = vpack.c.bf16 %v111_v10, %v110_v9  ;;  %640 = vmatpush3.bf16.msra.mxu0 %v639_v7  ;;  %v643_v17 = vpack.c.bf16 %v81_v15, %v80_v14  ;;  %v128_v18 = vld [vmem:[%s1190_s1 + $0x190] sm:$0xff]  ;;  %v129_v19 = vld [vmem:[%s1190_s1 + $0x198] sm:$0xff]  ;;  %v98_v23 = vld [vmem:[%s1190_s1 + $0xa0] sm:$0xff] }
   0x6   :  { %670 = vmatprep.subr.bf16.mxu1 %v669_v8  ;;  %v112_v20 = vld [vmem:[%s1190_s1 + $0x110] sm:$0xff]  ;;  %v673_v21 = vpack.c.bf16 %v129_v19, %v128_v18  ;;  %v113_v22 = vld [vmem:[%s1190_s1 + $0x118] sm:$0xff]  ;;  %v99_v24 = vld [vmem:[%s1190_s1 + $0xa8] sm:$0xff]  ;;  %642 = vmatprep.subr.bf16.mxu0 %v641_v16 }
   0x7   :  { %672 = vmatpush3.bf16.msra.mxu1 %v671_v12  ;;  %v675_v25 = vpack.c.bf16 %v113_v22, %v112_v20  ;;  %v645_v26 = vpack.c.bf16 %v99_v24, %v98_v23  ;;  %v82_v27 = vld [vmem:[%s1190_s1 + $0x20] sm:$0xff]  ;;  %v83_v28 = vld [vmem:[%s1190_s1 + $0x28] sm:$0xff]  ;;  %v100_v35 = vld [vmem:[%s1190_s1 + $0xb0] sm:$0xff] }
   0x8   :  { %v130_v29 = vld [vmem:[%s1190_s1 + $0x1a0] sm:$0xff]  ;;  %674 = vmatprep.subr.bf16.mxu1 %v673_v21  ;;  %v131_v30 = vld [vmem:[%s1190_s1 + $0x1a8] sm:$0xff]  ;;  %v647_v33 = vpack.c.bf16 %v83_v28, %v82_v27  ;;  %v101_v36 = vld [vmem:[%s1190_s1 + $0xb8] sm:$0xff] }
   0x9   :  { %v114_v31 = vld [vmem:[%s1190_s1 + $0x120] sm:$0xff]  ;;  %v115_v32 = vld [vmem:[%s1190_s1 + $0x128] sm:$0xff]  ;;  %644 = vmatpush3.bf16.msra.mxu0 %v643_v17  ;;  %v677_v34 = vpack.c.bf16 %v131_v30, %v130_v29  ;;  %v84_v37 = vld [vmem:[%s1190_s1 + $0x30] sm:$0xff]  ;;  %v649_v39 = vpack.c.bf16 %v101_v36, %v100_v35 }
   0xa   :  { %646 = vmatprep.subr.bf16.mxu0 %v645_v26  ;;  %v679_v38 = vpack.c.bf16 %v115_v32, %v114_v31  ;;  %v85_v40 = vld [vmem:[%s1190_s1 + $0x38] sm:$0xff]  ;;  %v132_v41 = vld [vmem:[%s1190_s1 + $0x1b0] sm:$0xff]  ;;  %v102_v46 = vld [vmem:[%s1190_s1 + $0xc0] sm:$0xff] }
   0xb   :  { %676 = vmatpush3.bf16.msra.mxu1 %v675_v25  ;;  %v133_v42 = vld [vmem:[%s1190_s1 + $0x1b8] sm:$0xff]  ;;  %v116_v44 = vld [vmem:[%s1190_s1 + $0x130] sm:$0xff]  ;;  %v103_v47 = vld [vmem:[%s1190_s1 + $0xc8] sm:$0xff]  ;;  %v651_v48 = vpack.c.bf16 %v85_v40, %v84_v37 }
   0xc   :  { %678 = vmatprep.subr.bf16.mxu1 %v677_v34  ;;  %v681_v43 = vpack.c.bf16 %v133_v42, %v132_v41  ;;  %v117_v45 = vld [vmem:[%s1190_s1 + $0x138] sm:$0xff]  ;;  %v134_v49 = vld [vmem:[%s1190_s1 + $0x1c0] sm:$0xff]  ;;  %v135_v50 = vld [vmem:[%s1190_s1 + $0x1c8] sm:$0xff]  ;;  %v653_v52 = vpack.c.bf16 %v103_v47, %v102_v46 }
   0xd   :  { %648 = vmatpush3.bf16.msra.mxu0 %v647_v33  ;;  %v683_v51 = vpack.c.bf16 %v117_v45, %v116_v44  ;;  %v86_v53 = vld [vmem:[%s1190_s1 + $0x40] sm:$0xff]  ;;  %v87_v54 = vld [vmem:[%s1190_s1 + $0x48] sm:$0xff]  ;;  %v685_v56 = vpack.c.bf16 %v135_v50, %v134_v49  ;;  %v104_v58 = vld [vmem:[%s1190_s1 + $0xd0] sm:$0xff] }
   0xe   :  { %650 = vmatprep.subr.bf16.mxu0 %v649_v39  ;;  %v118_v55 = vld [vmem:[%s1190_s1 + $0x140] sm:$0xff]  ;;  %v119_v57 = vld [vmem:[%s1190_s1 + $0x148] sm:$0xff]  ;;  %v105_v59 = vld [vmem:[%s1190_s1 + $0xd8] sm:$0xff]  ;;  %v655_v62 = vpack.c.bf16 %v87_v54, %v86_v53 }
   0xf   :  { %680 = vmatpush3.bf16.msra.mxu1 %v679_v38  ;;  %v136_v60 = vld [vmem:[%s1190_s1 + $0x1d0] sm:$0xff]  ;;  %v137_v61 = vld [vmem:[%s1190_s1 + $0x1d8] sm:$0xff]  ;;  %v687_v63 = vpack.c.bf16 %v119_v57, %v118_v55  ;;  %v657_v0 = vpack.c.bf16 %v105_v59, %v104_v58  ;;  %v106_v6 = vld [vmem:[%s1190_s1 + $0xe0] sm:$0xff] }
  0x10   :  { %682 = vmatprep.subr.bf16.mxu1 %v681_v43  ;;  %v88_v1 = vld [vmem:[%s1190_s1 + $0x50] sm:$0xff]  ;;  %v89_v2 = vld [vmem:[%s1190_s1 + $0x58] sm:$0xff]  ;;  %v689_v4 = vpack.c.bf16 %v137_v61, %v136_v60  ;;  %v107_v7 = vld [vmem:[%s1190_s1 + $0xe8] sm:$0xff] }
  0x11   :  { %652 = vmatpush3.bf16.msra.mxu0 %v651_v48  ;;  %v120_v3 = vld [vmem:[%s1190_s1 + $0x150] sm:$0xff]  ;;  %v121_v5 = vld [vmem:[%s1190_s1 + $0x158] sm:$0xff]  ;;  %v138_v8 = vld [vmem:[%s1190_s1 + $0x1e0] sm:$0xff]  ;;  %v659_v10 = vpack.c.bf16 %v89_v2, %v88_v1  ;;  %v661_v14 = vpack.c.bf16 %v107_v7, %v106_v6 }
  0x12   :  { %654 = vmatprep.subr.bf16.mxu0 %v653_v52  ;;  %v139_v9 = vld [vmem:[%s1190_s1 + $0x1e8] sm:$0xff]  ;;  %v90_v11 = vld [vmem:[%s1190_s1 + $0x60] sm:$0xff]  ;;  %v691_v13 = vpack.c.bf16 %v121_v5, %v120_v3  ;;  %v108_v19 = vld [vmem:[%s1190_s1 + $0xf0] sm:$0xff] }
  0x13   :  { %684 = vmatpush3.bf16.msra.mxu1 %v683_v51  ;;  %v91_v12 = vld [vmem:[%s1190_s1 + $0x68] sm:$0xff]  ;;  %v122_v15 = vld [vmem:[%s1190_s1 + $0x160] sm:$0xff]  ;;  %v693_v18 = vpack.c.bf16 %v139_v9, %v138_v8  ;;  %v109_v20 = vld [vmem:[%s1190_s1 + $0xf8] sm:$0xff] }
  0x14   :  { %686 = vmatprep.subr.bf16.mxu1 %v685_v56  ;;  %v123_v16 = vld [vmem:[%s1190_s1 + $0x168] sm:$0xff]  ;;  %v17_v21 = vld [vmem:[%s1191_s0 + $0x18] sm:$0xff]  ;;  %v140_v22 = vld [vmem:[%s1190_s1 + $0x1f0] sm:$0xff]  ;;  %v663_v24 = vpack.c.bf16 %v91_v12, %v90_v11  ;;  %v665_v26 = vpack.c.bf16 %v109_v20, %v108_v19 }
  0x15   :  { %656 = vmatpush3.bf16.msra.mxu0 %v655_v62  ;;  %v15_v17 = vld [vmem:[%s1191_s0 + $0x8] sm:$0xff]  ;;  %v141_v23 = vld [vmem:[%s1190_s1 + $0x1f8] sm:$0xff]  ;;  %358 = vmatprep.mubr.f32.mxu1 %v17_v21  ;;  %v695_v25 = vpack.c.bf16 %v123_v16, %v122_v15  ;;  %v92_v27 = vld [vmem:[%s1190_s1 + $0x70] sm:$0xff] }
  0x16   :  { %658 = vmatprep.subr.bf16.mxu0 %v657_v0  ;;  %213 = vmatprep.mubr.f32.mxu0 %v15_v17  ;;  %v93_v28 = vld [vmem:[%s1190_s1 + $0x78] sm:$0xff]  ;;  %v697_v29 = vpack.c.bf16 %v141_v23, %v140_v22  ;;  %v124_v30 = vld [vmem:[%s1190_s1 + $0x170] sm:$0xff]  ;;  %v14_v34 = vld [vmem:[%s1191_s0] sm:$0xff] }
  0x17   :  { %688 = vmatpush3.bf16.msra.mxu1 %v687_v63  ;;  %v125_v31 = vld [vmem:[%s1190_s1 + $0x178] sm:$0xff]  ;;  %v667_v32 = vpack.c.bf16 %v93_v28, %v92_v27  ;;  %v16_v35 = vld [vmem:[%s1191_s0 + $0x10] sm:$0xff]  ;;  %v19_v36 = vld [vmem:[%s1191_s0 + $0x28] sm:$0xff] }
  0x18   :  { %690 = vmatprep.subr.bf16.mxu1 %v689_v4  ;;  %v699_v33 = vpack.c.bf16 %v125_v31, %v124_v30  ;;  %v21_v37 = vld [vmem:[%s1191_s0 + $0x38] sm:$0xff]  ;;  %v18_v38 = vld [vmem:[%s1191_s0 + $0x20] sm:$0xff]  ;;  %v20_v39 = vld [vmem:[%s1191_s0 + $0x30] sm:$0xff] }
  0x19   :  { %660 = vmatpush3.bf16.msra.mxu0 %v659_v10  ;;  %v23_v40 = vld [vmem:[%s1191_s0 + $0x48] sm:$0xff]  ;;  %v25_v41 = vld [vmem:[%s1191_s0 + $0x58] sm:$0xff]  ;;  %v22_v42 = vld [vmem:[%s1191_s0 + $0x40] sm:$0xff] }
  0x1a   :  { %662 = vmatprep.subr.bf16.mxu0 %v661_v14  ;;  %v24_v43 = vld [vmem:[%s1191_s0 + $0x50] sm:$0xff]  ;;  %v27_v44 = vld [vmem:[%s1191_s0 + $0x68] sm:$0xff]  ;;  %v29_v45 = vld [vmem:[%s1191_s0 + $0x78] sm:$0xff] }
  0x1b   :  { %692 = vmatpush3.bf16.msra.mxu1 %v691_v13  ;;  %v26_v46 = vld [vmem:[%s1191_s0 + $0x60] sm:$0xff]  ;;  %v28_v47 = vld [vmem:[%s1191_s0 + $0x70] sm:$0xff]  ;;  %v31_v48 = vld [vmem:[%s1191_s0 + $0x88] sm:$0xff] }
  0x1c   :  { %694 = vmatprep.subr.bf16.mxu1 %v693_v18  ;;  %v33_v49 = vld [vmem:[%s1191_s0 + $0x98] sm:$0xff]  ;;  %v30_v50 = vld [vmem:[%s1191_s0 + $0x80] sm:$0xff]  ;;  %v32_v51 = vld [vmem:[%s1191_s0 + $0x90] sm:$0xff] }
  0x1d   :  { %664 = vmatpush3.bf16.msra.mxu0 %v663_v24  ;;  %v35_v52 = vld [vmem:[%s1191_s0 + $0xa8] sm:$0xff]  ;;  %v37_v53 = vld [vmem:[%s1191_s0 + $0xb8] sm:$0xff]  ;;  %v34_v54 = vld [vmem:[%s1191_s0 + $0xa0] sm:$0xff] }
  0x1e   :  { %666 = vmatprep.subr.bf16.mxu0 %v665_v26  ;;  %v36_v55 = vld [vmem:[%s1191_s0 + $0xb0] sm:$0xff]  ;;  %v39_v56 = vld [vmem:[%s1191_s0 + $0xc8] sm:$0xff]  ;;  %v41_v57 = vld [vmem:[%s1191_s0 + $0xd8] sm:$0xff] }
  0x1f   :  { %696 = vmatpush3.bf16.msra.mxu1 %v695_v25  ;;  %v38_v58 = vld [vmem:[%s1191_s0 + $0xc0] sm:$0xff]  ;;  %v40_v59 = vld [vmem:[%s1191_s0 + $0xd0] sm:$0xff]  ;;  %v43_v60 = vld [vmem:[%s1191_s0 + $0xe8] sm:$0xff] }
  0x20   :  { %698 = vmatprep.subr.bf16.mxu1 %v697_v29  ;;  %v45_v61 = vld [vmem:[%s1191_s0 + $0xf8] sm:$0xff]  ;;  %v42_v62 = vld [vmem:[%s1191_s0 + $0xe0] sm:$0xff]  ;;  %v44_v63 = vld [vmem:[%s1191_s0 + $0xf0] sm:$0xff] }
  0x21   :  { %668 = vmatpush3.bf16.msra.mxu0 %v667_v32  ;;  %v47_v0 = vld [vmem:[%s1191_s0 + $0x108] sm:$0xff]  ;;  %v49_v1 = vld [vmem:[%s1191_s0 + $0x118] sm:$0xff]  ;;  %v46_v2 = vld [vmem:[%s1191_s0 + $0x100] sm:$0xff] }
  0x22   :  { %v48_v3 = vld [vmem:[%s1191_s0 + $0x110] sm:$0xff]  ;;  %v51_v4 = vld [vmem:[%s1191_s0 + $0x128] sm:$0xff]  ;;  %v53_v5 = vld [vmem:[%s1191_s0 + $0x138] sm:$0xff] }
  0x23   :  { %700 = vmatpush3.bf16.msra.mxu1 %v699_v33  ;;  %v50_v6 = vld [vmem:[%s1191_s0 + $0x120] sm:$0xff]  ;;  %v52_v7 = vld [vmem:[%s1191_s0 + $0x130] sm:$0xff]  ;;  %v55_v8 = vld [vmem:[%s1191_s0 + $0x148] sm:$0xff] }
  0x24   :  { %214 = vmatmul.mubr.f32.vlgmr.msra.gmra.mrb[0].mxu0 %v14_v34  ;;  %v57_v9 = vld [vmem:[%s1191_s0 + $0x158] sm:$0xff]  ;;  %v54_v10 = vld [vmem:[%s1191_s0 + $0x140] sm:$0xff]  ;;  %v56_v11 = vld [vmem:[%s1191_s0 + $0x150] sm:$0xff] }
  0x25   :  { %218 = vmatprep.mubr.f32.mxu0 %v19_v36  ;;  %v59_v12 = vld [vmem:[%s1191_s0 + $0x168] sm:$0xff]  ;;  %v61_v13 = vld [vmem:[%s1191_s0 + $0x178] sm:$0xff]  ;;  %v58_v14 = vld [vmem:[%s1191_s0 + $0x160] sm:$0xff] }
  0x26   :  { %359 = vmatmul.mubr.f32.vlgmr.msra.gmra.mrb[0].mxu1 %v16_v35  ;;  %v60_v15 = vld [vmem:[%s1191_s0 + $0x170] sm:$0xff]  ;;  %v63_v16 = vld [vmem:[%s1191_s0 + $0x188] sm:$0xff]  ;;  %v65_v17 = vld [vmem:[%s1191_s0 + $0x198] sm:$0xff] }
  0x27   :  { %363 = vmatprep.mubr.f32.mxu1 %v21_v37  ;;  %v62_v18 = vld [vmem:[%s1191_s0 + $0x180] sm:$0xff]  ;;  %v64_v19 = vld [vmem:[%s1191_s0 + $0x190] sm:$0xff]  ;;  %v67_v20 = vld [vmem:[%s1191_s0 + $0x1a8] sm:$0xff] }
  0x28   :  { %219 = vmatmul.mubr.f32.gmra.mrb[2].mxu0 %v18_v38  ;;  %v69_v21 = vld [vmem:[%s1191_s0 + $0x1b8] sm:$0xff]  ;;  %v66_v22 = vld [vmem:[%s1191_s0 + $0x1a0] sm:$0xff]  ;;  %v68_v23 = vld [vmem:[%s1191_s0 + $0x1b0] sm:$0xff] }
  0x29   :  { %223 = vmatprep.mubr.f32.mxu0 %v23_v40  ;;  %v71_v24 = vld [vmem:[%s1191_s0 + $0x1c8] sm:$0xff]  ;;  %v73_v25 = vld [vmem:[%s1191_s0 + $0x1d8] sm:$0xff]  ;;  %v70_v26 = vld [vmem:[%s1191_s0 + $0x1c0] sm:$0xff] }
  0x2a   :  { %364 = vmatmul.mubr.f32.gmra.mrb[2].mxu1 %v20_v39  ;;  %v72_v27 = vld [vmem:[%s1191_s0 + $0x1d0] sm:$0xff]  ;;  %v75_v28 = vld [vmem:[%s1191_s0 + $0x1e8] sm:$0xff]  ;;  %v77_v29 = vld [vmem:[%s1191_s0 + $0x1f8] sm:$0xff] }
  0x2b   :  { %368 = vmatprep.mubr.f32.mxu1 %v25_v41  ;;  %v74_v30 = vld [vmem:[%s1191_s0 + $0x1e0] sm:$0xff]  ;;  %v76_v31 = vld [vmem:[%s1191_s0 + $0x1f0] sm:$0xff] }
  0x2c   :  { %224 = vmatmul.mubr.f32.gmra.mrb[4].mxu0 %v22_v42  ;;  %v1108_v33 = vld [vmem:[%s1192_s2] ss:$0 sm:$0xff] }
  0x2d   :  { %228 = vmatprep.mubr.f32.mxu0 %v27_v44 }
  0x2e   :  { %369 = vmatmul.mubr.f32.gmra.mrb[4].mxu1 %v24_v43 }
  0x2f   :  { %373 = vmatprep.mubr.f32.mxu1 %v29_v45 }
  0x30   :  { %229 = vmatmul.mubr.f32.gmra.mrb[6].mxu0 %v26_v46 }
  0x31   :  { %233 = vmatprep.mubr.f32.mxu0 %v31_v48 }
  0x32   :  { %374 = vmatmul.mubr.f32.gmra.mrb[6].mxu1 %v28_v47 }
  0x33   :  { %378 = vmatprep.mubr.f32.mxu1 %v33_v49 }
  0x34   :  { %234 = vmatmul.mubr.f32.gmra.mrb[8].mxu0 %v30_v50 }
  0x35   :  { %238 = vmatprep.mubr.f32.mxu0 %v35_v52 }
  0x36   :  { %379 = vmatmul.mubr.f32.gmra.mrb[8].mxu1 %v32_v51 }
  0x37   :  { %383 = vmatprep.mubr.f32.mxu1 %v37_v53 }
  0x38   :  { %239 = vmatmul.mubr.f32.gmra.mrb[10].mxu0 %v34_v54 }
  0x39   :  { %243 = vmatprep.mubr.f32.mxu0 %v39_v56 }
  0x3a   :  { %384 = vmatmul.mubr.f32.gmra.mrb[10].mxu1 %v36_v55 }
  0x3b   :  { %388 = vmatprep.mubr.f32.mxu1 %v41_v57 }
  0x3c   :  { %244 = vmatmul.mubr.f32.gmra.mrb[12].mxu0 %v38_v58 }
  0x3d   :  { %248 = vmatprep.mubr.f32.mxu0 %v43_v60 }
  0x3e   :  { %389 = vmatmul.mubr.f32.gmra.mrb[12].mxu1 %v40_v59 }
  0x3f   :  { %393 = vmatprep.mubr.f32.mxu1 %v45_v61 }
  0x40   :  { %249 = vmatmul.mubr.f32.gmra.mrb[14].mxu0 %v42_v62 }
  0x41   :  { %253 = vmatprep.mubr.f32.mxu0 %v47_v0 }
  0x42   :  { %394 = vmatmul.mubr.f32.gmra.mrb[14].mxu1 %v44_v63 }
  0x43   :  { %398 = vmatprep.mubr.f32.mxu1 %v49_v1 }
  0x44   :  { %254 = vmatmul.mubr.f32.gmra.mrb[16].mxu0 %v46_v2 }
  0x45   :  { %258 = vmatprep.mubr.f32.mxu0 %v51_v4 }
  0x46   :  { %399 = vmatmul.mubr.f32.gmra.mrb[16].mxu1 %v48_v3 }
  0x47   :  { %403 = vmatprep.mubr.f32.mxu1 %v53_v5 }
  0x48   :  { %259 = vmatmul.mubr.f32.gmra.mrb[18].mxu0 %v50_v6 }
  0x49   :  { %263 = vmatprep.mubr.f32.mxu0 %v55_v8 }
  0x4a   :  { %404 = vmatmul.mubr.f32.gmra.mrb[18].mxu1 %v52_v7 }
  0x4b   :  { %408 = vmatprep.mubr.f32.mxu1 %v57_v9 }
  0x4c   :  { %264 = vmatmul.mubr.f32.gmra.mrb[20].mxu0 %v54_v10 }
  0x4d   :  { %268 = vmatprep.mubr.f32.mxu0 %v59_v12 }
  0x4e   :  { %409 = vmatmul.mubr.f32.gmra.mrb[20].mxu1 %v56_v11 }
  0x4f   :  { %413 = vmatprep.mubr.f32.mxu1 %v61_v13 }
  0x50   :  { %269 = vmatmul.mubr.f32.gmra.mrb[22].mxu0 %v58_v14 }
  0x51   :  { %273 = vmatprep.mubr.f32.mxu0 %v63_v16 }
  0x52   :  { %414 = vmatmul.mubr.f32.gmra.mrb[22].mxu1 %v60_v15 }
  0x53   :  { %418 = vmatprep.mubr.f32.mxu1 %v65_v17 }
  0x54   :  { %274 = vmatmul.mubr.f32.gmra.mrb[24].mxu0 %v62_v18 }
  0x55   :  { %278 = vmatprep.mubr.f32.mxu0 %v67_v20 }
  0x56   :  { %419 = vmatmul.mubr.f32.gmra.mrb[24].mxu1 %v64_v19 }
  0x57   :  { %423 = vmatprep.mubr.f32.mxu1 %v69_v21 }
  0x58   :  { %279 = vmatmul.mubr.f32.gmra.mrb[26].mxu0 %v66_v22 }
  0x59   :  { %283 = vmatprep.mubr.f32.mxu0 %v71_v24 }
  0x5a   :  { %424 = vmatmul.mubr.f32.gmra.mrb[26].mxu1 %v68_v23 }
  0x5b   :  { %428 = vmatprep.mubr.f32.mxu1 %v73_v25 }
  0x5c   :  { %284 = vmatmul.mubr.f32.gmra.mrb[28].mxu0 %v70_v26 }
  0x5d   :  { %288 = vmatprep.mubr.f32.mxu0 %v75_v28 }
  0x5e   :  { %429 = vmatmul.mubr.f32.gmra.mrb[28].mxu1 %v72_v27 }
  0x5f   :  { %433 = vmatprep.mubr.f32.mxu1 %v77_v29 }
  0x60   :  { %289 = vmatmul.mubr.f32.gmra.mrb[30].mxu0 %v74_v30 }
  0x62   :  { %434 = vmatmul.mubr.f32.gmra.mrb[30].mxu1 %v76_v31 }
  0xf7   :  { %v509_v32 = vpop.f32.mrb[0].mxu0 }
  0xf8   :  { %v510_v34 = vpop.f32.mrb[1].mxu0 }
  0xf9   :  { %v589_v35 = vpop.f32.mrb[0].mxu1  ;;  %v511_v36 = vadd.f32 %v510_v34, %v509_v32 }
  0xfa   :  { %v590_v37 = vpop.f32.mrb[1].mxu1 }
  0xfb   :  { %v591_v38 = vadd.f32 %v590_v37, %v589_v35  ;;  %v216_v39 = vadd.f32 %v511_v36, %v1108_v33  ;;  %v512_v40 = vpop.f32.mrb[2].mxu0 }
  0xfc   :  { %v513_v41 = vpop.f32.mrb[3].mxu0 }
  0xfd   :  { %v592_v42 = vpop.f32.mrb[2].mxu1  ;;  %v361_v43 = vadd.f32 %v591_v38, %v216_v39  ;;  %v514_v44 = vadd.f32 %v513_v41, %v512_v40 }
  0xfe   :  { %v593_v45 = vpop.f32.mrb[3].mxu1 }
  0xff   :  { %v594_v46 = vadd.f32 %v593_v45, %v592_v42  ;;  %v439_v47 = vmax.f32 %v361_v43, 0.0  ;;  %v221_v48 = vadd.f32 %v514_v44, %v1108_v33  ;;  %v515_v49 = vpop.f32.mrb[4].mxu0 }
 0x100   :  { %v516_v50 = vpop.f32.mrb[5].mxu0 }
 0x101   :  { %v595_v51 = vpop.f32.mrb[4].mxu1  ;;  %456 = vst.msk [vmem:[%s1193_s3] sm:$0xff] %vm455_vm0, %v439_v47  ;;  %v366_v52 = vadd.f32 %v594_v46, %v221_v48  ;;  %v517_v53 = vadd.f32 %v516_v50, %v515_v49 }
 0x102   :  { %v596_v54 = vpop.f32.mrb[5].mxu1 }
 0x103   :  { %v597_v55 = vadd.f32 %v596_v54, %v595_v51  ;;  %v440_v56 = vmax.f32 %v366_v52, 0.0  ;;  %v226_v57 = vadd.f32 %v517_v53, %v1108_v33  ;;  %v518_v58 = vpop.f32.mrb[6].mxu0 }
 0x104   :  { %v519_v59 = vpop.f32.mrb[7].mxu0 }
 0x105   :  { %v598_v60 = vpop.f32.mrb[6].mxu1  ;;  %457 = vst.msk [vmem:[%s1193_s3 + $0x8] sm:$0xff] %vm455_vm0, %v440_v56  ;;  %v371_v61 = vadd.f32 %v597_v55, %v226_v57  ;;  %v520_v62 = vadd.f32 %v519_v59, %v518_v58 }
 0x106   :  { %v599_v63 = vpop.f32.mrb[7].mxu1 }
 0x107   :  { %v600_v0 = vadd.f32 %v599_v63, %v598_v60  ;;  %v441_v1 = vmax.f32 %v371_v61, 0.0  ;;  %v231_v2 = vadd.f32 %v520_v62, %v1108_v33  ;;  %v521_v3 = vpop.f32.mrb[8].mxu0 }
 0x108   :  { %v522_v4 = vpop.f32.mrb[9].mxu0 }
 0x109   :  { %v601_v5 = vpop.f32.mrb[8].mxu1  ;;  %458 = vst.msk [vmem:[%s1193_s3 + $0x10] sm:$0xff] %vm455_vm0, %v441_v1  ;;  %v376_v6 = vadd.f32 %v600_v0, %v231_v2  ;;  %v523_v7 = vadd.f32 %v522_v4, %v521_v3 }
 0x10a   :  { %v602_v8 = vpop.f32.mrb[9].mxu1 }
 0x10b   :  { %v603_v9 = vadd.f32 %v602_v8, %v601_v5  ;;  %v442_v10 = vmax.f32 %v376_v6, 0.0  ;;  %v236_v11 = vadd.f32 %v523_v7, %v1108_v33  ;;  %v524_v12 = vpop.f32.mrb[10].mxu0 }
 0x10c   :  { %v525_v13 = vpop.f32.mrb[11].mxu0 }
 0x10d   :  { %v604_v14 = vpop.f32.mrb[10].mxu1  ;;  %459 = vst.msk [vmem:[%s1193_s3 + $0x18] sm:$0xff] %vm455_vm0, %v442_v10  ;;  %v381_v15 = vadd.f32 %v603_v9, %v236_v11  ;;  %v526_v16 = vadd.f32 %v525_v13, %v524_v12 }
 0x10e   :  { %v605_v17 = vpop.f32.mrb[11].mxu1 }
 0x10f   :  { %v606_v18 = vadd.f32 %v605_v17, %v604_v14  ;;  %v443_v19 = vmax.f32 %v381_v15, 0.0  ;;  %v241_v20 = vadd.f32 %v526_v16, %v1108_v33  ;;  %v527_v21 = vpop.f32.mrb[12].mxu0 }
 0x110   :  { %v528_v22 = vpop.f32.mrb[13].mxu0 }
 0x111   :  { %v607_v23 = vpop.f32.mrb[12].mxu1  ;;  %460 = vst.msk [vmem:[%s1193_s3 + $0x20] sm:$0xff] %vm455_vm0, %v443_v19  ;;  %v386_v24 = vadd.f32 %v606_v18, %v241_v20  ;;  %v529_v25 = vadd.f32 %v528_v22, %v527_v21 }
 0x112   :  { %v608_v26 = vpop.f32.mrb[13].mxu1 }
 0x113   :  { %v609_v27 = vadd.f32 %v608_v26, %v607_v23  ;;  %v444_v28 = vmax.f32 %v386_v24, 0.0  ;;  %v246_v29 = vadd.f32 %v529_v25, %v1108_v33  ;;  %v530_v30 = vpop.f32.mrb[14].mxu0 }
 0x114   :  { %v531_v31 = vpop.f32.mrb[15].mxu0 }
 0x115   :  { %v610_v32 = vpop.f32.mrb[14].mxu1  ;;  %461 = vst.msk [vmem:[%s1193_s3 + $0x28] sm:$0xff] %vm455_vm0, %v444_v28  ;;  %v391_v34 = vadd.f32 %v609_v27, %v246_v29  ;;  %v532_v35 = vadd.f32 %v531_v31, %v530_v30 }
 0x116   :  { %v611_v36 = vpop.f32.mrb[15].mxu1 }
 0x117   :  { %v612_v37 = vadd.f32 %v611_v36, %v610_v32  ;;  %v445_v38 = vmax.f32 %v391_v34, 0.0  ;;  %v251_v39 = vadd.f32 %v532_v35, %v1108_v33  ;;  %v533_v40 = vpop.f32.mrb[16].mxu0 }
 0x118   :  { %v534_v41 = vpop.f32.mrb[17].mxu0 }
 0x119   :  { %v613_v42 = vpop.f32.mrb[16].mxu1  ;;  %462 = vst.msk [vmem:[%s1193_s3 + $0x30] sm:$0xff] %vm455_vm0, %v445_v38  ;;  %v396_v43 = vadd.f32 %v612_v37, %v251_v39  ;;  %v535_v44 = vadd.f32 %v534_v41, %v533_v40 }
 0x11a   :  { %v614_v45 = vpop.f32.mrb[17].mxu1 }
 0x11b   :  { %v615_v46 = vadd.f32 %v614_v45, %v613_v42  ;;  %v446_v47 = vmax.f32 %v396_v43, 0.0  ;;  %v256_v48 = vadd.f32 %v535_v44, %v1108_v33  ;;  %v536_v49 = vpop.f32.mrb[18].mxu0 }
 0x11c   :  { %v537_v50 = vpop.f32.mrb[19].mxu0 }
 0x11d   :  { %v616_v51 = vpop.f32.mrb[18].mxu1  ;;  %463 = vst.msk [vmem:[%s1193_s3 + $0x38] sm:$0xff] %vm455_vm0, %v446_v47  ;;  %v401_v52 = vadd.f32 %v615_v46, %v256_v48  ;;  %v538_v53 = vadd.f32 %v537_v50, %v536_v49 }
 0x11e   :  { %v617_v54 = vpop.f32.mrb[19].mxu1 }
 0x11f   :  { %v618_v55 = vadd.f32 %v617_v54, %v616_v51  ;;  %v447_v56 = vmax.f32 %v401_v52, 0.0  ;;  %v261_v57 = vadd.f32 %v538_v53, %v1108_v33  ;;  %v539_v58 = vpop.f32.mrb[20].mxu0 }
 0x120   :  { %v540_v59 = vpop.f32.mrb[21].mxu0 }
 0x121   :  { %v619_v60 = vpop.f32.mrb[20].mxu1  ;;  %464 = vst.msk [vmem:[%s1193_s3 + $0x40] sm:$0xff] %vm455_vm0, %v447_v56  ;;  %v406_v61 = vadd.f32 %v618_v55, %v261_v57  ;;  %v541_v62 = vadd.f32 %v540_v59, %v539_v58 }
 0x122   :  { %v620_v63 = vpop.f32.mrb[21].mxu1 }
 0x123   :  { %v621_v0 = vadd.f32 %v620_v63, %v619_v60  ;;  %v448_v1 = vmax.f32 %v406_v61, 0.0  ;;  %v266_v2 = vadd.f32 %v541_v62, %v1108_v33  ;;  %v542_v3 = vpop.f32.mrb[22].mxu0 }
 0x124   :  { %v543_v4 = vpop.f32.mrb[23].mxu0 }
 0x125   :  { %v622_v5 = vpop.f32.mrb[22].mxu1  ;;  %465 = vst.msk [vmem:[%s1193_s3 + $0x48] sm:$0xff] %vm455_vm0, %v448_v1  ;;  %v411_v6 = vadd.f32 %v621_v0, %v266_v2  ;;  %v544_v7 = vadd.f32 %v543_v4, %v542_v3 }
 0x126   :  { %v623_v8 = vpop.f32.mrb[23].mxu1 }
 0x127   :  { %v624_v9 = vadd.f32 %v623_v8, %v622_v5  ;;  %v449_v10 = vmax.f32 %v411_v6, 0.0  ;;  %v271_v11 = vadd.f32 %v544_v7, %v1108_v33  ;;  %v545_v12 = vpop.f32.mrb[24].mxu0 }
 0x128   :  { %v546_v13 = vpop.f32.mrb[25].mxu0 }
 0x129   :  { %v625_v14 = vpop.f32.mrb[24].mxu1  ;;  %466 = vst.msk [vmem:[%s1193_s3 + $0x50] sm:$0xff] %vm455_vm0, %v449_v10  ;;  %v416_v15 = vadd.f32 %v624_v9, %v271_v11  ;;  %v547_v16 = vadd.f32 %v546_v13, %v545_v12 }
 0x12a   :  { %v626_v17 = vpop.f32.mrb[25].mxu1 }
 0x12b   :  { %v627_v18 = vadd.f32 %v626_v17, %v625_v14  ;;  %v450_v19 = vmax.f32 %v416_v15, 0.0  ;;  %v276_v20 = vadd.f32 %v547_v16, %v1108_v33  ;;  %v548_v21 = vpop.f32.mrb[26].mxu0 }
 0x12c   :  { %v549_v22 = vpop.f32.mrb[27].mxu0 }
 0x12d   :  { %v628_v23 = vpop.f32.mrb[26].mxu1  ;;  %467 = vst.msk [vmem:[%s1193_s3 + $0x58] sm:$0xff] %vm455_vm0, %v450_v19  ;;  %v421_v24 = vadd.f32 %v627_v18, %v276_v20  ;;  %v550_v25 = vadd.f32 %v549_v22, %v548_v21 }
 0x12e   :  { %v629_v26 = vpop.f32.mrb[27].mxu1 }
 0x12f   :  { %v630_v27 = vadd.f32 %v629_v26, %v628_v23  ;;  %v451_v28 = vmax.f32 %v421_v24, 0.0  ;;  %v281_v29 = vadd.f32 %v550_v25, %v1108_v33  ;;  %v551_v30 = vpop.f32.mrb[28].mxu0 }
 0x130   :  { %v552_v31 = vpop.f32.mrb[29].mxu0 }
 0x131   :  { %v631_v32 = vpop.f32.mrb[28].mxu1  ;;  %468 = vst.msk [vmem:[%s1193_s3 + $0x60] sm:$0xff] %vm455_vm0, %v451_v28  ;;  %v426_v34 = vadd.f32 %v630_v27, %v281_v29  ;;  %v553_v35 = vadd.f32 %v552_v31, %v551_v30 }
 0x132   :  { %v632_v36 = vpop.f32.mrb[29].mxu1 }
 0x133   :  { %v633_v37 = vadd.f32 %v632_v36, %v631_v32  ;;  %v452_v38 = vmax.f32 %v426_v34, 0.0  ;;  %v286_v39 = vadd.f32 %v553_v35, %v1108_v33  ;;  %v554_v40 = vpop.f32.mrb[30].mxu0 }
 0x134   :  { %v555_v41 = vpop.f32.mrb[31].mxu0 }
 0x135   :  { %v634_v42 = vpop.f32.mrb[30].mxu1  ;;  %469 = vst.msk [vmem:[%s1193_s3 + $0x68] sm:$0xff] %vm455_vm0, %v452_v38  ;;  %v431_v43 = vadd.f32 %v633_v37, %v286_v39  ;;  %v556_v44 = vadd.f32 %v555_v41, %v554_v40 }
 0x136   :  { %v635_v45 = vpop.f32.mrb[31].mxu1 }
 0x137   :  { %v636_v46 = vadd.f32 %v635_v45, %v634_v42  ;;  %v453_v47 = vmax.f32 %v431_v43, 0.0  ;;  %v291_v48 = vadd.f32 %v556_v44, %v1108_v33 }
 0x139   :  { %470 = vst.msk [vmem:[%s1193_s3 + $0x70] sm:$0xff] %vm455_vm0, %v453_v47  ;;  %v436_v49 = vadd.f32 %v636_v46, %v291_v48 }
 0x13b   :  { %v454_v50 = vmax.f32 %v436_v49, 0.0 }
 0x13d   :  { %471 = vst.msk [vmem:[%s1193_s3 + $0x78] sm:$0xff] %vm455_vm0, %v454_v50 }

// kernel: convnet_forward.6
= control target key start
LH: loop header
LB: loop body
LE: loop exit
PB: predicated region body
PF: predicated region fallthrough
CT: control target
= control target key end

     0   :  { %vm794_vm0 = vmmov 0   ;;  %vm138_vm1 = vcmask 523264   ;;  %s1247_s1 = inlined_call_operand.vmem [shape: f32[576,64], index: 1, kind: input, shape index: {}]   ;;  %s1248_s0 = inlined_call_operand.vmem [shape: f32[72,576], index: 0, kind: input, shape index: {}]   ;;  %s1249_s2 = inlined_call_operand.vmem [shape: f32[1,64], index: 2, kind: input, shape index: {}]   ;;  %s1250_s3 = inlined_call_operand.vmem [shape: f32[72,64], index: 3, kind: output, shape index: {}]  }
   0x1   :  { %v75_v0 = vld [vmem:[%s1247_s1 + $0x80] sm:$0xff]  ;;  %v76_v1 = vld [vmem:[%s1247_s1 + $0x88] sm:$0xff]  ;;  %v77_v11 = vld [vmem:[%s1247_s1 + $0x90] sm:$0xff] }
   0x2   :  { %v107_v2 = vld [vmem:[%s1247_s1 + $0x180] sm:$0xff]  ;;  %v706_v3 = vpack.c.bf16 %v76_v1, %v75_v0  ;;  %v108_v4 = vld [vmem:[%s1247_s1 + $0x188] sm:$0xff]  ;;  %v78_v13 = vld [vmem:[%s1247_s1 + $0x98] sm:$0xff] }
   0x3   :  { %v59_v5 = vld [vmem:[%s1247_s1] sm:$0xff]  ;;  %v60_v6 = vld [vmem:[%s1247_s1 + $0x8] sm:$0xff]  ;;  %v738_v7 = vpack.c.bf16 %v108_v4, %v107_v2  ;;  %v109_v14 = vld [vmem:[%s1247_s1 + $0x190] sm:$0xff]  ;;  %v710_v16 = vpack.c.bf16 %v78_v13, %v77_v11 }
   0x4   :  { %v708_v8 = vpack.c.bf16 %v60_v6, %v59_v5  ;;  %v91_v9 = vld [vmem:[%s1247_s1 + $0x100] sm:$0xff]  ;;  %v92_v10 = vld [vmem:[%s1247_s1 + $0x108] sm:$0xff]  ;;  %707 = vmatprep.subr.bf16.mxu0 %v706_v3  ;;  %v110_v15 = vld [vmem:[%s1247_s1 + $0x198] sm:$0xff] }
   0x5   :  { %v740_v12 = vpack.c.bf16 %v92_v10, %v91_v9  ;;  %739 = vmatprep.subr.bf16.mxu1 %v738_v7  ;;  %v742_v17 = vpack.c.bf16 %v110_v15, %v109_v14  ;;  %v61_v18 = vld [vmem:[%s1247_s1 + $0x10] sm:$0xff]  ;;  %v62_v19 = vld [vmem:[%s1247_s1 + $0x18] sm:$0xff]  ;;  %v79_v23 = vld [vmem:[%s1247_s1 + $0xa0] sm:$0xff] }
   0x6   :  { %709 = vmatpush3.bf16.msra.mxu0 %v708_v8  ;;  %v93_v20 = vld [vmem:[%s1247_s1 + $0x110] sm:$0xff]  ;;  %v712_v21 = vpack.c.bf16 %v62_v19, %v61_v18  ;;  %v94_v22 = vld [vmem:[%s1247_s1 + $0x118] sm:$0xff]  ;;  %v80_v24 = vld [vmem:[%s1247_s1 + $0xa8] sm:$0xff] }
   0x7   :  { %741 = vmatpush3.bf16.msra.mxu1 %v740_v12  ;;  %711 = vmatprep.subr.bf16.mxu0 %v710_v16  ;;  %v744_v25 = vpack.c.bf16 %v94_v22, %v93_v20  ;;  %v714_v26 = vpack.c.bf16 %v80_v24, %v79_v23  ;;  %v111_v27 = vld [vmem:[%s1247_s1 + $0x1a0] sm:$0xff]  ;;  %v112_v28 = vld [vmem:[%s1247_s1 + $0x1a8] sm:$0xff]  ;;  %v81_v35 = vld [vmem:[%s1247_s1 + $0xb0] sm:$0xff] }
   0x8   :  { %743 = vmatprep.subr.bf16.mxu1 %v742_v17  ;;  %v63_v29 = vld [vmem:[%s1247_s1 + $0x20] sm:$0xff]  ;;  %v746_v30 = vpack.c.bf16 %v112_v28, %v111_v27  ;;  %v64_v31 = vld [vmem:[%s1247_s1 + $0x28] sm:$0xff]  ;;  %v82_v36 = vld [vmem:[%s1247_s1 + $0xb8] sm:$0xff] }
   0x9   :  { %v95_v32 = vld [vmem:[%s1247_s1 + $0x120] sm:$0xff]  ;;  %v96_v33 = vld [vmem:[%s1247_s1 + $0x128] sm:$0xff]  ;;  %v716_v34 = vpack.c.bf16 %v64_v31, %v63_v29  ;;  %v113_v37 = vld [vmem:[%s1247_s1 + $0x1b0] sm:$0xff]  ;;  %v718_v39 = vpack.c.bf16 %v82_v36, %v81_v35 }
   0xa   :  { %713 = vmatpush3.bf16.msra.mxu0 %v712_v21  ;;  %v748_v38 = vpack.c.bf16 %v96_v33, %v95_v32  ;;  %v114_v40 = vld [vmem:[%s1247_s1 + $0x1b8] sm:$0xff]  ;;  %v65_v41 = vld [vmem:[%s1247_s1 + $0x30] sm:$0xff]  ;;  %v83_v46 = vld [vmem:[%s1247_s1 + $0xc0] sm:$0xff] }
   0xb   :  { %745 = vmatpush3.bf16.msra.mxu1 %v744_v25  ;;  %715 = vmatprep.subr.bf16.mxu0 %v714_v26  ;;  %v66_v42 = vld [vmem:[%s1247_s1 + $0x38] sm:$0xff]  ;;  %v750_v43 = vpack.c.bf16 %v114_v40, %v113_v37  ;;  %v97_v44 = vld [vmem:[%s1247_s1 + $0x130] sm:$0xff]  ;;  %v84_v47 = vld [vmem:[%s1247_s1 + $0xc8] sm:$0xff] }
   0xc   :  { %747 = vmatprep.subr.bf16.mxu1 %v746_v30  ;;  %v98_v45 = vld [vmem:[%s1247_s1 + $0x138] sm:$0xff]  ;;  %v115_v48 = vld [vmem:[%s1247_s1 + $0x1c0] sm:$0xff]  ;;  %v116_v49 = vld [vmem:[%s1247_s1 + $0x1c8] sm:$0xff]  ;;  %v720_v50 = vpack.c.bf16 %v66_v42, %v65_v41  ;;  %v722_v52 = vpack.c.bf16 %v84_v47, %v83_v46 }
   0xd   :  { %v752_v51 = vpack.c.bf16 %v98_v45, %v97_v44  ;;  %v67_v53 = vld [vmem:[%s1247_s1 + $0x40] sm:$0xff]  ;;  %v68_v54 = vld [vmem:[%s1247_s1 + $0x48] sm:$0xff]  ;;  %v754_v56 = vpack.c.bf16 %v116_v49, %v115_v48  ;;  %v85_v58 = vld [vmem:[%s1247_s1 + $0xd0] sm:$0xff] }
   0xe   :  { %717 = vmatpush3.bf16.msra.mxu0 %v716_v34  ;;  %v99_v55 = vld [vmem:[%s1247_s1 + $0x140] sm:$0xff]  ;;  %v100_v57 = vld [vmem:[%s1247_s1 + $0x148] sm:$0xff]  ;;  %v86_v59 = vld [vmem:[%s1247_s1 + $0xd8] sm:$0xff]  ;;  %v724_v62 = vpack.c.bf16 %v68_v54, %v67_v53 }
   0xf   :  { %749 = vmatpush3.bf16.msra.mxu1 %v748_v38  ;;  %719 = vmatprep.subr.bf16.mxu0 %v718_v39  ;;  %v117_v60 = vld [vmem:[%s1247_s1 + $0x1d0] sm:$0xff]  ;;  %v118_v61 = vld [vmem:[%s1247_s1 + $0x1d8] sm:$0xff]  ;;  %v756_v63 = vpack.c.bf16 %v100_v57, %v99_v55  ;;  %v726_v0 = vpack.c.bf16 %v86_v59, %v85_v58  ;;  %v87_v6 = vld [vmem:[%s1247_s1 + $0xe0] sm:$0xff]  ;;  %v793_v39 = vmov 0.0|0.0  }
  0x10   :  { %751 = vmatprep.subr.bf16.mxu1 %v750_v43  ;;  %v69_v1 = vld [vmem:[%s1247_s1 + $0x50] sm:$0xff]  ;;  %v70_v2 = vld [vmem:[%s1247_s1 + $0x58] sm:$0xff]  ;;  %v758_v4 = vpack.c.bf16 %v118_v61, %v117_v60  ;;  %v88_v7 = vld [vmem:[%s1247_s1 + $0xe8] sm:$0xff] }
  0x11   :  { %v101_v3 = vld [vmem:[%s1247_s1 + $0x150] sm:$0xff]  ;;  %v102_v5 = vld [vmem:[%s1247_s1 + $0x158] sm:$0xff]  ;;  %v119_v8 = vld [vmem:[%s1247_s1 + $0x1e0] sm:$0xff]  ;;  %v728_v10 = vpack.c.bf16 %v70_v2, %v69_v1  ;;  %v730_v14 = vpack.c.bf16 %v88_v7, %v87_v6 }
  0x12   :  { %721 = vmatpush3.bf16.msra.mxu0 %v720_v50  ;;  %v120_v9 = vld [vmem:[%s1247_s1 + $0x1e8] sm:$0xff]  ;;  %v71_v11 = vld [vmem:[%s1247_s1 + $0x60] sm:$0xff]  ;;  %v760_v13 = vpack.c.bf16 %v102_v5, %v101_v3  ;;  %v17_v17 = vld [vmem:[%s1248_s0 + $0x18] sm:$0xff] }
  0x13   :  { %753 = vmatpush3.bf16.msra.mxu1 %v752_v51  ;;  %723 = vmatprep.subr.bf16.mxu0 %v722_v52  ;;  %v72_v12 = vld [vmem:[%s1247_s1 + $0x68] sm:$0xff]  ;;  %v103_v15 = vld [vmem:[%s1247_s1 + $0x160] sm:$0xff]  ;;  %v762_v18 = vpack.c.bf16 %v120_v9, %v119_v8  ;;  %v89_v20 = vld [vmem:[%s1247_s1 + $0xf0] sm:$0xff] }
  0x14   :  { %755 = vmatprep.subr.bf16.mxu1 %v754_v56  ;;  %v15_v16 = vld [vmem:[%s1248_s0 + $0x8] sm:$0xff]  ;;  %v90_v21 = vld [vmem:[%s1247_s1 + $0xf8] sm:$0xff]  ;;  %v121_v22 = vld [vmem:[%s1247_s1 + $0x1f0] sm:$0xff]  ;;  %340 = vmatprep.mubr.f32.mxu1 %v17_v17  ;;  %v732_v24 = vpack.c.bf16 %v72_v12, %v71_v11  ;;  %v795_v17 = vmov 0.0  }
  0x15   :  { %v104_v19 = vld [vmem:[%s1247_s1 + $0x168] sm:$0xff]  ;;  %230 = vmatprep.mubr.f32.mxu0 %v15_v16  ;;  %v122_v23 = vld [vmem:[%s1247_s1 + $0x1f8] sm:$0xff]  ;;  %v734_v26 = vpack.c.bf16 %v90_v21, %v89_v20  ;;  %v73_v27 = vld [vmem:[%s1247_s1 + $0x70] sm:$0xff] }
  0x16   :  { %725 = vmatpush3.bf16.msra.mxu0 %v724_v62  ;;  %v764_v25 = vpack.c.bf16 %v104_v19, %v103_v15  ;;  %v74_v28 = vld [vmem:[%s1247_s1 + $0x78] sm:$0xff]  ;;  %v766_v29 = vpack.c.bf16 %v122_v23, %v121_v22  ;;  %v105_v30 = vld [vmem:[%s1247_s1 + $0x170] sm:$0xff]  ;;  %v123_v34 = vld [vmem:[%s1247_s1 + $0x200] sm:$0xff] }
  0x17   :  { %757 = vmatpush3.bf16.msra.mxu1 %v756_v63  ;;  %727 = vmatprep.subr.bf16.mxu0 %v726_v0  ;;  %v106_v31 = vld [vmem:[%s1247_s1 + $0x178] sm:$0xff]  ;;  %v736_v32 = vpack.c.bf16 %v74_v28, %v73_v27  ;;  %v124_v35 = vld [vmem:[%s1247_s1 + $0x208] sm:$0xff]  ;;  %v14_v36 = vld [vmem:[%s1248_s0] sm:$0xff] }
  0x18   :  { %759 = vmatprep.subr.bf16.mxu1 %v758_v4  ;;  %v768_v33 = vpack.c.bf16 %v106_v31, %v105_v30  ;;  %v771_v37 = vpack.c.bf16 %v124_v35, %v123_v34  ;;  %v16_v38 = vld [vmem:[%s1248_s0 + $0x10] sm:$0xff]  ;;  %v22_v41 = vld [vmem:[%s1248_s0 + $0x40] sm:$0xff]  ;;  %v126_v43 = vld [vmem:[%s1247_s1 + $0x218] sm:$0xff] }
  0x19   :  { %v20_v40 = vld [vmem:[%s1248_s0 + $0x30] sm:$0xff]  ;;  %v19_v44 = vld [vmem:[%s1248_s0 + $0x28] sm:$0xff]  ;;  %v21_v45 = vld [vmem:[%s1248_s0 + $0x38] sm:$0xff] }
  0x1a   :  { %729 = vmatpush3.bf16.msra.mxu0 %v728_v10  ;;  %v125_v42 = vld [vmem:[%s1247_s1 + $0x210] sm:$0xff]  ;;  %v25_v46 = vld [vmem:[%s1248_s0 + $0x58] sm:$0xff]  ;;  %v27_v48 = vld [vmem:[%s1248_s0 + $0x68] sm:$0xff] }
  0x1b   :  { %761 = vmatpush3.bf16.msra.mxu1 %v760_v13  ;;  %731 = vmatprep.subr.bf16.mxu0 %v730_v14  ;;  %v774_v47 = vpack.c.bf16 %v126_v43, %v125_v42  ;;  %v127_v49 = vld [vmem:[%s1247_s1 + $0x220] sm:$0xff]  ;;  %v128_v50 = vld [vmem:[%s1247_s1 + $0x228] sm:$0xff]  ;;  %v24_v51 = vld [vmem:[%s1248_s0 + $0x50] sm:$0xff] }
  0x1c   :  { %763 = vmatprep.subr.bf16.mxu1 %v762_v18  ;;  %v26_v52 = vld [vmem:[%s1248_s0 + $0x60] sm:$0xff]  ;;  %v777_v54 = vpack.c.bf16 %v128_v50, %v127_v49  ;;  %v32_v55 = vld [vmem:[%s1248_s0 + $0x90] sm:$0xff]  ;;  %v130_v57 = vld [vmem:[%s1247_s1 + $0x238] sm:$0xff] }
  0x1d   :  { %v30_v53 = vld [vmem:[%s1248_s0 + $0x80] sm:$0xff]  ;;  %v129_v56 = vld [vmem:[%s1247_s1 + $0x230] sm:$0xff]  ;;  %v29_v58 = vld [vmem:[%s1248_s0 + $0x78] sm:$0xff] }
  0x1e   :  { %733 = vmatpush3.bf16.msra.mxu0 %v732_v24  ;;  %v31_v59 = vld [vmem:[%s1248_s0 + $0x88] sm:$0xff]  ;;  %v780_v61 = vpack.c.bf16 %v130_v57, %v129_v56  ;;  %v37_v62 = vld [vmem:[%s1248_s0 + $0xb8] sm:$0xff]  ;;  %v34_v63 = vld [vmem:[%s1248_s0 + $0xa0] sm:$0xff] }
  0x1f   :  { %765 = vmatpush3.bf16.msra.mxu1 %v764_v25  ;;  %735 = vmatprep.subr.bf16.mxu0 %v734_v26  ;;  %v35_v60 = vld [vmem:[%s1248_s0 + $0xa8] sm:$0xff]  ;;  %v36_v0 = vld [vmem:[%s1248_s0 + $0xb0] sm:$0xff]  ;;  %v42_v2 = vld [vmem:[%s1248_s0 + $0xe0] sm:$0xff] }
  0x20   :  { %767 = vmatprep.subr.bf16.mxu1 %v766_v29  ;;  %v40_v1 = vld [vmem:[%s1248_s0 + $0xd0] sm:$0xff]  ;;  %v39_v3 = vld [vmem:[%s1248_s0 + $0xc8] sm:$0xff]  ;;  %v41_v4 = vld [vmem:[%s1248_s0 + $0xd8] sm:$0xff] }
  0x21   :  { %v45_v5 = vld [vmem:[%s1248_s0 + $0xf8] sm:$0xff]  ;;  %v47_v6 = vld [vmem:[%s1248_s0 + $0x108] sm:$0xff]  ;;  %v44_v7 = vld [vmem:[%s1248_s0 + $0xf0] sm:$0xff] }
  0x22   :  { %737 = vmatpush3.bf16.msra.mxu0 %v736_v32  ;;  %v46_v8 = vld [vmem:[%s1248_s0 + $0x100] sm:$0xff]  ;;  %v52_v10 = vld [vmem:[%s1248_s0 + $0x130] sm:$0xff]  ;;  %v49_v11 = vld [vmem:[%s1248_s0 + $0x118] sm:$0xff] }
  0x23   :  { %769 = vmatpush3.bf16.msra.mxu1 %v768_v33  ;;  %770 = vmatprep.subr.bf16.mxu0 %v793_v39  ;;  %v50_v9 = vld [vmem:[%s1248_s0 + $0x120] sm:$0xff]  ;;  %v51_v12 = vld [vmem:[%s1248_s0 + $0x128] sm:$0xff]  ;;  %v57_v14 = vld [vmem:[%s1248_s0 + $0x158] sm:$0xff] }
  0x24   :  { %782 = vmatprep.subr.bf16.mxu1 %v793_v39  ;;  %v55_v13 = vld [vmem:[%s1248_s0 + $0x148] sm:$0xff]  ;;  %v54_v15 = vld [vmem:[%s1248_s0 + $0x140] sm:$0xff]  ;;  %v56_v16 = vld [vmem:[%s1248_s0 + $0x150] sm:$0xff] }
  0x25   :  { %231 = vmatmul.mubr.f32.vlgmr.msra.gmra.mrb[0].mxu0 %v14_v36  ;;  %v18_v18 = vld [vmem:[%s1248_s0 + $0x20] sm:$0xff]  ;;  %v43_v19 = vld [vmem:[%s1248_s0 + $0xe8] sm:$0xff]  ;;  %v48_v21 = vld [vmem:[%s1248_s0 + $0x110] sm:$0xff] }
  0x26   :  { %341 = vmatmul.mubr.f32.vlgmr.msra.gmra.mrb[0].mxu1 %v16_v38  ;;  %772 = vmatpush3.bf16.msra.mxu0 %v771_v37  ;;  %v23_v20 = vld [vmem:[%s1248_s0 + $0x48] sm:$0xff]  ;;  %v28_v22 = vld [vmem:[%s1248_s0 + $0x70] sm:$0xff]  ;;  %v53_v23 = vld [vmem:[%s1248_s0 + $0x138] sm:$0xff] }
  0x27   :  { %235 = vmatprep.mubr.f32.mxu0 %v20_v40  ;;  %345 = vmatprep.mubr.f32.mxu1 %v22_v41  ;;  %v33_v24 = vld [vmem:[%s1248_s0 + $0x98] sm:$0xff]  ;;  %v58_v25 = vld [vmem:[%s1248_s0 + $0x160] sm:$0xff] }
  0x28   :  { %786 = vmatpush3.bf16.msra.mxu1 %v771_v37  ;;  %773 = vmatprep.subr.bf16.mxu0 %v793_v39  ;;  %v38_v26 = vld [vmem:[%s1248_s0 + $0xc0] sm:$0xff] }
  0x29   :  { %236 = vmatmul.mubr.f32.gmra.mrb[2].mxu0 %v19_v44  ;;  %783 = vmatprep.subr.bf16.mxu1 %v793_v39  ;;  %v1188_v28 = vld [vmem:[%s1249_s2] ss:$0 sm:$0xff] }
  0x2a   :  { %346 = vmatmul.mubr.f32.gmra.mrb[2].mxu1 %v21_v45  ;;  %240 = vmatprep.mubr.f32.mxu0 %v25_v46 }
  0x2b   :  { %350 = vmatprep.mubr.f32.mxu1 %v27_v48  ;;  %775 = vmatpush3.bf16.msra.mxu0 %v774_v47 }
  0x2c   :  { %787 = vmatpush3.bf16.msra.mxu1 %v774_v47  ;;  %776 = vmatprep.subr.bf16.mxu0 %v793_v39 }
  0x2d   :  { %241 = vmatmul.mubr.f32.gmra.mrb[4].mxu0 %v24_v51  ;;  %784 = vmatprep.subr.bf16.mxu1 %v793_v39 }
  0x2e   :  { %351 = vmatmul.mubr.f32.gmra.mrb[4].mxu1 %v26_v52  ;;  %245 = vmatprep.mubr.f32.mxu0 %v30_v53 }
  0x2f   :  { %355 = vmatprep.mubr.f32.mxu1 %v32_v55  ;;  %778 = vmatpush3.bf16.msra.mxu0 %v777_v54 }
  0x30   :  { %788 = vmatpush3.bf16.msra.mxu1 %v777_v54  ;;  %779 = vmatprep.subr.bf16.mxu0 %v793_v39 }
  0x31   :  { %246 = vmatmul.mubr.f32.gmra.mrb[6].mxu0 %v29_v58  ;;  %785 = vmatprep.subr.bf16.mxu1 %v793_v39 }
  0x32   :  { %356 = vmatmul.mubr.f32.gmra.mrb[6].mxu1 %v31_v59  ;;  %250 = vmatprep.mubr.f32.mxu0 %v35_v60 }
  0x33   :  { %360 = vmatprep.mubr.f32.mxu1 %v37_v62  ;;  %781 = vmatpush3.bf16.msra.mxu0 %v780_v61 }
  0x34   :  { %789 = vmatpush3.bf16.msra.mxu1 %v780_v61 }
  0x35   :  { %251 = vmatmul.mubr.f32.gmra.mrb[8].mxu0 %v34_v63 }
  0x36   :  { %361 = vmatmul.mubr.f32.gmra.mrb[8].mxu1 %v36_v0  ;;  %255 = vmatprep.mubr.f32.mxu0 %v40_v1 }
  0x37   :  { %365 = vmatprep.mubr.f32.mxu1 %v42_v2 }
  0x39   :  { %256 = vmatmul.mubr.f32.gmra.mrb[10].mxu0 %v39_v3 }
  0x3a   :  { %366 = vmatmul.mubr.f32.gmra.mrb[10].mxu1 %v41_v4  ;;  %260 = vmatprep.mubr.f32.mxu0 %v45_v5 }
  0x3b   :  { %370 = vmatprep.mubr.f32.mxu1 %v47_v6 }
  0x3d   :  { %261 = vmatmul.mubr.f32.gmra.mrb[12].mxu0 %v44_v7 }
  0x3e   :  { %371 = vmatmul.mubr.f32.gmra.mrb[12].mxu1 %v46_v8  ;;  %265 = vmatprep.mubr.f32.mxu0 %v50_v9 }
  0x3f   :  { %375 = vmatprep.mubr.f32.mxu1 %v52_v10 }
  0x41   :  { %266 = vmatmul.mubr.f32.gmra.mrb[14].mxu0 %v49_v11 }
  0x42   :  { %376 = vmatmul.mubr.f32.gmra.mrb[14].mxu1 %v51_v12  ;;  %270 = vmatprep.mubr.f32.mxu0 %v55_v13 }
  0x43   :  { %380 = vmatprep.mubr.f32.mxu1 %v57_v14 }
  0x45   :  { %271 = vmatmul.mubr.f32.gmra.mrb[16].mxu0 %v54_v15 }
  0x46   :  { %381 = vmatmul.mubr.f32.gmra.mrb[16].mxu1 %v56_v16  ;;  %679 = vmatprep.mubr.msk.f32.mxu0 %vm794_vm0, %v795_v17 }
  0x47   :  { %694 = vmatprep.mubr.msk.f32.mxu1 %vm794_vm0, %v795_v17 }
  0x49   :  { %680 = vmatmul.mubr.msk.f32.vlgmr.msra.gmra.mrb[18].mxu0 %vm138_vm1, %v18_v18 }
  0x4a   :  { %695 = vmatmul.mubr.msk.f32.vlgmr.msra.gmra.mrb[18].mxu1 %vm138_vm1, %v43_v19  ;;  %682 = vmatprep.mubr.msk.f32.mxu0 %vm794_vm0, %v795_v17 }
  0x4b   :  { %697 = vmatprep.mubr.msk.f32.mxu1 %vm794_vm0, %v795_v17 }
  0x4d   :  { %683 = vmatmul.mubr.msk.f32.gmra.mrb[20].mxu0 %vm138_vm1, %v23_v20 }
  0x4e   :  { %698 = vmatmul.mubr.msk.f32.gmra.mrb[20].mxu1 %vm138_vm1, %v48_v21  ;;  %685 = vmatprep.mubr.msk.f32.mxu0 %vm794_vm0, %v795_v17 }
  0x4f   :  { %700 = vmatprep.mubr.msk.f32.mxu1 %vm794_vm0, %v795_v17 }
  0x51   :  { %686 = vmatmul.mubr.msk.f32.gmra.mrb[22].mxu0 %vm138_vm1, %v28_v22 }
  0x52   :  { %701 = vmatmul.mubr.msk.f32.gmra.mrb[22].mxu1 %vm138_vm1, %v53_v23  ;;  %688 = vmatprep.mubr.msk.f32.mxu0 %vm794_vm0, %v795_v17 }
  0x53   :  { %703 = vmatprep.mubr.msk.f32.mxu1 %vm794_vm0, %v795_v17 }
  0x55   :  { %689 = vmatmul.mubr.msk.f32.gmra.mrb[24].mxu0 %vm138_vm1, %v33_v24 }
  0x56   :  { %704 = vmatmul.mubr.msk.f32.gmra.mrb[24].mxu1 %vm138_vm1, %v58_v25  ;;  %691 = vmatprep.mubr.msk.f32.mxu0 %vm794_vm0, %v795_v17 }
  0x59   :  { %692 = vmatmul.mubr.msk.f32.gmra.mrb[26].mxu0 %vm138_vm1, %v38_v26 }
  0xf8   :  { %v560_v27 = vpop.f32.mrb[0].mxu0 }
  0xf9   :  { %v561_v29 = vpop.f32.mrb[1].mxu0  ;;  %v619_v30 = vpop.f32.mrb[0].mxu1 }
  0xfa   :  { %v562_v31 = vadd.f32 %v561_v29, %v560_v27  ;;  %v620_v32 = vpop.f32.mrb[1].mxu1 }
  0xfb   :  { %v621_v33 = vadd.f32 %v620_v32, %v619_v30 }
  0xfc   :  { %v233_v34 = vadd.f32 %v562_v31, %v1188_v28  ;;  %v563_v35 = vpop.f32.mrb[2].mxu0 }
  0xfd   :  { %v564_v36 = vpop.f32.mrb[3].mxu0  ;;  %v622_v37 = vpop.f32.mrb[2].mxu1 }
  0xfe   :  { %v565_v38 = vadd.f32 %v564_v36, %v563_v35  ;;  %v623_v39 = vpop.f32.mrb[3].mxu1  ;;  %v343_v40 = vadd.f32 %v621_v33, %v233_v34 }
  0xff   :  { %v624_v41 = vadd.f32 %v623_v39, %v622_v37 }
 0x100   :  { %v238_v42 = vadd.f32 %v565_v38, %v1188_v28  ;;  %v566_v43 = vpop.f32.mrb[4].mxu0 }
 0x101   :  { %v567_v44 = vpop.f32.mrb[5].mxu0  ;;  %v625_v45 = vpop.f32.mrb[4].mxu1 }
 0x102   :  { %v568_v46 = vadd.f32 %v567_v44, %v566_v43  ;;  %v626_v47 = vpop.f32.mrb[5].mxu1  ;;  %v1192_v48 = vadd.f32 %v624_v41, %v238_v42 }
 0x103   :  { %v627_v49 = vadd.f32 %v626_v47, %v625_v45 }
 0x104   :  { %v243_v50 = vadd.f32 %v568_v46, %v1188_v28  ;;  %v569_v51 = vpop.f32.mrb[6].mxu0 }
 0x105   :  { %v570_v52 = vpop.f32.mrb[7].mxu0  ;;  %v628_v53 = vpop.f32.mrb[6].mxu1 }
 0x106   :  { %v571_v54 = vadd.f32 %v570_v52, %v569_v51  ;;  %v629_v55 = vpop.f32.mrb[7].mxu1  ;;  %v1195_v56 = vadd.f32 %v627_v49, %v243_v50 }
 0x107   :  { %v630_v57 = vadd.f32 %v629_v55, %v628_v53 }
 0x108   :  { %v248_v58 = vadd.f32 %v571_v54, %v1188_v28  ;;  %v572_v59 = vpop.f32.mrb[8].mxu0 }
 0x109   :  { %v573_v60 = vpop.f32.mrb[9].mxu0  ;;  %v631_v61 = vpop.f32.mrb[8].mxu1 }
 0x10a   :  { %v574_v62 = vadd.f32 %v573_v60, %v572_v59  ;;  %v632_v63 = vpop.f32.mrb[9].mxu1  ;;  %v1198_v0 = vadd.f32 %v630_v57, %v248_v58 }
 0x10b   :  { %v633_v1 = vadd.f32 %v632_v63, %v631_v61 }
 0x10c   :  { %v253_v2 = vadd.f32 %v574_v62, %v1188_v28  ;;  %v575_v3 = vpop.f32.mrb[10].mxu0 }
 0x10d   :  { %v576_v4 = vpop.f32.mrb[11].mxu0  ;;  %v634_v5 = vpop.f32.mrb[10].mxu1 }
 0x10e   :  { %v577_v6 = vadd.f32 %v576_v4, %v575_v3  ;;  %v635_v7 = vpop.f32.mrb[11].mxu1  ;;  %v1201_v8 = vadd.f32 %v633_v1, %v253_v2 }
 0x10f   :  { %v636_v9 = vadd.f32 %v635_v7, %v634_v5 }
 0x110   :  { %v258_v10 = vadd.f32 %v577_v6, %v1188_v28  ;;  %v578_v11 = vpop.f32.mrb[12].mxu0 }
 0x111   :  { %v579_v12 = vpop.f32.mrb[13].mxu0  ;;  %v637_v13 = vpop.f32.mrb[12].mxu1 }
 0x112   :  { %v580_v14 = vadd.f32 %v579_v12, %v578_v11  ;;  %v638_v15 = vpop.f32.mrb[13].mxu1  ;;  %v368_v16 = vadd.f32 %v636_v9, %v258_v10 }
 0x113   :  { %v639_v17 = vadd.f32 %v638_v15, %v637_v13 }
 0x114   :  { %v263_v18 = vadd.f32 %v580_v14, %v1188_v28  ;;  %v581_v19 = vpop.f32.mrb[14].mxu0 }
 0x115   :  { %v582_v20 = vpop.f32.mrb[15].mxu0  ;;  %v640_v21 = vpop.f32.mrb[14].mxu1 }
 0x116   :  { %v583_v22 = vadd.f32 %v582_v20, %v581_v19  ;;  %v641_v23 = vpop.f32.mrb[15].mxu1  ;;  %v373_v24 = vadd.f32 %v639_v17, %v263_v18 }
 0x117   :  { %v642_v25 = vadd.f32 %v641_v23, %v640_v21 }
 0x118   :  { %v268_v26 = vadd.f32 %v583_v22, %v1188_v28  ;;  %v584_v27 = vpop.f32.mrb[16].mxu0 }
 0x119   :  { %v585_v29 = vpop.f32.mrb[17].mxu0  ;;  %v643_v30 = vpop.f32.mrb[16].mxu1 }
 0x11a   :  { %v586_v31 = vadd.f32 %v585_v29, %v584_v27  ;;  %v644_v32 = vpop.f32.mrb[17].mxu1  ;;  %v378_v33 = vadd.f32 %v642_v25, %v268_v26 }
 0x11b   :  { %v645_v34 = vadd.f32 %v644_v32, %v643_v30 }
 0x11c   :  { %v273_v35 = vadd.f32 %v586_v31, %v1188_v28  ;;  %v452_v36 = vpop.f32.mrb[18].mxu0 }
 0x11d   :  { %v453_v37 = vadd.f32 %v452_v36, %v343_v40  ;;  %v477_v38 = vpop.f32.mrb[18].mxu1  ;;  %v681_v39 = vpop.f32.mrb[19].mxu0 }
 0x11e   :  { %v478_v41 = vadd.f32 %v477_v38, %v368_v16  ;;  %v696_v42 = vpop.f32.mrb[19].mxu1  ;;  %v383_v43 = vadd.f32 %v645_v34, %v273_v35 }
 0x11f   :  { %v496_v44 = vmax.f32 %v453_v37, 0.0 }
 0x120   :  { %v501_v45 = vmax.f32 %v478_v41, 0.0  ;;  %v457_v46 = vpop.f32.mrb[20].mxu0 }
 0x121   :  { %505 = vst.msk [vmem:[%s1250_s3] sm:$0xff] %vm138_vm1, %v496_v44  ;;  %v458_v47 = vadd.f32 %v457_v46, %v1192_v48  ;;  %v482_v49 = vpop.f32.mrb[20].mxu1  ;;  %v684_v50 = vpop.f32.mrb[21].mxu0 }
 0x122   :  { %510 = vst.msk [vmem:[%s1250_s3 + $0x28] sm:$0xff] %vm138_vm1, %v501_v45  ;;  %v483_v28 = vadd.f32 %v482_v49, %v373_v24  ;;  %v699_v40 = vpop.f32.mrb[21].mxu1 }
 0x123   :  { %v497_v51 = vmax.f32 %v458_v47, 0.0 }
 0x124   :  { %v502_v52 = vmax.f32 %v483_v28, 0.0  ;;  %v462_v53 = vpop.f32.mrb[22].mxu0 }
 0x125   :  { %506 = vst.msk [vmem:[%s1250_s3 + $0x8] sm:$0xff] %vm138_vm1, %v497_v51  ;;  %v463_v54 = vadd.f32 %v462_v53, %v1195_v56  ;;  %v487_v48 = vpop.f32.mrb[22].mxu1  ;;  %v687_v55 = vpop.f32.mrb[23].mxu0 }
 0x126   :  { %511 = vst.msk [vmem:[%s1250_s3 + $0x30] sm:$0xff] %vm138_vm1, %v502_v52  ;;  %v488_v57 = vadd.f32 %v487_v48, %v378_v33  ;;  %v702_v58 = vpop.f32.mrb[23].mxu1 }
 0x127   :  { %v498_v59 = vmax.f32 %v463_v54, 0.0 }
 0x128   :  { %v503_v60 = vmax.f32 %v488_v57, 0.0  ;;  %v467_v61 = vpop.f32.mrb[24].mxu0 }
 0x129   :  { %507 = vst.msk [vmem:[%s1250_s3 + $0x10] sm:$0xff] %vm138_vm1, %v498_v59  ;;  %v468_v62 = vadd.f32 %v467_v61, %v1198_v0  ;;  %v492_v56 = vpop.f32.mrb[24].mxu1  ;;  %v690_v63 = vpop.f32.mrb[25].mxu0 }
 0x12a   :  { %512 = vst.msk [vmem:[%s1250_s3 + $0x38] sm:$0xff] %vm138_vm1, %v503_v60  ;;  %v493_v1 = vadd.f32 %v492_v56, %v383_v43  ;;  %v705_v2 = vpop.f32.mrb[25].mxu1 }
 0x12b   :  { %v499_v3 = vmax.f32 %v468_v62, 0.0 }
 0x12c   :  { %v504_v4 = vmax.f32 %v493_v1, 0.0  ;;  %v472_v5 = vpop.f32.mrb[26].mxu0 }
 0x12d   :  { %508 = vst.msk [vmem:[%s1250_s3 + $0x18] sm:$0xff] %vm138_vm1, %v499_v3  ;;  %v473_v6 = vadd.f32 %v472_v5, %v1201_v8  ;;  %v693_v0 = vpop.f32.mrb[27].mxu0 }
 0x12e   :  { %513 = vst.msk [vmem:[%s1250_s3 + $0x40] sm:$0xff] %vm138_vm1, %v504_v4 }
 0x12f   :  { %v500_v7 = vmax.f32 %v473_v6, 0.0 }
 0x131   :  { %509 = vst.msk [vmem:[%s1250_s3 + $0x20] sm:$0xff] %vm138_vm1, %v500_v7 }

// kernel: convnet_forward.7
= control target key start
LH: loop header
LB: loop body
LE: loop exit
PB: predicated region body
PF: predicated region fallthrough
CT: control target
= control target key end

     0   :  { %s7966_s0 = inlined_call_operand.vmem [shape: f32[2,2304], index: 0, kind: input, shape index: {}]   ;;  %s7967_s1 = inlined_call_operand.vmem [shape: f32[2304,512], index: 1, kind: input, shape index: {}]   ;;  %s7968_s2 = inlined_call_operand.vmem [shape: f32[1,512], index: 2, kind: input, shape index: {}]   ;;  %s7969_s3 = inlined_call_operand.vmem [shape: f32[512,6], index: 3, kind: input, shape index: {}]   ;;  %s7970_s4 = inlined_call_operand.vmem [shape: f32[1,6], index: 4, kind: input, shape index: {}]   ;;  %s7971_s5 = inlined_call_operand.hbm [shape: f32[2,6], index: 5, kind: output, shape index: {}]  }
   0x1   :  { %v27_v0 = vld [vmem:[%s7967_s1 + $0x8] sm:$0xff]  ;;  %v29_v2 = vld [vmem:[%s7967_s1 + $0x18] sm:$0xff]  ;;  %v26_v5 = vld [vmem:[%s7967_s1] sm:$0xff] }
   0x2   :  { %v31_v1 = vld [vmem:[%s7967_s1 + $0x28] sm:$0xff]  ;;  %v33_v4 = vld [vmem:[%s7967_s1 + $0x38] sm:$0xff]  ;;  %v30_v6 = vld [vmem:[%s7967_s1 + $0x20] sm:$0xff] }
   0x3   :  { %v2880_v3 = vpack.c.bf16 %v31_v1, %v27_v0  ;;  %v3456_v7 = vpack.c.bf16 %v33_v4, %v29_v2  ;;  %v2882_v8 = vpack.c.bf16 %v30_v6, %v26_v5  ;;  %v28_v9 = vld [vmem:[%s7967_s1 + $0x10] sm:$0xff]  ;;  %v35_v11 = vld [vmem:[%s7967_s1 + $0x48] sm:$0xff]  ;;  %v37_v14 = vld [vmem:[%s7967_s1 + $0x58] sm:$0xff] }
   0x4   :  { %v32_v10 = vld [vmem:[%s7967_s1 + $0x30] sm:$0xff]  ;;  %v39_v13 = vld [vmem:[%s7967_s1 + $0x68] sm:$0xff]  ;;  %v41_v15 = vld [vmem:[%s7967_s1 + $0x78] sm:$0xff] }
   0x5   :  { %2881 = vmatprep.subr.bf16.mxu0 %v2880_v3  ;;  %v3458_v12 = vpack.c.bf16 %v32_v10, %v28_v9  ;;  %3457 = vmatprep.subr.bf16.mxu1 %v3456_v7  ;;  %v2884_v16 = vpack.c.bf16 %v39_v13, %v35_v11  ;;  %v3460_v17 = vpack.c.bf16 %v41_v15, %v37_v14  ;;  %v34_v18 = vld [vmem:[%s7967_s1 + $0x40] sm:$0xff]  ;;  %v36_v20 = vld [vmem:[%s7967_s1 + $0x50] sm:$0xff]  ;;  %v43_v23 = vld [vmem:[%s7967_s1 + $0x88] sm:$0xff] }
   0x6   :  { %2883 = vmatpush1.bf16.msra.mxu0 %v2882_v8  ;;  %v38_v19 = vld [vmem:[%s7967_s1 + $0x60] sm:$0xff]  ;;  %v40_v22 = vld [vmem:[%s7967_s1 + $0x70] sm:$0xff]  ;;  %v47_v24 = vld [vmem:[%s7967_s1 + $0xa8] sm:$0xff] }
   0x7   :  { %3459 = vmatpush1.bf16.msra.mxu1 %v3458_v12  ;;  %v2886_v21 = vpack.c.bf16 %v38_v19, %v34_v18  ;;  %2885 = vmatprep.subr.bf16.mxu0 %v2884_v16  ;;  %v3462_v25 = vpack.c.bf16 %v40_v22, %v36_v20  ;;  %v2888_v26 = vpack.c.bf16 %v47_v24, %v43_v23  ;;  %v45_v27 = vld [vmem:[%s7967_s1 + $0x98] sm:$0xff]  ;;  %v42_v29 = vld [vmem:[%s7967_s1 + $0x80] sm:$0xff]  ;;  %v44_v32 = vld [vmem:[%s7967_s1 + $0x90] sm:$0xff] }
   0x8   :  { %3461 = vmatprep.subr.bf16.mxu1 %v3460_v17  ;;  %v49_v28 = vld [vmem:[%s7967_s1 + $0xb8] sm:$0xff]  ;;  %v46_v31 = vld [vmem:[%s7967_s1 + $0xa0] sm:$0xff]  ;;  %v48_v33 = vld [vmem:[%s7967_s1 + $0xb0] sm:$0xff] }
   0x9   :  { %v3464_v30 = vpack.c.bf16 %v49_v28, %v45_v27  ;;  %v2890_v34 = vpack.c.bf16 %v46_v31, %v42_v29  ;;  %v51_v35 = vld [vmem:[%s7967_s1 + $0xc8] sm:$0xff]  ;;  %v53_v37 = vld [vmem:[%s7967_s1 + $0xd8] sm:$0xff]  ;;  %v3466_v38 = vpack.c.bf16 %v48_v33, %v44_v32  ;;  %v50_v41 = vld [vmem:[%s7967_s1 + $0xc0] sm:$0xff] }
   0xa   :  { %2887 = vmatpush1.bf16.msra.mxu0 %v2886_v21  ;;  %v55_v36 = vld [vmem:[%s7967_s1 + $0xe8] sm:$0xff]  ;;  %v57_v40 = vld [vmem:[%s7967_s1 + $0xf8] sm:$0xff]  ;;  %v54_v42 = vld [vmem:[%s7967_s1 + $0xe0] sm:$0xff] }
   0xb   :  { %3463 = vmatpush1.bf16.msra.mxu1 %v3462_v25  ;;  %2889 = vmatprep.subr.bf16.mxu0 %v2888_v26  ;;  %v2892_v39 = vpack.c.bf16 %v55_v36, %v51_v35  ;;  %v3468_v43 = vpack.c.bf16 %v57_v40, %v53_v37  ;;  %v52_v44 = vld [vmem:[%s7967_s1 + $0xd0] sm:$0xff]  ;;  %v59_v46 = vld [vmem:[%s7967_s1 + $0x108] sm:$0xff]  ;;  %v61_v48 = vld [vmem:[%s7967_s1 + $0x118] sm:$0xff]  ;;  %v2894_v50 = vpack.c.bf16 %v54_v42, %v50_v41 }
   0xc   :  { %3465 = vmatprep.subr.bf16.mxu1 %v3464_v30  ;;  %v56_v45 = vld [vmem:[%s7967_s1 + $0xf0] sm:$0xff]  ;;  %v63_v47 = vld [vmem:[%s7967_s1 + $0x128] sm:$0xff]  ;;  %v65_v49 = vld [vmem:[%s7967_s1 + $0x138] sm:$0xff] }
   0xd   :  { %v3470_v51 = vpack.c.bf16 %v56_v45, %v52_v44  ;;  %v2896_v52 = vpack.c.bf16 %v63_v47, %v59_v46  ;;  %v58_v53 = vld [vmem:[%s7967_s1 + $0x100] sm:$0xff]  ;;  %v60_v55 = vld [vmem:[%s7967_s1 + $0x110] sm:$0xff]  ;;  %v3472_v56 = vpack.c.bf16 %v65_v49, %v61_v48  ;;  %v67_v58 = vld [vmem:[%s7967_s1 + $0x148] sm:$0xff]  ;;  %v1180_v46 = vlaneseq }
   0xe   :  { %2891 = vmatpush1.bf16.msra.mxu0 %v2890_v34  ;;  %v62_v54 = vld [vmem:[%s7967_s1 + $0x120] sm:$0xff]  ;;  %v64_v57 = vld [vmem:[%s7967_s1 + $0x130] sm:$0xff]  ;;  %v71_v59 = vld [vmem:[%s7967_s1 + $0x168] sm:$0xff]  ;;  %v4162_v47 = vmov 1983009808  }
   0xf   :  { %3467 = vmatpush1.bf16.msra.mxu1 %v3466_v38  ;;  %2893 = vmatprep.subr.bf16.mxu0 %v2892_v39  ;;  %v69_v60 = vld [vmem:[%s7967_s1 + $0x158] sm:$0xff]  ;;  %v2898_v62 = vpack.c.bf16 %v62_v54, %v58_v53  ;;  %v3474_v63 = vpack.c.bf16 %v64_v57, %v60_v55  ;;  %v2900_v0 = vpack.c.bf16 %v71_v59, %v67_v58  ;;  %v66_v1 = vld [vmem:[%s7967_s1 + $0x140] sm:$0xff]  ;;  %v68_v3 = vld [vmem:[%s7967_s1 + $0x150] sm:$0xff]  ;;  %v1207_v48 = vunpack.c.l.s4 %v4162_v47 }
  0x10   :  { %3469 = vmatprep.subr.bf16.mxu1 %v3468_v43  ;;  %v73_v61 = vld [vmem:[%s7967_s1 + $0x178] sm:$0xff]  ;;  %v70_v2 = vld [vmem:[%s7967_s1 + $0x160] sm:$0xff]  ;;  %v72_v5 = vld [vmem:[%s7967_s1 + $0x170] sm:$0xff] }
  0x11   :  { %v3476_v4 = vpack.c.bf16 %v73_v61, %v69_v60  ;;  %v75_v6 = vld [vmem:[%s7967_s1 + $0x188] sm:$0xff]  ;;  %v77_v8 = vld [vmem:[%s7967_s1 + $0x198] sm:$0xff]  ;;  %v2902_v10 = vpack.c.bf16 %v70_v2, %v66_v1  ;;  %v3478_v11 = vpack.c.bf16 %v72_v5, %v68_v3  ;;  %v74_v13 = vld [vmem:[%s7967_s1 + $0x180] sm:$0xff]  ;;  %v4446_v61 = vshrl.u32 %v1180_v46, 7 }
  0x12   :  { %2895 = vmatpush1.bf16.msra.mxu0 %v2894_v50  ;;  %v79_v7 = vld [vmem:[%s7967_s1 + $0x1a8] sm:$0xff]  ;;  %v81_v9 = vld [vmem:[%s7967_s1 + $0x1b8] sm:$0xff]  ;;  %v78_v14 = vld [vmem:[%s7967_s1 + $0x1a0] sm:$0xff] }
  0x13   :  { %3471 = vmatpush1.bf16.msra.mxu1 %v3470_v51  ;;  %2897 = vmatprep.subr.bf16.mxu0 %v2896_v52  ;;  %v2904_v12 = vpack.c.bf16 %v79_v7, %v75_v6  ;;  %v76_v15 = vld [vmem:[%s7967_s1 + $0x190] sm:$0xff]  ;;  %v3480_v16 = vpack.c.bf16 %v81_v9, %v77_v8  ;;  %v83_v18 = vld [vmem:[%s7967_s1 + $0x1c8] sm:$0xff]  ;;  %v85_v20 = vld [vmem:[%s7967_s1 + $0x1d8] sm:$0xff]  ;;  %v2906_v22 = vpack.c.bf16 %v78_v14, %v74_v13 }
  0x14   :  { %3473 = vmatprep.subr.bf16.mxu1 %v3472_v56  ;;  %v80_v17 = vld [vmem:[%s7967_s1 + $0x1b0] sm:$0xff]  ;;  %v87_v19 = vld [vmem:[%s7967_s1 + $0x1e8] sm:$0xff]  ;;  %v89_v21 = vld [vmem:[%s7967_s1 + $0x1f8] sm:$0xff] }
  0x15   :  { %v3482_v23 = vpack.c.bf16 %v80_v17, %v76_v15  ;;  %v2908_v24 = vpack.c.bf16 %v87_v19, %v83_v18  ;;  %v82_v25 = vld [vmem:[%s7967_s1 + $0x1c0] sm:$0xff]  ;;  %v84_v27 = vld [vmem:[%s7967_s1 + $0x1d0] sm:$0xff]  ;;  %v3484_v28 = vpack.c.bf16 %v89_v21, %v85_v20  ;;  %v91_v30 = vld [vmem:[%s7967_s1 + $0x208] sm:$0xff] }
  0x16   :  { %2899 = vmatpush1.bf16.msra.mxu0 %v2898_v62  ;;  %v86_v26 = vld [vmem:[%s7967_s1 + $0x1e0] sm:$0xff]  ;;  %v88_v29 = vld [vmem:[%s7967_s1 + $0x1f0] sm:$0xff]  ;;  %v95_v31 = vld [vmem:[%s7967_s1 + $0x228] sm:$0xff]  ;;  %v1208_v62 = vunpack.c.0.s8 %v1207_v48 }
  0x17   :  { %3475 = vmatpush1.bf16.msra.mxu1 %v3474_v63  ;;  %2901 = vmatprep.subr.bf16.mxu0 %v2900_v0  ;;  %v93_v32 = vld [vmem:[%s7967_s1 + $0x218] sm:$0xff]  ;;  %v2910_v34 = vpack.c.bf16 %v86_v26, %v82_v25  ;;  %v3486_v35 = vpack.c.bf16 %v88_v29, %v84_v27  ;;  %v2912_v36 = vpack.c.bf16 %v95_v31, %v91_v30  ;;  %v90_v37 = vld [vmem:[%s7967_s1 + $0x200] sm:$0xff]  ;;  %v92_v39 = vld [vmem:[%s7967_s1 + $0x210] sm:$0xff] }
  0x18   :  { %3477 = vmatprep.subr.bf16.mxu1 %v3476_v4  ;;  %v97_v33 = vld [vmem:[%s7967_s1 + $0x238] sm:$0xff]  ;;  %v94_v38 = vld [vmem:[%s7967_s1 + $0x220] sm:$0xff]  ;;  %v96_v41 = vld [vmem:[%s7967_s1 + $0x230] sm:$0xff] }
  0x19   :  { %v3488_v40 = vpack.c.bf16 %v97_v33, %v93_v32  ;;  %v99_v42 = vld [vmem:[%s7967_s1 + $0x248] sm:$0xff]  ;;  %v101_v44 = vld [vmem:[%s7967_s1 + $0x258] sm:$0xff]  ;;  %v2914_v49 = vpack.c.bf16 %v94_v38, %v90_v37  ;;  %v3490_v50 = vpack.c.bf16 %v96_v41, %v92_v39  ;;  %v98_v52 = vld [vmem:[%s7967_s1 + $0x240] sm:$0xff] }
  0x1a   :  { %2903 = vmatpush1.bf16.msra.mxu0 %v2902_v10  ;;  %v103_v43 = vld [vmem:[%s7967_s1 + $0x268] sm:$0xff]  ;;  %v105_v45 = vld [vmem:[%s7967_s1 + $0x278] sm:$0xff]  ;;  %v102_v53 = vld [vmem:[%s7967_s1 + $0x260] sm:$0xff] }
  0x1b   :  { %3479 = vmatpush1.bf16.msra.mxu1 %v3478_v11  ;;  %2905 = vmatprep.subr.bf16.mxu0 %v2904_v12  ;;  %v2916_v51 = vpack.c.bf16 %v103_v43, %v99_v42  ;;  %v100_v54 = vld [vmem:[%s7967_s1 + $0x250] sm:$0xff]  ;;  %v3492_v55 = vpack.c.bf16 %v105_v45, %v101_v44  ;;  %v107_v57 = vld [vmem:[%s7967_s1 + $0x288] sm:$0xff]  ;;  %v109_v59 = vld [vmem:[%s7967_s1 + $0x298] sm:$0xff]  ;;  %v2918_v63 = vpack.c.bf16 %v102_v53, %v98_v52 }
  0x1c   :  { %3481 = vmatprep.subr.bf16.mxu1 %v3480_v16  ;;  %v104_v56 = vld [vmem:[%s7967_s1 + $0x270] sm:$0xff]  ;;  %v111_v58 = vld [vmem:[%s7967_s1 + $0x2a8] sm:$0xff]  ;;  %v113_v60 = vld [vmem:[%s7967_s1 + $0x2b8] sm:$0xff]  ;;  %v4473_v11 = vsub.s32 %v1208_v62, %v4446_v61 }
  0x1d   :  { %v3494_v0 = vpack.c.bf16 %v104_v56, %v100_v54  ;;  %v2920_v1 = vpack.c.bf16 %v111_v58, %v107_v57  ;;  %v106_v2 = vld [vmem:[%s7967_s1 + $0x280] sm:$0xff]  ;;  %v108_v4 = vld [vmem:[%s7967_s1 + $0x290] sm:$0xff]  ;;  %v3496_v5 = vpack.c.bf16 %v113_v60, %v109_v59  ;;  %v115_v7 = vld [vmem:[%s7967_s1 + $0x2c8] sm:$0xff] }
  0x1e   :  { %2907 = vmatpush1.bf16.msra.mxu0 %v2906_v22  ;;  %v110_v3 = vld [vmem:[%s7967_s1 + $0x2a0] sm:$0xff]  ;;  %v112_v6 = vld [vmem:[%s7967_s1 + $0x2b0] sm:$0xff]  ;;  %v119_v8 = vld [vmem:[%s7967_s1 + $0x2e8] sm:$0xff] }
  0x1f   :  { %3483 = vmatpush1.bf16.msra.mxu1 %v3482_v23  ;;  %2909 = vmatprep.subr.bf16.mxu0 %v2908_v24  ;;  %v117_v9 = vld [vmem:[%s7967_s1 + $0x2d8] sm:$0xff]  ;;  %v2922_v12 = vpack.c.bf16 %v110_v3, %v106_v2  ;;  %v114_v13 = vld [vmem:[%s7967_s1 + $0x2c0] sm:$0xff]  ;;  %v3498_v14 = vpack.c.bf16 %v112_v6, %v108_v4  ;;  %v2924_v15 = vpack.c.bf16 %v119_v8, %v115_v7  ;;  %v116_v17 = vld [vmem:[%s7967_s1 + $0x2d0] sm:$0xff] }
  0x20   :  { %3485 = vmatprep.subr.bf16.mxu1 %v3484_v28  ;;  %v121_v10 = vld [vmem:[%s7967_s1 + $0x2f8] sm:$0xff]  ;;  %v118_v16 = vld [vmem:[%s7967_s1 + $0x2e0] sm:$0xff]  ;;  %v120_v18 = vld [vmem:[%s7967_s1 + $0x2f0] sm:$0xff] }
  0x21   :  { %v3500_v19 = vpack.c.bf16 %v121_v10, %v117_v9  ;;  %v123_v20 = vld [vmem:[%s7967_s1 + $0x308] sm:$0xff]  ;;  %v4496_v22 = vld [vmem:[%s7966_s0] sm:$0xff]  ;;  %v125_v23 = vld [vmem:[%s7967_s1 + $0x318] sm:$0xff]  ;;  %v2926_v26 = vpack.c.bf16 %v118_v16, %v114_v13  ;;  %v3502_v27 = vpack.c.bf16 %v120_v18, %v116_v17 }
  0x22   :  { %2911 = vmatpush1.bf16.msra.mxu0 %v2910_v34  ;;  %v127_v21 = vld [vmem:[%s7967_s1 + $0x328] sm:$0xff]  ;;  %v129_v24 = vld [vmem:[%s7967_s1 + $0x338] sm:$0xff]  ;;  %v4506_v25 = vrot.slane %v4496_v22, %v4473_v11  ;;  %v122_v29 = vld [vmem:[%s7967_s1 + $0x300] sm:$0xff]  ;;  %v1205_v8 = vcombine.high %v4496_v22, %v4496_v22 }
  0x23   :  { %3487 = vmatpush1.bf16.msra.mxu1 %v3486_v35  ;;  %2913 = vmatprep.subr.bf16.mxu0 %v2912_v36  ;;  %v2928_v28 = vpack.c.bf16 %v127_v21, %v123_v20  ;;  %v126_v30 = vld [vmem:[%s7967_s1 + $0x320] sm:$0xff]  ;;  %v124_v31 = vld [vmem:[%s7967_s1 + $0x310] sm:$0xff]  ;;  %v3504_v33 = vpack.c.bf16 %v129_v24, %v125_v23  ;;  %v131_v35 = vld [vmem:[%s7967_s1 + $0x348] sm:$0xff] }
  0x24   :  { %3489 = vmatprep.subr.bf16.mxu1 %v3488_v40  ;;  %v1220_v32 = vcombine.high %v4506_v25, %v4506_v25  ;;  %v128_v34 = vld [vmem:[%s7967_s1 + $0x330] sm:$0xff]  ;;  %v135_v36 = vld [vmem:[%s7967_s1 + $0x368] sm:$0xff]  ;;  %v133_v37 = vld [vmem:[%s7967_s1 + $0x358] sm:$0xff]  ;;  %v2930_v39 = vpack.c.bf16 %v126_v30, %v122_v29  ;;  %v4627_v24 = vrot.slane %v1205_v8, %v4473_v11 }
  0x25   :  { %v137_v38 = vld [vmem:[%s7967_s1 + $0x378] sm:$0xff]  ;;  %v3506_v40 = vpack.c.bf16 %v128_v34, %v124_v31  ;;  %v2932_v41 = vpack.c.bf16 %v135_v36, %v131_v35  ;;  %v130_v42 = vld [vmem:[%s7967_s1 + $0x340] sm:$0xff]  ;;  %v132_v44 = vld [vmem:[%s7967_s1 + $0x350] sm:$0xff] }
  0x26   :  { %2915 = vmatpush1.bf16.msra.mxu0 %v2914_v49  ;;  %1363 = vmatprep.mubr.f32.mxu0 %v1220_v32  ;;  %v134_v43 = vld [vmem:[%s7967_s1 + $0x360] sm:$0xff]  ;;  %v3508_v45 = vpack.c.bf16 %v137_v38, %v133_v37  ;;  %v136_v46 = vld [vmem:[%s7967_s1 + $0x370] sm:$0xff]  ;;  %v139_v47 = vld [vmem:[%s7967_s1 + $0x388] sm:$0xff]  ;;  %v1221_v38 = vcombine.high %v4627_v24, %v4627_v24 }
  0x27   :  { %3491 = vmatpush1.bf16.msra.mxu1 %v3490_v50  ;;  %2917 = vmatprep.subr.bf16.mxu0 %v2916_v51  ;;  %v143_v48 = vld [vmem:[%s7967_s1 + $0x3a8] sm:$0xff]  ;;  %v141_v49 = vld [vmem:[%s7967_s1 + $0x398] sm:$0xff]  ;;  %v2934_v51 = vpack.c.bf16 %v134_v43, %v130_v42  ;;  %v3510_v52 = vpack.c.bf16 %v136_v46, %v132_v44  ;;  %v138_v54 = vld [vmem:[%s7967_s1 + $0x380] sm:$0xff] }
  0x28   :  { %3493 = vmatprep.subr.bf16.mxu1 %v3492_v55  ;;  %2002 = vmatprep.mubr.f32.mxu1 %v1220_v32  ;;  %v145_v50 = vld [vmem:[%s7967_s1 + $0x3b8] sm:$0xff]  ;;  %v2936_v53 = vpack.c.bf16 %v143_v48, %v139_v47  ;;  %v142_v55 = vld [vmem:[%s7967_s1 + $0x3a0] sm:$0xff]  ;;  %v140_v56 = vld [vmem:[%s7967_s1 + $0x390] sm:$0xff] }
  0x29   :  { %v3512_v57 = vpack.c.bf16 %v145_v50, %v141_v49  ;;  %v144_v58 = vld [vmem:[%s7967_s1 + $0x3b0] sm:$0xff]  ;;  %v147_v59 = vld [vmem:[%s7967_s1 + $0x3c8] sm:$0xff]  ;;  %v149_v62 = vld [vmem:[%s7967_s1 + $0x3d8] sm:$0xff] }
  0x2a   :  { %2919 = vmatpush1.bf16.msra.mxu0 %v2918_v63  ;;  %v151_v60 = vld [vmem:[%s7967_s1 + $0x3e8] sm:$0xff]  ;;  %v153_v63 = vld [vmem:[%s7967_s1 + $0x3f8] sm:$0xff]  ;;  %v146_v3 = vld [vmem:[%s7967_s1 + $0x3c0] sm:$0xff] }
  0x2b   :  { %3495 = vmatpush1.bf16.msra.mxu1 %v3494_v0  ;;  %2921 = vmatprep.subr.bf16.mxu0 %v2920_v1  ;;  %v2938_v0 = vpack.c.bf16 %v142_v55, %v138_v54  ;;  %v3514_v1 = vpack.c.bf16 %v144_v58, %v140_v56  ;;  %v2940_v2 = vpack.c.bf16 %v151_v60, %v147_v59  ;;  %v150_v4 = vld [vmem:[%s7967_s1 + $0x3e0] sm:$0xff]  ;;  %v152_v7 = vld [vmem:[%s7967_s1 + $0x3f0] sm:$0xff]  ;;  %v155_v9 = vld [vmem:[%s7967_s1 + $0x408] sm:$0xff] }
  0x2c   :  { %3497 = vmatprep.subr.bf16.mxu1 %v3496_v5  ;;  %v148_v5 = vld [vmem:[%s7967_s1 + $0x3d0] sm:$0xff]  ;;  %v3516_v6 = vpack.c.bf16 %v153_v63, %v149_v62  ;;  %v159_v10 = vld [vmem:[%s7967_s1 + $0x428] sm:$0xff]  ;;  %v161_v13 = vld [vmem:[%s7967_s1 + $0x438] sm:$0xff] }
  0x2d   :  { %v2944_v16 = vpack.c.bf16 %v159_v10, %v155_v9  ;;  %v154_v17 = vld [vmem:[%s7967_s1 + $0x400] sm:$0xff]  ;;  %v160_v21 = vld [vmem:[%s7967_s1 + $0x430] sm:$0xff]  ;;  %v163_v22 = vld [vmem:[%s7967_s1 + $0x448] sm:$0xff] }
  0x2e   :  { %2923 = vmatpush1.bf16.msra.mxu0 %v2922_v12  ;;  %v157_v12 = vld [vmem:[%s7967_s1 + $0x418] sm:$0xff]  ;;  %v158_v18 = vld [vmem:[%s7967_s1 + $0x420] sm:$0xff]  ;;  %v167_v23 = vld [vmem:[%s7967_s1 + $0x468] sm:$0xff] }
  0x2f   :  { %3499 = vmatpush1.bf16.msra.mxu1 %v3498_v14  ;;  %2925 = vmatprep.subr.bf16.mxu0 %v2924_v15  ;;  %v2942_v14 = vpack.c.bf16 %v150_v4, %v146_v3  ;;  %v3518_v15 = vpack.c.bf16 %v152_v7, %v148_v5  ;;  %v3520_v20 = vpack.c.bf16 %v161_v13, %v157_v12  ;;  %v162_v31 = vld [vmem:[%s7967_s1 + $0x440] sm:$0xff]  ;;  %v168_v35 = vld [vmem:[%s7967_s1 + $0x470] sm:$0xff]  ;;  %v171_v36 = vld [vmem:[%s7967_s1 + $0x488] sm:$0xff] }
  0x30   :  { %3501 = vmatprep.subr.bf16.mxu1 %v3500_v19  ;;  %v156_v19 = vld [vmem:[%s7967_s1 + $0x410] sm:$0xff]  ;;  %v2948_v30 = vpack.c.bf16 %v167_v23, %v163_v22  ;;  %v166_v32 = vld [vmem:[%s7967_s1 + $0x460] sm:$0xff]  ;;  %v175_v37 = vld [vmem:[%s7967_s1 + $0x4a8] sm:$0xff] }
  0x31   :  { %v3522_v29 = vpack.c.bf16 %v160_v21, %v156_v19  ;;  %v2952_v43 = vpack.c.bf16 %v175_v37, %v171_v36  ;;  %v170_v44 = vld [vmem:[%s7967_s1 + $0x480] sm:$0xff]  ;;  %v172_v46 = vld [vmem:[%s7967_s1 + $0x490] sm:$0xff]  ;;  %v179_v48 = vld [vmem:[%s7967_s1 + $0x4c8] sm:$0xff] }
  0x32   :  { %2927 = vmatpush1.bf16.msra.mxu0 %v2926_v26  ;;  %v165_v26 = vld [vmem:[%s7967_s1 + $0x458] sm:$0xff]  ;;  %v183_v49 = vld [vmem:[%s7967_s1 + $0x4e8] sm:$0xff]  ;;  %v178_v55 = vld [vmem:[%s7967_s1 + $0x4c0] sm:$0xff] }
  0x33   :  { %3503 = vmatpush1.bf16.msra.mxu1 %v3502_v27  ;;  %2929 = vmatprep.subr.bf16.mxu0 %v2928_v28  ;;  %v169_v27 = vld [vmem:[%s7967_s1 + $0x478] sm:$0xff]  ;;  %v2946_v28 = vpack.c.bf16 %v158_v18, %v154_v17  ;;  %v2956_v54 = vpack.c.bf16 %v183_v49, %v179_v48  ;;  %v182_v56 = vld [vmem:[%s7967_s1 + $0x4e0] sm:$0xff]  ;;  %v184_v59 = vld [vmem:[%s7967_s1 + $0x4f0] sm:$0xff] }
  0x34   :  { %3505 = vmatprep.subr.bf16.mxu1 %v3504_v33  ;;  %v164_v33 = vld [vmem:[%s7967_s1 + $0x450] sm:$0xff]  ;;  %v3524_v34 = vpack.c.bf16 %v169_v27, %v165_v26  ;;  %v181_v50 = vld [vmem:[%s7967_s1 + $0x4d8] sm:$0xff]  ;;  %v187_v60 = vld [vmem:[%s7967_s1 + $0x508] sm:$0xff] }
  0x35   :  { %v3526_v42 = vpack.c.bf16 %v168_v35, %v164_v33  ;;  %v191_v62 = vld [vmem:[%s7967_s1 + $0x528] sm:$0xff]  ;;  %v189_v63 = vld [vmem:[%s7967_s1 + $0x518] sm:$0xff]  ;;  %v186_v4 = vld [vmem:[%s7967_s1 + $0x500] sm:$0xff] }
  0x36   :  { %2931 = vmatpush1.bf16.msra.mxu0 %v2930_v39  ;;  %v173_v39 = vld [vmem:[%s7967_s1 + $0x498] sm:$0xff]  ;;  %v2960_v3 = vpack.c.bf16 %v191_v62, %v187_v60  ;;  %v190_v5 = vld [vmem:[%s7967_s1 + $0x520] sm:$0xff]  ;;  %v192_v8 = vld [vmem:[%s7967_s1 + $0x530] sm:$0xff] }
  0x37   :  { %3507 = vmatpush1.bf16.msra.mxu1 %v3506_v40  ;;  %2933 = vmatprep.subr.bf16.mxu0 %v2932_v41  ;;  %v177_v40 = vld [vmem:[%s7967_s1 + $0x4b8] sm:$0xff]  ;;  %v2950_v41 = vpack.c.bf16 %v166_v32, %v162_v31  ;;  %v195_v9 = vld [vmem:[%s7967_s1 + $0x548] sm:$0xff]  ;;  %v194_v17 = vld [vmem:[%s7967_s1 + $0x540] sm:$0xff] }
  0x38   :  { %3509 = vmatprep.subr.bf16.mxu1 %v3508_v45  ;;  %v174_v45 = vld [vmem:[%s7967_s1 + $0x4a0] sm:$0xff]  ;;  %v3528_v47 = vpack.c.bf16 %v177_v40, %v173_v39  ;;  %v199_v10 = vld [vmem:[%s7967_s1 + $0x568] sm:$0xff]  ;;  %v197_v12 = vld [vmem:[%s7967_s1 + $0x558] sm:$0xff] }
  0x39   :  { %v201_v13 = vld [vmem:[%s7967_s1 + $0x578] sm:$0xff]  ;;  %v198_v18 = vld [vmem:[%s7967_s1 + $0x560] sm:$0xff]  ;;  %v196_v19 = vld [vmem:[%s7967_s1 + $0x550] sm:$0xff] }
  0x3a   :  { %2935 = vmatpush1.bf16.msra.mxu0 %v2934_v51  ;;  %v185_v51 = vld [vmem:[%s7967_s1 + $0x4f8] sm:$0xff]  ;;  %v200_v21 = vld [vmem:[%s7967_s1 + $0x570] sm:$0xff]  ;;  %v203_v22 = vld [vmem:[%s7967_s1 + $0x588] sm:$0xff] }
  0x3b   :  { %3511 = vmatpush1.bf16.msra.mxu1 %v3510_v52  ;;  %2937 = vmatprep.subr.bf16.mxu0 %v2936_v53  ;;  %v2954_v52 = vpack.c.bf16 %v174_v45, %v170_v44  ;;  %v3532_v58 = vpack.c.bf16 %v185_v51, %v181_v50  ;;  %v207_v23 = vld [vmem:[%s7967_s1 + $0x5a8] sm:$0xff]  ;;  %v205_v26 = vld [vmem:[%s7967_s1 + $0x598] sm:$0xff]  ;;  %v202_v31 = vld [vmem:[%s7967_s1 + $0x580] sm:$0xff] }
  0x3c   :  { %3513 = vmatprep.subr.bf16.mxu1 %v3512_v57  ;;  %v180_v57 = vld [vmem:[%s7967_s1 + $0x4d0] sm:$0xff]  ;;  %v209_v27 = vld [vmem:[%s7967_s1 + $0x5b8] sm:$0xff]  ;;  %v206_v32 = vld [vmem:[%s7967_s1 + $0x5a0] sm:$0xff] }
  0x3d   :  { %v204_v33 = vld [vmem:[%s7967_s1 + $0x590] sm:$0xff]  ;;  %v211_v36 = vld [vmem:[%s7967_s1 + $0x5c8] sm:$0xff]  ;;  %v217_v39 = vld [vmem:[%s7967_s1 + $0x5f8] sm:$0xff]  ;;  %v2970_v40 = vpack.c.bf16 %v206_v32, %v202_v31 }
  0x3e   :  { %2939 = vmatpush1.bf16.msra.mxu0 %v2938_v0  ;;  %v193_v0 = vld [vmem:[%s7967_s1 + $0x538] sm:$0xff]  ;;  %v208_v35 = vld [vmem:[%s7967_s1 + $0x5b0] sm:$0xff]  ;;  %v215_v37 = vld [vmem:[%s7967_s1 + $0x5e8] sm:$0xff] }
  0x3f   :  { %3515 = vmatpush1.bf16.msra.mxu1 %v3514_v1  ;;  %2941 = vmatprep.subr.bf16.mxu0 %v2940_v2  ;;  %v2958_v1 = vpack.c.bf16 %v182_v56, %v178_v55  ;;  %v3534_v2 = vpack.c.bf16 %v184_v59, %v180_v57  ;;  %v3536_v7 = vpack.c.bf16 %v193_v0, %v189_v63  ;;  %v214_v44 = vld [vmem:[%s7967_s1 + $0x5e0] sm:$0xff]  ;;  %v212_v45 = vld [vmem:[%s7967_s1 + $0x5d0] sm:$0xff]  ;;  %v223_v48 = vld [vmem:[%s7967_s1 + $0x628] sm:$0xff] }
  0x40   :  { %3517 = vmatprep.subr.bf16.mxu1 %v3516_v6  ;;  %v188_v6 = vld [vmem:[%s7967_s1 + $0x510] sm:$0xff]  ;;  %v221_v49 = vld [vmem:[%s7967_s1 + $0x618] sm:$0xff]  ;;  %v222_v55 = vld [vmem:[%s7967_s1 + $0x620] sm:$0xff] }
  0x41   :  { %v225_v50 = vld [vmem:[%s7967_s1 + $0x638] sm:$0xff]  ;;  %v220_v56 = vld [vmem:[%s7967_s1 + $0x610] sm:$0xff]  ;;  %v227_v59 = vld [vmem:[%s7967_s1 + $0x648] sm:$0xff] }
  0x42   :  { %2943 = vmatpush1.bf16.msra.mxu0 %v2942_v14  ;;  %v2962_v14 = vpack.c.bf16 %v190_v5, %v186_v4  ;;  %v3552_v57 = vpack.c.bf16 %v225_v50, %v221_v49  ;;  %v231_v60 = vld [vmem:[%s7967_s1 + $0x668] sm:$0xff]  ;;  %v229_v62 = vld [vmem:[%s7967_s1 + $0x658] sm:$0xff]  ;;  %v230_v4 = vld [vmem:[%s7967_s1 + $0x660] sm:$0xff] }
  0x43   :  { %3519 = vmatpush1.bf16.msra.mxu1 %v3518_v15  ;;  %2945 = vmatprep.subr.bf16.mxu0 %v2944_v16  ;;  %v3538_v15 = vpack.c.bf16 %v192_v8, %v188_v6  ;;  %v2964_v16 = vpack.c.bf16 %v199_v10, %v195_v9  ;;  %v233_v63 = vld [vmem:[%s7967_s1 + $0x678] sm:$0xff]  ;;  %v228_v5 = vld [vmem:[%s7967_s1 + $0x650] sm:$0xff]  ;;  %v235_v8 = vld [vmem:[%s7967_s1 + $0x688] sm:$0xff] }
  0x44   :  { %3521 = vmatprep.subr.bf16.mxu1 %v3520_v20  ;;  %v3540_v20 = vpack.c.bf16 %v201_v13, %v197_v12  ;;  %v3556_v6 = vpack.c.bf16 %v233_v63, %v229_v62  ;;  %v239_v9 = vld [vmem:[%s7967_s1 + $0x6a8] sm:$0xff]  ;;  %v237_v10 = vld [vmem:[%s7967_s1 + $0x698] sm:$0xff]  ;;  %v246_v31 = vld [vmem:[%s7967_s1 + $0x6e0] sm:$0xff] }
  0x45   :  { %1364 = vmatmul.mubr.f32.vlgmr.msra.gmra.mrb[0].mxu0 %v4506_v25  ;;  %v241_v12 = vld [vmem:[%s7967_s1 + $0x6b8] sm:$0xff]  ;;  %v244_v32 = vld [vmem:[%s7967_s1 + $0x6d0] sm:$0xff] }
  0x46   :  { %2947 = vmatpush1.bf16.msra.mxu0 %v2946_v28  ;;  %2003 = vmatmul.mubr.f32.vlgmr.msra.gmra.mrb[0].mxu1 %v4506_v25  ;;  %v176_v25 = vld [vmem:[%s7967_s1 + $0x4b0] sm:$0xff]  ;;  %v2966_v28 = vpack.c.bf16 %v198_v18, %v194_v17  ;;  %v238_v17 = vld [vmem:[%s7967_s1 + $0x6a0] sm:$0xff]  ;;  %v265_v49 = vld [vmem:[%s7967_s1 + $0x778] sm:$0xff] }
  0x47   :  { %3523 = vmatpush1.bf16.msra.mxu1 %v3522_v29  ;;  %2949 = vmatprep.subr.bf16.mxu0 %v2948_v30  ;;  %v3530_v53 = vpack.c.bf16 %v176_v25, %v172_v46  ;;  %v3542_v29 = vpack.c.bf16 %v200_v21, %v196_v19  ;;  %v2968_v30 = vpack.c.bf16 %v207_v23, %v203_v22  ;;  %v219_v25 = vld [vmem:[%s7967_s1 + $0x608] sm:$0xff]  ;;  %v236_v18 = vld [vmem:[%s7967_s1 + $0x690] sm:$0xff]  ;;  %v245_v23 = vld [vmem:[%s7967_s1 + $0x6d8] sm:$0xff] }
  0x48   :  { %3525 = vmatprep.subr.bf16.mxu1 %v3524_v34  ;;  %1434 = vmatprep.mubr.f32.mxu0 %v1221_v38  ;;  %v3544_v34 = vpack.c.bf16 %v209_v27, %v205_v26  ;;  %v3560_v19 = vpack.c.bf16 %v241_v12, %v237_v10  ;;  %v243_v21 = vld [vmem:[%s7967_s1 + $0x6c8] sm:$0xff]  ;;  %v249_v26 = vld [vmem:[%s7967_s1 + $0x6f8] sm:$0xff] }
  0x49   :  { %2073 = vmatprep.mubr.f32.mxu1 %v1221_v38  ;;  %v213_v38 = vld [vmem:[%s7967_s1 + $0x5d8] sm:$0xff]  ;;  %v247_v22 = vld [vmem:[%s7967_s1 + $0x6e8] sm:$0xff] }
  0x4a   :  { %2951 = vmatpush1.bf16.msra.mxu0 %v2950_v41  ;;  %v3546_v41 = vpack.c.bf16 %v208_v35, %v204_v33  ;;  %v3548_v46 = vpack.c.bf16 %v217_v39, %v213_v38  ;;  %v3564_v33 = vpack.c.bf16 %v249_v26, %v245_v23  ;;  %v251_v35 = vld [vmem:[%s7967_s1 + $0x708] sm:$0xff]  ;;  %v257_v38 = vld [vmem:[%s7967_s1 + $0x738] sm:$0xff] }
  0x4b   :  { %3527 = vmatpush1.bf16.msra.mxu1 %v3526_v42  ;;  %2953 = vmatprep.subr.bf16.mxu0 %v2952_v43  ;;  %v2972_v42 = vpack.c.bf16 %v215_v37, %v211_v36  ;;  %v210_v43 = vld [vmem:[%s7967_s1 + $0x5c0] sm:$0xff]  ;;  %v255_v36 = vld [vmem:[%s7967_s1 + $0x728] sm:$0xff]  ;;  %v253_v37 = vld [vmem:[%s7967_s1 + $0x718] sm:$0xff] }
  0x4c   :  { %3529 = vmatprep.subr.bf16.mxu1 %v3528_v47  ;;  %v216_v47 = vld [vmem:[%s7967_s1 + $0x5f0] sm:$0xff]  ;;  %v2974_v51 = vpack.c.bf16 %v214_v44, %v210_v43  ;;  %v254_v43 = vld [vmem:[%s7967_s1 + $0x720] sm:$0xff]  ;;  %v273_v62 = vld [vmem:[%s7967_s1 + $0x7b8] sm:$0xff] }
  0x4d   :  { %v252_v44 = vld [vmem:[%s7967_s1 + $0x710] sm:$0xff]  ;;  %v281_v10 = vld [vmem:[%s7967_s1 + $0x7f8] sm:$0xff] }
  0x4e   :  { %2955 = vmatpush1.bf16.msra.mxu0 %v2954_v52  ;;  %v3550_v52 = vpack.c.bf16 %v216_v47, %v212_v45  ;;  %v3568_v45 = vpack.c.bf16 %v257_v38, %v253_v37  ;;  %v259_v47 = vld [vmem:[%s7967_s1 + $0x748] sm:$0xff]  ;;  %v289_v23 = vld [vmem:[%s7967_s1 + $0x838] sm:$0xff] }
  0x4f   :  { %3531 = vmatpush1.bf16.msra.mxu1 %v3530_v53  ;;  %2957 = vmatprep.subr.bf16.mxu0 %v2956_v54  ;;  %v2976_v53 = vpack.c.bf16 %v223_v48, %v219_v25  ;;  %v218_v54 = vld [vmem:[%s7967_s1 + $0x600] sm:$0xff]  ;;  %v263_v25 = vld [vmem:[%s7967_s1 + $0x768] sm:$0xff]  ;;  %v261_v48 = vld [vmem:[%s7967_s1 + $0x758] sm:$0xff] }
  0x50   :  { %3533 = vmatprep.subr.bf16.mxu1 %v3532_v58  ;;  %v224_v58 = vld [vmem:[%s7967_s1 + $0x630] sm:$0xff]  ;;  %v2978_v0 = vpack.c.bf16 %v222_v55, %v218_v54  ;;  %v262_v54 = vld [vmem:[%s7967_s1 + $0x760] sm:$0xff]  ;;  %v297_v37 = vld [vmem:[%s7967_s1 + $0x878] sm:$0xff] }
  0x51   :  { %v260_v55 = vld [vmem:[%s7967_s1 + $0x750] sm:$0xff] }
  0x52   :  { %2959 = vmatpush1.bf16.msra.mxu0 %v2958_v1  ;;  %v3554_v1 = vpack.c.bf16 %v224_v58, %v220_v56  ;;  %v3572_v56 = vpack.c.bf16 %v265_v49, %v261_v48  ;;  %v267_v58 = vld [vmem:[%s7967_s1 + $0x788] sm:$0xff]  ;;  %v301_v49 = vld [vmem:[%s7967_s1 + $0x898] sm:$0xff] }
  0x53   :  { %3535 = vmatpush1.bf16.msra.mxu1 %v3534_v2  ;;  %2961 = vmatprep.subr.bf16.mxu0 %v2960_v3  ;;  %v2980_v2 = vpack.c.bf16 %v231_v60, %v227_v59  ;;  %v226_v3 = vld [vmem:[%s7967_s1 + $0x640] sm:$0xff]  ;;  %v271_v59 = vld [vmem:[%s7967_s1 + $0x7a8] sm:$0xff]  ;;  %v269_v60 = vld [vmem:[%s7967_s1 + $0x798] sm:$0xff] }
  0x54   :  { %3537 = vmatprep.subr.bf16.mxu1 %v3536_v7  ;;  %v232_v7 = vld [vmem:[%s7967_s1 + $0x670] sm:$0xff]  ;;  %v2982_v13 = vpack.c.bf16 %v230_v4, %v226_v3  ;;  %v270_v3 = vld [vmem:[%s7967_s1 + $0x7a0] sm:$0xff]  ;;  %v303_v48 = vld [vmem:[%s7967_s1 + $0x8a8] sm:$0xff] }
  0x55   :  { %v268_v4 = vld [vmem:[%s7967_s1 + $0x790] sm:$0xff] }
  0x56   :  { %2963 = vmatpush1.bf16.msra.mxu0 %v2962_v14  ;;  %v3558_v14 = vpack.c.bf16 %v232_v7, %v228_v5  ;;  %v3576_v5 = vpack.c.bf16 %v273_v62, %v269_v60  ;;  %v275_v7 = vld [vmem:[%s7967_s1 + $0x7c8] sm:$0xff]  ;;  %v309_v62 = vld [vmem:[%s7967_s1 + $0x8d8] sm:$0xff] }
  0x57   :  { %3539 = vmatpush1.bf16.msra.mxu1 %v3538_v15  ;;  %2965 = vmatprep.subr.bf16.mxu0 %v2964_v16  ;;  %v2984_v15 = vpack.c.bf16 %v239_v9, %v235_v8  ;;  %v234_v16 = vld [vmem:[%s7967_s1 + $0x680] sm:$0xff]  ;;  %v279_v8 = vld [vmem:[%s7967_s1 + $0x7e8] sm:$0xff]  ;;  %v277_v9 = vld [vmem:[%s7967_s1 + $0x7d8] sm:$0xff] }
  0x58   :  { %3541 = vmatprep.subr.bf16.mxu1 %v3540_v20  ;;  %v240_v20 = vld [vmem:[%s7967_s1 + $0x6b0] sm:$0xff]  ;;  %v2986_v27 = vpack.c.bf16 %v238_v17, %v234_v16  ;;  %v278_v16 = vld [vmem:[%s7967_s1 + $0x7e0] sm:$0xff]  ;;  %v311_v60 = vld [vmem:[%s7967_s1 + $0x8e8] sm:$0xff] }
  0x59   :  { %v276_v17 = vld [vmem:[%s7967_s1 + $0x7d0] sm:$0xff] }
  0x5a   :  { %2967 = vmatpush1.bf16.msra.mxu0 %v2966_v28  ;;  %v3562_v28 = vpack.c.bf16 %v240_v20, %v236_v18  ;;  %v3580_v18 = vpack.c.bf16 %v281_v10, %v277_v9  ;;  %v283_v20 = vld [vmem:[%s7967_s1 + $0x808] sm:$0xff]  ;;  %v317_v10 = vld [vmem:[%s7967_s1 + $0x918] sm:$0xff] }
  0x5b   :  { %3543 = vmatpush1.bf16.msra.mxu1 %v3542_v29  ;;  %2969 = vmatprep.subr.bf16.mxu0 %v2968_v30  ;;  %v2988_v29 = vpack.c.bf16 %v247_v22, %v243_v21  ;;  %v242_v30 = vld [vmem:[%s7967_s1 + $0x6c0] sm:$0xff]  ;;  %v287_v21 = vld [vmem:[%s7967_s1 + $0x828] sm:$0xff]  ;;  %v285_v22 = vld [vmem:[%s7967_s1 + $0x818] sm:$0xff] }
  0x5c   :  { %3545 = vmatprep.subr.bf16.mxu1 %v3544_v34  ;;  %v248_v34 = vld [vmem:[%s7967_s1 + $0x6f0] sm:$0xff]  ;;  %v2990_v39 = vpack.c.bf16 %v246_v31, %v242_v30  ;;  %v286_v30 = vld [vmem:[%s7967_s1 + $0x820] sm:$0xff]  ;;  %v319_v9 = vld [vmem:[%s7967_s1 + $0x928] sm:$0xff] }
  0x5d   :  { %v284_v31 = vld [vmem:[%s7967_s1 + $0x810] sm:$0xff] }
  0x5e   :  { %2971 = vmatpush1.bf16.msra.mxu0 %v2970_v40  ;;  %v3566_v40 = vpack.c.bf16 %v248_v34, %v244_v32  ;;  %v3584_v32 = vpack.c.bf16 %v289_v23, %v285_v22  ;;  %v291_v34 = vld [vmem:[%s7967_s1 + $0x848] sm:$0xff]  ;;  %v325_v23 = vld [vmem:[%s7967_s1 + $0x958] sm:$0xff] }
  0x5f   :  { %3547 = vmatpush1.bf16.msra.mxu1 %v3546_v41  ;;  %2973 = vmatprep.subr.bf16.mxu0 %v2972_v42  ;;  %v2992_v41 = vpack.c.bf16 %v255_v36, %v251_v35  ;;  %v250_v42 = vld [vmem:[%s7967_s1 + $0x700] sm:$0xff]  ;;  %v295_v35 = vld [vmem:[%s7967_s1 + $0x868] sm:$0xff]  ;;  %v293_v36 = vld [vmem:[%s7967_s1 + $0x858] sm:$0xff] }
  0x60   :  { %3549 = vmatprep.subr.bf16.mxu1 %v3548_v46  ;;  %v256_v46 = vld [vmem:[%s7967_s1 + $0x730] sm:$0xff]  ;;  %v2994_v50 = vpack.c.bf16 %v254_v43, %v250_v42  ;;  %v290_v42 = vld [vmem:[%s7967_s1 + $0x840] sm:$0xff]  ;;  %v327_v22 = vld [vmem:[%s7967_s1 + $0x968] sm:$0xff] }
  0x61   :  { %v294_v43 = vld [vmem:[%s7967_s1 + $0x860] sm:$0xff] }
  0x62   :  { %2975 = vmatpush1.bf16.msra.mxu0 %v2974_v51  ;;  %v3570_v51 = vpack.c.bf16 %v256_v46, %v252_v44  ;;  %v292_v44 = vld [vmem:[%s7967_s1 + $0x850] sm:$0xff]  ;;  %v3588_v46 = vpack.c.bf16 %v297_v37, %v293_v36  ;;  %v335_v36 = vld [vmem:[%s7967_s1 + $0x9a8] sm:$0xff]  ;;  %v333_v37 = vld [vmem:[%s7967_s1 + $0x998] sm:$0xff] }
  0x63   :  { %3551 = vmatpush1.bf16.msra.mxu1 %v3550_v52  ;;  %2977 = vmatprep.subr.bf16.mxu0 %v2976_v53  ;;  %v2996_v52 = vpack.c.bf16 %v263_v25, %v259_v47  ;;  %v258_v53 = vld [vmem:[%s7967_s1 + $0x740] sm:$0xff]  ;;  %v296_v47 = vld [vmem:[%s7967_s1 + $0x870] sm:$0xff]  ;;  %v299_v25 = vld [vmem:[%s7967_s1 + $0x888] sm:$0xff] }
  0x64   :  { %3553 = vmatprep.subr.bf16.mxu1 %v3552_v57  ;;  %v264_v57 = vld [vmem:[%s7967_s1 + $0x770] sm:$0xff]  ;;  %v2998_v63 = vpack.c.bf16 %v262_v54, %v258_v53  ;;  %v3590_v53 = vpack.c.bf16 %v296_v47, %v292_v44  ;;  %v3016_v54 = vpack.c.bf16 %v303_v48, %v299_v25  ;;  %v334_v44 = vld [vmem:[%s7967_s1 + $0x9a0] sm:$0xff]  ;;  %v339_v48 = vld [vmem:[%s7967_s1 + $0x9c8] sm:$0xff] }
  0x65   :  { %v336_v25 = vld [vmem:[%s7967_s1 + $0x9b0] sm:$0xff] }
  0x66   :  { %2979 = vmatpush1.bf16.msra.mxu0 %v2978_v0  ;;  %v3574_v0 = vpack.c.bf16 %v264_v57, %v260_v55  ;;  %v298_v55 = vld [vmem:[%s7967_s1 + $0x880] sm:$0xff]  ;;  %v300_v57 = vld [vmem:[%s7967_s1 + $0x890] sm:$0xff] }
  0x67   :  { %3555 = vmatpush1.bf16.msra.mxu1 %v3554_v1  ;;  %2981 = vmatprep.subr.bf16.mxu0 %v2980_v2  ;;  %v3000_v1 = vpack.c.bf16 %v271_v59, %v267_v58  ;;  %v266_v2 = vld [vmem:[%s7967_s1 + $0x780] sm:$0xff]  ;;  %v307_v59 = vld [vmem:[%s7967_s1 + $0x8c8] sm:$0xff] }
  0x68   :  { %3557 = vmatprep.subr.bf16.mxu1 %v3556_v6  ;;  %v272_v6 = vld [vmem:[%s7967_s1 + $0x7b0] sm:$0xff]  ;;  %v3002_v12 = vpack.c.bf16 %v270_v3, %v266_v2  ;;  %v3020_v2 = vpack.c.bf16 %v311_v60, %v307_v59  ;;  %v306_v3 = vld [vmem:[%s7967_s1 + $0x8c0] sm:$0xff]  ;;  %v347_v59 = vld [vmem:[%s7967_s1 + $0xa08] sm:$0xff] }
  0x69   :  { %v351_v60 = vld [vmem:[%s7967_s1 + $0xa28] sm:$0xff] }
  0x6a   :  { %2983 = vmatpush1.bf16.msra.mxu0 %v2982_v13  ;;  %v3578_v13 = vpack.c.bf16 %v272_v6, %v268_v4  ;;  %v310_v4 = vld [vmem:[%s7967_s1 + $0x8e0] sm:$0xff] }
  0x6b   :  { %3559 = vmatpush1.bf16.msra.mxu1 %v3558_v14  ;;  %2985 = vmatprep.subr.bf16.mxu0 %v2984_v15  ;;  %v3004_v14 = vpack.c.bf16 %v279_v8, %v275_v7  ;;  %v274_v15 = vld [vmem:[%s7967_s1 + $0x7c0] sm:$0xff]  ;;  %v312_v7 = vld [vmem:[%s7967_s1 + $0x8f0] sm:$0xff]  ;;  %v315_v8 = vld [vmem:[%s7967_s1 + $0x908] sm:$0xff] }
  0x6c   :  { %3561 = vmatprep.subr.bf16.mxu1 %v3560_v19  ;;  %v280_v19 = vld [vmem:[%s7967_s1 + $0x7f0] sm:$0xff]  ;;  %v3006_v26 = vpack.c.bf16 %v278_v16, %v274_v15  ;;  %v3024_v15 = vpack.c.bf16 %v319_v9, %v315_v8  ;;  %v314_v16 = vld [vmem:[%s7967_s1 + $0x900] sm:$0xff]  ;;  %v355_v8 = vld [vmem:[%s7967_s1 + $0xa48] sm:$0xff] }
  0x6d   :  { %v359_v9 = vld [vmem:[%s7967_s1 + $0xa68] sm:$0xff] }
  0x6e   :  { %2987 = vmatpush1.bf16.msra.mxu0 %v2986_v27  ;;  %v3582_v27 = vpack.c.bf16 %v280_v19, %v276_v17  ;;  %v318_v17 = vld [vmem:[%s7967_s1 + $0x920] sm:$0xff] }
  0x6f   :  { %3563 = vmatpush1.bf16.msra.mxu1 %v3562_v28  ;;  %2989 = vmatprep.subr.bf16.mxu0 %v2988_v29  ;;  %v3008_v28 = vpack.c.bf16 %v287_v21, %v283_v20  ;;  %v282_v29 = vld [vmem:[%s7967_s1 + $0x800] sm:$0xff]  ;;  %v320_v20 = vld [vmem:[%s7967_s1 + $0x930] sm:$0xff]  ;;  %v323_v21 = vld [vmem:[%s7967_s1 + $0x948] sm:$0xff] }
  0x70   :  { %3565 = vmatprep.subr.bf16.mxu1 %v3564_v33  ;;  %v288_v33 = vld [vmem:[%s7967_s1 + $0x830] sm:$0xff]  ;;  %v3010_v38 = vpack.c.bf16 %v286_v30, %v282_v29  ;;  %v3028_v29 = vpack.c.bf16 %v327_v22, %v323_v21  ;;  %v322_v30 = vld [vmem:[%s7967_s1 + $0x940] sm:$0xff]  ;;  %v363_v21 = vld [vmem:[%s7967_s1 + $0xa88] sm:$0xff] }
  0x71   :  { %v367_v22 = vld [vmem:[%s7967_s1 + $0xaa8] sm:$0xff] }
  0x72   :  { %2991 = vmatpush1.bf16.msra.mxu0 %v2990_v39  ;;  %v5026_v39 = vld [vmem:[%s7966_s0 + $0x8] sm:$0xff] }
  0x73   :  { %3567 = vmatpush1.bf16.msra.mxu1 %v3566_v40  ;;  %2993 = vmatprep.subr.bf16.mxu0 %v2992_v41  ;;  %v3586_v40 = vpack.c.bf16 %v288_v33, %v284_v31  ;;  %v3012_v41 = vpack.c.bf16 %v295_v35, %v291_v34  ;;  %v326_v31 = vld [vmem:[%s7967_s1 + $0x960] sm:$0xff]  ;;  %v328_v34 = vld [vmem:[%s7967_s1 + $0x970] sm:$0xff]  ;;  %v331_v35 = vld [vmem:[%s7967_s1 + $0x988] sm:$0xff] }
  0x74   :  { %3569 = vmatprep.subr.bf16.mxu1 %v3568_v45  ;;  %v5039_v45 = vrot.slane %v5026_v39, %v4473_v11 }
  0x76   :  { %2995 = vmatpush1.bf16.msra.mxu0 %v2994_v50  ;;  %v305_v50 = vld [vmem:[%s7967_s1 + $0x8b8] sm:$0xff] }
  0x77   :  { %3571 = vmatpush1.bf16.msra.mxu1 %v3570_v51  ;;  %2997 = vmatprep.subr.bf16.mxu0 %v2996_v52  ;;  %v1237_v51 = vcombine.high %v5039_v45, %v5039_v45  ;;  %v3014_v52 = vpack.c.bf16 %v294_v43, %v290_v42  ;;  %v3592_v58 = vpack.c.bf16 %v305_v50, %v301_v49  ;;  %v330_v43 = vld [vmem:[%s7967_s1 + $0x980] sm:$0xff]  ;;  %v343_v49 = vld [vmem:[%s7967_s1 + $0x9e8] sm:$0xff]  ;;  %v341_v50 = vld [vmem:[%s7967_s1 + $0x9d8] sm:$0xff] }
  0x78   :  { %3573 = vmatprep.subr.bf16.mxu1 %v3572_v56  ;;  %v302_v56 = vld [vmem:[%s7967_s1 + $0x8a0] sm:$0xff]  ;;  %v3032_v42 = vpack.c.bf16 %v335_v36, %v331_v35  ;;  %v371_v35 = vld [vmem:[%s7967_s1 + $0xac8] sm:$0xff] }
  0x79   :  { %v375_v36 = vld [vmem:[%s7967_s1 + $0xae8] sm:$0xff] }
  0x7a   :  { %2999 = vmatpush1.bf16.msra.mxu0 %v2998_v63  ;;  %v313_v63 = vld [vmem:[%s7967_s1 + $0x8f8] sm:$0xff] }
  0x7b   :  { %3575 = vmatpush1.bf16.msra.mxu1 %v3574_v0  ;;  %3001 = vmatprep.subr.bf16.mxu0 %v3000_v1  ;;  %v3018_v0 = vpack.c.bf16 %v302_v56, %v298_v55  ;;  %v3596_v6 = vpack.c.bf16 %v313_v63, %v309_v62  ;;  %v338_v55 = vld [vmem:[%s7967_s1 + $0x9c0] sm:$0xff]  ;;  %v349_v62 = vld [vmem:[%s7967_s1 + $0xa18] sm:$0xff] }
  0x7c   :  { %3577 = vmatprep.subr.bf16.mxu1 %v3576_v5  ;;  %v308_v5 = vld [vmem:[%s7967_s1 + $0x8d0] sm:$0xff]  ;;  %v342_v56 = vld [vmem:[%s7967_s1 + $0x9e0] sm:$0xff]  ;;  %v353_v63 = vld [vmem:[%s7967_s1 + $0xa38] sm:$0xff] }
  0x7e   :  { %3003 = vmatpush1.bf16.msra.mxu0 %v3002_v12  ;;  %v321_v12 = vld [vmem:[%s7967_s1 + $0x938] sm:$0xff] }
  0x7f   :  { %3579 = vmatpush1.bf16.msra.mxu1 %v3578_v13  ;;  %3005 = vmatprep.subr.bf16.mxu0 %v3004_v14  ;;  %v3022_v13 = vpack.c.bf16 %v310_v4, %v306_v3  ;;  %v3598_v14 = vpack.c.bf16 %v312_v7, %v308_v5  ;;  %v3600_v19 = vpack.c.bf16 %v321_v12, %v317_v10  ;;  %v346_v3 = vld [vmem:[%s7967_s1 + $0xa00] sm:$0xff]  ;;  %v348_v5 = vld [vmem:[%s7967_s1 + $0xa10] sm:$0xff]  ;;  %v357_v10 = vld [vmem:[%s7967_s1 + $0xa58] sm:$0xff] }
  0x80   :  { %3581 = vmatprep.subr.bf16.mxu1 %v3580_v18  ;;  %v316_v18 = vld [vmem:[%s7967_s1 + $0x910] sm:$0xff]  ;;  %v350_v4 = vld [vmem:[%s7967_s1 + $0xa20] sm:$0xff]  ;;  %v361_v12 = vld [vmem:[%s7967_s1 + $0xa78] sm:$0xff] }
  0x81   :  { %v352_v7 = vld [vmem:[%s7967_s1 + $0xa30] sm:$0xff] }
  0x82   :  { %3007 = vmatpush1.bf16.msra.mxu0 %v3006_v26  ;;  %v329_v26 = vld [vmem:[%s7967_s1 + $0x978] sm:$0xff] }
  0x83   :  { %3583 = vmatpush1.bf16.msra.mxu1 %v3582_v27  ;;  %3009 = vmatprep.subr.bf16.mxu0 %v3008_v28  ;;  %v3026_v27 = vpack.c.bf16 %v318_v17, %v314_v16  ;;  %v3602_v28 = vpack.c.bf16 %v320_v20, %v316_v18  ;;  %v3604_v33 = vpack.c.bf16 %v329_v26, %v325_v23  ;;  %v354_v16 = vld [vmem:[%s7967_s1 + $0xa40] sm:$0xff]  ;;  %v356_v18 = vld [vmem:[%s7967_s1 + $0xa50] sm:$0xff]  ;;  %v365_v23 = vld [vmem:[%s7967_s1 + $0xa98] sm:$0xff] }
  0x84   :  { %3585 = vmatprep.subr.bf16.mxu1 %v3584_v32  ;;  %v324_v32 = vld [vmem:[%s7967_s1 + $0x950] sm:$0xff]  ;;  %v358_v17 = vld [vmem:[%s7967_s1 + $0xa60] sm:$0xff]  ;;  %v369_v26 = vld [vmem:[%s7967_s1 + $0xab8] sm:$0xff] }
  0x85   :  { %1435 = vmatmul.mubr.f32.vlgmr.msra.gmra.mrb[0].mxu0 %v4627_v24  ;;  %v360_v20 = vld [vmem:[%s7967_s1 + $0xa70] sm:$0xff] }
  0x86   :  { %3011 = vmatpush1.bf16.msra.mxu0 %v3010_v38  ;;  %2074 = vmatmul.mubr.f32.vlgmr.msra.gmra.mrb[0].mxu1 %v4627_v24  ;;  %v304_v24 = vld [vmem:[%s7967_s1 + $0x8b0] sm:$0xff]  ;;  %v337_v38 = vld [vmem:[%s7967_s1 + $0x9b8] sm:$0xff] }
  0x87   :  { %3587 = vmatpush1.bf16.msra.mxu1 %v3586_v40  ;;  %3013 = vmatprep.subr.bf16.mxu0 %v3012_v41  ;;  %v3594_v1 = vpack.c.bf16 %v304_v24, %v300_v57  ;;  %v3030_v40 = vpack.c.bf16 %v326_v31, %v322_v30  ;;  %v3606_v41 = vpack.c.bf16 %v328_v34, %v324_v32  ;;  %v340_v57 = vld [vmem:[%s7967_s1 + $0x9d0] sm:$0xff]  ;;  %v362_v30 = vld [vmem:[%s7967_s1 + $0xa80] sm:$0xff] }
  0x88   :  { %3589 = vmatprep.subr.bf16.mxu1 %v3588_v46  ;;  %1505 = vmatprep.mubr.f32.mxu0 %v1237_v51  ;;  %v332_v46 = vld [vmem:[%s7967_s1 + $0x990] sm:$0xff]  ;;  %v3608_v47 = vpack.c.bf16 %v337_v38, %v333_v37  ;;  %v366_v31 = vld [vmem:[%s7967_s1 + $0xaa0] sm:$0xff]  ;;  %v373_v37 = vld [vmem:[%s7967_s1 + $0xad8] sm:$0xff] }
  0x89   :  { %2144 = vmatprep.mubr.f32.mxu1 %v1237_v51  ;;  %v345_v51 = vld [vmem:[%s7967_s1 + $0x9f8] sm:$0xff]  ;;  %v344_v24 = vld [vmem:[%s7967_s1 + $0x9f0] sm:$0xff] }
  0x8a   :  { %3015 = vmatpush1.bf16.msra.mxu0 %v3014_v52  ;;  %v3034_v52 = vpack.c.bf16 %v334_v44, %v330_v43  ;;  %v364_v32 = vld [vmem:[%s7967_s1 + $0xa90] sm:$0xff]  ;;  %v377_v38 = vld [vmem:[%s7967_s1 + $0xaf8] sm:$0xff]  ;;  %v370_v43 = vld [vmem:[%s7967_s1 + $0xac0] sm:$0xff] }
  0x8b   :  { %3591 = vmatpush1.bf16.msra.mxu1 %v3590_v53  ;;  %3017 = vmatprep.subr.bf16.mxu0 %v3016_v54  ;;  %v3610_v53 = vpack.c.bf16 %v336_v25, %v332_v46  ;;  %v3036_v54 = vpack.c.bf16 %v343_v49, %v339_v48  ;;  %v368_v34 = vld [vmem:[%s7967_s1 + $0xab0] sm:$0xff]  ;;  %v374_v44 = vld [vmem:[%s7967_s1 + $0xae0] sm:$0xff]  ;;  %v379_v48 = vld [vmem:[%s7967_s1 + $0xb08] sm:$0xff] }
  0x8c   :  { %3593 = vmatprep.subr.bf16.mxu1 %v3592_v58  ;;  %v3612_v58 = vpack.c.bf16 %v345_v51, %v341_v50  ;;  %v372_v46 = vld [vmem:[%s7967_s1 + $0xad0] sm:$0xff]  ;;  %v383_v49 = vld [vmem:[%s7967_s1 + $0xb28] sm:$0xff]  ;;  %v381_v50 = vld [vmem:[%s7967_s1 + $0xb18] sm:$0xff] }
  0x8d   :  { %v376_v25 = vld [vmem:[%s7967_s1 + $0xaf0] sm:$0xff]  ;;  %v385_v51 = vld [vmem:[%s7967_s1 + $0xb38] sm:$0xff] }
  0x8e   :  { %3019 = vmatpush1.bf16.msra.mxu0 %v3018_v0  ;;  %v3038_v0 = vpack.c.bf16 %v342_v56, %v338_v55  ;;  %v378_v55 = vld [vmem:[%s7967_s1 + $0xb00] sm:$0xff] }
  0x8f   :  { %3595 = vmatpush1.bf16.msra.mxu1 %v3594_v1  ;;  %3021 = vmatprep.subr.bf16.mxu0 %v3020_v2  ;;  %v3614_v1 = vpack.c.bf16 %v344_v24, %v340_v57  ;;  %v3040_v2 = vpack.c.bf16 %v351_v60, %v347_v59  ;;  %v382_v56 = vld [vmem:[%s7967_s1 + $0xb20] sm:$0xff]  ;;  %v380_v57 = vld [vmem:[%s7967_s1 + $0xb10] sm:$0xff]  ;;  %v387_v59 = vld [vmem:[%s7967_s1 + $0xb48] sm:$0xff] }
  0x90   :  { %3597 = vmatprep.subr.bf16.mxu1 %v3596_v6  ;;  %v3616_v6 = vpack.c.bf16 %v353_v63, %v349_v62  ;;  %v384_v24 = vld [vmem:[%s7967_s1 + $0xb30] sm:$0xff]  ;;  %v391_v60 = vld [vmem:[%s7967_s1 + $0xb68] sm:$0xff]  ;;  %v389_v62 = vld [vmem:[%s7967_s1 + $0xb58] sm:$0xff] }
  0x91   :  { %v393_v63 = vld [vmem:[%s7967_s1 + $0xb78] sm:$0xff] }
  0x92   :  { %3023 = vmatpush1.bf16.msra.mxu0 %v3022_v13  ;;  %v3042_v13 = vpack.c.bf16 %v350_v4, %v346_v3  ;;  %v386_v3 = vld [vmem:[%s7967_s1 + $0xb40] sm:$0xff] }
  0x93   :  { %3599 = vmatpush1.bf16.msra.mxu1 %v3598_v14  ;;  %3025 = vmatprep.subr.bf16.mxu0 %v3024_v15  ;;  %v3618_v14 = vpack.c.bf16 %v352_v7, %v348_v5  ;;  %v3044_v15 = vpack.c.bf16 %v359_v9, %v355_v8  ;;  %v390_v4 = vld [vmem:[%s7967_s1 + $0xb60] sm:$0xff]  ;;  %v388_v5 = vld [vmem:[%s7967_s1 + $0xb50] sm:$0xff]  ;;  %v395_v8 = vld [vmem:[%s7967_s1 + $0xb88] sm:$0xff] }
  0x94   :  { %3601 = vmatprep.subr.bf16.mxu1 %v3600_v19  ;;  %v3620_v19 = vpack.c.bf16 %v361_v12, %v357_v10  ;;  %v392_v7 = vld [vmem:[%s7967_s1 + $0xb70] sm:$0xff]  ;;  %v399_v9 = vld [vmem:[%s7967_s1 + $0xba8] sm:$0xff]  ;;  %v397_v10 = vld [vmem:[%s7967_s1 + $0xb98] sm:$0xff] }
  0x95   :  { %v401_v12 = vld [vmem:[%s7967_s1 + $0xbb8] sm:$0xff] }
  0x96   :  { %3027 = vmatpush1.bf16.msra.mxu0 %v3026_v27  ;;  %v3046_v27 = vpack.c.bf16 %v358_v17, %v354_v16  ;;  %v394_v16 = vld [vmem:[%s7967_s1 + $0xb80] sm:$0xff] }
  0x97   :  { %3603 = vmatpush1.bf16.msra.mxu1 %v3602_v28  ;;  %3029 = vmatprep.subr.bf16.mxu0 %v3028_v29  ;;  %v3622_v28 = vpack.c.bf16 %v360_v20, %v356_v18  ;;  %v3048_v29 = vpack.c.bf16 %v367_v22, %v363_v21  ;;  %v398_v17 = vld [vmem:[%s7967_s1 + $0xba0] sm:$0xff]  ;;  %v396_v18 = vld [vmem:[%s7967_s1 + $0xb90] sm:$0xff]  ;;  %v403_v21 = vld [vmem:[%s7967_s1 + $0xbc8] sm:$0xff] }
  0x98   :  { %3605 = vmatprep.subr.bf16.mxu1 %v3604_v33  ;;  %v3624_v33 = vpack.c.bf16 %v369_v26, %v365_v23  ;;  %v400_v20 = vld [vmem:[%s7967_s1 + $0xbb0] sm:$0xff]  ;;  %v407_v22 = vld [vmem:[%s7967_s1 + $0xbe8] sm:$0xff]  ;;  %v405_v23 = vld [vmem:[%s7967_s1 + $0xbd8] sm:$0xff] }
  0x99   :  { %v409_v26 = vld [vmem:[%s7967_s1 + $0xbf8] sm:$0xff] }
  0x9a   :  { %3031 = vmatpush1.bf16.msra.mxu0 %v3030_v40  ;;  %v3050_v40 = vpack.c.bf16 %v366_v31, %v362_v30  ;;  %v402_v30 = vld [vmem:[%s7967_s1 + $0xbc0] sm:$0xff] }
  0x9b   :  { %3607 = vmatpush1.bf16.msra.mxu1 %v3606_v41  ;;  %3033 = vmatprep.subr.bf16.mxu0 %v3032_v42  ;;  %v3626_v41 = vpack.c.bf16 %v368_v34, %v364_v32  ;;  %v3052_v42 = vpack.c.bf16 %v375_v36, %v371_v35  ;;  %v406_v31 = vld [vmem:[%s7967_s1 + $0xbe0] sm:$0xff]  ;;  %v404_v32 = vld [vmem:[%s7967_s1 + $0xbd0] sm:$0xff]  ;;  %v411_v35 = vld [vmem:[%s7967_s1 + $0xc08] sm:$0xff] }
  0x9c   :  { %3609 = vmatprep.subr.bf16.mxu1 %v3608_v47  ;;  %v3628_v47 = vpack.c.bf16 %v377_v38, %v373_v37  ;;  %v408_v34 = vld [vmem:[%s7967_s1 + $0xbf0] sm:$0xff]  ;;  %v415_v36 = vld [vmem:[%s7967_s1 + $0xc28] sm:$0xff]  ;;  %v1222_v37 = vcombine.high %v5026_v39, %v5026_v39  ;;  %v413_v38 = vld [vmem:[%s7967_s1 + $0xc18] sm:$0xff] }
  0x9d   :  { %v414_v39 = vld [vmem:[%s7967_s1 + $0xc20] sm:$0xff] }
  0x9e   :  { %3035 = vmatpush1.bf16.msra.mxu0 %v3034_v52  ;;  %v3054_v52 = vpack.c.bf16 %v374_v44, %v370_v43  ;;  %v3072_v43 = vpack.c.bf16 %v415_v36, %v411_v35  ;;  %v410_v44 = vld [vmem:[%s7967_s1 + $0xc00] sm:$0xff]  ;;  %v448_v35 = vld [vmem:[%s7967_s1 + $0xd30] sm:$0xff]  ;;  %v451_v36 = vld [vmem:[%s7967_s1 + $0xd48] sm:$0xff] }
  0x9f   :  { %3611 = vmatpush1.bf16.msra.mxu1 %v3610_v53  ;;  %3037 = vmatprep.subr.bf16.mxu0 %v3036_v54  ;;  %v3630_v53 = vpack.c.bf16 %v376_v25, %v372_v46  ;;  %v3056_v54 = vpack.c.bf16 %v383_v49, %v379_v48  ;;  %v412_v46 = vld [vmem:[%s7967_s1 + $0xc10] sm:$0xff]  ;;  %v419_v48 = vld [vmem:[%s7967_s1 + $0xc48] sm:$0xff] }
  0xa0   :  { %3613 = vmatprep.subr.bf16.mxu1 %v3612_v58  ;;  %v3632_v58 = vpack.c.bf16 %v385_v51, %v381_v50  ;;  %v416_v25 = vld [vmem:[%s7967_s1 + $0xc30] sm:$0xff]  ;;  %v423_v49 = vld [vmem:[%s7967_s1 + $0xc68] sm:$0xff]  ;;  %v5417_v50 = vrot.slane %v1222_v37, %v4473_v11  ;;  %v421_v51 = vld [vmem:[%s7967_s1 + $0xc58] sm:$0xff] }
  0xa1   :  { %v455_v37 = vld [vmem:[%s7967_s1 + $0xd68] sm:$0xff] }
  0xa2   :  { %3039 = vmatpush1.bf16.msra.mxu0 %v3038_v0  ;;  %v3058_v0 = vpack.c.bf16 %v382_v56, %v378_v55  ;;  %v3076_v55 = vpack.c.bf16 %v423_v49, %v419_v48  ;;  %v418_v56 = vld [vmem:[%s7967_s1 + $0xc40] sm:$0xff]  ;;  %v459_v48 = vld [vmem:[%s7967_s1 + $0xd88] sm:$0xff] }
  0xa3   :  { %3615 = vmatpush1.bf16.msra.mxu1 %v3614_v1  ;;  %3041 = vmatprep.subr.bf16.mxu0 %v3040_v2  ;;  %v3634_v1 = vpack.c.bf16 %v384_v24, %v380_v57  ;;  %v3060_v2 = vpack.c.bf16 %v391_v60, %v387_v59  ;;  %v422_v57 = vld [vmem:[%s7967_s1 + $0xc60] sm:$0xff]  ;;  %v424_v59 = vld [vmem:[%s7967_s1 + $0xc70] sm:$0xff]  ;;  %v427_v60 = vld [vmem:[%s7967_s1 + $0xc88] sm:$0xff] }
  0xa4   :  { %3617 = vmatprep.subr.bf16.mxu1 %v3616_v6  ;;  %v3636_v6 = vpack.c.bf16 %v393_v63, %v389_v62  ;;  %v431_v62 = vld [vmem:[%s7967_s1 + $0xca8] sm:$0xff]  ;;  %v1238_v63 = vcombine.high %v5417_v50, %v5417_v50 }
  0xa5   :  { %v463_v49 = vld [vmem:[%s7967_s1 + $0xda8] sm:$0xff] }
  0xa6   :  { %3043 = vmatpush1.bf16.msra.mxu0 %v3042_v13  ;;  %v3062_v13 = vpack.c.bf16 %v390_v4, %v386_v3  ;;  %v3080_v4 = vpack.c.bf16 %v431_v62, %v427_v60  ;;  %v467_v60 = vld [vmem:[%s7967_s1 + $0xdc8] sm:$0xff] }
  0xa7   :  { %3619 = vmatpush1.bf16.msra.mxu1 %v3618_v14  ;;  %3045 = vmatprep.subr.bf16.mxu0 %v3044_v15  ;;  %v3638_v14 = vpack.c.bf16 %v392_v7, %v388_v5  ;;  %v3064_v15 = vpack.c.bf16 %v399_v9, %v395_v8  ;;  %v426_v5 = vld [vmem:[%s7967_s1 + $0xc80] sm:$0xff]  ;;  %v428_v7 = vld [vmem:[%s7967_s1 + $0xc90] sm:$0xff]  ;;  %v435_v9 = vld [vmem:[%s7967_s1 + $0xcc8] sm:$0xff] }
  0xa8   :  { %3621 = vmatprep.subr.bf16.mxu1 %v3620_v19  ;;  %v3640_v19 = vpack.c.bf16 %v401_v12, %v397_v10  ;;  %v439_v10 = vld [vmem:[%s7967_s1 + $0xce8] sm:$0xff]  ;;  %v437_v12 = vld [vmem:[%s7967_s1 + $0xcd8] sm:$0xff] }
  0xa9   :  { %v471_v62 = vld [vmem:[%s7967_s1 + $0xde8] sm:$0xff] }
  0xaa   :  { %3047 = vmatpush1.bf16.msra.mxu0 %v3046_v27  ;;  %v3066_v27 = vpack.c.bf16 %v398_v17, %v394_v16  ;;  %v3084_v16 = vpack.c.bf16 %v439_v10, %v435_v9  ;;  %v434_v17 = vld [vmem:[%s7967_s1 + $0xcc0] sm:$0xff]  ;;  %v479_v9 = vld [vmem:[%s7967_s1 + $0xe28] sm:$0xff]  ;;  %v477_v10 = vld [vmem:[%s7967_s1 + $0xe18] sm:$0xff] }
  0xab   :  { %3623 = vmatpush1.bf16.msra.mxu1 %v3622_v28  ;;  %3049 = vmatprep.subr.bf16.mxu0 %v3048_v29  ;;  %v3642_v28 = vpack.c.bf16 %v400_v20, %v396_v18  ;;  %v3068_v29 = vpack.c.bf16 %v407_v22, %v403_v21  ;;  %v438_v18 = vld [vmem:[%s7967_s1 + $0xce0] sm:$0xff]  ;;  %v440_v21 = vld [vmem:[%s7967_s1 + $0xcf0] sm:$0xff]  ;;  %v443_v22 = vld [vmem:[%s7967_s1 + $0xd08] sm:$0xff] }
  0xac   :  { %3625 = vmatprep.subr.bf16.mxu1 %v3624_v33  ;;  %v3644_v33 = vpack.c.bf16 %v409_v26, %v405_v23  ;;  %v447_v23 = vld [vmem:[%s7967_s1 + $0xd28] sm:$0xff]  ;;  %v445_v26 = vld [vmem:[%s7967_s1 + $0xd18] sm:$0xff] }
  0xae   :  { %3051 = vmatpush1.bf16.msra.mxu0 %v3050_v40  ;;  %v417_v40 = vld [vmem:[%s7967_s1 + $0xc38] sm:$0xff] }
  0xaf   :  { %3627 = vmatpush1.bf16.msra.mxu1 %v3626_v41  ;;  %3053 = vmatprep.subr.bf16.mxu0 %v3052_v42  ;;  %v3070_v41 = vpack.c.bf16 %v406_v31, %v402_v30  ;;  %v3646_v42 = vpack.c.bf16 %v408_v34, %v404_v32  ;;  %v3088_v30 = vpack.c.bf16 %v447_v23, %v443_v22  ;;  %v442_v31 = vld [vmem:[%s7967_s1 + $0xd00] sm:$0xff]  ;;  %v487_v22 = vld [vmem:[%s7967_s1 + $0xe68] sm:$0xff]  ;;  %v485_v23 = vld [vmem:[%s7967_s1 + $0xe58] sm:$0xff] }
  0xb0   :  { %3629 = vmatprep.subr.bf16.mxu1 %v3628_v47  ;;  %v3648_v47 = vpack.c.bf16 %v417_v40, %v413_v38  ;;  %v446_v32 = vld [vmem:[%s7967_s1 + $0xd20] sm:$0xff]  ;;  %v453_v38 = vld [vmem:[%s7967_s1 + $0xd58] sm:$0xff] }
  0xb1   :  { %v457_v40 = vld [vmem:[%s7967_s1 + $0xd78] sm:$0xff] }
  0xb2   :  { %3055 = vmatpush1.bf16.msra.mxu0 %v3054_v52  ;;  %v425_v52 = vld [vmem:[%s7967_s1 + $0xc78] sm:$0xff] }
  0xb3   :  { %3631 = vmatpush1.bf16.msra.mxu1 %v3630_v53  ;;  %3057 = vmatprep.subr.bf16.mxu0 %v3056_v54  ;;  %v3074_v53 = vpack.c.bf16 %v414_v39, %v410_v44  ;;  %v3650_v54 = vpack.c.bf16 %v416_v25, %v412_v46  ;;  %v3652_v24 = vpack.c.bf16 %v425_v52, %v421_v51  ;;  %v450_v44 = vld [vmem:[%s7967_s1 + $0xd40] sm:$0xff]  ;;  %v452_v46 = vld [vmem:[%s7967_s1 + $0xd50] sm:$0xff]  ;;  %v461_v51 = vld [vmem:[%s7967_s1 + $0xd98] sm:$0xff] }
  0xb4   :  { %3633 = vmatprep.subr.bf16.mxu1 %v3632_v58  ;;  %v420_v58 = vld [vmem:[%s7967_s1 + $0xc50] sm:$0xff]  ;;  %v454_v39 = vld [vmem:[%s7967_s1 + $0xd60] sm:$0xff]  ;;  %v465_v52 = vld [vmem:[%s7967_s1 + $0xdb8] sm:$0xff] }
  0xb5   :  { %v3654_v3 = vpack.c.bf16 %v424_v59, %v420_v58  ;;  %v456_v25 = vld [vmem:[%s7967_s1 + $0xd70] sm:$0xff] }
  0xb6   :  { %3059 = vmatpush1.bf16.msra.mxu0 %v3058_v0  ;;  %v429_v0 = vld [vmem:[%s7967_s1 + $0xc98] sm:$0xff]  ;;  %v460_v58 = vld [vmem:[%s7967_s1 + $0xd90] sm:$0xff] }
  0xb7   :  { %3635 = vmatpush1.bf16.msra.mxu1 %v3634_v1  ;;  %3061 = vmatprep.subr.bf16.mxu0 %v3060_v2  ;;  %v433_v1 = vld [vmem:[%s7967_s1 + $0xcb8] sm:$0xff]  ;;  %v3078_v2 = vpack.c.bf16 %v422_v57, %v418_v56  ;;  %v458_v56 = vld [vmem:[%s7967_s1 + $0xd80] sm:$0xff]  ;;  %v464_v59 = vld [vmem:[%s7967_s1 + $0xdb0] sm:$0xff] }
  0xb8   :  { %3637 = vmatprep.subr.bf16.mxu1 %v3636_v6  ;;  %v430_v6 = vld [vmem:[%s7967_s1 + $0xca0] sm:$0xff]  ;;  %v3656_v8 = vpack.c.bf16 %v433_v1, %v429_v0  ;;  %v473_v0 = vld [vmem:[%s7967_s1 + $0xdf8] sm:$0xff] }
  0xb9   :  { %v462_v57 = vld [vmem:[%s7967_s1 + $0xda0] sm:$0xff] }
  0xba   :  { %3063 = vmatpush1.bf16.msra.mxu0 %v3062_v13  ;;  %v441_v13 = vld [vmem:[%s7967_s1 + $0xcf8] sm:$0xff]  ;;  %v3098_v1 = vpack.c.bf16 %v462_v57, %v458_v56  ;;  %v502_v56 = vld [vmem:[%s7967_s1 + $0xee0] sm:$0xff]  ;;  %v500_v57 = vld [vmem:[%s7967_s1 + $0xed0] sm:$0xff] }
  0xbb   :  { %3639 = vmatpush1.bf16.msra.mxu1 %v3638_v14  ;;  %3065 = vmatprep.subr.bf16.mxu0 %v3064_v15  ;;  %v3082_v14 = vpack.c.bf16 %v430_v6, %v426_v5  ;;  %v3660_v20 = vpack.c.bf16 %v441_v13, %v437_v12  ;;  %v470_v5 = vld [vmem:[%s7967_s1 + $0xde0] sm:$0xff]  ;;  %v468_v6 = vld [vmem:[%s7967_s1 + $0xdd0] sm:$0xff]  ;;  %v481_v12 = vld [vmem:[%s7967_s1 + $0xe38] sm:$0xff] }
  0xbc   :  { %3641 = vmatprep.subr.bf16.mxu1 %v3640_v19  ;;  %v436_v19 = vld [vmem:[%s7967_s1 + $0xcd0] sm:$0xff] }
  0xbe   :  { %3067 = vmatpush1.bf16.msra.mxu0 %v3066_v27  ;;  %v449_v27 = vld [vmem:[%s7967_s1 + $0xd38] sm:$0xff] }
  0xbf   :  { %3643 = vmatpush1.bf16.msra.mxu1 %v3642_v28  ;;  %3069 = vmatprep.subr.bf16.mxu0 %v3068_v29  ;;  %v3086_v28 = vpack.c.bf16 %v438_v18, %v434_v17  ;;  %v3662_v29 = vpack.c.bf16 %v440_v21, %v436_v19  ;;  %v3664_v34 = vpack.c.bf16 %v449_v27, %v445_v26  ;;  %v478_v17 = vld [vmem:[%s7967_s1 + $0xe20] sm:$0xff]  ;;  %v476_v18 = vld [vmem:[%s7967_s1 + $0xe10] sm:$0xff]  ;;  %v483_v21 = vld [vmem:[%s7967_s1 + $0xe48] sm:$0xff] }
  0xc0   :  { %3645 = vmatprep.subr.bf16.mxu1 %v3644_v33  ;;  %v444_v33 = vld [vmem:[%s7967_s1 + $0xd10] sm:$0xff]  ;;  %v3680_v19 = vpack.c.bf16 %v481_v12, %v477_v10  ;;  %v489_v26 = vld [vmem:[%s7967_s1 + $0xe78] sm:$0xff] }
  0xc1   :  { %v521_v10 = vld [vmem:[%s7967_s1 + $0xf78] sm:$0xff] }
  0xc2   :  { %3071 = vmatpush1.bf16.msra.mxu0 %v3070_v41  ;;  %v3090_v41 = vpack.c.bf16 %v446_v32, %v442_v31  ;;  %v486_v31 = vld [vmem:[%s7967_s1 + $0xe60] sm:$0xff]  ;;  %v484_v32 = vld [vmem:[%s7967_s1 + $0xe50] sm:$0xff] }
  0xc3   :  { %3647 = vmatpush1.bf16.msra.mxu1 %v3646_v42  ;;  %3073 = vmatprep.subr.bf16.mxu0 %v3072_v43  ;;  %v3666_v42 = vpack.c.bf16 %v448_v35, %v444_v33  ;;  %v3092_v43 = vpack.c.bf16 %v455_v37, %v451_v36  ;;  %v3684_v33 = vpack.c.bf16 %v489_v26, %v485_v23  ;;  %v491_v35 = vld [vmem:[%s7967_s1 + $0xe88] sm:$0xff]  ;;  %v493_v37 = vld [vmem:[%s7967_s1 + $0xe98] sm:$0xff] }
  0xc4   :  { %3649 = vmatprep.subr.bf16.mxu1 %v3648_v47  ;;  %v3668_v47 = vpack.c.bf16 %v457_v40, %v453_v38  ;;  %v495_v36 = vld [vmem:[%s7967_s1 + $0xea8] sm:$0xff]  ;;  %v497_v38 = vld [vmem:[%s7967_s1 + $0xeb8] sm:$0xff] }
  0xc5   :  { %1506 = vmatmul.mubr.f32.vlgmr.msra.gmra.mrb[0].mxu0 %v5039_v45  ;;  %v529_v23 = vld [vmem:[%s7967_s1 + $0xfb8] sm:$0xff] }
  0xc6   :  { %3075 = vmatpush1.bf16.msra.mxu0 %v3074_v53  ;;  %2145 = vmatmul.mubr.f32.vlgmr.msra.gmra.mrb[0].mxu1 %v5039_v45  ;;  %v432_v45 = vld [vmem:[%s7967_s1 + $0xcb0] sm:$0xff]  ;;  %v3094_v53 = vpack.c.bf16 %v454_v39, %v450_v44  ;;  %v494_v44 = vld [vmem:[%s7967_s1 + $0xea0] sm:$0xff] }
  0xc7   :  { %3651 = vmatpush1.bf16.msra.mxu1 %v3650_v54  ;;  %3077 = vmatprep.subr.bf16.mxu0 %v3076_v55  ;;  %v3658_v15 = vpack.c.bf16 %v432_v45, %v428_v7  ;;  %v3670_v54 = vpack.c.bf16 %v456_v25, %v452_v46  ;;  %v3096_v55 = vpack.c.bf16 %v463_v49, %v459_v48  ;;  %v475_v45 = vld [vmem:[%s7967_s1 + $0xe08] sm:$0xff]  ;;  %v492_v39 = vld [vmem:[%s7967_s1 + $0xe90] sm:$0xff]  ;;  %v501_v49 = vld [vmem:[%s7967_s1 + $0xed8] sm:$0xff] }
  0xc8   :  { %3653 = vmatprep.subr.bf16.mxu1 %v3652_v24  ;;  %1576 = vmatprep.mubr.f32.mxu0 %v1238_v63  ;;  %v3672_v24 = vpack.c.bf16 %v465_v52, %v461_v51  ;;  %v3688_v46 = vpack.c.bf16 %v497_v38, %v493_v37  ;;  %v499_v25 = vld [vmem:[%s7967_s1 + $0xec8] sm:$0xff]  ;;  %v505_v51 = vld [vmem:[%s7967_s1 + $0xef8] sm:$0xff] }
  0xc9   :  { %2215 = vmatprep.mubr.f32.mxu1 %v1238_v63  ;;  %v469_v63 = vld [vmem:[%s7967_s1 + $0xdd8] sm:$0xff]  ;;  %v503_v48 = vld [vmem:[%s7967_s1 + $0xee8] sm:$0xff] }
  0xca   :  { %3079 = vmatpush1.bf16.msra.mxu0 %v3078_v2  ;;  %v3674_v2 = vpack.c.bf16 %v464_v59, %v460_v58  ;;  %v3676_v7 = vpack.c.bf16 %v473_v0, %v469_v63  ;;  %v3692_v58 = vpack.c.bf16 %v505_v51, %v501_v49  ;;  %v507_v59 = vld [vmem:[%s7967_s1 + $0xf08] sm:$0xff]  ;;  %v513_v63 = vld [vmem:[%s7967_s1 + $0xf38] sm:$0xff]  ;;  %v5792_v51 = vld [vmem:[%s7966_s0 + $0x10] sm:$0xff] }
  0xcb   :  { %3655 = vmatpush1.bf16.msra.mxu1 %v3654_v3  ;;  %3081 = vmatprep.subr.bf16.mxu0 %v3080_v4  ;;  %v3100_v3 = vpack.c.bf16 %v471_v62, %v467_v60  ;;  %v466_v4 = vld [vmem:[%s7967_s1 + $0xdc0] sm:$0xff]  ;;  %v511_v60 = vld [vmem:[%s7967_s1 + $0xf28] sm:$0xff]  ;;  %v509_v62 = vld [vmem:[%s7967_s1 + $0xf18] sm:$0xff] }
  0xcc   :  { %3657 = vmatprep.subr.bf16.mxu1 %v3656_v8  ;;  %v472_v8 = vld [vmem:[%s7967_s1 + $0xdf0] sm:$0xff]  ;;  %v3102_v13 = vpack.c.bf16 %v470_v5, %v466_v4  ;;  %v510_v4 = vld [vmem:[%s7967_s1 + $0xf20] sm:$0xff]  ;;  %v537_v37 = vld [vmem:[%s7967_s1 + $0xff8] sm:$0xff] }
  0xcd   :  { %v508_v5 = vld [vmem:[%s7967_s1 + $0xf10] sm:$0xff]  ;;  %v545_v49 = vld [vmem:[%s7967_s1 + $0x1038] sm:$0xff] }
  0xce   :  { %3083 = vmatpush1.bf16.msra.mxu0 %v3082_v14  ;;  %v3678_v14 = vpack.c.bf16 %v472_v8, %v468_v6  ;;  %v3696_v6 = vpack.c.bf16 %v513_v63, %v509_v62  ;;  %v515_v8 = vld [vmem:[%s7967_s1 + $0xf48] sm:$0xff]  ;;  %v5814_v62 = vrot.slane %v5792_v51, %v4473_v11  ;;  %v549_v63 = vld [vmem:[%s7967_s1 + $0x1058] sm:$0xff] }
  0xcf   :  { %3659 = vmatpush1.bf16.msra.mxu1 %v3658_v15  ;;  %3085 = vmatprep.subr.bf16.mxu0 %v3084_v16  ;;  %v3104_v15 = vpack.c.bf16 %v479_v9, %v475_v45  ;;  %v474_v16 = vld [vmem:[%s7967_s1 + $0xe00] sm:$0xff]  ;;  %v519_v45 = vld [vmem:[%s7967_s1 + $0xf68] sm:$0xff]  ;;  %v517_v9 = vld [vmem:[%s7967_s1 + $0xf58] sm:$0xff] }
  0xd0   :  { %3661 = vmatprep.subr.bf16.mxu1 %v3660_v20  ;;  %v480_v20 = vld [vmem:[%s7967_s1 + $0xe30] sm:$0xff]  ;;  %v3106_v27 = vpack.c.bf16 %v478_v17, %v474_v16  ;;  %v518_v16 = vld [vmem:[%s7967_s1 + $0xf60] sm:$0xff] }
  0xd1   :  { %v516_v17 = vld [vmem:[%s7967_s1 + $0xf50] sm:$0xff] }
  0xd2   :  { %3087 = vmatpush1.bf16.msra.mxu0 %v3086_v28  ;;  %v3682_v28 = vpack.c.bf16 %v480_v20, %v476_v18  ;;  %v3700_v18 = vpack.c.bf16 %v521_v10, %v517_v9  ;;  %v523_v20 = vld [vmem:[%s7967_s1 + $0xf88] sm:$0xff]  ;;  %v1254_v10 = vcombine.high %v5814_v62, %v5814_v62 }
  0xd3   :  { %3663 = vmatpush1.bf16.msra.mxu1 %v3662_v29  ;;  %3089 = vmatprep.subr.bf16.mxu0 %v3088_v30  ;;  %v3108_v29 = vpack.c.bf16 %v487_v22, %v483_v21  ;;  %v482_v30 = vld [vmem:[%s7967_s1 + $0xe40] sm:$0xff]  ;;  %v527_v21 = vld [vmem:[%s7967_s1 + $0xfa8] sm:$0xff]  ;;  %v525_v22 = vld [vmem:[%s7967_s1 + $0xf98] sm:$0xff] }
  0xd4   :  { %3665 = vmatprep.subr.bf16.mxu1 %v3664_v34  ;;  %v488_v34 = vld [vmem:[%s7967_s1 + $0xe70] sm:$0xff]  ;;  %v3110_v40 = vpack.c.bf16 %v486_v31, %v482_v30  ;;  %v526_v30 = vld [vmem:[%s7967_s1 + $0xfa0] sm:$0xff]  ;;  %v559_v9 = vld [vmem:[%s7967_s1 + $0x10a8] sm:$0xff] }
  0xd5   :  { %v524_v31 = vld [vmem:[%s7967_s1 + $0xf90] sm:$0xff] }
  0xd6   :  { %3091 = vmatpush1.bf16.msra.mxu0 %v3090_v41  ;;  %v3686_v41 = vpack.c.bf16 %v488_v34, %v484_v32  ;;  %v3704_v32 = vpack.c.bf16 %v529_v23, %v525_v22  ;;  %v531_v34 = vld [vmem:[%s7967_s1 + $0xfc8] sm:$0xff] }
  0xd7   :  { %3667 = vmatpush1.bf16.msra.mxu1 %v3666_v42  ;;  %3093 = vmatprep.subr.bf16.mxu0 %v3092_v43  ;;  %v3112_v42 = vpack.c.bf16 %v495_v36, %v491_v35  ;;  %v490_v43 = vld [vmem:[%s7967_s1 + $0xe80] sm:$0xff]  ;;  %v535_v35 = vld [vmem:[%s7967_s1 + $0xfe8] sm:$0xff]  ;;  %v533_v36 = vld [vmem:[%s7967_s1 + $0xfd8] sm:$0xff] }
  0xd8   :  { %3669 = vmatprep.subr.bf16.mxu1 %v3668_v47  ;;  %v496_v47 = vld [vmem:[%s7967_s1 + $0xeb0] sm:$0xff]  ;;  %v3114_v52 = vpack.c.bf16 %v494_v44, %v490_v43  ;;  %v534_v43 = vld [vmem:[%s7967_s1 + $0xfe0] sm:$0xff] }
  0xd9   :  { %v532_v44 = vld [vmem:[%s7967_s1 + $0xfd0] sm:$0xff] }
  0xda   :  { %3095 = vmatpush1.bf16.msra.mxu0 %v3094_v53  ;;  %v3690_v53 = vpack.c.bf16 %v496_v47, %v492_v39  ;;  %v3708_v39 = vpack.c.bf16 %v537_v37, %v533_v36  ;;  %v539_v47 = vld [vmem:[%s7967_s1 + $0x1008] sm:$0xff] }
  0xdb   :  { %3671 = vmatpush1.bf16.msra.mxu1 %v3670_v54  ;;  %3097 = vmatprep.subr.bf16.mxu0 %v3096_v55  ;;  %v3116_v54 = vpack.c.bf16 %v503_v48, %v499_v25  ;;  %v498_v55 = vld [vmem:[%s7967_s1 + $0xec0] sm:$0xff]  ;;  %v543_v25 = vld [vmem:[%s7967_s1 + $0x1028] sm:$0xff]  ;;  %v541_v48 = vld [vmem:[%s7967_s1 + $0x1018] sm:$0xff] }
  0xdc   :  { %3673 = vmatprep.subr.bf16.mxu1 %v3672_v24  ;;  %v504_v24 = vld [vmem:[%s7967_s1 + $0xef0] sm:$0xff]  ;;  %v3118_v0 = vpack.c.bf16 %v502_v56, %v498_v55  ;;  %v538_v55 = vld [vmem:[%s7967_s1 + $0x1000] sm:$0xff] }
  0xdd   :  { %v542_v56 = vld [vmem:[%s7967_s1 + $0x1020] sm:$0xff] }
  0xde   :  { %3099 = vmatpush1.bf16.msra.mxu0 %v3098_v1  ;;  %v3694_v1 = vpack.c.bf16 %v504_v24, %v500_v57  ;;  %v540_v57 = vld [vmem:[%s7967_s1 + $0x1010] sm:$0xff] }
  0xdf   :  { %3675 = vmatpush1.bf16.msra.mxu1 %v3674_v2  ;;  %3101 = vmatprep.subr.bf16.mxu0 %v3100_v3  ;;  %v3120_v2 = vpack.c.bf16 %v511_v60, %v507_v59  ;;  %v506_v3 = vld [vmem:[%s7967_s1 + $0xf00] sm:$0xff]  ;;  %v544_v24 = vld [vmem:[%s7967_s1 + $0x1030] sm:$0xff]  ;;  %v547_v59 = vld [vmem:[%s7967_s1 + $0x1048] sm:$0xff] }
  0xe0   :  { %3677 = vmatprep.subr.bf16.mxu1 %v3676_v7  ;;  %v512_v7 = vld [vmem:[%s7967_s1 + $0xf30] sm:$0xff]  ;;  %v3122_v12 = vpack.c.bf16 %v510_v4, %v506_v3  ;;  %v551_v60 = vld [vmem:[%s7967_s1 + $0x1068] sm:$0xff]  ;;  %v546_v4 = vld [vmem:[%s7967_s1 + $0x1040] sm:$0xff] }
  0xe1   :  { %v3140_v3 = vpack.c.bf16 %v551_v60, %v547_v59 }
  0xe2   :  { %3103 = vmatpush1.bf16.msra.mxu0 %v3102_v13  ;;  %v3698_v13 = vpack.c.bf16 %v512_v7, %v508_v5  ;;  %v550_v5 = vld [vmem:[%s7967_s1 + $0x1060] sm:$0xff] }
  0xe3   :  { %3679 = vmatpush1.bf16.msra.mxu1 %v3678_v14  ;;  %3105 = vmatprep.subr.bf16.mxu0 %v3104_v15  ;;  %v3124_v14 = vpack.c.bf16 %v519_v45, %v515_v8  ;;  %v514_v15 = vld [vmem:[%s7967_s1 + $0xf40] sm:$0xff]  ;;  %v552_v8 = vld [vmem:[%s7967_s1 + $0x1070] sm:$0xff]  ;;  %v555_v45 = vld [vmem:[%s7967_s1 + $0x1088] sm:$0xff] }
  0xe4   :  { %3681 = vmatprep.subr.bf16.mxu1 %v3680_v19  ;;  %v520_v19 = vld [vmem:[%s7967_s1 + $0xf70] sm:$0xff]  ;;  %v3126_v26 = vpack.c.bf16 %v518_v16, %v514_v15 }
  0xe6   :  { %3107 = vmatpush1.bf16.msra.mxu0 %v3106_v27  ;;  %v3702_v27 = vpack.c.bf16 %v520_v19, %v516_v17 }
  0xe7   :  { %3683 = vmatpush1.bf16.msra.mxu1 %v3682_v28  ;;  %3109 = vmatprep.subr.bf16.mxu0 %v3108_v29  ;;  %v3128_v28 = vpack.c.bf16 %v527_v21, %v523_v20  ;;  %v522_v29 = vld [vmem:[%s7967_s1 + $0xf80] sm:$0xff] }
  0xe8   :  { %3685 = vmatprep.subr.bf16.mxu1 %v3684_v33  ;;  %v528_v33 = vld [vmem:[%s7967_s1 + $0xfb0] sm:$0xff]  ;;  %v3130_v38 = vpack.c.bf16 %v526_v30, %v522_v29 }
  0xea   :  { %3111 = vmatpush1.bf16.msra.mxu0 %v3110_v40  ;;  %v3706_v40 = vpack.c.bf16 %v528_v33, %v524_v31 }
  0xeb   :  { %3687 = vmatpush1.bf16.msra.mxu1 %v3686_v41  ;;  %3113 = vmatprep.subr.bf16.mxu0 %v3112_v42  ;;  %v3132_v41 = vpack.c.bf16 %v535_v35, %v531_v34  ;;  %v530_v42 = vld [vmem:[%s7967_s1 + $0xfc0] sm:$0xff] }
  0xec   :  { %3689 = vmatprep.subr.bf16.mxu1 %v3688_v46  ;;  %v536_v46 = vld [vmem:[%s7967_s1 + $0xff0] sm:$0xff] }
  0xee   :  { %3115 = vmatpush1.bf16.msra.mxu0 %v3114_v52  ;;  %v3134_v52 = vpack.c.bf16 %v534_v43, %v530_v42 }
  0xef   :  { %3691 = vmatpush1.bf16.msra.mxu1 %v3690_v53  ;;  %3117 = vmatprep.subr.bf16.mxu0 %v3116_v54  ;;  %v3710_v53 = vpack.c.bf16 %v536_v46, %v532_v44  ;;  %v3136_v54 = vpack.c.bf16 %v543_v25, %v539_v47 }
  0xf0   :  { %3693 = vmatprep.subr.bf16.mxu1 %v3692_v58  ;;  %v3712_v58 = vpack.c.bf16 %v545_v49, %v541_v48 }
  0xf2   :  { %3119 = vmatpush1.bf16.msra.mxu0 %v3118_v0  ;;  %v553_v0 = vld [vmem:[%s7967_s1 + $0x1078] sm:$0xff] }
  0xf3   :  { %3695 = vmatpush1.bf16.msra.mxu1 %v3694_v1  ;;  %3121 = vmatprep.subr.bf16.mxu0 %v3120_v2  ;;  %v3138_v1 = vpack.c.bf16 %v542_v56, %v538_v55  ;;  %v3714_v2 = vpack.c.bf16 %v544_v24, %v540_v57  ;;  %v3716_v7 = vpack.c.bf16 %v553_v0, %v549_v63 }
  0xf4   :  { %3697 = vmatprep.subr.bf16.mxu1 %v3696_v6  ;;  %v548_v6 = vld [vmem:[%s7967_s1 + $0x1050] sm:$0xff] }
  0xf6   :  { %3123 = vmatpush1.bf16.msra.mxu0 %v3122_v12  ;;  %v557_v12 = vld [vmem:[%s7967_s1 + $0x1098] sm:$0xff] }
  0xf7   :  { %3699 = vmatpush1.bf16.msra.mxu1 %v3698_v13  ;;  %3125 = vmatprep.subr.bf16.mxu0 %v3124_v14  ;;  %v561_v13 = vld [vmem:[%s7967_s1 + $0x10b8] sm:$0xff] }
  0xf8   :  { %3701 = vmatprep.subr.bf16.mxu1 %v3700_v18 }
  0xfa   :  { %3127 = vmatpush1.bf16.msra.mxu0 %v3126_v26 }
  0xfb   :  { %3703 = vmatpush1.bf16.msra.mxu1 %v3702_v27  ;;  %3129 = vmatprep.subr.bf16.mxu0 %v3128_v28 }
  0xfc   :  { %3705 = vmatprep.subr.bf16.mxu1 %v3704_v32 }
  0xfe   :  { %3131 = vmatpush1.bf16.msra.mxu0 %v3130_v38 }
  0xff   :  { %3707 = vmatpush1.bf16.msra.mxu1 %v3706_v40  ;;  %3133 = vmatprep.subr.bf16.mxu0 %v3132_v41 }
 0x100   :  { %3709 = vmatprep.subr.bf16.mxu1 %v3708_v39 }
 0x102   :  { %3135 = vmatpush1.bf16.msra.mxu0 %v3134_v52 }
 0x103   :  { %3711 = vmatpush1.bf16.msra.mxu1 %v3710_v53  ;;  %3137 = vmatprep.subr.bf16.mxu0 %v3136_v54 }
 0x104   :  { %3713 = vmatprep.subr.bf16.mxu1 %v3712_v58 }
 0x105   :  { %1577 = vmatmul.mubr.f32.vlgmr.msra.gmra.mrb[0].mxu0 %v5417_v50 }
 0x106   :  { %10 = vsyncpa [#allocation3], 0  ;;  %3139 = vmatpush1.bf16.msra.mxu0 %v3138_v1  ;;  %2216 = vmatmul.mubr.f32.vlgmr.msra.gmra.mrb[0].mxu1 %v5417_v50  ;;  %v3142_v14 = vpack.c.bf16 %v550_v5, %v546_v4  ;;  %v3718_v15 = vpack.c.bf16 %v552_v8, %v548_v6  ;;  %v3144_v16 = vpack.c.bf16 %v559_v9, %v555_v45  ;;  %v554_v17 = vld [vmem:[%s7967_s1 + $0x1080] sm:$0xff]  ;;  %v556_v19 = vld [vmem:[%s7967_s1 + $0x1090] sm:$0xff]  ;;  %s4163_s18 = smov [#allocation2]   ;;  %vm2792_vm0 = vcmask 41984  }
 0x107   :  { %3715 = vmatpush1.bf16.msra.mxu1 %v3714_v2  ;;  %3141 = vmatprep.subr.bf16.mxu0 %v3140_v3  ;;  %v558_v18 = vld [vmem:[%s7967_s1 + $0x10a0] sm:$0xff]  ;;  %v3720_v20 = vpack.c.bf16 %v561_v13, %v557_v12  ;;  %v560_v50 = vld [vmem:[%s7967_s1 + $0x10b0] sm:$0xff]  ;;  %v563_v21 = vld [vmem:[%s7967_s1 + $0x10c8] sm:$0xff]  ;;  %s2800_s19 = sshll.u32 %s4163_s18, 4  ;;  %s2801_s19 = int_to_ptr.vmem [resolvable:$true] %s2800_s19 }
 0x108   :  { %3717 = vmatprep.subr.bf16.mxu1 %v3716_v7  ;;  %v567_v22 = vld [vmem:[%s7967_s1 + $0x10e8] sm:$0xff]  ;;  %1647 = vmatprep.mubr.f32.mxu0 %v1254_v10  ;;  %v565_v23 = vld [vmem:[%s7967_s1 + $0x10d8] sm:$0xff]  ;;  %v3146_v27 = vpack.c.bf16 %v558_v18, %v554_v17  ;;  %v3722_v28 = vpack.c.bf16 %v560_v50, %v556_v19  ;;  %v562_v30 = vld [vmem:[%s7967_s1 + $0x10c0] sm:$0xff]  ;;  %s4138_s20 = scalar_lea.vmem %s2801_s19, 32  ;;  %p4143_p1 = scmp.lt.s32.totalorder %s2801_s19, %s2801_s19 }
 0x109   :  { %v569_v26 = vld [vmem:[%s7967_s1 + $0x10f8] sm:$0xff]  ;;  %2286 = vmatprep.mubr.f32.mxu1 %v1254_v10  ;;  %v3148_v29 = vpack.c.bf16 %v567_v22, %v563_v21  ;;  %v566_v31 = vld [vmem:[%s7967_s1 + $0x10e0] sm:$0xff]  ;;  %v564_v32 = vld [vmem:[%s7967_s1 + $0x10d0] sm:$0xff]  ;;  %p4139_p0 = scmp.ne.s32.totalorder %s2801_s19, %s4138_s20  ;;  %p4144_p2 = scmp.lt.s32.totalorder %s4138_s20, %s4138_s20 }
 0x10a   :  { %3143 = vmatpush1.bf16.msra.mxu0 %v3142_v14  ;;  %v3724_v33 = vpack.c.bf16 %v569_v26, %v565_v23  ;;  %v568_v34 = vld [vmem:[%s7967_s1 + $0x10f0] sm:$0xff]  ;;  %v571_v35 = vld [vmem:[%s7967_s1 + $0x1108] sm:$0xff]  ;;  %v573_v37 = vld [vmem:[%s7967_s1 + $0x1118] sm:$0xff]  ;;  %v3150_v40 = vpack.c.bf16 %v566_v31, %v562_v30 }
 0x10b   :  { %3719 = vmatpush1.bf16.msra.mxu1 %v3718_v15  ;;  %3145 = vmatprep.subr.bf16.mxu0 %v3144_v16  ;;  %v575_v36 = vld [vmem:[%s7967_s1 + $0x1128] sm:$0xff]  ;;  %v577_v38 = vld [vmem:[%s7967_s1 + $0x1138] sm:$0xff]  ;;  %v3726_v41 = vpack.c.bf16 %v568_v34, %v564_v32  ;;  %v570_v43 = vld [vmem:[%s7967_s1 + $0x1100] sm:$0xff]  ;;  %p4145_p3 = por %p4144_p2, %p4143_p1 }
 0x10c   :  { %3721 = vmatprep.subr.bf16.mxu1 %v3720_v20  ;;  %v3152_v42 = vpack.c.bf16 %v575_v36, %v571_v35  ;;  %v574_v44 = vld [vmem:[%s7967_s1 + $0x1120] sm:$0xff]  ;;  %v572_v39 = vld [vmem:[%s7967_s1 + $0x1110] sm:$0xff]  ;;  %v3728_v46 = vpack.c.bf16 %v577_v38, %v573_v37  ;;  %v579_v25 = vld [vmem:[%s7967_s1 + $0x1148] sm:$0xff] }
 0x10d   :  { %v576_v47 = vld [vmem:[%s7967_s1 + $0x1130] sm:$0xff]  ;;  %v583_v48 = vld [vmem:[%s7967_s1 + $0x1168] sm:$0xff]  ;;  %v581_v49 = vld [vmem:[%s7967_s1 + $0x1158] sm:$0xff]  ;;  %v3154_v53 = vpack.c.bf16 %v574_v44, %v570_v43  ;;  %p4146_p4 = pnand %p4145_p3, %p4139_p0 }
 0x10e   :  { %3147 = vmatpush1.bf16.msra.mxu0 %v3146_v27  ;;  %v585_v52 = vld [vmem:[%s7967_s1 + $0x1178] sm:$0xff]  ;;  %v3730_v54 = vpack.c.bf16 %v576_v47, %v572_v39  ;;  %v3156_v55 = vpack.c.bf16 %v583_v48, %v579_v25  ;;  %v578_v56 = vld [vmem:[%s7967_s1 + $0x1140] sm:$0xff]  ;;  %v580_v58 = vld [vmem:[%s7967_s1 + $0x1150] sm:$0xff] }
 0x10f   :  { %3723 = vmatpush1.bf16.msra.mxu1 %v3722_v28  ;;  %3149 = vmatprep.subr.bf16.mxu0 %v3148_v29  ;;  %v582_v57 = vld [vmem:[%s7967_s1 + $0x1160] sm:$0xff]  ;;  %v3732_v24 = vpack.c.bf16 %v585_v52, %v581_v49  ;;  %v584_v59 = vld [vmem:[%s7967_s1 + $0x1170] sm:$0xff]  ;;  %v587_v60 = vld [vmem:[%s7967_s1 + $0x1188] sm:$0xff] }
 0x110   :  { %3725 = vmatprep.subr.bf16.mxu1 %v3724_v33  ;;  %v591_v63 = vld [vmem:[%s7967_s1 + $0x11a8] sm:$0xff]  ;;  %v589_v0 = vld [vmem:[%s7967_s1 + $0x1198] sm:$0xff]  ;;  %v3158_v2 = vpack.c.bf16 %v582_v57, %v578_v56  ;;  %v3734_v3 = vpack.c.bf16 %v584_v59, %v580_v58  ;;  %v586_v5 = vld [vmem:[%s7967_s1 + $0x1180] sm:$0xff] }
 0x111   :  { %v593_v1 = vld [vmem:[%s7967_s1 + $0x11b8] sm:$0xff]  ;;  %v3160_v4 = vpack.c.bf16 %v591_v63, %v587_v60  ;;  %v590_v6 = vld [vmem:[%s7967_s1 + $0x11a0] sm:$0xff]  ;;  %v588_v7 = vld [vmem:[%s7967_s1 + $0x1190] sm:$0xff] }
 0x112   :  { %3151 = vmatpush1.bf16.msra.mxu0 %v3150_v40  ;;  %v3736_v8 = vpack.c.bf16 %v593_v1, %v589_v0  ;;  %v592_v45 = vld [vmem:[%s7967_s1 + $0x11b0] sm:$0xff]  ;;  %v595_v9 = vld [vmem:[%s7967_s1 + $0x11c8] sm:$0xff]  ;;  %v597_v12 = vld [vmem:[%s7967_s1 + $0x11d8] sm:$0xff]  ;;  %v3162_v14 = vpack.c.bf16 %v590_v6, %v586_v5 }
 0x113   :  { %3727 = vmatpush1.bf16.msra.mxu1 %v3726_v41  ;;  %3153 = vmatprep.subr.bf16.mxu0 %v3152_v42  ;;  %v599_v10 = vld [vmem:[%s7967_s1 + $0x11e8] sm:$0xff]  ;;  %v601_v13 = vld [vmem:[%s7967_s1 + $0x11f8] sm:$0xff]  ;;  %v3738_v15 = vpack.c.bf16 %v592_v45, %v588_v7  ;;  %v594_v17 = vld [vmem:[%s7967_s1 + $0x11c0] sm:$0xff] }
 0x114   :  { %3729 = vmatprep.subr.bf16.mxu1 %v3728_v46  ;;  %v3164_v16 = vpack.c.bf16 %v599_v10, %v595_v9  ;;  %v598_v18 = vld [vmem:[%s7967_s1 + $0x11e0] sm:$0xff]  ;;  %v596_v19 = vld [vmem:[%s7967_s1 + $0x11d0] sm:$0xff]  ;;  %v3740_v20 = vpack.c.bf16 %v601_v13, %v597_v12  ;;  %v603_v21 = vld [vmem:[%s7967_s1 + $0x1208] sm:$0xff] }
 0x115   :  { %v600_v50 = vld [vmem:[%s7967_s1 + $0x11f0] sm:$0xff]  ;;  %v607_v22 = vld [vmem:[%s7967_s1 + $0x1228] sm:$0xff]  ;;  %v605_v23 = vld [vmem:[%s7967_s1 + $0x1218] sm:$0xff]  ;;  %v3166_v27 = vpack.c.bf16 %v598_v18, %v594_v17 }
 0x116   :  { %3155 = vmatpush1.bf16.msra.mxu0 %v3154_v53  ;;  %v609_v26 = vld [vmem:[%s7967_s1 + $0x1238] sm:$0xff]  ;;  %v3742_v28 = vpack.c.bf16 %v600_v50, %v596_v19  ;;  %v3168_v29 = vpack.c.bf16 %v607_v22, %v603_v21  ;;  %v602_v30 = vld [vmem:[%s7967_s1 + $0x1200] sm:$0xff]  ;;  %v604_v32 = vld [vmem:[%s7967_s1 + $0x1210] sm:$0xff] }
 0x117   :  { %3731 = vmatpush1.bf16.msra.mxu1 %v3730_v54  ;;  %3157 = vmatprep.subr.bf16.mxu0 %v3156_v55  ;;  %v606_v31 = vld [vmem:[%s7967_s1 + $0x1220] sm:$0xff]  ;;  %v3744_v33 = vpack.c.bf16 %v609_v26, %v605_v23  ;;  %v608_v34 = vld [vmem:[%s7967_s1 + $0x1230] sm:$0xff]  ;;  %v611_v35 = vld [vmem:[%s7967_s1 + $0x1248] sm:$0xff] }
 0x118   :  { %3733 = vmatprep.subr.bf16.mxu1 %v3732_v24  ;;  %v615_v36 = vld [vmem:[%s7967_s1 + $0x1268] sm:$0xff]  ;;  %v613_v37 = vld [vmem:[%s7967_s1 + $0x1258] sm:$0xff]  ;;  %v3170_v40 = vpack.c.bf16 %v606_v31, %v602_v30  ;;  %v3746_v41 = vpack.c.bf16 %v608_v34, %v604_v32  ;;  %v610_v43 = vld [vmem:[%s7967_s1 + $0x1240] sm:$0xff] }
 0x119   :  { %v617_v38 = vld [vmem:[%s7967_s1 + $0x1278] sm:$0xff]  ;;  %v3172_v42 = vpack.c.bf16 %v615_v36, %v611_v35  ;;  %v614_v44 = vld [vmem:[%s7967_s1 + $0x1260] sm:$0xff]  ;;  %v612_v39 = vld [vmem:[%s7967_s1 + $0x1250] sm:$0xff] }
 0x11a   :  { %3159 = vmatpush1.bf16.msra.mxu0 %v3158_v2  ;;  %v3748_v46 = vpack.c.bf16 %v617_v38, %v613_v37  ;;  %v616_v47 = vld [vmem:[%s7967_s1 + $0x1270] sm:$0xff]  ;;  %v619_v25 = vld [vmem:[%s7967_s1 + $0x1288] sm:$0xff]  ;;  %v621_v49 = vld [vmem:[%s7967_s1 + $0x1298] sm:$0xff]  ;;  %v3174_v53 = vpack.c.bf16 %v614_v44, %v610_v43 }
 0x11b   :  { %3735 = vmatpush1.bf16.msra.mxu1 %v3734_v3  ;;  %3161 = vmatprep.subr.bf16.mxu0 %v3160_v4  ;;  %v623_v48 = vld [vmem:[%s7967_s1 + $0x12a8] sm:$0xff]  ;;  %v625_v52 = vld [vmem:[%s7967_s1 + $0x12b8] sm:$0xff]  ;;  %v3750_v54 = vpack.c.bf16 %v616_v47, %v612_v39  ;;  %v618_v56 = vld [vmem:[%s7967_s1 + $0x1280] sm:$0xff] }
 0x11c   :  { %3737 = vmatprep.subr.bf16.mxu1 %v3736_v8  ;;  %v3176_v55 = vpack.c.bf16 %v623_v48, %v619_v25  ;;  %v622_v57 = vld [vmem:[%s7967_s1 + $0x12a0] sm:$0xff]  ;;  %v620_v58 = vld [vmem:[%s7967_s1 + $0x1290] sm:$0xff]  ;;  %v3752_v24 = vpack.c.bf16 %v625_v52, %v621_v49  ;;  %v627_v60 = vld [vmem:[%s7967_s1 + $0x12c8] sm:$0xff] }
 0x11d   :  { %v624_v59 = vld [vmem:[%s7967_s1 + $0x12b0] sm:$0xff]  ;;  %v631_v63 = vld [vmem:[%s7967_s1 + $0x12e8] sm:$0xff]  ;;  %v629_v0 = vld [vmem:[%s7967_s1 + $0x12d8] sm:$0xff]  ;;  %v3178_v2 = vpack.c.bf16 %v622_v57, %v618_v56 }
 0x11e   :  { %3163 = vmatpush1.bf16.msra.mxu0 %v3162_v14  ;;  %v633_v1 = vld [vmem:[%s7967_s1 + $0x12f8] sm:$0xff]  ;;  %v3754_v3 = vpack.c.bf16 %v624_v59, %v620_v58  ;;  %v3180_v4 = vpack.c.bf16 %v631_v63, %v627_v60  ;;  %v626_v5 = vld [vmem:[%s7967_s1 + $0x12c0] sm:$0xff]  ;;  %v628_v7 = vld [vmem:[%s7967_s1 + $0x12d0] sm:$0xff] }
 0x11f   :  { %3739 = vmatpush1.bf16.msra.mxu1 %v3738_v15  ;;  %3165 = vmatprep.subr.bf16.mxu0 %v3164_v16  ;;  %v630_v6 = vld [vmem:[%s7967_s1 + $0x12e0] sm:$0xff]  ;;  %v3756_v8 = vpack.c.bf16 %v633_v1, %v629_v0  ;;  %v632_v45 = vld [vmem:[%s7967_s1 + $0x12f0] sm:$0xff]  ;;  %v635_v9 = vld [vmem:[%s7967_s1 + $0x1308] sm:$0xff]  ;;  %v1239_v0 = vcombine.high %v5792_v51, %v5792_v51 }
 0x120   :  { %3741 = vmatprep.subr.bf16.mxu1 %v3740_v20  ;;  %v639_v10 = vld [vmem:[%s7967_s1 + $0x1328] sm:$0xff]  ;;  %v637_v12 = vld [vmem:[%s7967_s1 + $0x1318] sm:$0xff]  ;;  %v3182_v14 = vpack.c.bf16 %v630_v6, %v626_v5  ;;  %v3758_v15 = vpack.c.bf16 %v632_v45, %v628_v7  ;;  %v634_v17 = vld [vmem:[%s7967_s1 + $0x1300] sm:$0xff] }
 0x121   :  { %v641_v13 = vld [vmem:[%s7967_s1 + $0x1338] sm:$0xff]  ;;  %v3184_v16 = vpack.c.bf16 %v639_v10, %v635_v9  ;;  %v638_v18 = vld [vmem:[%s7967_s1 + $0x1320] sm:$0xff]  ;;  %v636_v19 = vld [vmem:[%s7967_s1 + $0x1310] sm:$0xff] }
 0x122   :  { %3167 = vmatpush1.bf16.msra.mxu0 %v3166_v27  ;;  %v3760_v20 = vpack.c.bf16 %v641_v13, %v637_v12  ;;  %v640_v50 = vld [vmem:[%s7967_s1 + $0x1330] sm:$0xff]  ;;  %v643_v21 = vld [vmem:[%s7967_s1 + $0x1348] sm:$0xff]  ;;  %v645_v23 = vld [vmem:[%s7967_s1 + $0x1358] sm:$0xff]  ;;  %v3186_v27 = vpack.c.bf16 %v638_v18, %v634_v17  ;;  %v6207_v12 = vrot.slane %v1239_v0, %v4473_v11 }
 0x123   :  { %3743 = vmatpush1.bf16.msra.mxu1 %v3742_v28  ;;  %3169 = vmatprep.subr.bf16.mxu0 %v3168_v29  ;;  %v647_v22 = vld [vmem:[%s7967_s1 + $0x1368] sm:$0xff]  ;;  %v649_v26 = vld [vmem:[%s7967_s1 + $0x1378] sm:$0xff]  ;;  %v3762_v28 = vpack.c.bf16 %v640_v50, %v636_v19  ;;  %v642_v30 = vld [vmem:[%s7967_s1 + $0x1340] sm:$0xff] }
 0x124   :  { %3745 = vmatprep.subr.bf16.mxu1 %v3744_v33  ;;  %v3188_v29 = vpack.c.bf16 %v647_v22, %v643_v21  ;;  %v646_v31 = vld [vmem:[%s7967_s1 + $0x1360] sm:$0xff]  ;;  %v644_v32 = vld [vmem:[%s7967_s1 + $0x1350] sm:$0xff]  ;;  %v3764_v33 = vpack.c.bf16 %v649_v26, %v645_v23  ;;  %v651_v35 = vld [vmem:[%s7967_s1 + $0x1388] sm:$0xff]  ;;  %v1255_v26 = vcombine.high %v6207_v12, %v6207_v12 }
 0x125   :  { %v648_v34 = vld [vmem:[%s7967_s1 + $0x1370] sm:$0xff]  ;;  %v655_v36 = vld [vmem:[%s7967_s1 + $0x13a8] sm:$0xff]  ;;  %v653_v37 = vld [vmem:[%s7967_s1 + $0x1398] sm:$0xff] }
 0x126   :  { %3171 = vmatpush1.bf16.msra.mxu0 %v3170_v40  ;;  %v657_v38 = vld [vmem:[%s7967_s1 + $0x13b8] sm:$0xff]  ;;  %v3190_v40 = vpack.c.bf16 %v646_v31, %v642_v30  ;;  %v650_v43 = vld [vmem:[%s7967_s1 + $0x1380] sm:$0xff]  ;;  %v652_v39 = vld [vmem:[%s7967_s1 + $0x1390] sm:$0xff] }
 0x127   :  { %3747 = vmatpush1.bf16.msra.mxu1 %v3746_v41  ;;  %3173 = vmatprep.subr.bf16.mxu0 %v3172_v42  ;;  %v3766_v41 = vpack.c.bf16 %v648_v34, %v644_v32  ;;  %v3192_v42 = vpack.c.bf16 %v655_v36, %v651_v35  ;;  %v654_v44 = vld [vmem:[%s7967_s1 + $0x13a0] sm:$0xff]  ;;  %v656_v47 = vld [vmem:[%s7967_s1 + $0x13b0] sm:$0xff]  ;;  %v659_v25 = vld [vmem:[%s7967_s1 + $0x13c8] sm:$0xff] }
 0x128   :  { %3749 = vmatprep.subr.bf16.mxu1 %v3748_v46  ;;  %v3768_v46 = vpack.c.bf16 %v657_v38, %v653_v37  ;;  %v663_v48 = vld [vmem:[%s7967_s1 + $0x13e8] sm:$0xff]  ;;  %v661_v49 = vld [vmem:[%s7967_s1 + $0x13d8] sm:$0xff]  ;;  %v658_v56 = vld [vmem:[%s7967_s1 + $0x13c0] sm:$0xff] }
 0x129   :  { %v665_v52 = vld [vmem:[%s7967_s1 + $0x13f8] sm:$0xff]  ;;  %v662_v57 = vld [vmem:[%s7967_s1 + $0x13e0] sm:$0xff]  ;;  %v660_v58 = vld [vmem:[%s7967_s1 + $0x13d0] sm:$0xff] }
 0x12a   :  { %3175 = vmatpush1.bf16.msra.mxu0 %v3174_v53  ;;  %v3194_v53 = vpack.c.bf16 %v654_v44, %v650_v43  ;;  %v664_v59 = vld [vmem:[%s7967_s1 + $0x13f0] sm:$0xff]  ;;  %v667_v60 = vld [vmem:[%s7967_s1 + $0x1408] sm:$0xff]  ;;  %v669_v1 = vld [vmem:[%s7967_s1 + $0x1418] sm:$0xff] }
 0x12b   :  { %3751 = vmatpush1.bf16.msra.mxu1 %v3750_v54  ;;  %3177 = vmatprep.subr.bf16.mxu0 %v3176_v55  ;;  %v3770_v54 = vpack.c.bf16 %v656_v47, %v652_v39  ;;  %v3196_v55 = vpack.c.bf16 %v663_v48, %v659_v25  ;;  %v671_v63 = vld [vmem:[%s7967_s1 + $0x1428] sm:$0xff]  ;;  %v666_v6 = vld [vmem:[%s7967_s1 + $0x1400] sm:$0xff]  ;;  %v668_v7 = vld [vmem:[%s7967_s1 + $0x1410] sm:$0xff] }
 0x12c   :  { %3753 = vmatprep.subr.bf16.mxu1 %v3752_v24  ;;  %v3772_v24 = vpack.c.bf16 %v665_v52, %v661_v49  ;;  %v3200_v5 = vpack.c.bf16 %v671_v63, %v667_v60  ;;  %v670_v51 = vld [vmem:[%s7967_s1 + $0x1420] sm:$0xff]  ;;  %v672_v45 = vld [vmem:[%s7967_s1 + $0x1430] sm:$0xff]  ;;  %v675_v9 = vld [vmem:[%s7967_s1 + $0x1448] sm:$0xff] }
 0x12d   :  { %v679_v10 = vld [vmem:[%s7967_s1 + $0x1468] sm:$0xff]  ;;  %v677_v13 = vld [vmem:[%s7967_s1 + $0x1458] sm:$0xff]  ;;  %v674_v18 = vld [vmem:[%s7967_s1 + $0x1440] sm:$0xff] }
 0x12e   :  { %3179 = vmatpush1.bf16.msra.mxu0 %v3178_v2  ;;  %v673_v2 = vld [vmem:[%s7967_s1 + $0x1438] sm:$0xff]  ;;  %v3204_v17 = vpack.c.bf16 %v679_v10, %v675_v9  ;;  %v678_v19 = vld [vmem:[%s7967_s1 + $0x1460] sm:$0xff]  ;;  %v680_v21 = vld [vmem:[%s7967_s1 + $0x1470] sm:$0xff] }
 0x12f   :  { %3755 = vmatpush1.bf16.msra.mxu1 %v3754_v3  ;;  %3181 = vmatprep.subr.bf16.mxu0 %v3180_v4  ;;  %v3198_v3 = vpack.c.bf16 %v662_v57, %v658_v56  ;;  %v3774_v4 = vpack.c.bf16 %v664_v59, %v660_v58  ;;  %v683_v22 = vld [vmem:[%s7967_s1 + $0x1488] sm:$0xff]  ;;  %v682_v32 = vld [vmem:[%s7967_s1 + $0x1480] sm:$0xff]  ;;  %v684_v34 = vld [vmem:[%s7967_s1 + $0x1490] sm:$0xff] }
 0x130   :  { %3757 = vmatprep.subr.bf16.mxu1 %v3756_v8  ;;  %v3776_v8 = vpack.c.bf16 %v673_v2, %v669_v1  ;;  %v687_v23 = vld [vmem:[%s7967_s1 + $0x14a8] sm:$0xff]  ;;  %v693_v38 = vld [vmem:[%s7967_s1 + $0x14d8] sm:$0xff]  ;;  %v690_v44 = vld [vmem:[%s7967_s1 + $0x14c0] sm:$0xff] }
 0x131   :  { %v3208_v31 = vpack.c.bf16 %v687_v23, %v683_v22  ;;  %v691_v36 = vld [vmem:[%s7967_s1 + $0x14c8] sm:$0xff]  ;;  %v694_v39 = vld [vmem:[%s7967_s1 + $0x14e0] sm:$0xff]  ;;  %v696_v25 = vld [vmem:[%s7967_s1 + $0x14f0] sm:$0xff] }
 0x132   :  { %3183 = vmatpush1.bf16.msra.mxu0 %v3182_v14  ;;  %v681_v14 = vld [vmem:[%s7967_s1 + $0x1478] sm:$0xff]  ;;  %v695_v37 = vld [vmem:[%s7967_s1 + $0x14e8] sm:$0xff]  ;;  %v698_v57 = vld [vmem:[%s7967_s1 + $0x1500] sm:$0xff] }
 0x133   :  { %3759 = vmatpush1.bf16.msra.mxu1 %v3758_v15  ;;  %3185 = vmatprep.subr.bf16.mxu0 %v3184_v16  ;;  %v3202_v15 = vpack.c.bf16 %v670_v51, %v666_v6  ;;  %v3778_v16 = vpack.c.bf16 %v672_v45, %v668_v7  ;;  %v3780_v50 = vpack.c.bf16 %v681_v14, %v677_v13  ;;  %v699_v48 = vld [vmem:[%s7967_s1 + $0x1508] sm:$0xff]  ;;  %v701_v52 = vld [vmem:[%s7967_s1 + $0x1518] sm:$0xff]  ;;  %v702_v58 = vld [vmem:[%s7967_s1 + $0x1520] sm:$0xff] }
 0x134   :  { %3761 = vmatprep.subr.bf16.mxu1 %v3760_v20  ;;  %v676_v20 = vld [vmem:[%s7967_s1 + $0x1450] sm:$0xff]  ;;  %v3212_v43 = vpack.c.bf16 %v695_v37, %v691_v36  ;;  %v703_v49 = vld [vmem:[%s7967_s1 + $0x1528] sm:$0xff]  ;;  %v709_v1 = vld [vmem:[%s7967_s1 + $0x1558] sm:$0xff] }
 0x135   :  { %v3782_v30 = vpack.c.bf16 %v680_v21, %v676_v20  ;;  %v3216_v56 = vpack.c.bf16 %v703_v49, %v699_v48  ;;  %v704_v60 = vld [vmem:[%s7967_s1 + $0x1530] sm:$0xff]  ;;  %v707_v63 = vld [vmem:[%s7967_s1 + $0x1548] sm:$0xff]  ;;  %v713_v2 = vld [vmem:[%s7967_s1 + $0x1578] sm:$0xff] }
 0x136   :  { %3187 = vmatpush1.bf16.msra.mxu0 %v3186_v27  ;;  %v685_v27 = vld [vmem:[%s7967_s1 + $0x1498] sm:$0xff]  ;;  %v711_v0 = vld [vmem:[%s7967_s1 + $0x1568] sm:$0xff]  ;;  %v706_v6 = vld [vmem:[%s7967_s1 + $0x1540] sm:$0xff] }
 0x137   :  { %3763 = vmatpush1.bf16.msra.mxu1 %v3762_v28  ;;  %3189 = vmatprep.subr.bf16.mxu0 %v3188_v29  ;;  %v689_v28 = vld [vmem:[%s7967_s1 + $0x14b8] sm:$0xff]  ;;  %v3206_v29 = vpack.c.bf16 %v678_v19, %v674_v18  ;;  %v710_v51 = vld [vmem:[%s7967_s1 + $0x1560] sm:$0xff]  ;;  %v708_v7 = vld [vmem:[%s7967_s1 + $0x1550] sm:$0xff] }
 0x138   :  { %3765 = vmatprep.subr.bf16.mxu1 %v3764_v33  ;;  %v686_v33 = vld [vmem:[%s7967_s1 + $0x14a0] sm:$0xff]  ;;  %v3784_v35 = vpack.c.bf16 %v689_v28, %v685_v27  ;;  %v712_v45 = vld [vmem:[%s7967_s1 + $0x1570] sm:$0xff]  ;;  %v715_v9 = vld [vmem:[%s7967_s1 + $0x1588] sm:$0xff] }
 0x139   :  { %v719_v10 = vld [vmem:[%s7967_s1 + $0x15a8] sm:$0xff]  ;;  %v717_v13 = vld [vmem:[%s7967_s1 + $0x1598] sm:$0xff]  ;;  %v714_v18 = vld [vmem:[%s7967_s1 + $0x1580] sm:$0xff] }
 0x13a   :  { %3191 = vmatpush1.bf16.msra.mxu0 %v3190_v40  ;;  %v697_v40 = vld [vmem:[%s7967_s1 + $0x14f8] sm:$0xff]  ;;  %v718_v19 = vld [vmem:[%s7967_s1 + $0x15a0] sm:$0xff]  ;;  %v716_v20 = vld [vmem:[%s7967_s1 + $0x1590] sm:$0xff] }
 0x13b   :  { %3767 = vmatpush1.bf16.msra.mxu1 %v3766_v41  ;;  %3193 = vmatprep.subr.bf16.mxu0 %v3192_v42  ;;  %v3210_v41 = vpack.c.bf16 %v686_v33, %v682_v32  ;;  %v3788_v47 = vpack.c.bf16 %v697_v40, %v693_v38  ;;  %v721_v14 = vld [vmem:[%s7967_s1 + $0x15b8] sm:$0xff]  ;;  %v720_v21 = vld [vmem:[%s7967_s1 + $0x15b0] sm:$0xff]  ;;  %v723_v22 = vld [vmem:[%s7967_s1 + $0x15c8] sm:$0xff]  ;;  %v3226_v28 = vpack.c.bf16 %v718_v19, %v714_v18 }
 0x13c   :  { %3769 = vmatprep.subr.bf16.mxu1 %v3768_v46  ;;  %v692_v46 = vld [vmem:[%s7967_s1 + $0x14d0] sm:$0xff]  ;;  %v727_v23 = vld [vmem:[%s7967_s1 + $0x15e8] sm:$0xff]  ;;  %v729_v27 = vld [vmem:[%s7967_s1 + $0x15f8] sm:$0xff] }
 0x13d   :  { %v726_v32 = vld [vmem:[%s7967_s1 + $0x15e0] sm:$0xff]  ;;  %v724_v33 = vld [vmem:[%s7967_s1 + $0x15d0] sm:$0xff]  ;;  %v735_v36 = vld [vmem:[%s7967_s1 + $0x1628] sm:$0xff] }
 0x13e   :  { %3195 = vmatpush1.bf16.msra.mxu0 %v3194_v53  ;;  %v705_v53 = vld [vmem:[%s7967_s1 + $0x1538] sm:$0xff]  ;;  %v743_v48 = vld [vmem:[%s7967_s1 + $0x1668] sm:$0xff]  ;;  %v758_v18 = vld [vmem:[%s7967_s1 + $0x16e0] sm:$0xff] }
 0x13f   :  { %3771 = vmatpush1.bf16.msra.mxu1 %v3770_v54  ;;  %3197 = vmatprep.subr.bf16.mxu0 %v3196_v55  ;;  %v3214_v54 = vpack.c.bf16 %v694_v39, %v690_v44  ;;  %v3790_v55 = vpack.c.bf16 %v696_v25, %v692_v46  ;;  %v3792_v59 = vpack.c.bf16 %v705_v53, %v701_v52  ;;  %v733_v37 = vld [vmem:[%s7967_s1 + $0x1618] sm:$0xff]  ;;  %v734_v44 = vld [vmem:[%s7967_s1 + $0x1620] sm:$0xff]  ;;  %v732_v39 = vld [vmem:[%s7967_s1 + $0x1610] sm:$0xff] }
 0x140   :  { %3773 = vmatprep.subr.bf16.mxu1 %v3772_v24  ;;  %v700_v24 = vld [vmem:[%s7967_s1 + $0x1510] sm:$0xff]  ;;  %v737_v38 = vld [vmem:[%s7967_s1 + $0x1638] sm:$0xff]  ;;  %v739_v25 = vld [vmem:[%s7967_s1 + $0x1648] sm:$0xff] }
 0x141   :  { %v3808_v46 = vpack.c.bf16 %v737_v38, %v733_v37  ;;  %v741_v49 = vld [vmem:[%s7967_s1 + $0x1658] sm:$0xff]  ;;  %v756_v19 = vld [vmem:[%s7967_s1 + $0x16d0] sm:$0xff] }
 0x142   :  { %3199 = vmatpush1.bf16.msra.mxu0 %v3198_v3  ;;  %v3218_v3 = vpack.c.bf16 %v702_v58, %v698_v57  ;;  %v745_v52 = vld [vmem:[%s7967_s1 + $0x1678] sm:$0xff]  ;;  %v742_v57 = vld [vmem:[%s7967_s1 + $0x1660] sm:$0xff]  ;;  %v740_v58 = vld [vmem:[%s7967_s1 + $0x1650] sm:$0xff] }
 0x143   :  { %3775 = vmatpush1.bf16.msra.mxu1 %v3774_v4  ;;  %3201 = vmatprep.subr.bf16.mxu0 %v3200_v5  ;;  %v3794_v4 = vpack.c.bf16 %v704_v60, %v700_v24  ;;  %v3220_v5 = vpack.c.bf16 %v711_v0, %v707_v63  ;;  %v3812_v24 = vpack.c.bf16 %v745_v52, %v741_v49  ;;  %v747_v60 = vld [vmem:[%s7967_s1 + $0x1688] sm:$0xff]  ;;  %v749_v0 = vld [vmem:[%s7967_s1 + $0x1698] sm:$0xff] }
 0x144   :  { %3777 = vmatprep.subr.bf16.mxu1 %v3776_v8  ;;  %v3796_v8 = vpack.c.bf16 %v713_v2, %v709_v1  ;;  %v751_v63 = vld [vmem:[%s7967_s1 + $0x16a8] sm:$0xff]  ;;  %v753_v1 = vld [vmem:[%s7967_s1 + $0x16b8] sm:$0xff] }
 0x145   :  { %1648 = vmatmul.mubr.f32.vlgmr.msra.gmra.mrb[0].mxu0 %v5814_v62  ;;  %v777_v37 = vld [vmem:[%s7967_s1 + $0x1778] sm:$0xff] }
 0x146   :  { %3203 = vmatpush1.bf16.msra.mxu0 %v3202_v15  ;;  %2287 = vmatmul.mubr.f32.vlgmr.msra.gmra.mrb[0].mxu1 %v5814_v62  ;;  %v688_v62 = vld [vmem:[%s7967_s1 + $0x14b0] sm:$0xff]  ;;  %v3222_v15 = vpack.c.bf16 %v710_v51, %v706_v6  ;;  %v750_v6 = vld [vmem:[%s7967_s1 + $0x16a0] sm:$0xff]  ;;  %v785_v49 = vld [vmem:[%s7967_s1 + $0x17b8] sm:$0xff] }
 0x147   :  { %3779 = vmatpush1.bf16.msra.mxu1 %v3778_v16  ;;  %3205 = vmatprep.subr.bf16.mxu0 %v3204_v17  ;;  %v3786_v42 = vpack.c.bf16 %v688_v62, %v684_v34  ;;  %v3798_v16 = vpack.c.bf16 %v712_v45, %v708_v7  ;;  %v3224_v17 = vpack.c.bf16 %v719_v10, %v715_v9  ;;  %v731_v62 = vld [vmem:[%s7967_s1 + $0x1608] sm:$0xff]  ;;  %v748_v51 = vld [vmem:[%s7967_s1 + $0x1690] sm:$0xff]  ;;  %v757_v10 = vld [vmem:[%s7967_s1 + $0x16d8] sm:$0xff] }
 0x148   :  { %3781 = vmatprep.subr.bf16.mxu1 %v3780_v50  ;;  %1718 = vmatprep.mubr.f32.mxu0 %v1255_v26  ;;  %v3800_v50 = vpack.c.bf16 %v721_v14, %v717_v13  ;;  %v3816_v7 = vpack.c.bf16 %v753_v1, %v749_v0  ;;  %v755_v45 = vld [vmem:[%s7967_s1 + $0x16c8] sm:$0xff]  ;;  %v761_v13 = vld [vmem:[%s7967_s1 + $0x16f8] sm:$0xff] }
 0x149   :  { %2357 = vmatprep.mubr.f32.mxu1 %v1255_v26  ;;  %v725_v26 = vld [vmem:[%s7967_s1 + $0x15d8] sm:$0xff]  ;;  %v759_v9 = vld [vmem:[%s7967_s1 + $0x16e8] sm:$0xff] }
 0x14a   :  { %3207 = vmatpush1.bf16.msra.mxu0 %v3206_v29  ;;  %v3802_v29 = vpack.c.bf16 %v720_v21, %v716_v20  ;;  %v3804_v34 = vpack.c.bf16 %v729_v27, %v725_v26  ;;  %v3820_v20 = vpack.c.bf16 %v761_v13, %v757_v10  ;;  %v763_v21 = vld [vmem:[%s7967_s1 + $0x1708] sm:$0xff]  ;;  %v769_v26 = vld [vmem:[%s7967_s1 + $0x1738] sm:$0xff] }
 0x14b   :  { %3783 = vmatpush1.bf16.msra.mxu1 %v3782_v30  ;;  %3209 = vmatprep.subr.bf16.mxu0 %v3208_v31  ;;  %v3228_v30 = vpack.c.bf16 %v727_v23, %v723_v22  ;;  %v722_v31 = vld [vmem:[%s7967_s1 + $0x15c0] sm:$0xff]  ;;  %v767_v22 = vld [vmem:[%s7967_s1 + $0x1728] sm:$0xff]  ;;  %v765_v23 = vld [vmem:[%s7967_s1 + $0x1718] sm:$0xff] }
 0x14c   :  { %3785 = vmatprep.subr.bf16.mxu1 %v3784_v35  ;;  %v728_v35 = vld [vmem:[%s7967_s1 + $0x15f0] sm:$0xff]  ;;  %v3230_v40 = vpack.c.bf16 %v726_v32, %v722_v31  ;;  %v766_v31 = vld [vmem:[%s7967_s1 + $0x1720] sm:$0xff]  ;;  %v793_v0 = vld [vmem:[%s7967_s1 + $0x17f8] sm:$0xff] }
 0x14d   :  { %v764_v32 = vld [vmem:[%s7967_s1 + $0x1710] sm:$0xff]  ;;  %v801_v10 = vld [vmem:[%s7967_s1 + $0x1838] sm:$0xff] }
 0x14e   :  { %3211 = vmatpush1.bf16.msra.mxu0 %v3210_v41  ;;  %v3806_v41 = vpack.c.bf16 %v728_v35, %v724_v33  ;;  %v3824_v33 = vpack.c.bf16 %v769_v26, %v765_v23  ;;  %v771_v35 = vld [vmem:[%s7967_s1 + $0x1748] sm:$0xff]  ;;  %v6582_v13 = vld [vmem:[%s7966_s0 + $0x18] sm:$0xff] }
 0x14f   :  { %3787 = vmatpush1.bf16.msra.mxu1 %v3786_v42  ;;  %3213 = vmatprep.subr.bf16.mxu0 %v3212_v43  ;;  %v3232_v42 = vpack.c.bf16 %v735_v36, %v731_v62  ;;  %v730_v43 = vld [vmem:[%s7967_s1 + $0x1600] sm:$0xff]  ;;  %v775_v62 = vld [vmem:[%s7967_s1 + $0x1768] sm:$0xff]  ;;  %v773_v36 = vld [vmem:[%s7967_s1 + $0x1758] sm:$0xff]  ;;  %v6604_v23 = vrot.slane %v6582_v13, %v4473_v11 }
 0x150   :  { %3789 = vmatprep.subr.bf16.mxu1 %v3788_v47  ;;  %v736_v47 = vld [vmem:[%s7967_s1 + $0x1630] sm:$0xff]  ;;  %v3234_v53 = vpack.c.bf16 %v734_v44, %v730_v43  ;;  %v774_v43 = vld [vmem:[%s7967_s1 + $0x1760] sm:$0xff]  ;;  %v805_v26 = vld [vmem:[%s7967_s1 + $0x1858] sm:$0xff] }
 0x151   :  { %v772_v44 = vld [vmem:[%s7967_s1 + $0x1750] sm:$0xff] }
 0x152   :  { %3215 = vmatpush1.bf16.msra.mxu0 %v3214_v54  ;;  %v3810_v54 = vpack.c.bf16 %v736_v47, %v732_v39  ;;  %v3828_v39 = vpack.c.bf16 %v777_v37, %v773_v36  ;;  %v779_v47 = vld [vmem:[%s7967_s1 + $0x1788] sm:$0xff]  ;;  %v1271_v37 = vcombine.high %v6604_v23, %v6604_v23 }
 0x153   :  { %3791 = vmatpush1.bf16.msra.mxu1 %v3790_v55  ;;  %3217 = vmatprep.subr.bf16.mxu0 %v3216_v56  ;;  %v3236_v55 = vpack.c.bf16 %v743_v48, %v739_v25  ;;  %v738_v56 = vld [vmem:[%s7967_s1 + $0x1640] sm:$0xff]  ;;  %v783_v25 = vld [vmem:[%s7967_s1 + $0x17a8] sm:$0xff]  ;;  %v781_v48 = vld [vmem:[%s7967_s1 + $0x1798] sm:$0xff] }
 0x154   :  { %3793 = vmatprep.subr.bf16.mxu1 %v3792_v59  ;;  %v744_v59 = vld [vmem:[%s7967_s1 + $0x1670] sm:$0xff]  ;;  %v3238_v2 = vpack.c.bf16 %v742_v57, %v738_v56  ;;  %v782_v56 = vld [vmem:[%s7967_s1 + $0x17a0] sm:$0xff]  ;;  %v815_v36 = vld [vmem:[%s7967_s1 + $0x18a8] sm:$0xff] }
 0x155   :  { %v780_v57 = vld [vmem:[%s7967_s1 + $0x1790] sm:$0xff] }
 0x156   :  { %3219 = vmatpush1.bf16.msra.mxu0 %v3218_v3  ;;  %v3814_v3 = vpack.c.bf16 %v744_v59, %v740_v58  ;;  %v3832_v58 = vpack.c.bf16 %v785_v49, %v781_v48  ;;  %v787_v59 = vld [vmem:[%s7967_s1 + $0x17c8] sm:$0xff]  ;;  %v821_v49 = vld [vmem:[%s7967_s1 + $0x18d8] sm:$0xff] }
 0x157   :  { %3795 = vmatpush1.bf16.msra.mxu1 %v3794_v4  ;;  %3221 = vmatprep.subr.bf16.mxu0 %v3220_v5  ;;  %v3240_v4 = vpack.c.bf16 %v751_v63, %v747_v60  ;;  %v746_v5 = vld [vmem:[%s7967_s1 + $0x1680] sm:$0xff]  ;;  %v791_v60 = vld [vmem:[%s7967_s1 + $0x17e8] sm:$0xff]  ;;  %v789_v63 = vld [vmem:[%s7967_s1 + $0x17d8] sm:$0xff] }
 0x158   :  { %3797 = vmatprep.subr.bf16.mxu1 %v3796_v8  ;;  %v752_v8 = vld [vmem:[%s7967_s1 + $0x16b0] sm:$0xff]  ;;  %v3242_v14 = vpack.c.bf16 %v750_v6, %v746_v5  ;;  %v790_v5 = vld [vmem:[%s7967_s1 + $0x17e0] sm:$0xff]  ;;  %v823_v48 = vld [vmem:[%s7967_s1 + $0x18e8] sm:$0xff] }
 0x159   :  { %v788_v6 = vld [vmem:[%s7967_s1 + $0x17d0] sm:$0xff] }
 0x15a   :  { %3223 = vmatpush1.bf16.msra.mxu0 %v3222_v15  ;;  %v3818_v15 = vpack.c.bf16 %v752_v8, %v748_v51  ;;  %v3836_v51 = vpack.c.bf16 %v793_v0, %v789_v63  ;;  %v795_v8 = vld [vmem:[%s7967_s1 + $0x1808] sm:$0xff]  ;;  %v829_v0 = vld [vmem:[%s7967_s1 + $0x1918] sm:$0xff] }
 0x15b   :  { %3799 = vmatpush1.bf16.msra.mxu1 %v3798_v16  ;;  %3225 = vmatprep.subr.bf16.mxu0 %v3224_v17  ;;  %v3244_v16 = vpack.c.bf16 %v759_v9, %v755_v45  ;;  %v754_v17 = vld [vmem:[%s7967_s1 + $0x16c0] sm:$0xff]  ;;  %v799_v45 = vld [vmem:[%s7967_s1 + $0x1828] sm:$0xff]  ;;  %v797_v9 = vld [vmem:[%s7967_s1 + $0x1818] sm:$0xff] }
 0x15c   :  { %3801 = vmatprep.subr.bf16.mxu1 %v3800_v50  ;;  %v760_v50 = vld [vmem:[%s7967_s1 + $0x16f0] sm:$0xff]  ;;  %v3246_v27 = vpack.c.bf16 %v758_v18, %v754_v17  ;;  %v794_v17 = vld [vmem:[%s7967_s1 + $0x1800] sm:$0xff]  ;;  %v831_v63 = vld [vmem:[%s7967_s1 + $0x1928] sm:$0xff] }
 0x15d   :  { %v798_v18 = vld [vmem:[%s7967_s1 + $0x1820] sm:$0xff] }
 0x15e   :  { %3227 = vmatpush1.bf16.msra.mxu0 %v3226_v28  ;;  %v3822_v28 = vpack.c.bf16 %v760_v50, %v756_v19  ;;  %v796_v19 = vld [vmem:[%s7967_s1 + $0x1810] sm:$0xff] }
 0x15f   :  { %3803 = vmatpush1.bf16.msra.mxu1 %v3802_v29  ;;  %3229 = vmatprep.subr.bf16.mxu0 %v3228_v30  ;;  %v3248_v29 = vpack.c.bf16 %v767_v22, %v763_v21  ;;  %v762_v30 = vld [vmem:[%s7967_s1 + $0x1700] sm:$0xff]  ;;  %v800_v50 = vld [vmem:[%s7967_s1 + $0x1830] sm:$0xff]  ;;  %v803_v21 = vld [vmem:[%s7967_s1 + $0x1848] sm:$0xff] }
 0x160   :  { %3805 = vmatprep.subr.bf16.mxu1 %v3804_v34  ;;  %v768_v34 = vld [vmem:[%s7967_s1 + $0x1730] sm:$0xff]  ;;  %v3250_v38 = vpack.c.bf16 %v766_v31, %v762_v30  ;;  %v807_v22 = vld [vmem:[%s7967_s1 + $0x1868] sm:$0xff]  ;;  %v802_v31 = vld [vmem:[%s7967_s1 + $0x1840] sm:$0xff] }
 0x161   :  { %v3268_v30 = vpack.c.bf16 %v807_v22, %v803_v21  ;;  %v840_v21 = vld [vmem:[%s7967_s1 + $0x1970] sm:$0xff]  ;;  %v843_v22 = vld [vmem:[%s7967_s1 + $0x1988] sm:$0xff] }
 0x162   :  { %3231 = vmatpush1.bf16.msra.mxu0 %v3230_v40  ;;  %v3826_v40 = vpack.c.bf16 %v768_v34, %v764_v32  ;;  %v806_v32 = vld [vmem:[%s7967_s1 + $0x1860] sm:$0xff] }
 0x163   :  { %3807 = vmatpush1.bf16.msra.mxu1 %v3806_v41  ;;  %3233 = vmatprep.subr.bf16.mxu0 %v3232_v42  ;;  %v3252_v41 = vpack.c.bf16 %v775_v62, %v771_v35  ;;  %v770_v42 = vld [vmem:[%s7967_s1 + $0x1740] sm:$0xff]  ;;  %v808_v35 = vld [vmem:[%s7967_s1 + $0x1870] sm:$0xff]  ;;  %v811_v62 = vld [vmem:[%s7967_s1 + $0x1888] sm:$0xff] }
 0x164   :  { %3809 = vmatprep.subr.bf16.mxu1 %v3808_v46  ;;  %v776_v46 = vld [vmem:[%s7967_s1 + $0x1770] sm:$0xff]  ;;  %v3254_v52 = vpack.c.bf16 %v774_v43, %v770_v42  ;;  %v3272_v43 = vpack.c.bf16 %v815_v36, %v811_v62  ;;  %v851_v36 = vld [vmem:[%s7967_s1 + $0x19c8] sm:$0xff] }
 0x165   :  { %v848_v62 = vld [vmem:[%s7967_s1 + $0x19b0] sm:$0xff] }
 0x166   :  { %3235 = vmatpush1.bf16.msra.mxu0 %v3234_v53  ;;  %v3830_v53 = vpack.c.bf16 %v776_v46, %v772_v44  ;;  %v810_v44 = vld [vmem:[%s7967_s1 + $0x1880] sm:$0xff]  ;;  %v812_v46 = vld [vmem:[%s7967_s1 + $0x1890] sm:$0xff] }
 0x167   :  { %3811 = vmatpush1.bf16.msra.mxu1 %v3810_v54  ;;  %3237 = vmatprep.subr.bf16.mxu0 %v3236_v55  ;;  %v3256_v54 = vpack.c.bf16 %v783_v25, %v779_v47  ;;  %v778_v55 = vld [vmem:[%s7967_s1 + $0x1780] sm:$0xff]  ;;  %v819_v25 = vld [vmem:[%s7967_s1 + $0x18c8] sm:$0xff] }
 0x168   :  { %3813 = vmatprep.subr.bf16.mxu1 %v3812_v24  ;;  %v784_v24 = vld [vmem:[%s7967_s1 + $0x17b0] sm:$0xff]  ;;  %v3258_v1 = vpack.c.bf16 %v782_v56, %v778_v55  ;;  %v3276_v55 = vpack.c.bf16 %v823_v48, %v819_v25  ;;  %v818_v56 = vld [vmem:[%s7967_s1 + $0x18c0] sm:$0xff]  ;;  %v859_v25 = vld [vmem:[%s7967_s1 + $0x1a08] sm:$0xff] }
 0x169   :  { %v863_v48 = vld [vmem:[%s7967_s1 + $0x1a28] sm:$0xff] }
 0x16a   :  { %3239 = vmatpush1.bf16.msra.mxu0 %v3238_v2  ;;  %v3834_v2 = vpack.c.bf16 %v784_v24, %v780_v57  ;;  %v822_v57 = vld [vmem:[%s7967_s1 + $0x18e0] sm:$0xff] }
 0x16b   :  { %3815 = vmatpush1.bf16.msra.mxu1 %v3814_v3  ;;  %3241 = vmatprep.subr.bf16.mxu0 %v3240_v4  ;;  %v3260_v3 = vpack.c.bf16 %v791_v60, %v787_v59  ;;  %v786_v4 = vld [vmem:[%s7967_s1 + $0x17c0] sm:$0xff]  ;;  %v824_v59 = vld [vmem:[%s7967_s1 + $0x18f0] sm:$0xff]  ;;  %v827_v60 = vld [vmem:[%s7967_s1 + $0x1908] sm:$0xff] }
 0x16c   :  { %3817 = vmatprep.subr.bf16.mxu1 %v3816_v7  ;;  %v792_v7 = vld [vmem:[%s7967_s1 + $0x17f0] sm:$0xff] }
 0x16e   :  { %3243 = vmatpush1.bf16.msra.mxu0 %v3242_v14  ;;  %v3262_v14 = vpack.c.bf16 %v790_v5, %v786_v4  ;;  %v3280_v4 = vpack.c.bf16 %v831_v63, %v827_v60  ;;  %v826_v5 = vld [vmem:[%s7967_s1 + $0x1900] sm:$0xff]  ;;  %v867_v60 = vld [vmem:[%s7967_s1 + $0x1a48] sm:$0xff] }
 0x16f   :  { %3819 = vmatpush1.bf16.msra.mxu1 %v3818_v15  ;;  %3245 = vmatprep.subr.bf16.mxu0 %v3244_v16  ;;  %v3838_v15 = vpack.c.bf16 %v792_v7, %v788_v6  ;;  %v3264_v16 = vpack.c.bf16 %v799_v45, %v795_v8  ;;  %v830_v6 = vld [vmem:[%s7967_s1 + $0x1920] sm:$0xff]  ;;  %v832_v8 = vld [vmem:[%s7967_s1 + $0x1930] sm:$0xff]  ;;  %v835_v45 = vld [vmem:[%s7967_s1 + $0x1948] sm:$0xff] }
 0x170   :  { %3821 = vmatprep.subr.bf16.mxu1 %v3820_v20  ;;  %v3840_v20 = vpack.c.bf16 %v801_v10, %v797_v9  ;;  %v839_v9 = vld [vmem:[%s7967_s1 + $0x1968] sm:$0xff]  ;;  %v837_v10 = vld [vmem:[%s7967_s1 + $0x1958] sm:$0xff] }
 0x171   :  { %v871_v63 = vld [vmem:[%s7967_s1 + $0x1a68] sm:$0xff] }
 0x172   :  { %3247 = vmatpush1.bf16.msra.mxu0 %v3246_v27  ;;  %v809_v27 = vld [vmem:[%s7967_s1 + $0x1878] sm:$0xff] }
 0x173   :  { %3823 = vmatpush1.bf16.msra.mxu1 %v3822_v28  ;;  %3249 = vmatprep.subr.bf16.mxu0 %v3248_v29  ;;  %v3266_v28 = vpack.c.bf16 %v798_v18, %v794_v17  ;;  %v3842_v29 = vpack.c.bf16 %v800_v50, %v796_v19  ;;  %v3844_v34 = vpack.c.bf16 %v809_v27, %v805_v26  ;;  %v834_v18 = vld [vmem:[%s7967_s1 + $0x1940] sm:$0xff]  ;;  %v847_v26 = vld [vmem:[%s7967_s1 + $0x19a8] sm:$0xff]  ;;  %v845_v27 = vld [vmem:[%s7967_s1 + $0x1998] sm:$0xff] }
 0x174   :  { %3825 = vmatprep.subr.bf16.mxu1 %v3824_v33  ;;  %v804_v33 = vld [vmem:[%s7967_s1 + $0x1850] sm:$0xff]  ;;  %v3284_v17 = vpack.c.bf16 %v839_v9, %v835_v45  ;;  %v838_v19 = vld [vmem:[%s7967_s1 + $0x1960] sm:$0xff]  ;;  %v875_v45 = vld [vmem:[%s7967_s1 + $0x1a88] sm:$0xff] }
 0x175   :  { %v3846_v42 = vpack.c.bf16 %v808_v35, %v804_v33  ;;  %v846_v33 = vld [vmem:[%s7967_s1 + $0x19a0] sm:$0xff]  ;;  %v879_v9 = vld [vmem:[%s7967_s1 + $0x1aa8] sm:$0xff] }
 0x176   :  { %3251 = vmatpush1.bf16.msra.mxu0 %v3250_v38  ;;  %v813_v38 = vld [vmem:[%s7967_s1 + $0x1898] sm:$0xff] }
 0x177   :  { %3827 = vmatpush1.bf16.msra.mxu1 %v3826_v40  ;;  %3253 = vmatprep.subr.bf16.mxu0 %v3252_v41  ;;  %v817_v40 = vld [vmem:[%s7967_s1 + $0x18b8] sm:$0xff]  ;;  %v3270_v41 = vpack.c.bf16 %v806_v32, %v802_v31  ;;  %v3288_v31 = vpack.c.bf16 %v847_v26, %v843_v22  ;;  %v842_v32 = vld [vmem:[%s7967_s1 + $0x1980] sm:$0xff]  ;;  %v883_v22 = vld [vmem:[%s7967_s1 + $0x1ac8] sm:$0xff] }
 0x178   :  { %3829 = vmatprep.subr.bf16.mxu1 %v3828_v39  ;;  %v814_v39 = vld [vmem:[%s7967_s1 + $0x18a0] sm:$0xff]  ;;  %v3848_v47 = vpack.c.bf16 %v817_v40, %v813_v38  ;;  %v853_v38 = vld [vmem:[%s7967_s1 + $0x19d8] sm:$0xff]  ;;  %v887_v26 = vld [vmem:[%s7967_s1 + $0x1ae8] sm:$0xff] }
 0x179   :  { %v857_v40 = vld [vmem:[%s7967_s1 + $0x19f8] sm:$0xff] }
 0x17a   :  { %3255 = vmatpush1.bf16.msra.mxu0 %v3254_v52  ;;  %v825_v52 = vld [vmem:[%s7967_s1 + $0x18f8] sm:$0xff] }
 0x17b   :  { %3831 = vmatpush1.bf16.msra.mxu1 %v3830_v53  ;;  %3257 = vmatprep.subr.bf16.mxu0 %v3256_v54  ;;  %v3274_v53 = vpack.c.bf16 %v814_v39, %v810_v44  ;;  %v3852_v24 = vpack.c.bf16 %v825_v52, %v821_v49  ;;  %v850_v44 = vld [vmem:[%s7967_s1 + $0x19c0] sm:$0xff]  ;;  %v861_v49 = vld [vmem:[%s7967_s1 + $0x1a18] sm:$0xff] }
 0x17c   :  { %3833 = vmatprep.subr.bf16.mxu1 %v3832_v58  ;;  %v820_v58 = vld [vmem:[%s7967_s1 + $0x18d0] sm:$0xff]  ;;  %v854_v39 = vld [vmem:[%s7967_s1 + $0x19e0] sm:$0xff]  ;;  %v865_v52 = vld [vmem:[%s7967_s1 + $0x1a38] sm:$0xff] }
 0x17e   :  { %3259 = vmatpush1.bf16.msra.mxu0 %v3258_v1  ;;  %v833_v1 = vld [vmem:[%s7967_s1 + $0x1938] sm:$0xff] }
 0x17f   :  { %3835 = vmatpush1.bf16.msra.mxu1 %v3834_v2  ;;  %3261 = vmatprep.subr.bf16.mxu0 %v3260_v3  ;;  %v3278_v2 = vpack.c.bf16 %v822_v57, %v818_v56  ;;  %v3854_v3 = vpack.c.bf16 %v824_v59, %v820_v58  ;;  %v3856_v7 = vpack.c.bf16 %v833_v1, %v829_v0  ;;  %v858_v56 = vld [vmem:[%s7967_s1 + $0x1a00] sm:$0xff]  ;;  %v860_v58 = vld [vmem:[%s7967_s1 + $0x1a10] sm:$0xff]  ;;  %v869_v0 = vld [vmem:[%s7967_s1 + $0x1a58] sm:$0xff] }
 0x180   :  { %3837 = vmatprep.subr.bf16.mxu1 %v3836_v51  ;;  %v828_v51 = vld [vmem:[%s7967_s1 + $0x1910] sm:$0xff]  ;;  %v862_v57 = vld [vmem:[%s7967_s1 + $0x1a20] sm:$0xff]  ;;  %v873_v1 = vld [vmem:[%s7967_s1 + $0x1a78] sm:$0xff] }
 0x181   :  { %v864_v59 = vld [vmem:[%s7967_s1 + $0x1a30] sm:$0xff] }
 0x182   :  { %3263 = vmatpush1.bf16.msra.mxu0 %v3262_v14  ;;  %v841_v14 = vld [vmem:[%s7967_s1 + $0x1978] sm:$0xff] }
 0x183   :  { %3839 = vmatpush1.bf16.msra.mxu1 %v3838_v15  ;;  %3265 = vmatprep.subr.bf16.mxu0 %v3264_v16  ;;  %v3282_v15 = vpack.c.bf16 %v830_v6, %v826_v5  ;;  %v3858_v16 = vpack.c.bf16 %v832_v8, %v828_v51  ;;  %v3860_v50 = vpack.c.bf16 %v841_v14, %v837_v10  ;;  %v866_v5 = vld [vmem:[%s7967_s1 + $0x1a40] sm:$0xff]  ;;  %v868_v51 = vld [vmem:[%s7967_s1 + $0x1a50] sm:$0xff]  ;;  %v877_v10 = vld [vmem:[%s7967_s1 + $0x1a98] sm:$0xff] }
 0x184   :  { %3841 = vmatprep.subr.bf16.mxu1 %v3840_v20  ;;  %v836_v20 = vld [vmem:[%s7967_s1 + $0x1950] sm:$0xff]  ;;  %v870_v6 = vld [vmem:[%s7967_s1 + $0x1a60] sm:$0xff]  ;;  %v881_v14 = vld [vmem:[%s7967_s1 + $0x1ab8] sm:$0xff] }
 0x185   :  { %1719 = vmatmul.mubr.f32.vlgmr.msra.gmra.mrb[0].mxu0 %v6207_v12  ;;  %v872_v8 = vld [vmem:[%s7967_s1 + $0x1a70] sm:$0xff] }
 0x186   :  { %3267 = vmatpush1.bf16.msra.mxu0 %v3266_v28  ;;  %2358 = vmatmul.mubr.f32.vlgmr.msra.gmra.mrb[0].mxu1 %v6207_v12  ;;  %v816_v12 = vld [vmem:[%s7967_s1 + $0x18b0] sm:$0xff]  ;;  %v849_v28 = vld [vmem:[%s7967_s1 + $0x19b8] sm:$0xff] }
 0x187   :  { %3843 = vmatpush1.bf16.msra.mxu1 %v3842_v29  ;;  %3269 = vmatprep.subr.bf16.mxu0 %v3268_v30  ;;  %v3850_v54 = vpack.c.bf16 %v816_v12, %v812_v46  ;;  %v3286_v29 = vpack.c.bf16 %v838_v19, %v834_v18  ;;  %v3862_v30 = vpack.c.bf16 %v840_v21, %v836_v20  ;;  %v852_v46 = vld [vmem:[%s7967_s1 + $0x19d0] sm:$0xff]  ;;  %v874_v18 = vld [vmem:[%s7967_s1 + $0x1a80] sm:$0xff] }
 0x188   :  { %3845 = vmatprep.subr.bf16.mxu1 %v3844_v34  ;;  %1789 = vmatprep.mubr.f32.mxu0 %v1271_v37  ;;  %v844_v34 = vld [vmem:[%s7967_s1 + $0x1990] sm:$0xff]  ;;  %v3864_v35 = vpack.c.bf16 %v849_v28, %v845_v27  ;;  %v878_v19 = vld [vmem:[%s7967_s1 + $0x1aa0] sm:$0xff]  ;;  %v885_v27 = vld [vmem:[%s7967_s1 + $0x1ad8] sm:$0xff] }
 0x189   :  { %2428 = vmatprep.mubr.f32.mxu1 %v1271_v37  ;;  %v855_v37 = vld [vmem:[%s7967_s1 + $0x19e8] sm:$0xff]  ;;  %v856_v12 = vld [vmem:[%s7967_s1 + $0x19f0] sm:$0xff]  ;;  %v889_v28 = vld [vmem:[%s7967_s1 + $0x1af8] sm:$0xff] }
 0x18a   :  { %3271 = vmatpush1.bf16.msra.mxu0 %v3270_v41  ;;  %v3290_v41 = vpack.c.bf16 %v846_v33, %v842_v32  ;;  %v876_v20 = vld [vmem:[%s7967_s1 + $0x1a90] sm:$0xff]  ;;  %v882_v32 = vld [vmem:[%s7967_s1 + $0x1ac0] sm:$0xff] }
 0x18b   :  { %3847 = vmatpush1.bf16.msra.mxu1 %v3846_v42  ;;  %3273 = vmatprep.subr.bf16.mxu0 %v3272_v43  ;;  %v3866_v42 = vpack.c.bf16 %v848_v62, %v844_v34  ;;  %v3292_v43 = vpack.c.bf16 %v855_v37, %v851_v36  ;;  %v880_v21 = vld [vmem:[%s7967_s1 + $0x1ab0] sm:$0xff]  ;;  %v886_v33 = vld [vmem:[%s7967_s1 + $0x1ae0] sm:$0xff]  ;;  %v891_v36 = vld [vmem:[%s7967_s1 + $0x1b08] sm:$0xff] }
 0x18c   :  { %3849 = vmatprep.subr.bf16.mxu1 %v3848_v47  ;;  %v3868_v47 = vpack.c.bf16 %v857_v40, %v853_v38  ;;  %v884_v34 = vld [vmem:[%s7967_s1 + $0x1ad0] sm:$0xff]  ;;  %v895_v37 = vld [vmem:[%s7967_s1 + $0x1b28] sm:$0xff]  ;;  %v893_v38 = vld [vmem:[%s7967_s1 + $0x1b18] sm:$0xff] }
 0x18d   :  { %v888_v62 = vld [vmem:[%s7967_s1 + $0x1af0] sm:$0xff]  ;;  %v897_v40 = vld [vmem:[%s7967_s1 + $0x1b38] sm:$0xff] }
 0x18e   :  { %3275 = vmatpush1.bf16.msra.mxu0 %v3274_v53  ;;  %v3294_v53 = vpack.c.bf16 %v854_v39, %v850_v44  ;;  %v890_v44 = vld [vmem:[%s7967_s1 + $0x1b00] sm:$0xff] }
 0x18f   :  { %3851 = vmatpush1.bf16.msra.mxu1 %v3850_v54  ;;  %3277 = vmatprep.subr.bf16.mxu0 %v3276_v55  ;;  %v3870_v54 = vpack.c.bf16 %v856_v12, %v852_v46  ;;  %v3296_v55 = vpack.c.bf16 %v863_v48, %v859_v25  ;;  %v894_v39 = vld [vmem:[%s7967_s1 + $0x1b20] sm:$0xff]  ;;  %v892_v46 = vld [vmem:[%s7967_s1 + $0x1b10] sm:$0xff]  ;;  %v899_v25 = vld [vmem:[%s7967_s1 + $0x1b48] sm:$0xff] }
 0x190   :  { %3853 = vmatprep.subr.bf16.mxu1 %v3852_v24  ;;  %v3872_v24 = vpack.c.bf16 %v865_v52, %v861_v49  ;;  %v896_v12 = vld [vmem:[%s7967_s1 + $0x1b30] sm:$0xff]  ;;  %v903_v48 = vld [vmem:[%s7967_s1 + $0x1b68] sm:$0xff]  ;;  %v901_v49 = vld [vmem:[%s7967_s1 + $0x1b58] sm:$0xff] }
 0x191   :  { %v905_v52 = vld [vmem:[%s7967_s1 + $0x1b78] sm:$0xff] }
 0x192   :  { %3279 = vmatpush1.bf16.msra.mxu0 %v3278_v2  ;;  %v3298_v2 = vpack.c.bf16 %v862_v57, %v858_v56  ;;  %v898_v56 = vld [vmem:[%s7967_s1 + $0x1b40] sm:$0xff] }
 0x193   :  { %3855 = vmatpush1.bf16.msra.mxu1 %v3854_v3  ;;  %3281 = vmatprep.subr.bf16.mxu0 %v3280_v4  ;;  %v3874_v3 = vpack.c.bf16 %v864_v59, %v860_v58  ;;  %v3300_v4 = vpack.c.bf16 %v871_v63, %v867_v60  ;;  %v902_v57 = vld [vmem:[%s7967_s1 + $0x1b60] sm:$0xff]  ;;  %v900_v58 = vld [vmem:[%s7967_s1 + $0x1b50] sm:$0xff]  ;;  %v907_v60 = vld [vmem:[%s7967_s1 + $0x1b88] sm:$0xff] }
 0x194   :  { %3857 = vmatprep.subr.bf16.mxu1 %v3856_v7  ;;  %v3876_v7 = vpack.c.bf16 %v873_v1, %v869_v0  ;;  %v904_v59 = vld [vmem:[%s7967_s1 + $0x1b70] sm:$0xff]  ;;  %v911_v63 = vld [vmem:[%s7967_s1 + $0x1ba8] sm:$0xff]  ;;  %v909_v0 = vld [vmem:[%s7967_s1 + $0x1b98] sm:$0xff] }
 0x195   :  { %v913_v1 = vld [vmem:[%s7967_s1 + $0x1bb8] sm:$0xff] }
 0x196   :  { %3283 = vmatpush1.bf16.msra.mxu0 %v3282_v15  ;;  %v3302_v15 = vpack.c.bf16 %v870_v6, %v866_v5  ;;  %v906_v5 = vld [vmem:[%s7967_s1 + $0x1b80] sm:$0xff] }
 0x197   :  { %3859 = vmatpush1.bf16.msra.mxu1 %v3858_v16  ;;  %3285 = vmatprep.subr.bf16.mxu0 %v3284_v17  ;;  %v3878_v16 = vpack.c.bf16 %v872_v8, %v868_v51  ;;  %v3304_v17 = vpack.c.bf16 %v879_v9, %v875_v45  ;;  %v910_v6 = vld [vmem:[%s7967_s1 + $0x1ba0] sm:$0xff]  ;;  %v908_v51 = vld [vmem:[%s7967_s1 + $0x1b90] sm:$0xff]  ;;  %v915_v45 = vld [vmem:[%s7967_s1 + $0x1bc8] sm:$0xff] }
 0x198   :  { %3861 = vmatprep.subr.bf16.mxu1 %v3860_v50  ;;  %v3880_v50 = vpack.c.bf16 %v881_v14, %v877_v10  ;;  %v912_v8 = vld [vmem:[%s7967_s1 + $0x1bb0] sm:$0xff]  ;;  %v919_v9 = vld [vmem:[%s7967_s1 + $0x1be8] sm:$0xff]  ;;  %v917_v10 = vld [vmem:[%s7967_s1 + $0x1bd8] sm:$0xff] }
 0x199   :  { %v921_v14 = vld [vmem:[%s7967_s1 + $0x1bf8] sm:$0xff] }
 0x19a   :  { %3287 = vmatpush1.bf16.msra.mxu0 %v3286_v29  ;;  %v3306_v29 = vpack.c.bf16 %v878_v19, %v874_v18  ;;  %v914_v18 = vld [vmem:[%s7967_s1 + $0x1bc0] sm:$0xff] }
 0x19b   :  { %3863 = vmatpush1.bf16.msra.mxu1 %v3862_v30  ;;  %3289 = vmatprep.subr.bf16.mxu0 %v3288_v31  ;;  %v3882_v30 = vpack.c.bf16 %v880_v21, %v876_v20  ;;  %v3308_v31 = vpack.c.bf16 %v887_v26, %v883_v22  ;;  %v918_v19 = vld [vmem:[%s7967_s1 + $0x1be0] sm:$0xff]  ;;  %v916_v20 = vld [vmem:[%s7967_s1 + $0x1bd0] sm:$0xff]  ;;  %v923_v22 = vld [vmem:[%s7967_s1 + $0x1c08] sm:$0xff] }
 0x19c   :  { %3865 = vmatprep.subr.bf16.mxu1 %v3864_v35  ;;  %v3884_v35 = vpack.c.bf16 %v889_v28, %v885_v27  ;;  %v920_v21 = vld [vmem:[%s7967_s1 + $0x1bf0] sm:$0xff]  ;;  %v927_v26 = vld [vmem:[%s7967_s1 + $0x1c28] sm:$0xff]  ;;  %v1256_v27 = vcombine.high %v6582_v13, %v6582_v13  ;;  %v925_v28 = vld [vmem:[%s7967_s1 + $0x1c18] sm:$0xff] }
 0x19d   :  { %v926_v13 = vld [vmem:[%s7967_s1 + $0x1c20] sm:$0xff] }
 0x19e   :  { %3291 = vmatpush1.bf16.msra.mxu0 %v3290_v41  ;;  %v3310_v41 = vpack.c.bf16 %v886_v33, %v882_v32  ;;  %v3328_v32 = vpack.c.bf16 %v927_v26, %v923_v22  ;;  %v922_v33 = vld [vmem:[%s7967_s1 + $0x1c00] sm:$0xff]  ;;  %v963_v22 = vld [vmem:[%s7967_s1 + $0x1d48] sm:$0xff] }
 0x19f   :  { %3867 = vmatpush1.bf16.msra.mxu1 %v3866_v42  ;;  %3293 = vmatprep.subr.bf16.mxu0 %v3292_v43  ;;  %v3886_v42 = vpack.c.bf16 %v888_v62, %v884_v34  ;;  %v3312_v43 = vpack.c.bf16 %v895_v37, %v891_v36  ;;  %v924_v34 = vld [vmem:[%s7967_s1 + $0x1c10] sm:$0xff]  ;;  %v931_v36 = vld [vmem:[%s7967_s1 + $0x1c48] sm:$0xff] }
 0x1a0   :  { %3869 = vmatprep.subr.bf16.mxu1 %v3868_v47  ;;  %v3888_v47 = vpack.c.bf16 %v897_v40, %v893_v38  ;;  %v928_v62 = vld [vmem:[%s7967_s1 + $0x1c30] sm:$0xff]  ;;  %v935_v37 = vld [vmem:[%s7967_s1 + $0x1c68] sm:$0xff]  ;;  %v6997_v38 = vrot.slane %v1256_v27, %v4473_v11  ;;  %v933_v40 = vld [vmem:[%s7967_s1 + $0x1c58] sm:$0xff] }
 0x1a1   :  { %v934_v11 = vld [vmem:[%s7967_s1 + $0x1c60] sm:$0xff]  ;;  %v967_v26 = vld [vmem:[%s7967_s1 + $0x1d68] sm:$0xff]  ;;  %v965_v27 = vld [vmem:[%s7967_s1 + $0x1d58] sm:$0xff] }
 0x1a2   :  { %3295 = vmatpush1.bf16.msra.mxu0 %v3294_v53  ;;  %v3314_v53 = vpack.c.bf16 %v894_v39, %v890_v44  ;;  %v3332_v44 = vpack.c.bf16 %v935_v37, %v931_v36  ;;  %v930_v39 = vld [vmem:[%s7967_s1 + $0x1c40] sm:$0xff]  ;;  %v975_v36 = vld [vmem:[%s7967_s1 + $0x1da8] sm:$0xff]  ;;  %v973_v37 = vld [vmem:[%s7967_s1 + $0x1d98] sm:$0xff] }
 0x1a3   :  { %3871 = vmatpush1.bf16.msra.mxu1 %v3870_v54  ;;  %3297 = vmatprep.subr.bf16.mxu0 %v3296_v55  ;;  %v3890_v54 = vpack.c.bf16 %v896_v12, %v892_v46  ;;  %v3316_v55 = vpack.c.bf16 %v903_v48, %v899_v25  ;;  %v932_v46 = vld [vmem:[%s7967_s1 + $0x1c50] sm:$0xff]  ;;  %v939_v25 = vld [vmem:[%s7967_s1 + $0x1c88] sm:$0xff] }
 0x1a4   :  { %3873 = vmatprep.subr.bf16.mxu1 %v3872_v24  ;;  %v3892_v24 = vpack.c.bf16 %v905_v52, %v901_v49  ;;  %v936_v12 = vld [vmem:[%s7967_s1 + $0x1c70] sm:$0xff]  ;;  %v943_v48 = vld [vmem:[%s7967_s1 + $0x1ca8] sm:$0xff]  ;;  %v1272_v49 = vcombine.high %v6997_v38, %v6997_v38  ;;  %v941_v52 = vld [vmem:[%s7967_s1 + $0x1c98] sm:$0xff] }
 0x1a6   :  { %3299 = vmatpush1.bf16.msra.mxu0 %v3298_v2  ;;  %v3318_v2 = vpack.c.bf16 %v902_v57, %v898_v56  ;;  %v3336_v56 = vpack.c.bf16 %v943_v48, %v939_v25  ;;  %v938_v57 = vld [vmem:[%s7967_s1 + $0x1c80] sm:$0xff]  ;;  %v983_v25 = vld [vmem:[%s7967_s1 + $0x1de8] sm:$0xff]  ;;  %v981_v48 = vld [vmem:[%s7967_s1 + $0x1dd8] sm:$0xff] }
 0x1a7   :  { %3875 = vmatpush1.bf16.msra.mxu1 %v3874_v3  ;;  %3301 = vmatprep.subr.bf16.mxu0 %v3300_v4  ;;  %v3894_v3 = vpack.c.bf16 %v904_v59, %v900_v58  ;;  %v3320_v4 = vpack.c.bf16 %v911_v63, %v907_v60  ;;  %v942_v58 = vld [vmem:[%s7967_s1 + $0x1ca0] sm:$0xff]  ;;  %v947_v60 = vld [vmem:[%s7967_s1 + $0x1cc8] sm:$0xff] }
 0x1a8   :  { %3877 = vmatprep.subr.bf16.mxu1 %v3876_v7  ;;  %v3896_v7 = vpack.c.bf16 %v913_v1, %v909_v0  ;;  %v951_v63 = vld [vmem:[%s7967_s1 + $0x1ce8] sm:$0xff]  ;;  %v949_v0 = vld [vmem:[%s7967_s1 + $0x1cd8] sm:$0xff] }
 0x1a9   :  { %v953_v1 = vld [vmem:[%s7967_s1 + $0x1cf8] sm:$0xff] }
 0x1aa   :  { %3303 = vmatpush1.bf16.msra.mxu0 %v3302_v15  ;;  %v3322_v15 = vpack.c.bf16 %v910_v6, %v906_v5  ;;  %v946_v5 = vld [vmem:[%s7967_s1 + $0x1cc0] sm:$0xff] }
 0x1ab   :  { %3879 = vmatpush1.bf16.msra.mxu1 %v3878_v16  ;;  %3305 = vmatprep.subr.bf16.mxu0 %v3304_v17  ;;  %v3898_v16 = vpack.c.bf16 %v912_v8, %v908_v51  ;;  %v3324_v17 = vpack.c.bf16 %v919_v9, %v915_v45  ;;  %v950_v6 = vld [vmem:[%s7967_s1 + $0x1ce0] sm:$0xff]  ;;  %v948_v51 = vld [vmem:[%s7967_s1 + $0x1cd0] sm:$0xff]  ;;  %v955_v45 = vld [vmem:[%s7967_s1 + $0x1d08] sm:$0xff] }
 0x1ac   :  { %3881 = vmatprep.subr.bf16.mxu1 %v3880_v50  ;;  %v3900_v50 = vpack.c.bf16 %v921_v14, %v917_v10  ;;  %v952_v8 = vld [vmem:[%s7967_s1 + $0x1cf0] sm:$0xff]  ;;  %v959_v9 = vld [vmem:[%s7967_s1 + $0x1d28] sm:$0xff]  ;;  %v957_v10 = vld [vmem:[%s7967_s1 + $0x1d18] sm:$0xff] }
 0x1ad   :  { %v961_v14 = vld [vmem:[%s7967_s1 + $0x1d38] sm:$0xff] }
 0x1ae   :  { %3307 = vmatpush1.bf16.msra.mxu0 %v3306_v29  ;;  %v929_v29 = vld [vmem:[%s7967_s1 + $0x1c38] sm:$0xff] }
 0x1af   :  { %3883 = vmatpush1.bf16.msra.mxu1 %v3882_v30  ;;  %3309 = vmatprep.subr.bf16.mxu0 %v3308_v31  ;;  %v3326_v30 = vpack.c.bf16 %v918_v19, %v914_v18  ;;  %v3902_v31 = vpack.c.bf16 %v920_v21, %v916_v20  ;;  %v954_v18 = vld [vmem:[%s7967_s1 + $0x1d00] sm:$0xff]  ;;  %v956_v20 = vld [vmem:[%s7967_s1 + $0x1d10] sm:$0xff] }
 0x1b0   :  { %3885 = vmatprep.subr.bf16.mxu1 %v3884_v35  ;;  %v3904_v35 = vpack.c.bf16 %v929_v29, %v925_v28  ;;  %v958_v19 = vld [vmem:[%s7967_s1 + $0x1d20] sm:$0xff]  ;;  %v960_v21 = vld [vmem:[%s7967_s1 + $0x1d30] sm:$0xff]  ;;  %v969_v28 = vld [vmem:[%s7967_s1 + $0x1d78] sm:$0xff] }
 0x1b1   :  { %v3346_v29 = vpack.c.bf16 %v958_v19, %v954_v18  ;;  %v996_v18 = vld [vmem:[%s7967_s1 + $0x1e50] sm:$0xff] }
 0x1b2   :  { %3311 = vmatpush1.bf16.msra.mxu0 %v3310_v41  ;;  %v937_v41 = vld [vmem:[%s7967_s1 + $0x1c78] sm:$0xff] }
 0x1b3   :  { %3887 = vmatpush1.bf16.msra.mxu1 %v3886_v42  ;;  %3313 = vmatprep.subr.bf16.mxu0 %v3312_v43  ;;  %v3330_v42 = vpack.c.bf16 %v926_v13, %v922_v33  ;;  %v3906_v43 = vpack.c.bf16 %v928_v62, %v924_v34  ;;  %v966_v33 = vld [vmem:[%s7967_s1 + $0x1d60] sm:$0xff]  ;;  %v964_v13 = vld [vmem:[%s7967_s1 + $0x1d50] sm:$0xff]  ;;  %v3924_v34 = vpack.c.bf16 %v969_v28, %v965_v27  ;;  %v971_v62 = vld [vmem:[%s7967_s1 + $0x1d88] sm:$0xff] }
 0x1b4   :  { %3889 = vmatprep.subr.bf16.mxu1 %v3888_v47  ;;  %v3908_v47 = vpack.c.bf16 %v937_v41, %v933_v40  ;;  %v977_v40 = vld [vmem:[%s7967_s1 + $0x1db8] sm:$0xff] }
 0x1b6   :  { %3315 = vmatpush1.bf16.msra.mxu0 %v3314_v53  ;;  %v945_v53 = vld [vmem:[%s7967_s1 + $0x1cb8] sm:$0xff] }
 0x1b7   :  { %3891 = vmatpush1.bf16.msra.mxu1 %v3890_v54  ;;  %3317 = vmatprep.subr.bf16.mxu0 %v3316_v55  ;;  %v3334_v54 = vpack.c.bf16 %v934_v11, %v930_v39  ;;  %v3910_v55 = vpack.c.bf16 %v936_v12, %v932_v46  ;;  %v3912_v59 = vpack.c.bf16 %v945_v53, %v941_v52  ;;  %v974_v39 = vld [vmem:[%s7967_s1 + $0x1da0] sm:$0xff]  ;;  %v972_v11 = vld [vmem:[%s7967_s1 + $0x1d90] sm:$0xff]  ;;  %v979_v12 = vld [vmem:[%s7967_s1 + $0x1dc8] sm:$0xff] }
 0x1b8   :  { %3893 = vmatprep.subr.bf16.mxu1 %v3892_v24  ;;  %v940_v24 = vld [vmem:[%s7967_s1 + $0x1c90] sm:$0xff]  ;;  %v3928_v46 = vpack.c.bf16 %v977_v40, %v973_v37 }
 0x1ba   :  { %3319 = vmatpush1.bf16.msra.mxu0 %v3318_v2  ;;  %v3338_v2 = vpack.c.bf16 %v942_v58, %v938_v57  ;;  %v980_v57 = vld [vmem:[%s7967_s1 + $0x1dd0] sm:$0xff] }
 0x1bb   :  { %3895 = vmatpush1.bf16.msra.mxu1 %v3894_v3  ;;  %3321 = vmatprep.subr.bf16.mxu0 %v3320_v4  ;;  %v3340_v4 = vpack.c.bf16 %v951_v63, %v947_v60  ;;  %v989_v60 = vld [vmem:[%s7967_s1 + $0x1e18] sm:$0xff] }
 0x1bc   :  { %3897 = vmatprep.subr.bf16.mxu1 %v3896_v7  ;;  %v3916_v7 = vpack.c.bf16 %v953_v1, %v949_v0  ;;  %v993_v63 = vld [vmem:[%s7967_s1 + $0x1e38] sm:$0xff] }
 0x1be   :  { %3323 = vmatpush1.bf16.msra.mxu0 %v3322_v15  ;;  %v3342_v15 = vpack.c.bf16 %v950_v6, %v946_v5  ;;  %v988_v5 = vld [vmem:[%s7967_s1 + $0x1e10] sm:$0xff]  ;;  %v3936_v6 = vpack.c.bf16 %v993_v63, %v989_v60 }
 0x1bf   :  { %3899 = vmatpush1.bf16.msra.mxu1 %v3898_v16  ;;  %3325 = vmatprep.subr.bf16.mxu0 %v3324_v17  ;;  %v3918_v16 = vpack.c.bf16 %v952_v8, %v948_v51  ;;  %v3344_v17 = vpack.c.bf16 %v959_v9, %v955_v45  ;;  %v992_v51 = vld [vmem:[%s7967_s1 + $0x1e30] sm:$0xff]  ;;  %v999_v8 = vld [vmem:[%s7967_s1 + $0x1e68] sm:$0xff]  ;;  %v997_v45 = vld [vmem:[%s7967_s1 + $0x1e58] sm:$0xff] }
 0x1c0   :  { %3901 = vmatprep.subr.bf16.mxu1 %v3900_v50  ;;  %v3920_v50 = vpack.c.bf16 %v961_v14, %v957_v10  ;;  %v1001_v9 = vld [vmem:[%s7967_s1 + $0x1e78] sm:$0xff]  ;;  %v3938_v14 = vpack.c.bf16 %v992_v51, %v988_v5  ;;  %v1032_v5 = vld [vmem:[%s7967_s1 + $0x1f70] sm:$0xff]  ;;  %v1039_v51 = vld [vmem:[%s7967_s1 + $0x1fa8] sm:$0xff] }
 0x1c1   :  { %v3940_v19 = vpack.c.bf16 %v1001_v9, %v997_v45 }
 0x1c2   :  { %3327 = vmatpush1.bf16.msra.mxu0 %v3326_v30  ;;  %v3922_v30 = vpack.c.bf16 %v960_v21, %v956_v20  ;;  %v1000_v20 = vld [vmem:[%s7967_s1 + $0x1e70] sm:$0xff]  ;;  %v1007_v21 = vld [vmem:[%s7967_s1 + $0x1ea8] sm:$0xff] }
 0x1c3   :  { %3903 = vmatpush1.bf16.msra.mxu1 %v3902_v31  ;;  %3329 = vmatprep.subr.bf16.mxu0 %v3328_v32  ;;  %v3348_v31 = vpack.c.bf16 %v967_v26, %v963_v22  ;;  %v962_v32 = vld [vmem:[%s7967_s1 + $0x1d40] sm:$0xff]  ;;  %v1005_v22 = vld [vmem:[%s7967_s1 + $0x1e98] sm:$0xff]  ;;  %v3942_v28 = vpack.c.bf16 %v1000_v20, %v996_v18  ;;  %v1040_v18 = vld [vmem:[%s7967_s1 + $0x1fb0] sm:$0xff] }
 0x1c4   :  { %3905 = vmatprep.subr.bf16.mxu1 %v3904_v35  ;;  %v968_v35 = vld [vmem:[%s7967_s1 + $0x1d70] sm:$0xff]  ;;  %v3350_v41 = vpack.c.bf16 %v966_v33, %v962_v32  ;;  %v1009_v26 = vld [vmem:[%s7967_s1 + $0x1eb8] sm:$0xff]  ;;  %v1047_v20 = vld [vmem:[%s7967_s1 + $0x1fe8] sm:$0xff] }
 0x1c5   :  { %1790 = vmatmul.mubr.f32.vlgmr.msra.gmra.mrb[0].mxu0 %v6604_v23  ;;  %v1004_v32 = vld [vmem:[%s7967_s1 + $0x1e90] sm:$0xff]  ;;  %v3944_v33 = vpack.c.bf16 %v1009_v26, %v1005_v22 }
 0x1c6   :  { %3331 = vmatpush1.bf16.msra.mxu0 %v3330_v42  ;;  %2429 = vmatmul.mubr.f32.vlgmr.msra.gmra.mrb[0].mxu1 %v6604_v23  ;;  %v944_v23 = vld [vmem:[%s7967_s1 + $0x1cb0] sm:$0xff]  ;;  %v3926_v42 = vpack.c.bf16 %v968_v35, %v964_v13  ;;  %v1015_v35 = vld [vmem:[%s7967_s1 + $0x1ee8] sm:$0xff] }
 0x1c7   :  { %3907 = vmatpush1.bf16.msra.mxu1 %v3906_v43  ;;  %3333 = vmatprep.subr.bf16.mxu0 %v3332_v44  ;;  %v3914_v3 = vpack.c.bf16 %v944_v23, %v940_v24  ;;  %v3352_v43 = vpack.c.bf16 %v975_v36, %v971_v62  ;;  %v970_v44 = vld [vmem:[%s7967_s1 + $0x1d80] sm:$0xff]  ;;  %v984_v24 = vld [vmem:[%s7967_s1 + $0x1df0] sm:$0xff]  ;;  %v991_v23 = vld [vmem:[%s7967_s1 + $0x1e28] sm:$0xff] }
 0x1c8   :  { %3909 = vmatprep.subr.bf16.mxu1 %v3908_v47  ;;  %1860 = vmatprep.mubr.f32.mxu0 %v1272_v49  ;;  %v976_v47 = vld [vmem:[%s7967_s1 + $0x1db0] sm:$0xff]  ;;  %v3354_v52 = vpack.c.bf16 %v974_v39, %v970_v44  ;;  %v3934_v1 = vpack.c.bf16 %v984_v24, %v980_v57  ;;  %v1013_v62 = vld [vmem:[%s7967_s1 + $0x1ed8] sm:$0xff]  ;;  %v1031_v24 = vld [vmem:[%s7967_s1 + $0x1f68] sm:$0xff] }
 0x1c9   :  { %2499 = vmatprep.mubr.f32.mxu1 %v1272_v49  ;;  %v985_v49 = vld [vmem:[%s7967_s1 + $0x1df8] sm:$0xff]  ;;  %v3930_v53 = vpack.c.bf16 %v976_v47, %v972_v11  ;;  %v1008_v13 = vld [vmem:[%s7967_s1 + $0x1eb0] sm:$0xff]  ;;  %v1023_v47 = vld [vmem:[%s7967_s1 + $0x1f28] sm:$0xff] }
 0x1ca   :  { %3335 = vmatpush1.bf16.msra.mxu0 %v3334_v54  ;;  %v3356_v54 = vpack.c.bf16 %v983_v25, %v979_v12  ;;  %v3932_v58 = vpack.c.bf16 %v985_v49, %v981_v48  ;;  %v1017_v36 = vld [vmem:[%s7967_s1 + $0x1ef8] sm:$0xff]  ;;  %v3946_v40 = vpack.c.bf16 %v1008_v13, %v1004_v32  ;;  %v1012_v44 = vld [vmem:[%s7967_s1 + $0x1ed0] sm:$0xff]  ;;  %v1055_v13 = vld [vmem:[%s7967_s1 + $0x2028] sm:$0xff] }
 0x1cb   :  { %3911 = vmatpush1.bf16.msra.mxu1 %v3910_v55  ;;  %3337 = vmatprep.subr.bf16.mxu0 %v3336_v56  ;;  %v978_v55 = vld [vmem:[%s7967_s1 + $0x1dc0] sm:$0xff]  ;;  %v3948_v39 = vpack.c.bf16 %v1017_v36, %v1013_v62  ;;  %v1016_v11 = vld [vmem:[%s7967_s1 + $0x1ef0] sm:$0xff]  ;;  %v1021_v12 = vld [vmem:[%s7967_s1 + $0x1f18] sm:$0xff] }
 0x1cc   :  { %3913 = vmatprep.subr.bf16.mxu1 %v3912_v59  ;;  %v982_v56 = vld [vmem:[%s7967_s1 + $0x1de0] sm:$0xff]  ;;  %v987_v59 = vld [vmem:[%s7967_s1 + $0x1e08] sm:$0xff]  ;;  %v1025_v25 = vld [vmem:[%s7967_s1 + $0x1f38] sm:$0xff]  ;;  %v3950_v49 = vpack.c.bf16 %v1016_v11, %v1012_v44 }
 0x1cd   :  { %v3358_v0 = vpack.c.bf16 %v982_v56, %v978_v55  ;;  %v1020_v55 = vld [vmem:[%s7967_s1 + $0x1f10] sm:$0xff]  ;;  %v3952_v56 = vpack.c.bf16 %v1025_v25, %v1021_v12  ;;  %v1063_v11 = vld [vmem:[%s7967_s1 + $0x2068] sm:$0xff]  ;;  %v7396_v12 = vld.sshfl [vmem:[%s7966_s0 + $0x20] sm:$0x33 pattern:$0x76325410] }
 0x1ce   :  { %3339 = vmatpush1.bf16.msra.mxu0 %v3338_v2  ;;  %v3360_v2 = vpack.c.bf16 %v991_v23, %v987_v59  ;;  %v1024_v57 = vld [vmem:[%s7967_s1 + $0x1f30] sm:$0xff]  ;;  %v1029_v59 = vld [vmem:[%s7967_s1 + $0x1f58] sm:$0xff] }
 0x1cf   :  { %3915 = vmatpush1.bf16.msra.mxu1 %v3914_v3  ;;  %3341 = vmatprep.subr.bf16.mxu0 %v3340_v4  ;;  %v986_v3 = vld [vmem:[%s7967_s1 + $0x1e00] sm:$0xff]  ;;  %v1033_v23 = vld [vmem:[%s7967_s1 + $0x1f78] sm:$0xff]  ;;  %v3954_v63 = vpack.c.bf16 %v1024_v57, %v1020_v55  ;;  %v1048_v32 = vld [vmem:[%s7967_s1 + $0x1ff0] sm:$0xff] }
 0x1d0   :  { %3917 = vmatprep.subr.bf16.mxu1 %v3916_v7  ;;  %v990_v4 = vld [vmem:[%s7967_s1 + $0x1e20] sm:$0xff]  ;;  %v995_v7 = vld [vmem:[%s7967_s1 + $0x1e48] sm:$0xff]  ;;  %v1056_v44 = vld [vmem:[%s7967_s1 + $0x2030] sm:$0xff] }
 0x1d1   :  { %v3362_v10 = vpack.c.bf16 %v990_v4, %v986_v3  ;;  %v1028_v3 = vld [vmem:[%s7967_s1 + $0x1f50] sm:$0xff]  ;;  %v3956_v4 = vpack.c.bf16 %v1033_v23, %v1029_v59  ;;  %v1067_v57 = vld [vmem:[%s7967_s1 + $0x2088] sm:$0xff]  ;;  %v1069_v59 = vld [vmem:[%s7967_s1 + $0x2098] sm:$0xff] }
 0x1d2   :  { %3343 = vmatpush1.bf16.msra.mxu0 %v3342_v15  ;;  %v3364_v15 = vpack.c.bf16 %v999_v8, %v995_v7  ;;  %v1037_v7 = vld [vmem:[%s7967_s1 + $0x1f98] sm:$0xff]  ;;  %v3958_v9 = vpack.c.bf16 %v1032_v5, %v1028_v3  ;;  %v1068_v3 = vld [vmem:[%s7967_s1 + $0x2090] sm:$0xff]  ;;  %v1075_v5 = vld [vmem:[%s7967_s1 + $0x20c8] sm:$0xff] }
 0x1d3   :  { %3919 = vmatpush1.bf16.msra.mxu1 %v3918_v16  ;;  %3345 = vmatprep.subr.bf16.mxu0 %v3344_v17  ;;  %v994_v16 = vld [vmem:[%s7967_s1 + $0x1e40] sm:$0xff]  ;;  %v1041_v8 = vld [vmem:[%s7967_s1 + $0x1fb8] sm:$0xff] }
 0x1d4   :  { %3921 = vmatprep.subr.bf16.mxu1 %v3920_v50  ;;  %v998_v17 = vld [vmem:[%s7967_s1 + $0x1e60] sm:$0xff]  ;;  %v1003_v50 = vld [vmem:[%s7967_s1 + $0x1e88] sm:$0xff]  ;;  %v1073_v23 = vld [vmem:[%s7967_s1 + $0x20b8] sm:$0xff] }
 0x1d5   :  { %v3366_v27 = vpack.c.bf16 %v998_v17, %v994_v16  ;;  %v1036_v16 = vld [vmem:[%s7967_s1 + $0x1f90] sm:$0xff]  ;;  %v3960_v17 = vpack.c.bf16 %v1041_v8, %v1037_v7  ;;  %v1081_v7 = vld [vmem:[%s7967_s1 + $0x20f8] sm:$0xff] }
 0x1d6   :  { %3347 = vmatpush1.bf16.msra.mxu0 %v3346_v29  ;;  %v3368_v29 = vpack.c.bf16 %v1007_v21, %v1003_v50  ;;  %v1045_v50 = vld [vmem:[%s7967_s1 + $0x1fd8] sm:$0xff]  ;;  %v3962_v26 = vpack.c.bf16 %v1040_v18, %v1036_v16  ;;  %v1083_v18 = vld [vmem:[%s7967_s1 + $0x2108] sm:$0xff] }
 0x1d7   :  { %3923 = vmatpush1.bf16.msra.mxu1 %v3922_v30  ;;  %3349 = vmatprep.subr.bf16.mxu0 %v3348_v31  ;;  %v1002_v30 = vld [vmem:[%s7967_s1 + $0x1e80] sm:$0xff]  ;;  %v1049_v21 = vld [vmem:[%s7967_s1 + $0x1ff8] sm:$0xff] }
 0x1d8   :  { %3925 = vmatprep.subr.bf16.mxu1 %v3924_v34  ;;  %v1006_v31 = vld [vmem:[%s7967_s1 + $0x1ea0] sm:$0xff]  ;;  %v1011_v34 = vld [vmem:[%s7967_s1 + $0x1ec8] sm:$0xff] }
 0x1d9   :  { %v3370_v37 = vpack.c.bf16 %v1006_v31, %v1002_v30  ;;  %v1044_v30 = vld [vmem:[%s7967_s1 + $0x1fd0] sm:$0xff]  ;;  %v3964_v31 = vpack.c.bf16 %v1049_v21, %v1045_v50  ;;  %v1089_v50 = vld [vmem:[%s7967_s1 + $0x2138] sm:$0xff] }
 0x1da   :  { %3351 = vmatpush1.bf16.msra.mxu0 %v3350_v41  ;;  %v3372_v41 = vpack.c.bf16 %v1015_v35, %v1011_v34  ;;  %v1053_v34 = vld [vmem:[%s7967_s1 + $0x2018] sm:$0xff]  ;;  %v3966_v36 = vpack.c.bf16 %v1048_v32, %v1044_v30  ;;  %v1091_v32 = vld [vmem:[%s7967_s1 + $0x2148] sm:$0xff] }
 0x1db   :  { %3927 = vmatpush1.bf16.msra.mxu1 %v3926_v42  ;;  %3353 = vmatprep.subr.bf16.mxu0 %v3352_v43  ;;  %v1010_v42 = vld [vmem:[%s7967_s1 + $0x1ec0] sm:$0xff]  ;;  %v1057_v35 = vld [vmem:[%s7967_s1 + $0x2038] sm:$0xff] }
 0x1dc   :  { %3929 = vmatprep.subr.bf16.mxu1 %v3928_v46  ;;  %v1014_v43 = vld [vmem:[%s7967_s1 + $0x1ee0] sm:$0xff]  ;;  %v1019_v46 = vld [vmem:[%s7967_s1 + $0x1f08] sm:$0xff] }
 0x1dd   :  { %v3374_v48 = vpack.c.bf16 %v1014_v43, %v1010_v42  ;;  %v1052_v42 = vld [vmem:[%s7967_s1 + $0x2010] sm:$0xff]  ;;  %v3968_v43 = vpack.c.bf16 %v1057_v35, %v1053_v34  ;;  %v1097_v34 = vld [vmem:[%s7967_s1 + $0x2178] sm:$0xff] }
 0x1de   :  { %3355 = vmatpush1.bf16.msra.mxu0 %v3354_v52  ;;  %v3376_v52 = vpack.c.bf16 %v1023_v47, %v1019_v46  ;;  %v1061_v46 = vld [vmem:[%s7967_s1 + $0x2058] sm:$0xff] }
 0x1df   :  { %3931 = vmatpush1.bf16.msra.mxu1 %v3930_v53  ;;  %3357 = vmatprep.subr.bf16.mxu0 %v3356_v54  ;;  %v1018_v53 = vld [vmem:[%s7967_s1 + $0x1f00] sm:$0xff]  ;;  %v1065_v47 = vld [vmem:[%s7967_s1 + $0x2078] sm:$0xff] }
 0x1e0   :  { %3933 = vmatprep.subr.bf16.mxu1 %v3932_v58  ;;  %v1022_v54 = vld [vmem:[%s7967_s1 + $0x1f20] sm:$0xff]  ;;  %v1027_v58 = vld [vmem:[%s7967_s1 + $0x1f48] sm:$0xff]  ;;  %v3972_v55 = vpack.c.bf16 %v1065_v47, %v1061_v46  ;;  %v1105_v46 = vld [vmem:[%s7967_s1 + $0x21b8] sm:$0xff] }
 0x1e1   :  { %v3378_v60 = vpack.c.bf16 %v1022_v54, %v1018_v53  ;;  %v1062_v53 = vld [vmem:[%s7967_s1 + $0x2060] sm:$0xff]  ;;  %v1060_v54 = vld [vmem:[%s7967_s1 + $0x2050] sm:$0xff] }
 0x1e2   :  { %3359 = vmatpush1.bf16.msra.mxu0 %v3358_v0  ;;  %v3380_v0 = vpack.c.bf16 %v1031_v24, %v1027_v58  ;;  %v1071_v58 = vld [vmem:[%s7967_s1 + $0x20a8] sm:$0xff]  ;;  %v1280_v24 = vcombine.high %v7396_v12, %v7396_v12 }
 0x1e3   :  { %3935 = vmatpush1.bf16.msra.mxu1 %v3934_v1  ;;  %3361 = vmatprep.subr.bf16.mxu0 %v3360_v2  ;;  %v1026_v1 = vld [vmem:[%s7967_s1 + $0x1f40] sm:$0xff] }
 0x1e4   :  { %3937 = vmatprep.subr.bf16.mxu1 %v3936_v6  ;;  %v1030_v2 = vld [vmem:[%s7967_s1 + $0x1f60] sm:$0xff]  ;;  %v1035_v6 = vld [vmem:[%s7967_s1 + $0x1f88] sm:$0xff] }
 0x1e5   :  { %v3382_v45 = vpack.c.bf16 %v1030_v2, %v1026_v1  ;;  %v1066_v1 = vld [vmem:[%s7967_s1 + $0x2080] sm:$0xff] }
 0x1e6   :  { %3363 = vmatpush1.bf16.msra.mxu0 %v3362_v10  ;;  %v3384_v10 = vpack.c.bf16 %v1039_v51, %v1035_v6  ;;  %v1070_v2 = vld [vmem:[%s7967_s1 + $0x20a0] sm:$0xff]  ;;  %v1079_v6 = vld [vmem:[%s7967_s1 + $0x20e8] sm:$0xff]  ;;  %v1077_v51 = vld [vmem:[%s7967_s1 + $0x20d8] sm:$0xff] }
 0x1e7   :  { %3939 = vmatpush1.bf16.msra.mxu1 %v3938_v14  ;;  %3365 = vmatprep.subr.bf16.mxu0 %v3364_v15  ;;  %v1034_v14 = vld [vmem:[%s7967_s1 + $0x1f80] sm:$0xff]  ;;  %v3402_v8 = vpack.c.bf16 %v1070_v2, %v1066_v1  ;;  %v3980_v16 = vpack.c.bf16 %v1081_v7, %v1077_v51  ;;  %v1108_v1 = vld [vmem:[%s7967_s1 + $0x21d0] sm:$0xff] }
 0x1e8   :  { %3941 = vmatprep.subr.bf16.mxu1 %v3940_v19  ;;  %v1038_v15 = vld [vmem:[%s7967_s1 + $0x1fa0] sm:$0xff]  ;;  %v1043_v19 = vld [vmem:[%s7967_s1 + $0x1fc8] sm:$0xff] }
 0x1e9   :  { %v3386_v22 = vpack.c.bf16 %v1038_v15, %v1034_v14  ;;  %v1078_v14 = vld [vmem:[%s7967_s1 + $0x20e0] sm:$0xff]  ;;  %v1076_v15 = vld [vmem:[%s7967_s1 + $0x20d0] sm:$0xff] }
 0x1ea   :  { %3367 = vmatpush1.bf16.msra.mxu0 %v3366_v27  ;;  %v3388_v27 = vpack.c.bf16 %v1047_v20, %v1043_v19  ;;  %v1087_v19 = vld [vmem:[%s7967_s1 + $0x2128] sm:$0xff]  ;;  %v1085_v20 = vld [vmem:[%s7967_s1 + $0x2118] sm:$0xff] }
 0x1eb   :  { %3943 = vmatpush1.bf16.msra.mxu1 %v3942_v28  ;;  %3369 = vmatprep.subr.bf16.mxu0 %v3368_v29  ;;  %v1042_v28 = vld [vmem:[%s7967_s1 + $0x1fc0] sm:$0xff]  ;;  %v3984_v30 = vpack.c.bf16 %v1089_v50, %v1085_v20 }
 0x1ec   :  { %3945 = vmatprep.subr.bf16.mxu1 %v3944_v33  ;;  %v1046_v29 = vld [vmem:[%s7967_s1 + $0x1fe0] sm:$0xff]  ;;  %v1051_v33 = vld [vmem:[%s7967_s1 + $0x2008] sm:$0xff] }
 0x1ed   :  { %v3390_v62 = vpack.c.bf16 %v1046_v29, %v1042_v28  ;;  %v1086_v28 = vld [vmem:[%s7967_s1 + $0x2120] sm:$0xff]  ;;  %v1084_v29 = vld [vmem:[%s7967_s1 + $0x2110] sm:$0xff] }
 0x1ee   :  { %3371 = vmatpush1.bf16.msra.mxu0 %v3370_v37  ;;  %v3392_v37 = vpack.c.bf16 %v1055_v13, %v1051_v33  ;;  %v1095_v33 = vld [vmem:[%s7967_s1 + $0x2168] sm:$0xff]  ;;  %v1093_v13 = vld [vmem:[%s7967_s1 + $0x2158] sm:$0xff] }
 0x1ef   :  { %3947 = vmatpush1.bf16.msra.mxu1 %v3946_v40  ;;  %3373 = vmatprep.subr.bf16.mxu0 %v3372_v41  ;;  %v1050_v40 = vld [vmem:[%s7967_s1 + $0x2000] sm:$0xff] }
 0x1f0   :  { %3949 = vmatprep.subr.bf16.mxu1 %v3948_v39  ;;  %v1054_v41 = vld [vmem:[%s7967_s1 + $0x2020] sm:$0xff]  ;;  %v1059_v39 = vld [vmem:[%s7967_s1 + $0x2048] sm:$0xff] }
 0x1f1   :  { %v3394_v25 = vpack.c.bf16 %v1054_v41, %v1050_v40  ;;  %v1094_v40 = vld [vmem:[%s7967_s1 + $0x2160] sm:$0xff]  ;;  %v1092_v41 = vld [vmem:[%s7967_s1 + $0x2150] sm:$0xff] }
 0x1f2   :  { %3375 = vmatpush1.bf16.msra.mxu0 %v3374_v48  ;;  %v3970_v48 = vpack.c.bf16 %v1056_v44, %v1052_v42  ;;  %v3988_v42 = vpack.c.bf16 %v1097_v34, %v1093_v13  ;;  %v1099_v44 = vld [vmem:[%s7967_s1 + $0x2188] sm:$0xff] }
 0x1f3   :  { %3951 = vmatpush1.bf16.msra.mxu1 %v3950_v49  ;;  %3377 = vmatprep.subr.bf16.mxu0 %v3376_v52  ;;  %v3396_v49 = vpack.c.bf16 %v1063_v11, %v1059_v39  ;;  %v1058_v52 = vld [vmem:[%s7967_s1 + $0x2040] sm:$0xff]  ;;  %v1103_v39 = vld [vmem:[%s7967_s1 + $0x21a8] sm:$0xff]  ;;  %v1101_v11 = vld [vmem:[%s7967_s1 + $0x2198] sm:$0xff] }
 0x1f4   :  { %3953 = vmatprep.subr.bf16.mxu1 %v3952_v56  ;;  %v1064_v56 = vld [vmem:[%s7967_s1 + $0x2070] sm:$0xff] }
 0x1f6   :  { %3379 = vmatpush1.bf16.msra.mxu0 %v3378_v60  ;;  %v3398_v60 = vpack.c.bf16 %v1062_v53, %v1058_v52  ;;  %v1102_v52 = vld [vmem:[%s7967_s1 + $0x21a0] sm:$0xff]  ;;  %v1100_v53 = vld [vmem:[%s7967_s1 + $0x2190] sm:$0xff] }
 0x1f7   :  { %3955 = vmatpush1.bf16.msra.mxu1 %v3954_v63  ;;  %3381 = vmatprep.subr.bf16.mxu0 %v3380_v0  ;;  %v3974_v63 = vpack.c.bf16 %v1064_v56, %v1060_v54  ;;  %v3400_v0 = vpack.c.bf16 %v1071_v58, %v1067_v57  ;;  %v3992_v54 = vpack.c.bf16 %v1105_v46, %v1101_v11  ;;  %v1107_v56 = vld [vmem:[%s7967_s1 + $0x21c8] sm:$0xff]  ;;  %v1109_v58 = vld [vmem:[%s7967_s1 + $0x21d8] sm:$0xff] }
 0x1f8   :  { %3957 = vmatprep.subr.bf16.mxu1 %v3956_v4  ;;  %v3976_v4 = vpack.c.bf16 %v1073_v23, %v1069_v59  ;;  %v1111_v57 = vld [vmem:[%s7967_s1 + $0x21e8] sm:$0xff] }
 0x1fa   :  { %3383 = vmatpush1.bf16.msra.mxu0 %v3382_v45 }
 0x1fb   :  { %3959 = vmatpush1.bf16.msra.mxu1 %v3958_v9  ;;  %3385 = vmatprep.subr.bf16.mxu0 %v3384_v10  ;;  %v3404_v9 = vpack.c.bf16 %v1079_v6, %v1075_v5  ;;  %v1074_v10 = vld [vmem:[%s7967_s1 + $0x20c0] sm:$0xff]  ;;  %v1117_v5 = vld [vmem:[%s7967_s1 + $0x2218] sm:$0xff] }
 0x1fc   :  { %3961 = vmatprep.subr.bf16.mxu1 %v3960_v17  ;;  %v1080_v17 = vld [vmem:[%s7967_s1 + $0x20f0] sm:$0xff]  ;;  %v3406_v21 = vpack.c.bf16 %v1078_v14, %v1074_v10  ;;  %v1121_v6 = vld [vmem:[%s7967_s1 + $0x2238] sm:$0xff] }
 0x1fd   :  { %v1116_v10 = vld [vmem:[%s7967_s1 + $0x2210] sm:$0xff]  ;;  %v4000_v14 = vpack.c.bf16 %v1121_v6, %v1117_v5 }
 0x1fe   :  { %3387 = vmatpush1.bf16.msra.mxu0 %v3386_v22  ;;  %v3982_v22 = vpack.c.bf16 %v1080_v17, %v1076_v15  ;;  %v1120_v15 = vld [vmem:[%s7967_s1 + $0x2230] sm:$0xff]  ;;  %v1127_v17 = vld [vmem:[%s7967_s1 + $0x2268] sm:$0xff] }
 0x1ff   :  { %3963 = vmatpush1.bf16.msra.mxu1 %v3962_v26  ;;  %3389 = vmatprep.subr.bf16.mxu0 %v3388_v27  ;;  %v3408_v26 = vpack.c.bf16 %v1087_v19, %v1083_v18  ;;  %v1082_v27 = vld [vmem:[%s7967_s1 + $0x2100] sm:$0xff]  ;;  %v1125_v18 = vld [vmem:[%s7967_s1 + $0x2258] sm:$0xff]  ;;  %v4002_v50 = vpack.c.bf16 %v1120_v15, %v1116_v10  ;;  %v1160_v10 = vld [vmem:[%s7967_s1 + $0x2370] sm:$0xff] }
 0x200   :  { %3965 = vmatprep.subr.bf16.mxu1 %v3964_v31  ;;  %v1088_v31 = vld [vmem:[%s7967_s1 + $0x2130] sm:$0xff]  ;;  %v3410_v35 = vpack.c.bf16 %v1086_v28, %v1082_v27  ;;  %v1129_v19 = vld [vmem:[%s7967_s1 + $0x2278] sm:$0xff]  ;;  %v1167_v15 = vld [vmem:[%s7967_s1 + $0x23a8] sm:$0xff] }
 0x201   :  { %v1124_v27 = vld [vmem:[%s7967_s1 + $0x2250] sm:$0xff]  ;;  %v4004_v28 = vpack.c.bf16 %v1129_v19, %v1125_v18 }
 0x202   :  { %3391 = vmatpush1.bf16.msra.mxu0 %v3390_v62  ;;  %v3986_v62 = vpack.c.bf16 %v1088_v31, %v1084_v29  ;;  %v1128_v29 = vld [vmem:[%s7967_s1 + $0x2270] sm:$0xff]  ;;  %v1135_v31 = vld [vmem:[%s7967_s1 + $0x22a8] sm:$0xff] }
 0x203   :  { %3967 = vmatpush1.bf16.msra.mxu1 %v3966_v36  ;;  %3393 = vmatprep.subr.bf16.mxu0 %v3392_v37  ;;  %v3412_v36 = vpack.c.bf16 %v1095_v33, %v1091_v32  ;;  %v1090_v37 = vld [vmem:[%s7967_s1 + $0x2140] sm:$0xff]  ;;  %v1133_v32 = vld [vmem:[%s7967_s1 + $0x2298] sm:$0xff]  ;;  %v4006_v34 = vpack.c.bf16 %v1128_v29, %v1124_v27  ;;  %v1168_v27 = vld [vmem:[%s7967_s1 + $0x23b0] sm:$0xff] }
 0x204   :  { %3969 = vmatprep.subr.bf16.mxu1 %v3968_v43  ;;  %v1096_v43 = vld [vmem:[%s7967_s1 + $0x2170] sm:$0xff]  ;;  %v3414_v47 = vpack.c.bf16 %v1094_v40, %v1090_v37  ;;  %v1137_v33 = vld [vmem:[%s7967_s1 + $0x22b8] sm:$0xff]  ;;  %v1175_v29 = vld [vmem:[%s7967_s1 + $0x23e8] sm:$0xff] }
 0x205   :  { %1861 = vmatmul.mubr.f32.vlgmr.msra.gmra.mrb[0].mxu0 %v6997_v38  ;;  %v1132_v37 = vld [vmem:[%s7967_s1 + $0x2290] sm:$0xff]  ;;  %v4008_v40 = vpack.c.bf16 %v1137_v33, %v1133_v32 }
 0x206   :  { %3395 = vmatpush1.bf16.msra.mxu0 %v3394_v25  ;;  %2500 = vmatmul.mubr.f32.vlgmr.msra.gmra.mrb[0].mxu1 %v6997_v38  ;;  %v1072_v38 = vld [vmem:[%s7967_s1 + $0x20b0] sm:$0xff]  ;;  %v3990_v25 = vpack.c.bf16 %v1096_v43, %v1092_v41  ;;  %v1143_v43 = vld [vmem:[%s7967_s1 + $0x22e8] sm:$0xff] }
 0x207   :  { %3971 = vmatpush1.bf16.msra.mxu1 %v3970_v48  ;;  %3397 = vmatprep.subr.bf16.mxu0 %v3396_v49  ;;  %v3978_v45 = vpack.c.bf16 %v1072_v38, %v1068_v3  ;;  %v3416_v48 = vpack.c.bf16 %v1103_v39, %v1099_v44  ;;  %v1098_v49 = vld [vmem:[%s7967_s1 + $0x2180] sm:$0xff]  ;;  %v1112_v3 = vld [vmem:[%s7967_s1 + $0x21f0] sm:$0xff]  ;;  %v1119_v38 = vld [vmem:[%s7967_s1 + $0x2228] sm:$0xff] }
 0x208   :  { %3973 = vmatprep.subr.bf16.mxu1 %v3972_v55  ;;  %1931 = vmatprep.mubr.f32.mxu0 %v1280_v24  ;;  %v1104_v55 = vld [vmem:[%s7967_s1 + $0x21b0] sm:$0xff]  ;;  %v3418_v59 = vpack.c.bf16 %v1102_v52, %v1098_v49  ;;  %v3998_v7 = vpack.c.bf16 %v1112_v3, %v1108_v1  ;;  %v1141_v44 = vld [vmem:[%s7967_s1 + $0x22d8] sm:$0xff]  ;;  %v1159_v3 = vld [vmem:[%s7967_s1 + $0x2368] sm:$0xff] }
 0x209   :  { %2570 = vmatprep.mubr.f32.mxu1 %v1280_v24  ;;  %v1113_v24 = vld [vmem:[%s7967_s1 + $0x21f8] sm:$0xff]  ;;  %v3994_v23 = vpack.c.bf16 %v1104_v55, %v1100_v53  ;;  %v1136_v41 = vld [vmem:[%s7967_s1 + $0x22b0] sm:$0xff]  ;;  %v1151_v55 = vld [vmem:[%s7967_s1 + $0x2328] sm:$0xff] }
 0x20a   :  { %3399 = vmatpush1.bf16.msra.mxu0 %v3398_v60  ;;  %v3420_v60 = vpack.c.bf16 %v1111_v57, %v1107_v56  ;;  %v3996_v2 = vpack.c.bf16 %v1113_v24, %v1109_v58  ;;  %v1145_v39 = vld [vmem:[%s7967_s1 + $0x22f8] sm:$0xff]  ;;  %v4010_v46 = vpack.c.bf16 %v1136_v41, %v1132_v37  ;;  %v1140_v49 = vld [vmem:[%s7967_s1 + $0x22d0] sm:$0xff]  ;;  %v2598_v41 = vld [vmem:[%s7969_s3 + $0x88] sm:$0xff] }
 0x20b   :  { %3975 = vmatpush1.bf16.msra.mxu1 %v3974_v63  ;;  %3401 = vmatprep.subr.bf16.mxu0 %v3400_v0  ;;  %v1106_v63 = vld [vmem:[%s7967_s1 + $0x21c0] sm:$0xff]  ;;  %v4012_v52 = vpack.c.bf16 %v1145_v39, %v1141_v44  ;;  %v1144_v53 = vld [vmem:[%s7967_s1 + $0x22f0] sm:$0xff]  ;;  %v1149_v56 = vld [vmem:[%s7967_s1 + $0x2318] sm:$0xff] }
 0x20c   :  { %3977 = vmatprep.subr.bf16.mxu1 %v3976_v4  ;;  %v1110_v0 = vld [vmem:[%s7967_s1 + $0x21e0] sm:$0xff]  ;;  %v1115_v4 = vld [vmem:[%s7967_s1 + $0x2208] sm:$0xff]  ;;  %v1153_v57 = vld [vmem:[%s7967_s1 + $0x2338] sm:$0xff]  ;;  %v4014_v24 = vpack.c.bf16 %v1144_v53, %v1140_v49 }
 0x20d   :  { %v3422_v51 = vpack.c.bf16 %v1110_v0, %v1106_v63  ;;  %v1148_v63 = vld [vmem:[%s7967_s1 + $0x2310] sm:$0xff]  ;;  %v4016_v0 = vpack.c.bf16 %v1153_v57, %v1149_v56  ;;  %v2614_v49 = vld [vmem:[%s7969_s3 + $0x108] sm:$0xff]  ;;  %v2600_v53 = vld [vmem:[%s7969_s3 + $0x98] sm:$0xff] }
 0x20e   :  { %3403 = vmatpush1.bf16.msra.mxu0 %v3402_v8  ;;  %v3424_v8 = vpack.c.bf16 %v1119_v38, %v1115_v4  ;;  %v1152_v1 = vld [vmem:[%s7967_s1 + $0x2330] sm:$0xff]  ;;  %v1157_v4 = vld [vmem:[%s7967_s1 + $0x2358] sm:$0xff] }
 0x20f   :  { %3979 = vmatpush1.bf16.msra.mxu1 %v3978_v45  ;;  %3405 = vmatprep.subr.bf16.mxu0 %v3404_v9  ;;  %v1114_v45 = vld [vmem:[%s7967_s1 + $0x2200] sm:$0xff]  ;;  %v1161_v38 = vld [vmem:[%s7967_s1 + $0x2378] sm:$0xff]  ;;  %v4018_v6 = vpack.c.bf16 %v1152_v1, %v1148_v63  ;;  %v1176_v37 = vld [vmem:[%s7967_s1 + $0x23f0] sm:$0xff] }
 0x210   :  { %3981 = vmatprep.subr.bf16.mxu1 %v3980_v16  ;;  %v1118_v9 = vld [vmem:[%s7967_s1 + $0x2220] sm:$0xff]  ;;  %v1123_v16 = vld [vmem:[%s7967_s1 + $0x2248] sm:$0xff]  ;;  %v2616_v63 = vld [vmem:[%s7969_s3 + $0x118] sm:$0xff] }
 0x211   :  { %v3426_v20 = vpack.c.bf16 %v1118_v9, %v1114_v45  ;;  %v1156_v45 = vld [vmem:[%s7967_s1 + $0x2350] sm:$0xff]  ;;  %v4020_v9 = vpack.c.bf16 %v1161_v38, %v1157_v4  ;;  %v2602_v1 = vld [vmem:[%s7969_s3 + $0xa8] sm:$0xff] }
 0x212   :  { %3407 = vmatpush1.bf16.msra.mxu0 %v3406_v21  ;;  %v3428_v21 = vpack.c.bf16 %v1127_v17, %v1123_v16  ;;  %v1165_v16 = vld [vmem:[%s7967_s1 + $0x2398] sm:$0xff]  ;;  %v4022_v19 = vpack.c.bf16 %v1160_v10, %v1156_v45  ;;  %v2603_v45 = vld [vmem:[%s7969_s3 + $0xb0] sm:$0xff] }
 0x213   :  { %3983 = vmatpush1.bf16.msra.mxu1 %v3982_v22  ;;  %3409 = vmatprep.subr.bf16.mxu0 %v3408_v26  ;;  %v1122_v22 = vld [vmem:[%s7967_s1 + $0x2240] sm:$0xff]  ;;  %v1169_v17 = vld [vmem:[%s7967_s1 + $0x23b8] sm:$0xff]  ;;  %v2635_v10 = vld [vmem:[%s7969_s3 + $0x1b0] sm:$0xff] }
 0x214   :  { %3985 = vmatprep.subr.bf16.mxu1 %v3984_v30  ;;  %v1126_v26 = vld [vmem:[%s7967_s1 + $0x2260] sm:$0xff]  ;;  %v1131_v30 = vld [vmem:[%s7967_s1 + $0x2288] sm:$0xff] }
 0x215   :  { %v3430_v13 = vpack.c.bf16 %v1126_v26, %v1122_v22  ;;  %v1164_v22 = vld [vmem:[%s7967_s1 + $0x2390] sm:$0xff]  ;;  %v4024_v26 = vpack.c.bf16 %v1169_v17, %v1165_v16 }
 0x216   :  { %3411 = vmatpush1.bf16.msra.mxu0 %v3410_v35  ;;  %v3432_v35 = vpack.c.bf16 %v1135_v31, %v1131_v30  ;;  %v1173_v30 = vld [vmem:[%s7967_s1 + $0x23d8] sm:$0xff]  ;;  %v4026_v33 = vpack.c.bf16 %v1168_v27, %v1164_v22  ;;  %v2605_v22 = vld [vmem:[%s7969_s3 + $0xc0] sm:$0xff] }
 0x217   :  { %3987 = vmatpush1.bf16.msra.mxu1 %v3986_v62  ;;  %3413 = vmatprep.subr.bf16.mxu0 %v3412_v36  ;;  %v1130_v62 = vld [vmem:[%s7967_s1 + $0x2280] sm:$0xff]  ;;  %v1177_v31 = vld [vmem:[%s7967_s1 + $0x23f8] sm:$0xff] }
 0x218   :  { %3989 = vmatprep.subr.bf16.mxu1 %v3988_v42  ;;  %v1134_v36 = vld [vmem:[%s7967_s1 + $0x22a0] sm:$0xff]  ;;  %v1139_v42 = vld [vmem:[%s7967_s1 + $0x22c8] sm:$0xff] }
 0x219   :  { %v3434_v11 = vpack.c.bf16 %v1134_v36, %v1130_v62  ;;  %v1172_v62 = vld [vmem:[%s7967_s1 + $0x23d0] sm:$0xff]  ;;  %v4028_v36 = vpack.c.bf16 %v1177_v31, %v1173_v30  ;;  %v2637_v27 = vld [vmem:[%s7969_s3 + $0x1c0] sm:$0xff] }
 0x21a   :  { %3415 = vmatpush1.bf16.msra.mxu0 %v3414_v47  ;;  %v3436_v47 = vpack.c.bf16 %v1143_v43, %v1139_v42  ;;  %v2629_v42 = vld [vmem:[%s7969_s3 + $0x180] sm:$0xff]  ;;  %v2630_v43 = vld [vmem:[%s7969_s3 + $0x188] sm:$0xff]  ;;  %v4030_v39 = vpack.c.bf16 %v1176_v37, %v1172_v62  ;;  %v2607_v62 = vld [vmem:[%s7969_s3 + $0xd0] sm:$0xff] }
 0x21b   :  { %3991 = vmatpush1.bf16.msra.mxu1 %v3990_v25  ;;  %3417 = vmatprep.subr.bf16.mxu0 %v3416_v48  ;;  %v1138_v25 = vld [vmem:[%s7967_s1 + $0x22c0] sm:$0xff]  ;;  %v2639_v37 = vld [vmem:[%s7969_s3 + $0x1d0] sm:$0xff] }
 0x21c   :  { %3993 = vmatprep.subr.bf16.mxu1 %v3992_v54  ;;  %v1142_v48 = vld [vmem:[%s7967_s1 + $0x22e0] sm:$0xff]  ;;  %v1147_v54 = vld [vmem:[%s7967_s1 + $0x2308] sm:$0xff] }
 0x21d   :  { %v3438_v58 = vpack.c.bf16 %v1142_v48, %v1138_v25  ;;  %v2613_v25 = vld [vmem:[%s7969_s3 + $0x100] sm:$0xff]  ;;  %v4064_v48 = vpack.c.bf16 %v2630_v43, %v2629_v42 }
 0x21e   :  { %3419 = vmatpush1.bf16.msra.mxu0 %v3418_v59  ;;  %v3440_v59 = vpack.c.bf16 %v1151_v55, %v1147_v54  ;;  %v2631_v54 = vld [vmem:[%s7969_s3 + $0x190] sm:$0xff]  ;;  %v2632_v55 = vld [vmem:[%s7969_s3 + $0x198] sm:$0xff]  ;;  %v4066_v57 = vpack.c.bf16 %v2614_v49, %v2613_v25  ;;  %v2609_v25 = vld [vmem:[%s7969_s3 + $0xe0] sm:$0xff] }
 0x21f   :  { %3995 = vmatpush1.bf16.msra.mxu1 %v3994_v23  ;;  %3421 = vmatprep.subr.bf16.mxu0 %v3420_v60  ;;  %v1146_v23 = vld [vmem:[%s7967_s1 + $0x2300] sm:$0xff] }
 0x220   :  { %3997 = vmatprep.subr.bf16.mxu1 %v3996_v2  ;;  %v1150_v60 = vld [vmem:[%s7967_s1 + $0x2320] sm:$0xff]  ;;  %v1155_v2 = vld [vmem:[%s7967_s1 + $0x2348] sm:$0xff] }
 0x221   :  { %v3442_v5 = vpack.c.bf16 %v1150_v60, %v1146_v23  ;;  %v2615_v23 = vld [vmem:[%s7969_s3 + $0x110] sm:$0xff]  ;;  %v4068_v60 = vpack.c.bf16 %v2632_v55, %v2631_v54  ;;  %v2641_v49 = vld [vmem:[%s7969_s3 + $0x1e0] sm:$0xff] }
 0x222   :  { %3423 = vmatpush1.bf16.msra.mxu0 %v3422_v51  ;;  %v3444_v51 = vpack.c.bf16 %v1159_v3, %v1155_v2  ;;  %v2633_v2 = vld [vmem:[%s7969_s3 + $0x1a0] sm:$0xff]  ;;  %v2634_v3 = vld [vmem:[%s7969_s3 + $0x1a8] sm:$0xff]  ;;  %v4070_v38 = vpack.c.bf16 %v2616_v63, %v2615_v23  ;;  %v2611_v63 = vld [vmem:[%s7969_s3 + $0xf0] sm:$0xff] }
 0x223   :  { %3999 = vmatpush1.bf16.msra.mxu1 %v3998_v7  ;;  %3425 = vmatprep.subr.bf16.mxu0 %v3424_v8  ;;  %v1154_v7 = vld [vmem:[%s7967_s1 + $0x2340] sm:$0xff]  ;;  %v2626_v23 = vld [vmem:[%s7969_s3 + $0x168] sm:$0xff] }
 0x224   :  { %4001 = vmatprep.subr.bf16.mxu1 %v4000_v14  ;;  %v1158_v8 = vld [vmem:[%s7967_s1 + $0x2360] sm:$0xff]  ;;  %v1163_v14 = vld [vmem:[%s7967_s1 + $0x2388] sm:$0xff] }
 0x225   :  { %v3446_v18 = vpack.c.bf16 %v1158_v8, %v1154_v7  ;;  %v2617_v7 = vld [vmem:[%s7969_s3 + $0x120] sm:$0xff]  ;;  %v2618_v8 = vld [vmem:[%s7969_s3 + $0x128] sm:$0xff] }
 0x226   :  { %3427 = vmatpush1.bf16.msra.mxu0 %v3426_v20  ;;  %v3448_v20 = vpack.c.bf16 %v1167_v15, %v1163_v14  ;;  %v2636_v14 = vld [vmem:[%s7969_s3 + $0x1b8] sm:$0xff]  ;;  %v4074_v16 = vpack.c.bf16 %v2618_v8, %v2617_v7  ;;  %v1182_v8 = vsub.s32 0, %v4446_v61 }
 0x227   :  { %4003 = vmatpush1.bf16.msra.mxu1 %v4002_v50  ;;  %3429 = vmatprep.subr.bf16.mxu0 %v3428_v21  ;;  %v1162_v50 = vld [vmem:[%s7967_s1 + $0x2380] sm:$0xff]  ;;  %v2628_v7 = vld [vmem:[%s7969_s3 + $0x178] sm:$0xff] }
 0x228   :  { %4005 = vmatprep.subr.bf16.mxu1 %v4004_v28  ;;  %v1166_v21 = vld [vmem:[%s7967_s1 + $0x23a0] sm:$0xff]  ;;  %v1171_v28 = vld [vmem:[%s7967_s1 + $0x23c8] sm:$0xff] }
 0x229   :  { %v3450_v32 = vpack.c.bf16 %v1166_v21, %v1162_v50  ;;  %v4076_v50 = vpack.c.bf16 %v2636_v14, %v2635_v10  ;;  %v2620_v21 = vld [vmem:[%s7969_s3 + $0x138] sm:$0xff]  ;;  %v1186_v10 = vsub.s32 1, %v4446_v61  ;;  %v1194_v14 = vsub.s32 3, %v4446_v61 }
 0x22a   :  { %3431 = vmatpush1.bf16.msra.mxu0 %v3430_v13  ;;  %v3452_v13 = vpack.c.bf16 %v1175_v29, %v1171_v28  ;;  %v2638_v28 = vld [vmem:[%s7969_s3 + $0x1c8] sm:$0xff] }
 0x22b   :  { %4007 = vmatpush1.bf16.msra.mxu1 %v4006_v34  ;;  %3433 = vmatprep.subr.bf16.mxu0 %v3432_v35  ;;  %v1170_v34 = vld [vmem:[%s7967_s1 + $0x23c0] sm:$0xff] }
 0x22c   :  { %4009 = vmatprep.subr.bf16.mxu1 %v4008_v40  ;;  %v1174_v35 = vld [vmem:[%s7967_s1 + $0x23e0] sm:$0xff] }
 0x22d   :  { %v2597_v40 = vld [vmem:[%s7969_s3 + $0x80] sm:$0xff]  ;;  %v3454_v44 = vpack.c.bf16 %v1174_v35, %v1170_v34  ;;  %v4080_v34 = vpack.c.bf16 %v2638_v28, %v2637_v27  ;;  %v2622_v35 = vld [vmem:[%s7969_s3 + $0x148] sm:$0xff] }
 0x22e   :  { %3435 = vmatpush1.bf16.msra.mxu0 %v3434_v11  ;;  %v4032_v11 = vpack.c.bf16 %v2598_v41, %v2597_v40  ;;  %v2640_v40 = vld [vmem:[%s7969_s3 + $0x1d8] sm:$0xff] }
 0x22f   :  { %4011 = vmatpush1.bf16.msra.mxu1 %v4010_v46  ;;  %3437 = vmatprep.subr.bf16.mxu0 %v3436_v47  ;;  %v2581_v46 = vld [vmem:[%s7969_s3] sm:$0xff]  ;;  %v2582_v47 = vld [vmem:[%s7969_s3 + $0x8] sm:$0xff] }
 0x230   :  { %4013 = vmatprep.subr.bf16.mxu1 %v4012_v52  ;;  %v2599_v52 = vld [vmem:[%s7969_s3 + $0x90] sm:$0xff]  ;;  %v4034_v56 = vpack.c.bf16 %v2582_v47, %v2581_v46  ;;  %v4084_v46 = vpack.c.bf16 %v2640_v40, %v2639_v37  ;;  %v2624_v47 = vld [vmem:[%s7969_s3 + $0x158] sm:$0xff] }
 0x232   :  { %3439 = vmatpush1.bf16.msra.mxu0 %v3438_v58  ;;  %v4036_v58 = vpack.c.bf16 %v2600_v53, %v2599_v52  ;;  %v2642_v52 = vld [vmem:[%s7969_s3 + $0x1e8] sm:$0xff] }
 0x233   :  { %4015 = vmatpush1.bf16.msra.mxu1 %v4014_v24  ;;  %3441 = vmatprep.subr.bf16.mxu0 %v3440_v59  ;;  %v2583_v24 = vld [vmem:[%s7969_s3 + $0x10] sm:$0xff]  ;;  %v2584_v59 = vld [vmem:[%s7969_s3 + $0x18] sm:$0xff] }
 0x234   :  { %4017 = vmatprep.subr.bf16.mxu1 %v4016_v0  ;;  %v2601_v0 = vld [vmem:[%s7969_s3 + $0xa0] sm:$0xff]  ;;  %v4038_v4 = vpack.c.bf16 %v2584_v59, %v2583_v24 }
 0x235   :  { %v2625_v24 = vld [vmem:[%s7969_s3 + $0x160] sm:$0xff] }
 0x236   :  { %3443 = vmatpush1.bf16.msra.mxu0 %v3442_v5  ;;  %v4040_v5 = vpack.c.bf16 %v2602_v1, %v2601_v0  ;;  %v2612_v0 = vld [vmem:[%s7969_s3 + $0xf8] sm:$0xff]  ;;  %v2643_v1 = vld [vmem:[%s7969_s3 + $0x1f0] sm:$0xff] }
 0x237   :  { %4019 = vmatpush1.bf16.msra.mxu1 %v4018_v6  ;;  %3445 = vmatprep.subr.bf16.mxu0 %v3444_v51  ;;  %v2585_v6 = vld [vmem:[%s7969_s3 + $0x20] sm:$0xff]  ;;  %v2586_v51 = vld [vmem:[%s7969_s3 + $0x28] sm:$0xff] }
 0x238   :  { %4021 = vmatprep.subr.bf16.mxu1 %v4020_v9  ;;  %v2604_v9 = vld [vmem:[%s7969_s3 + $0xb8] sm:$0xff]  ;;  %v4042_v15 = vpack.c.bf16 %v2586_v51, %v2585_v6  ;;  %v2627_v51 = vld [vmem:[%s7969_s3 + $0x170] sm:$0xff] }
 0x239   :  { %v4044_v17 = vpack.c.bf16 %v2604_v9, %v2603_v45  ;;  %v1178_v45 = vld [vmem:[%s7968_s2] sm:$0xf]  ;;  %v1190_v9 = vsub.s32 2, %v4446_v61 }
 0x23a   :  { %3447 = vmatpush1.bf16.msra.mxu0 %v3446_v18  ;;  %v2587_v18 = vld [vmem:[%s7969_s3 + $0x30] sm:$0xff] }
 0x23b   :  { %4023 = vmatpush1.bf16.msra.mxu1 %v4022_v19  ;;  %3449 = vmatprep.subr.bf16.mxu0 %v3448_v20  ;;  %v2588_v19 = vld [vmem:[%s7969_s3 + $0x38] sm:$0xff]  ;;  %v2619_v20 = vld [vmem:[%s7969_s3 + $0x130] sm:$0xff] }
 0x23c   :  { %4025 = vmatprep.subr.bf16.mxu1 %v4024_v26  ;;  %v2606_v26 = vld [vmem:[%s7969_s3 + $0xc8] sm:$0xff]  ;;  %v4046_v29 = vpack.c.bf16 %v2588_v19, %v2587_v18  ;;  %v4078_v30 = vpack.c.bf16 %v2620_v21, %v2619_v20  ;;  %v1195_v18 = vrot.slane %v1178_v45, %v1194_v14 }
 0x23d   :  { %v4048_v31 = vpack.c.bf16 %v2606_v26, %v2605_v22 }
 0x23e   :  { %3451 = vmatpush1.bf16.msra.mxu0 %v3450_v32  ;;  %v2589_v32 = vld [vmem:[%s7969_s3 + $0x40] sm:$0xff] }
 0x23f   :  { %4027 = vmatpush1.bf16.msra.mxu1 %v4026_v33  ;;  %3453 = vmatprep.subr.bf16.mxu0 %v3452_v13  ;;  %v2590_v33 = vld [vmem:[%s7969_s3 + $0x48] sm:$0xff]  ;;  %v2621_v13 = vld [vmem:[%s7969_s3 + $0x140] sm:$0xff] }
 0x240   :  { %4029 = vmatprep.subr.bf16.mxu1 %v4028_v36  ;;  %v2608_v36 = vld [vmem:[%s7969_s3 + $0xd8] sm:$0xff]  ;;  %v4050_v41 = vpack.c.bf16 %v2590_v33, %v2589_v32  ;;  %v4082_v42 = vpack.c.bf16 %v2622_v35, %v2621_v13  ;;  %v2809_v13 = vld [vmem:[%s7970_s4] ss:$0 sm:$0xff] }
 0x241   :  { %v4052_v43 = vpack.c.bf16 %v2608_v36, %v2607_v62 }
 0x242   :  { %3455 = vmatpush1.bf16.msra.mxu0 %v3454_v44  ;;  %v2591_v44 = vld [vmem:[%s7969_s3 + $0x50] sm:$0xff] }
 0x243   :  { %4031 = vmatpush1.bf16.msra.mxu1 %v4030_v39  ;;  %4033 = vmatprep.subr.bf16.mxu0 %v4032_v11  ;;  %v2592_v39 = vld [vmem:[%s7969_s3 + $0x58] sm:$0xff]  ;;  %v2623_v11 = vld [vmem:[%s7969_s3 + $0x150] sm:$0xff] }
 0x244   :  { %4065 = vmatprep.subr.bf16.mxu1 %v4064_v48  ;;  %v2610_v48 = vld [vmem:[%s7969_s3 + $0xe8] sm:$0xff]  ;;  %v4054_v53 = vpack.c.bf16 %v2592_v39, %v2591_v44  ;;  %v4086_v54 = vpack.c.bf16 %v2624_v47, %v2623_v11 }
 0x245   :  { %1932 = vmatmul.mubr.f32.vlgmr.msra.gmra.mrb[0].mxu0 %v7396_v12  ;;  %v4056_v55 = vpack.c.bf16 %v2610_v48, %v2609_v25 }
 0x246   :  { %2571 = vmatmul.mubr.f32.vlgmr.msra.gmra.mrb[0].mxu1 %v7396_v12  ;;  %4035 = vmatpush3.bf16.msra.mxu0 %v4034_v56  ;;  %v4072_v12 = vpack.c.bf16 %v2634_v3, %v2633_v2  ;;  %v4088_v56 = vpack.c.bf16 %v2642_v52, %v2641_v49  ;;  %v4060_v2 = vpack.c.bf16 %v2612_v0, %v2611_v63  ;;  %v2644_v3 = vld [vmem:[%s7969_s3 + $0x1f8] sm:$0xff] }
 0x247   :  { %4067 = vmatpush3.bf16.msra.mxu1 %v4066_v57  ;;  %4037 = vmatprep.subr.bf16.mxu0 %v4036_v58  ;;  %v2593_v57 = vld [vmem:[%s7969_s3 + $0x60] sm:$0xff]  ;;  %v2594_v58 = vld [vmem:[%s7969_s3 + $0x68] sm:$0xff] }
 0x248   :  { %4069 = vmatprep.subr.bf16.mxu1 %v4068_v60  ;;  %v4058_v59 = vpack.c.bf16 %v2594_v58, %v2593_v57  ;;  %v4090_v60 = vpack.c.bf16 %v2626_v23, %v2625_v24 }
 0x24a   :  { %4039 = vmatpush3.bf16.msra.mxu0 %v4038_v4  ;;  %v2595_v4 = vld [vmem:[%s7969_s3 + $0x70] sm:$0xff] }
 0x24b   :  { %4071 = vmatpush3.bf16.msra.mxu1 %v4070_v38  ;;  %4041 = vmatprep.subr.bf16.mxu0 %v4040_v5  ;;  %v2596_v38 = vld [vmem:[%s7969_s3 + $0x78] sm:$0xff]  ;;  %v4092_v5 = vpack.c.bf16 %v2644_v3, %v2643_v1 }
 0x24c   :  { %4073 = vmatprep.subr.bf16.mxu1 %v4072_v12  ;;  %v4062_v6 = vpack.c.bf16 %v2596_v38, %v2595_v4  ;;  %v4094_v12 = vpack.c.bf16 %v2628_v7, %v2627_v51 }
 0x24e   :  { %4043 = vmatpush3.bf16.msra.mxu0 %v4042_v15  ;;  %v1183_v15 = vrot.slane %v1178_v45, %v1182_v8 }
 0x24f   :  { %4075 = vmatpush3.bf16.msra.mxu1 %v4074_v16  ;;  %4045 = vmatprep.subr.bf16.mxu0 %v4044_v17  ;;  %v1191_v16 = vrot.slane %v1178_v45, %v1190_v9  ;;  %v1187_v17 = vrot.slane %v1178_v45, %v1186_v10 }
 0x250   :  { %4077 = vmatprep.subr.bf16.mxu1 %v4076_v50 }
 0x252   :  { %4047 = vmatpush3.bf16.msra.mxu0 %v4046_v29 }
 0x253   :  { %4079 = vmatpush3.bf16.msra.mxu1 %v4078_v30  ;;  %4049 = vmatprep.subr.bf16.mxu0 %v4048_v31 }
 0x254   :  { %4081 = vmatprep.subr.bf16.mxu1 %v4080_v34 }
 0x256   :  { %4051 = vmatpush3.bf16.msra.mxu0 %v4050_v41 }
 0x257   :  { %4083 = vmatpush3.bf16.msra.mxu1 %v4082_v42  ;;  %4053 = vmatprep.subr.bf16.mxu0 %v4052_v43 }
 0x258   :  { %4085 = vmatprep.subr.bf16.mxu1 %v4084_v46 }
 0x25a   :  { %4055 = vmatpush3.bf16.msra.mxu0 %v4054_v53 }
 0x25b   :  { %4087 = vmatpush3.bf16.msra.mxu1 %v4086_v54  ;;  %4057 = vmatprep.subr.bf16.mxu0 %v4056_v55 }
 0x25c   :  { %4089 = vmatprep.subr.bf16.mxu1 %v4088_v56 }
 0x25e   :  { %4059 = vmatpush3.bf16.msra.mxu0 %v4058_v59 }
 0x25f   :  { %4091 = vmatpush3.bf16.msra.mxu1 %v4090_v60  ;;  %4061 = vmatprep.subr.bf16.mxu0 %v4060_v2 }
 0x260   :  { %4093 = vmatprep.subr.bf16.mxu1 %v4092_v5 }
 0x262   :  { %4063 = vmatpush3.bf16.msra.mxu0 %v4062_v6 }
 0x263   :  { %4095 = vmatpush3.bf16.msra.mxu1 %v4094_v12 }
 0x318   :  { %v1933_v19 = vpop.f32.mrb[0].mxu0 }
 0x319   :  { %v4096_v20 = vadd.f32 %v1933_v19, %v1183_v15  ;;  %v2572_v50 = vpop.f32.mrb[0].mxu1  ;;  %v1935_v21 = vpop.f32.mrb[1].mxu0 }
 0x31a   :  { %v4098_v22 = vadd.f32 %v2572_v50, %v1191_v16  ;;  %v4097_v26 = vadd.f32 %v1935_v21, %v1187_v17  ;;  %v2574_v27 = vpop.f32.mrb[1].mxu1 }
 0x31b   :  { %v4099_v28 = vadd.f32 %v2574_v27, %v1195_v18  ;;  %v2577_v30 = vmax.f32 %v4096_v20, 0.0 }
 0x31c   :  { %v2578_v29 = vmax.f32 %v4097_v26, 0.0  ;;  %v2579_v32 = vmax.f32 %v4098_v22, 0.0 }
 0x31d   :  { %v2580_v31 = vmax.f32 %v4099_v28, 0.0 }
 0x31e   :  { %2716 = vmatprep.mubr.f32.mxu0 %v2578_v29 }
 0x31f   :  { %2786 = vmatprep.mubr.f32.mxu1 %v2580_v31  ;;  %2717 = vmatmul.mubr.f32.vlgmr.msra.gmra.mrb[2].mxu0 %v2577_v30 }
 0x320   :  { %2787 = vmatmul.mubr.f32.vlgmr.msra.gmra.mrb[2].mxu1 %v2579_v32 }
 0x3f2   :  { %v2842_v61 = vpop.f32.mrb[2].mxu0 }
 0x3f3   :  { %v2877_v33 = vpop.f32.mrb[2].mxu1  ;;  %v2843_v34 = vpop.f32.mrb[3].mxu0 }
 0x3f4   :  { %v2844_v35 = vadd.f32 %v2843_v34, %v2842_v61  ;;  %v2878_v62 = vpop.f32.mrb[3].mxu1 }
 0x3f5   :  { %v2879_v36 = vadd.f32 %v2878_v62, %v2877_v33 }
 0x3f6   :  { %v2719_v37 = vadd.f32 %v2844_v35, %v2809_v13 }
 0x3f8   :  { %v2789_v40 = vadd.f32 %v2879_v36, %v2719_v37 }
 0x3fa   :  { %2793 = vst.msk [vmem:[#allocation2] sm:$0x3] %vm2792_vm0, %v2789_v40 }
 0x3fb   :  { %4149 = shalt.err (!%p4146_p4)
}
 0x3fc   :  { %s4150_s22 = scalar_lea.hbm %s7971_s5, 32 }
 0x3fd   :  { %p4151_p5 = scmp.ne.s32.totalorder %s7971_s5, %s4150_s22  ;;  %p4154_p6 = scmp.lt.u32.totalorder %s4150_s22, %s7971_s5 }
 0x3ff   :  { %p4156_p7 = pnand %p4154_p6, %p4151_p5 }
 0x401   :  { %4159 = shalt.err (!%p4156_p7)
}
 0x402   :  { %2803 = dma.vmem_to_hbm [thread:$0]  %s2801_s19, 32, %s7971_s5, [#allocation3]  }
 0x403   :  { %4160 = dma.done.wait [#allocation3], 32  }
 0x404   :  { %4161 = vsyncadd [#allocation3], 4294967264 }
 0x405   :  { %2807 = vsyncpa [#allocation3], 1 }

</bundles_post_ra>
